<compile_context>
chip_gen: v7x
topology: tpu7x:2x2x1
jax: 0.10.0
libtpu: 0.0.40
codegen_flags: <defaults>
</compile_context>

<pallas_src>
import functools

import jax
import jax.numpy as jnp
from jax.experimental import pallas as pl
from jax.experimental.pallas import tpu as pltpu

EPS = 1e-12          # spectral-norm eps (Conv2DSpectralNorm default)
NEG_SLOPE = 0.2      # LeakyReLU negative slope
KSIZE = 5
STRIDE = 2
PAD = (KSIZE - 1) // 2


def _round_up(x, m):
    return ((x + m - 1) // m) * m


def _dconv_kernel(x00, x01, x10, x11, w_ref, b_ref, o_ref, *, taps, tile_ho, wt):
    """Fused 5x5 / stride-2 spectral-norm conv + bias + LeakyReLU.

    One grid step = (one image, one tile of output rows), computed as
    len(taps) shifted matmuls accumulated in f32.

    x{p}{q} : (Hh, Wh, Cin) bf16  row/col parity-(p,q) view of the padded input
    w_ref   : (K*K, Cin, Np) bf16 per-tap (W / sigma), Cout zero-padded to Np
    b_ref   : (1, Np)        f32  bias (zero padded)
    o_ref   : (tile_ho, Wt, Np)   output block (bf16 between layers)
    """
    t = pl.program_id(1)
    parity = ((x00, x01), (x10, x11))
    np_ = o_ref.shape[-1]
    row_base = t * tile_ho

    acc = jnp.zeros((tile_ho * wt, np_), jnp.float32)
    for kh, kw in taps:                       # static unroll over live taps
        src = parity[kh % 2][kw % 2]
        sl = src[pl.ds(row_base + kh // 2, tile_ho), pl.ds(kw // 2, wt), :]
        lhs = sl.reshape(tile_ho * wt, sl.shape[-1])   # layout-preserving (wt % 8 == 0)
        acc = acc + jnp.dot(lhs, w_ref[kh * KSIZE + kw],
                            preferred_element_type=jnp.float32)

    y = acc + b_ref[...]
    y = jnp.where(y >= 0, y, NEG_SLOPE * y)
    o_ref[...] = y.reshape(tile_ho, wt, np_).astype(o_ref.dtype)


def dconv_forward_nhwc(x, weight, bias, weight_u, out_dtype=jnp.bfloat16):
    """DConv forward (spectral-norm conv, stride 2, 'auto' pad + LeakyReLU).

    x        : (N, H, W, Cin) NHWC activations (f32 or bf16)
    weight   : (Cout, Cin, K, K) f32  (PyTorch OIHW layout)
    bias     : (Cout,) f32
    weight_u : (Cout, 1) f32 power-iteration vector

    Returns (y_nhwc out_dtype, u_new).
    """
    N, H, W, Cin = x.shape
    Cout = weight.shape[0]
    K = KSIZE
    Ho = (H + 2 * PAD - K) // STRIDE + 1
    Wo = (W + 2 * PAD - K) // STRIDE + 1

    # ---- spectral norm (1 power iteration) hoisted out of the kernel (tiny) ----
    w2 = weight.reshape(Cout, -1).astype(jnp.float32)
    u = weight_u.reshape(Cout, 1).astype(jnp.float32)
    v = w2.T @ u
    v = v / jnp.maximum(jnp.linalg.norm(v), EPS)
    u_new = w2 @ v
    u_new = u_new / jnp.maximum(jnp.linalg.norm(u_new), EPS)
    sigma = (u_new.T @ w2 @ v)[0, 0]
    inv_sigma = 1.0 / sigma                       # exact divide (accuracy-critical)

    # ---- static tiling decisions ----
    Np = _round_up(Cout, 128)                     # lane-dense output columns
    Wt = _round_up(Wo, 8)                         # sublane-aligned output width
    ACC_BUDGET = 4 * 1024 * 1024                  # f32 accumulator bytes / step
    tile_ho_max = max(1, ACC_BUDGET // (Wt * Np * 4))
    n_ho = -(-Ho // tile_ho_max)
    tile_ho = -(-Ho // n_ho)
    Ho_pad = n_ho * tile_ho

    # ---- zero-pad + row/col parity decomposition (bf16), replaces HBM im2col ----
    Hp = 2 * (Ho_pad + 2)
    Wp = 2 * (Wt + 2)
    xp = jnp.pad(x.astype(jnp.bfloat16),
                 ((0, 0), (PAD, Hp - H - PAD), (PAD, Wp - W - PAD), (0, 0)))
    x00 = xp[:, 0::2, 0::2, :]
    x01 = xp[:, 0::2, 1::2, :]
    x10 = xp[:, 1::2, 0::2, :]
    x11 = xp[:, 1::2, 1::2, :]
    Hh, Wh = Ho_pad + 2, Wt + 2                   # each parity view: (N, Hh, Wh, Cin)

    # ---- prune taps that can only ever read zero padding (tiny tail layers) ----
    taps = []
    for kh in range(K):
        if not any(PAD <= 2 * ho + kh < PAD + H for ho in range(Ho)):
            continue
        for kw in range(K):
            if not any(PAD <= 2 * wo + kw < PAD + W for wo in range(Wo)):
                continue
            taps.append((kh, kw))

    # ---- per-tap weights: (K*K, Cin, Np) bf16 with 1/sigma folded in ----
    w_taps = jnp.transpose(weight.astype(jnp.float32) * inv_sigma, (2, 3, 1, 0))
    w_taps = w_taps.reshape(K * K, Cin, Cout)
    w_taps = jnp.pad(w_taps, ((0, 0), (0, 0), (0, Np - Cout))).astype(jnp.bfloat16)
    b_row = jnp.pad(bias.reshape(1, Cout).astype(jnp.float32),
                    ((0, 0), (0, Np - Cout)))

    kernel = functools.partial(_dconv_kernel, taps=tuple(taps),
                               tile_ho=tile_ho, wt=Wt)
    par_spec = pl.BlockSpec((None, Hh, Wh, Cin), lambda n, t: (n, 0, 0, 0))

    out = pl.pallas_call(
        kernel,
        out_shape=jax.ShapeDtypeStruct((N, Ho_pad, Wt, Np), out_dtype),
        grid_spec=pltpu.PrefetchScalarGridSpec(
            num_scalar_prefetch=0,
            grid=(N, n_ho),
            in_specs=[
                par_spec, par_spec, par_spec, par_spec,
                # constant index_map -> weight DMA'd once, VMEM-resident
                pl.BlockSpec((K * K, Cin, Np), lambda n, t: (0, 0, 0)),
                pl.BlockSpec((1, Np), lambda n, t: (0, 0)),
            ],
            out_specs=pl.BlockSpec((None, tile_ho, Wt, Np),
                                   lambda n, t: (n, t, 0, 0)),
        ),
        compiler_params=pltpu.CompilerParams(
            dimension_semantics=("parallel", "arbitrary"),
            vmem_limit_bytes=32 * 1024 * 1024,   # small working set; v7x-safe
        ),
    )(x00, x01, x10, x11, w_taps, b_row)

    y = out[:, :Ho, :Wo, :Cout]                   # drop alignment padding, stay NHWC
    return y, u_new


# --------------------------- Discriminator ---------------------------------

def init_discriminator_params(key, cnum_in, cnum):
    """Parameters for the 6 DConv layers (PyTorch-like init, deterministic)."""
    channels = [cnum_in, cnum, 2 * cnum, 4 * cnum, 4 * cnum, 4 * cnum, 4 * cnum]
    params = []
    for i in range(6):
        cin, cout = channels[i], channels[i + 1]
        key, kw, kb, ku = jax.random.split(key, 4)
        fan_in = cin * KSIZE * KSIZE
        bound = 1.0 / jnp.sqrt(jnp.float32(fan_in))
        w = jax.random.uniform(kw, (cout, cin, KSIZE, KSIZE), jnp.float32,
                               -bound, bound)
        b = jax.random.uniform(kb, (cout,), jnp.float32, -bound, bound)
        # nn.init.trunc_normal_ default: N(0,1) truncated to [-2, 2]
        u = jax.random.truncated_normal(ku, -2.0, 2.0, (cout, 1), jnp.float32)
        params.append({"w": w, "b": b, "u": u})
    return params


def _discriminator_forward_impl(x_nchw, params):
    """6 x DConv (Pallas, bf16 between layers) then Flatten in NCHW order."""
    x = x_nchw.transpose(0, 2, 3, 1)              # NCHW -> NHWC once at boundary
    n_layers = len(params)
    for i, p in enumerate(params):
        out_dtype = jnp.float32 if i == n_layers - 1 else jnp.bfloat16
        x, _ = dconv_forward_nhwc(x, p["w"], p["b"], p["u"], out_dtype=out_dtype)
    n = x.shape[0]
    # Flatten must match PyTorch's NCHW ordering at the model boundary.
    return x.transpose(0, 3, 1, 2).reshape(n, -1)


discriminator_forward = jax.jit(_discriminator_forward_impl)


def discriminator_reference(x, params):
    """Pure-JAX f32 reference (spectral-norm conv + LeakyReLU, NCHW)."""
    for p in params:
        w, b, u = p["w"], p["b"], p["u"]
        cout = w.shape[0]
        w2 = w.reshape(cout, -1)
        v = w2.T @ u
        v = v / jnp.maximum(jnp.linalg.norm(v), EPS)
        u_new = w2 @ v
        u_new = u_new / jnp.maximum(jnp.linalg.norm(u_new), EPS)
        sigma = (u_new.T @ w2 @ v)[0, 0]
        w_sn = w / sigma
        y = jax.lax.conv_general_dilated(
            x, w_sn, (STRIDE, STRIDE), [(PAD, PAD), (PAD, PAD)],
            dimension_numbers=("NCHW", "OIHW", "NCHW"))
        y = y + b.reshape(1, cout, 1, 1)
        x = jnp.where(y >= 0, y, NEG_SLOPE * y)
    return x.reshape(x.shape[0], -1)


if __name__ == "__main__":
    # Small shapes consistent with Discriminator(cnum_in=4, cnum=8).
    N, cnum_in, H, W = 2, 4, 16, 16
    cnum = 8

    key = jax.random.PRNGKey(0)
    key, kx = jax.random.split(key)
    x = jax.random.normal(kx, (N, cnum_in, H, W), jnp.float32)
    params = init_discriminator_params(key, cnum_in, cnum)

    y = jax.block_until_ready(discriminator_forward(x, params))
    y_ref = jax.block_until_ready(discriminator_reference(x, params))

    # spatial: 16 -> 8 -> 4 -> 2 -> 1 -> 1 -> 1 ; final channels = 4*cnum
    assert y.shape == (N, 4 * cnum), y.shape
    # bf16 activations/weights in the Pallas path (f32 accumulate) vs f32 reference.
    assert jnp.allclose(y, y_ref, rtol=3e-2, atol=3e-2), float(
        jnp.max(jnp.abs(y - y_ref)))
    print("KERNEL_OK")
</pallas_src>

<mosaic_0001>
module attributes {stable_mosaic.version = 11 : i64} {
  func.func @_dconv_kernel(%arg0: i32, %arg1: i32, %arg2: memref<1x10x10x4xbf16, #tpu.memory_space<vmem>>, %arg3: memref<1x10x10x4xbf16, #tpu.memory_space<vmem>>, %arg4: memref<1x10x10x4xbf16, #tpu.memory_space<vmem>>, %arg5: memref<1x10x10x4xbf16, #tpu.memory_space<vmem>>, %arg6: memref<25x4x128xbf16, #tpu.memory_space<vmem>>, %arg7: memref<1x128xf32, #tpu.memory_space<vmem>>, %arg8: memref<1x8x8x128xbf16, #tpu.memory_space<vmem>>) attributes {dimension_semantics = [#tpu.dimension_semantics<parallel>, #tpu.dimension_semantics<arbitrary>], iteration_bounds = array<i64: 2, 1>, scalar_prefetch = 0 : i64, scratch_operands = 0 : i64, tpu.core_type = #tpu.core_type<tc>, window_params = [{transform_indices = @transform_0, window_bounds = array<i64: 1, 10, 10, 4>}, {transform_indices = @transform_1, window_bounds = array<i64: 1, 10, 10, 4>}, {transform_indices = @transform_2, window_bounds = array<i64: 1, 10, 10, 4>}, {transform_indices = @transform_3, window_bounds = array<i64: 1, 10, 10, 4>}, {pipeline_mode = #tpu.pipeline_mode<synchronous>, transform_indices = @transform_4, window_bounds = array<i64: 25, 4, 128>}, {pipeline_mode = #tpu.pipeline_mode<synchronous>, transform_indices = @transform_5, window_bounds = array<i64: 1, 128>}, {transform_indices = @transform_6, window_bounds = array<i64: 1, 8, 8, 128>}]} {
    %c8_i32 = arith.constant 8 : i32
    %0 = arith.muli %arg1, %c8_i32 : i32
    %cst = arith.constant 0.000000e+00 : f32
    %1 = vector.broadcast %cst : f32 to vector<64x128xf32>
    %c0_i32 = arith.constant 0 : i32
    %2 = arith.addi %0, %c0_i32 : i32
    %c0 = arith.constant 0 : index
    %3 = arith.index_cast %2 : i32 to index
    %c0_0 = arith.constant 0 : index
    %c0_1 = arith.constant 0 : index
    %4 = vector.load %arg2[%c0, %3, %c0_0, %c0_1] : memref<1x10x10x4xbf16, #tpu.memory_space<vmem>>, vector<1x8x8x4xbf16>
    %5 = vector.shape_cast %4 : vector<1x8x8x4xbf16> to vector<8x8x4xbf16>
    %6 = vector.shape_cast %5 : vector<8x8x4xbf16> to vector<64x4xbf16>
    %c0_2 = arith.constant 0 : index
    %c0_3 = arith.constant 0 : index
    %c0_4 = arith.constant 0 : index
    %7 = vector.load %arg6[%c0_2, %c0_3, %c0_4] : memref<25x4x128xbf16, #tpu.memory_space<vmem>>, vector<1x4x128xbf16>
    %8 = vector.shape_cast %7 : vector<1x4x128xbf16> to vector<4x128xbf16>
    %cst_5 = arith.constant dense<0.000000e+00> : vector<64x128xf32>
    %9 = tpu.matmul %6, %8, %cst_5 {dimension_numbers = #tpu.dot_dimension_numbers<[1], [0], [0], [1], [0, 0, 1, 1], [], []>} : vector<64x4xbf16>, vector<4x128xbf16>, vector<64x128xf32> -> vector<64x128xf32>
    %10 = arith.addf %1, %9 : vector<64x128xf32>
    %c0_i32_6 = arith.constant 0 : i32
    %11 = arith.addi %0, %c0_i32_6 : i32
    %c0_7 = arith.constant 0 : index
    %12 = arith.index_cast %11 : i32 to index
    %c0_8 = arith.constant 0 : index
    %c0_9 = arith.constant 0 : index
    %13 = vector.load %arg3[%c0_7, %12, %c0_8, %c0_9] : memref<1x10x10x4xbf16, #tpu.memory_space<vmem>>, vector<1x8x8x4xbf16>
    %14 = vector.shape_cast %13 : vector<1x8x8x4xbf16> to vector<8x8x4xbf16>
    %15 = vector.shape_cast %14 : vector<8x8x4xbf16> to vector<64x4xbf16>
    %c1 = arith.constant 1 : index
    %c0_10 = arith.constant 0 : index
    %c0_11 = arith.constant 0 : index
    %16 = vector.load %arg6[%c1, %c0_10, %c0_11] : memref<25x4x128xbf16, #tpu.memory_space<vmem>>, vector<1x4x128xbf16>
    %17 = vector.shape_cast %16 : vector<1x4x128xbf16> to vector<4x128xbf16>
    %cst_12 = arith.constant dense<0.000000e+00> : vector<64x128xf32>
    %18 = tpu.matmul %15, %17, %cst_12 {dimension_numbers = #tpu.dot_dimension_numbers<[1], [0], [0], [1], [0, 0, 1, 1], [], []>} : vector<64x4xbf16>, vector<4x128xbf16>, vector<64x128xf32> -> vector<64x128xf32>
    %19 = arith.addf %10, %18 : vector<64x128xf32>
    %c0_i32_13 = arith.constant 0 : i32
    %20 = arith.addi %0, %c0_i32_13 : i32
    %c0_14 = arith.constant 0 : index
    %21 = arith.index_cast %20 : i32 to index
    %c1_15 = arith.constant 1 : index
    %c0_16 = arith.constant 0 : index
    %22 = vector.load %arg2[%c0_14, %21, %c1_15, %c0_16] : memref<1x10x10x4xbf16, #tpu.memory_space<vmem>>, vector<1x8x8x4xbf16>
    %23 = vector.shape_cast %22 : vector<1x8x8x4xbf16> to vector<8x8x4xbf16>
    %24 = vector.shape_cast %23 : vector<8x8x4xbf16> to vector<64x4xbf16>
    %c2 = arith.constant 2 : index
    %c0_17 = arith.constant 0 : index
    %c0_18 = arith.constant 0 : index
    %25 = vector.load %arg6[%c2, %c0_17, %c0_18] : memref<25x4x128xbf16, #tpu.memory_space<vmem>>, vector<1x4x128xbf16>
    %26 = vector.shape_cast %25 : vector<1x4x128xbf16> to vector<4x128xbf16>
    %cst_19 = arith.constant dense<0.000000e+00> : vector<64x128xf32>
    %27 = tpu.matmul %24, %26, %cst_19 {dimension_numbers = #tpu.dot_dimension_numbers<[1], [0], [0], [1], [0, 0, 1, 1], [], []>} : vector<64x4xbf16>, vector<4x128xbf16>, vector<64x128xf32> -> vector<64x128xf32>
    %28 = arith.addf %19, %27 : vector<64x128xf32>
    %c0_i32_20 = arith.constant 0 : i32
    %29 = arith.addi %0, %c0_i32_20 : i32
    %c0_21 = arith.constant 0 : index
    %30 = arith.index_cast %29 : i32 to index
    %c1_22 = arith.constant 1 : index
    %c0_23 = arith.constant 0 : index
    %31 = vector.load %arg3[%c0_21, %30, %c1_22, %c0_23] : memref<1x10x10x4xbf16, #tpu.memory_space<vmem>>, vector<1x8x8x4xbf16>
    %32 = vector.shape_cast %31 : vector<1x8x8x4xbf16> to vector<8x8x4xbf16>
    %33 = vector.shape_cast %32 : vector<8x8x4xbf16> to vector<64x4xbf16>
    %c3 = arith.constant 3 : index
    %c0_24 = arith.constant 0 : index
    %c0_25 = arith.constant 0 : index
    %34 = vector.load %arg6[%c3, %c0_24, %c0_25] : memref<25x4x128xbf16, #tpu.memory_space<vmem>>, vector<1x4x128xbf16>
    %35 = vector.shape_cast %34 : vector<1x4x128xbf16> to vector<4x128xbf16>
    %cst_26 = arith.constant dense<0.000000e+00> : vector<64x128xf32>
    %36 = tpu.matmul %33, %35, %cst_26 {dimension_numbers = #tpu.dot_dimension_numbers<[1], [0], [0], [1], [0, 0, 1, 1], [], []>} : vector<64x4xbf16>, vector<4x128xbf16>, vector<64x128xf32> -> vector<64x128xf32>
    %37 = arith.addf %28, %36 : vector<64x128xf32>
    %c0_i32_27 = arith.constant 0 : i32
    %38 = arith.addi %0, %c0_i32_27 : i32
    %c0_28 = arith.constant 0 : index
    %39 = arith.index_cast %38 : i32 to index
    %c2_29 = arith.constant 2 : index
    %c0_30 = arith.constant 0 : index
    %40 = vector.load %arg2[%c0_28, %39, %c2_29, %c0_30] : memref<1x10x10x4xbf16, #tpu.memory_space<vmem>>, vector<1x8x8x4xbf16>
    %41 = vector.shape_cast %40 : vector<1x8x8x4xbf16> to vector<8x8x4xbf16>
    %42 = vector.shape_cast %41 : vector<8x8x4xbf16> to vector<64x4xbf16>
    %c4 = arith.constant 4 : index
    %c0_31 = arith.constant 0 : index
    %c0_32 = arith.constant 0 : index
    %43 = vector.load %arg6[%c4, %c0_31, %c0_32] : memref<25x4x128xbf16, #tpu.memory_space<vmem>>, vector<1x4x128xbf16>
    %44 = vector.shape_cast %43 : vector<1x4x128xbf16> to vector<4x128xbf16>
    %cst_33 = arith.constant dense<0.000000e+00> : vector<64x128xf32>
    %45 = tpu.matmul %42, %44, %cst_33 {dimension_numbers = #tpu.dot_dimension_numbers<[1], [0], [0], [1], [0, 0, 1, 1], [], []>} : vector<64x4xbf16>, vector<4x128xbf16>, vector<64x128xf32> -> vector<64x128xf32>
    %46 = arith.addf %37, %45 : vector<64x128xf32>
    %c0_i32_34 = arith.constant 0 : i32
    %47 = arith.addi %0, %c0_i32_34 : i32
    %c0_35 = arith.constant 0 : index
    %48 = arith.index_cast %47 : i32 to index
    %c0_36 = arith.constant 0 : index
    %c0_37 = arith.constant 0 : index
    %49 = vector.load %arg4[%c0_35, %48, %c0_36, %c0_37] : memref<1x10x10x4xbf16, #tpu.memory_space<vmem>>, vector<1x8x8x4xbf16>
    %50 = vector.shape_cast %49 : vector<1x8x8x4xbf16> to vector<8x8x4xbf16>
    %51 = vector.shape_cast %50 : vector<8x8x4xbf16> to vector<64x4xbf16>
    %c5 = arith.constant 5 : index
    %c0_38 = arith.constant 0 : index
    %c0_39 = arith.constant 0 : index
    %52 = vector.load %arg6[%c5, %c0_38, %c0_39] : memref<25x4x128xbf16, #tpu.memory_space<vmem>>, vector<1x4x128xbf16>
    %53 = vector.shape_cast %52 : vector<1x4x128xbf16> to vector<4x128xbf16>
    %cst_40 = arith.constant dense<0.000000e+00> : vector<64x128xf32>
    %54 = tpu.matmul %51, %53, %cst_40 {dimension_numbers = #tpu.dot_dimension_numbers<[1], [0], [0], [1], [0, 0, 1, 1], [], []>} : vector<64x4xbf16>, vector<4x128xbf16>, vector<64x128xf32> -> vector<64x128xf32>
    %55 = arith.addf %46, %54 : vector<64x128xf32>
    %c0_i32_41 = arith.constant 0 : i32
    %56 = arith.addi %0, %c0_i32_41 : i32
    %c0_42 = arith.constant 0 : index
    %57 = arith.index_cast %56 : i32 to index
    %c0_43 = arith.constant 0 : index
    %c0_44 = arith.constant 0 : index
    %58 = vector.load %arg5[%c0_42, %57, %c0_43, %c0_44] : memref<1x10x10x4xbf16, #tpu.memory_space<vmem>>, vector<1x8x8x4xbf16>
    %59 = vector.shape_cast %58 : vector<1x8x8x4xbf16> to vector<8x8x4xbf16>
    %60 = vector.shape_cast %59 : vector<8x8x4xbf16> to vector<64x4xbf16>
    %c6 = arith.constant 6 : index
    %c0_45 = arith.constant 0 : index
    %c0_46 = arith.constant 0 : index
    %61 = vector.load %arg6[%c6, %c0_45, %c0_46] : memref<25x4x128xbf16, #tpu.memory_space<vmem>>, vector<1x4x128xbf16>
    %62 = vector.shape_cast %61 : vector<1x4x128xbf16> to vector<4x128xbf16>
    %cst_47 = arith.constant dense<0.000000e+00> : vector<64x128xf32>
    %63 = tpu.matmul %60, %62, %cst_47 {dimension_numbers = #tpu.dot_dimension_numbers<[1], [0], [0], [1], [0, 0, 1, 1], [], []>} : vector<64x4xbf16>, vector<4x128xbf16>, vector<64x128xf32> -> vector<64x128xf32>
    %64 = arith.addf %55, %63 : vector<64x128xf32>
    %c0_i32_48 = arith.constant 0 : i32
    %65 = arith.addi %0, %c0_i32_48 : i32
    %c0_49 = arith.constant 0 : index
    %66 = arith.index_cast %65 : i32 to index
    %c1_50 = arith.constant 1 : index
    %c0_51 = arith.constant 0 : index
    %67 = vector.load %arg4[%c0_49, %66, %c1_50, %c0_51] : memref<1x10x10x4xbf16, #tpu.memory_space<vmem>>, vector<1x8x8x4xbf16>
    %68 = vector.shape_cast %67 : vector<1x8x8x4xbf16> to vector<8x8x4xbf16>
    %69 = vector.shape_cast %68 : vector<8x8x4xbf16> to vector<64x4xbf16>
    %c7 = arith.constant 7 : index
    %c0_52 = arith.constant 0 : index
    %c0_53 = arith.constant 0 : index
    %70 = vector.load %arg6[%c7, %c0_52, %c0_53] : memref<25x4x128xbf16, #tpu.memory_space<vmem>>, vector<1x4x128xbf16>
    %71 = vector.shape_cast %70 : vector<1x4x128xbf16> to vector<4x128xbf16>
    %cst_54 = arith.constant dense<0.000000e+00> : vector<64x128xf32>
    %72 = tpu.matmul %69, %71, %cst_54 {dimension_numbers = #tpu.dot_dimension_numbers<[1], [0], [0], [1], [0, 0, 1, 1], [], []>} : vector<64x4xbf16>, vector<4x128xbf16>, vector<64x128xf32> -> vector<64x128xf32>
    %73 = arith.addf %64, %72 : vector<64x128xf32>
    %c0_i32_55 = arith.constant 0 : i32
    %74 = arith.addi %0, %c0_i32_55 : i32
    %c0_56 = arith.constant 0 : index
    %75 = arith.index_cast %74 : i32 to index
    %c1_57 = arith.constant 1 : index
    %c0_58 = arith.constant 0 : index
    %76 = vector.load %arg5[%c0_56, %75, %c1_57, %c0_58] : memref<1x10x10x4xbf16, #tpu.memory_space<vmem>>, vector<1x8x8x4xbf16>
    %77 = vector.shape_cast %76 : vector<1x8x8x4xbf16> to vector<8x8x4xbf16>
    %78 = vector.shape_cast %77 : vector<8x8x4xbf16> to vector<64x4xbf16>
    %c8 = arith.constant 8 : index
    %c0_59 = arith.constant 0 : index
    %c0_60 = arith.constant 0 : index
    %79 = vector.load %arg6[%c8, %c0_59, %c0_60] : memref<25x4x128xbf16, #tpu.memory_space<vmem>>, vector<1x4x128xbf16>
    %80 = vector.shape_cast %79 : vector<1x4x128xbf16> to vector<4x128xbf16>
    %cst_61 = arith.constant dense<0.000000e+00> : vector<64x128xf32>
    %81 = tpu.matmul %78, %80, %cst_61 {dimension_numbers = #tpu.dot_dimension_numbers<[1], [0], [0], [1], [0, 0, 1, 1], [], []>} : vector<64x4xbf16>, vector<4x128xbf16>, vector<64x128xf32> -> vector<64x128xf32>
    %82 = arith.addf %73, %81 : vector<64x128xf32>
    %c0_i32_62 = arith.constant 0 : i32
    %83 = arith.addi %0, %c0_i32_62 : i32
    %c0_63 = arith.constant 0 : index
    %84 = arith.index_cast %83 : i32 to index
    %c2_64 = arith.constant 2 : index
    %c0_65 = arith.constant 0 : index
    %85 = vector.load %arg4[%c0_63, %84, %c2_64, %c0_65] : memref<1x10x10x4xbf16, #tpu.memory_space<vmem>>, vector<1x8x8x4xbf16>
    %86 = vector.shape_cast %85 : vector<1x8x8x4xbf16> to vector<8x8x4xbf16>
    %87 = vector.shape_cast %86 : vector<8x8x4xbf16> to vector<64x4xbf16>
    %c9 = arith.constant 9 : index
    %c0_66 = arith.constant 0 : index
    %c0_67 = arith.constant 0 : index
    %88 = vector.load %arg6[%c9, %c0_66, %c0_67] : memref<25x4x128xbf16, #tpu.memory_space<vmem>>, vector<1x4x128xbf16>
    %89 = vector.shape_cast %88 : vector<1x4x128xbf16> to vector<4x128xbf16>
    %cst_68 = arith.constant dense<0.000000e+00> : vector<64x128xf32>
    %90 = tpu.matmul %87, %89, %cst_68 {dimension_numbers = #tpu.dot_dimension_numbers<[1], [0], [0], [1], [0, 0, 1, 1], [], []>} : vector<64x4xbf16>, vector<4x128xbf16>, vector<64x128xf32> -> vector<64x128xf32>
    %91 = arith.addf %82, %90 : vector<64x128xf32>
    %c1_i32 = arith.constant 1 : i32
    %92 = arith.addi %0, %c1_i32 : i32
    %c0_69 = arith.constant 0 : index
    %93 = arith.index_cast %92 : i32 to index
    %c0_70 = arith.constant 0 : index
    %c0_71 = arith.constant 0 : index
    %94 = vector.load %arg2[%c0_69, %93, %c0_70, %c0_71] : memref<1x10x10x4xbf16, #tpu.memory_space<vmem>>, vector<1x8x8x4xbf16>
    %95 = vector.shape_cast %94 : vector<1x8x8x4xbf16> to vector<8x8x4xbf16>
    %96 = vector.shape_cast %95 : vector<8x8x4xbf16> to vector<64x4xbf16>
    %c10 = arith.constant 10 : index
    %c0_72 = arith.constant 0 : index
    %c0_73 = arith.constant 0 : index
    %97 = vector.load %arg6[%c10, %c0_72, %c0_73] : memref<25x4x128xbf16, #tpu.memory_space<vmem>>, vector<1x4x128xbf16>
    %98 = vector.shape_cast %97 : vector<1x4x128xbf16> to vector<4x128xbf16>
    %cst_74 = arith.constant dense<0.000000e+00> : vector<64x128xf32>
    %99 = tpu.matmul %96, %98, %cst_74 {dimension_numbers = #tpu.dot_dimension_numbers<[1], [0], [0], [1], [0, 0, 1, 1], [], []>} : vector<64x4xbf16>, vector<4x128xbf16>, vector<64x128xf32> -> vector<64x128xf32>
    %100 = arith.addf %91, %99 : vector<64x128xf32>
    %c1_i32_75 = arith.constant 1 : i32
    %101 = arith.addi %0, %c1_i32_75 : i32
    %c0_76 = arith.constant 0 : index
    %102 = arith.index_cast %101 : i32 to index
    %c0_77 = arith.constant 0 : index
    %c0_78 = arith.constant 0 : index
    %103 = vector.load %arg3[%c0_76, %102, %c0_77, %c0_78] : memref<1x10x10x4xbf16, #tpu.memory_space<vmem>>, vector<1x8x8x4xbf16>
    %104 = vector.shape_cast %103 : vector<1x8x8x4xbf16> to vector<8x8x4xbf16>
    %105 = vector.shape_cast %104 : vector<8x8x4xbf16> to vector<64x4xbf16>
    %c11 = arith.constant 11 : index
    %c0_79 = arith.constant 0 : index
    %c0_80 = arith.constant 0 : index
    %106 = vector.load %arg6[%c11, %c0_79, %c0_80] : memref<25x4x128xbf16, #tpu.memory_space<vmem>>, vector<1x4x128xbf16>
    %107 = vector.shape_cast %106 : vector<1x4x128xbf16> to vector<4x128xbf16>
    %cst_81 = arith.constant dense<0.000000e+00> : vector<64x128xf32>
    %108 = tpu.matmul %105, %107, %cst_81 {dimension_numbers = #tpu.dot_dimension_numbers<[1], [0], [0], [1], [0, 0, 1, 1], [], []>} : vector<64x4xbf16>, vector<4x128xbf16>, vector<64x128xf32> -> vector<64x128xf32>
    %109 = arith.addf %100, %108 : vector<64x128xf32>
    %c1_i32_82 = arith.constant 1 : i32
    %110 = arith.addi %0, %c1_i32_82 : i32
    %c0_83 = arith.constant 0 : index
    %111 = arith.index_cast %110 : i32 to index
    %c1_84 = arith.constant 1 : index
    %c0_85 = arith.constant 0 : index
    %112 = vector.load %arg2[%c0_83, %111, %c1_84, %c0_85] : memref<1x10x10x4xbf16, #tpu.memory_space<vmem>>, vector<1x8x8x4xbf16>
    %113 = vector.shape_cast %112 : vector<1x8x8x4xbf16> to vector<8x8x4xbf16>
    %114 = vector.shape_cast %113 : vector<8x8x4xbf16> to vector<64x4xbf16>
    %c12 = arith.constant 12 : index
    %c0_86 = arith.constant 0 : index
    %c0_87 = arith.constant 0 : index
    %115 = vector.load %arg6[%c12, %c0_86, %c0_87] : memref<25x4x128xbf16, #tpu.memory_space<vmem>>, vector<1x4x128xbf16>
    %116 = vector.shape_cast %115 : vector<1x4x128xbf16> to vector<4x128xbf16>
    %cst_88 = arith.constant dense<0.000000e+00> : vector<64x128xf32>
    %117 = tpu.matmul %114, %116, %cst_88 {dimension_numbers = #tpu.dot_dimension_numbers<[1], [0], [0], [1], [0, 0, 1, 1], [], []>} : vector<64x4xbf16>, vector<4x128xbf16>, vector<64x128xf32> -> vector<64x128xf32>
    %118 = arith.addf %109, %117 : vector<64x128xf32>
    %c1_i32_89 = arith.constant 1 : i32
    %119 = arith.addi %0, %c1_i32_89 : i32
    %c0_90 = arith.constant 0 : index
    %120 = arith.index_cast %119 : i32 to index
    %c1_91 = arith.constant 1 : index
    %c0_92 = arith.constant 0 : index
    %121 = vector.load %arg3[%c0_90, %120, %c1_91, %c0_92] : memref<1x10x10x4xbf16, #tpu.memory_space<vmem>>, vector<1x8x8x4xbf16>
    %122 = vector.shape_cast %121 : vector<1x8x8x4xbf16> to vector<8x8x4xbf16>
    %123 = vector.shape_cast %122 : vector<8x8x4xbf16> to vector<64x4xbf16>
    %c13 = arith.constant 13 : index
    %c0_93 = arith.constant 0 : index
    %c0_94 = arith.constant 0 : index
    %124 = vector.load %arg6[%c13, %c0_93, %c0_94] : memref<25x4x128xbf16, #tpu.memory_space<vmem>>, vector<1x4x128xbf16>
    %125 = vector.shape_cast %124 : vector<1x4x128xbf16> to vector<4x128xbf16>
    %cst_95 = arith.constant dense<0.000000e+00> : vector<64x128xf32>
    %126 = tpu.matmul %123, %125, %cst_95 {dimension_numbers = #tpu.dot_dimension_numbers<[1], [0], [0], [1], [0, 0, 1, 1], [], []>} : vector<64x4xbf16>, vector<4x128xbf16>, vector<64x128xf32> -> vector<64x128xf32>
    %127 = arith.addf %118, %126 : vector<64x128xf32>
    %c1_i32_96 = arith.constant 1 : i32
    %128 = arith.addi %0, %c1_i32_96 : i32
    %c0_97 = arith.constant 0 : index
    %129 = arith.index_cast %128 : i32 to index
    %c2_98 = arith.constant 2 : index
    %c0_99 = arith.constant 0 : index
    %130 = vector.load %arg2[%c0_97, %129, %c2_98, %c0_99] : memref<1x10x10x4xbf16, #tpu.memory_space<vmem>>, vector<1x8x8x4xbf16>
    %131 = vector.shape_cast %130 : vector<1x8x8x4xbf16> to vector<8x8x4xbf16>
    %132 = vector.shape_cast %131 : vector<8x8x4xbf16> to vector<64x4xbf16>
    %c14 = arith.constant 14 : index
    %c0_100 = arith.constant 0 : index
    %c0_101 = arith.constant 0 : index
    %133 = vector.load %arg6[%c14, %c0_100, %c0_101] : memref<25x4x128xbf16, #tpu.memory_space<vmem>>, vector<1x4x128xbf16>
    %134 = vector.shape_cast %133 : vector<1x4x128xbf16> to vector<4x128xbf16>
    %cst_102 = arith.constant dense<0.000000e+00> : vector<64x128xf32>
    %135 = tpu.matmul %132, %134, %cst_102 {dimension_numbers = #tpu.dot_dimension_numbers<[1], [0], [0], [1], [0, 0, 1, 1], [], []>} : vector<64x4xbf16>, vector<4x128xbf16>, vector<64x128xf32> -> vector<64x128xf32>
    %136 = arith.addf %127, %135 : vector<64x128xf32>
    %c1_i32_103 = arith.constant 1 : i32
    %137 = arith.addi %0, %c1_i32_103 : i32
    %c0_104 = arith.constant 0 : index
    %138 = arith.index_cast %137 : i32 to index
    %c0_105 = arith.constant 0 : index
    %c0_106 = arith.constant 0 : index
    %139 = vector.load %arg4[%c0_104, %138, %c0_105, %c0_106] : memref<1x10x10x4xbf16, #tpu.memory_space<vmem>>, vector<1x8x8x4xbf16>
    %140 = vector.shape_cast %139 : vector<1x8x8x4xbf16> to vector<8x8x4xbf16>
    %141 = vector.shape_cast %140 : vector<8x8x4xbf16> to vector<64x4xbf16>
    %c15 = arith.constant 15 : index
    %c0_107 = arith.constant 0 : index
    %c0_108 = arith.constant 0 : index
    %142 = vector.load %arg6[%c15, %c0_107, %c0_108] : memref<25x4x128xbf16, #tpu.memory_space<vmem>>, vector<1x4x128xbf16>
    %143 = vector.shape_cast %142 : vector<1x4x128xbf16> to vector<4x128xbf16>
    %cst_109 = arith.constant dense<0.000000e+00> : vector<64x128xf32>
    %144 = tpu.matmul %141, %143, %cst_109 {dimension_numbers = #tpu.dot_dimension_numbers<[1], [0], [0], [1], [0, 0, 1, 1], [], []>} : vector<64x4xbf16>, vector<4x128xbf16>, vector<64x128xf32> -> vector<64x128xf32>
    %145 = arith.addf %136, %144 : vector<64x128xf32>
    %c1_i32_110 = arith.constant 1 : i32
    %146 = arith.addi %0, %c1_i32_110 : i32
    %c0_111 = arith.constant 0 : index
    %147 = arith.index_cast %146 : i32 to index
    %c0_112 = arith.constant 0 : index
    %c0_113 = arith.constant 0 : index
    %148 = vector.load %arg5[%c0_111, %147, %c0_112, %c0_113] : memref<1x10x10x4xbf16, #tpu.memory_space<vmem>>, vector<1x8x8x4xbf16>
    %149 = vector.shape_cast %148 : vector<1x8x8x4xbf16> to vector<8x8x4xbf16>
    %150 = vector.shape_cast %149 : vector<8x8x4xbf16> to vector<64x4xbf16>
    %c16 = arith.constant 16 : index
    %c0_114 = arith.constant 0 : index
    %c0_115 = arith.constant 0 : index
    %151 = vector.load %arg6[%c16, %c0_114, %c0_115] : memref<25x4x128xbf16, #tpu.memory_space<vmem>>, vector<1x4x128xbf16>
    %152 = vector.shape_cast %151 : vector<1x4x128xbf16> to vector<4x128xbf16>
    %cst_116 = arith.constant dense<0.000000e+00> : vector<64x128xf32>
    %153 = tpu.matmul %150, %152, %cst_116 {dimension_numbers = #tpu.dot_dimension_numbers<[1], [0], [0], [1], [0, 0, 1, 1], [], []>} : vector<64x4xbf16>, vector<4x128xbf16>, vector<64x128xf32> -> vector<64x128xf32>
    %154 = arith.addf %145, %153 : vector<64x128xf32>
    %c1_i32_117 = arith.constant 1 : i32
    %155 = arith.addi %0, %c1_i32_117 : i32
    %c0_118 = arith.constant 0 : index
    %156 = arith.index_cast %155 : i32 to index
    %c1_119 = arith.constant 1 : index
    %c0_120 = arith.constant 0 : index
    %157 = vector.load %arg4[%c0_118, %156, %c1_119, %c0_120] : memref<1x10x10x4xbf16, #tpu.memory_space<vmem>>, vector<1x8x8x4xbf16>
    %158 = vector.shape_cast %157 : vector<1x8x8x4xbf16> to vector<8x8x4xbf16>
    %159 = vector.shape_cast %158 : vector<8x8x4xbf16> to vector<64x4xbf16>
    %c17 = arith.constant 17 : index
    %c0_121 = arith.constant 0 : index
    %c0_122 = arith.constant 0 : index
    %160 = vector.load %arg6[%c17, %c0_121, %c0_122] : memref<25x4x128xbf16, #tpu.memory_space<vmem>>, vector<1x4x128xbf16>
    %161 = vector.shape_cast %160 : vector<1x4x128xbf16> to vector<4x128xbf16>
    %cst_123 = arith.constant dense<0.000000e+00> : vector<64x128xf32>
    %162 = tpu.matmul %159, %161, %cst_123 {dimension_numbers = #tpu.dot_dimension_numbers<[1], [0], [0], [1], [0, 0, 1, 1], [], []>} : vector<64x4xbf16>, vector<4x128xbf16>, vector<64x128xf32> -> vector<64x128xf32>
    %163 = arith.addf %154, %162 : vector<64x128xf32>
    %c1_i32_124 = arith.constant 1 : i32
    %164 = arith.addi %0, %c1_i32_124 : i32
    %c0_125 = arith.constant 0 : index
    %165 = arith.index_cast %164 : i32 to index
    %c1_126 = arith.constant 1 : index
    %c0_127 = arith.constant 0 : index
    %166 = vector.load %arg5[%c0_125, %165, %c1_126, %c0_127] : memref<1x10x10x4xbf16, #tpu.memory_space<vmem>>, vector<1x8x8x4xbf16>
    %167 = vector.shape_cast %166 : vector<1x8x8x4xbf16> to vector<8x8x4xbf16>
    %168 = vector.shape_cast %167 : vector<8x8x4xbf16> to vector<64x4xbf16>
    %c18 = arith.constant 18 : index
    %c0_128 = arith.constant 0 : index
    %c0_129 = arith.constant 0 : index
    %169 = vector.load %arg6[%c18, %c0_128, %c0_129] : memref<25x4x128xbf16, #tpu.memory_space<vmem>>, vector<1x4x128xbf16>
    %170 = vector.shape_cast %169 : vector<1x4x128xbf16> to vector<4x128xbf16>
    %cst_130 = arith.constant dense<0.000000e+00> : vector<64x128xf32>
    %171 = tpu.matmul %168, %170, %cst_130 {dimension_numbers = #tpu.dot_dimension_numbers<[1], [0], [0], [1], [0, 0, 1, 1], [], []>} : vector<64x4xbf16>, vector<4x128xbf16>, vector<64x128xf32> -> vector<64x128xf32>
    %172 = arith.addf %163, %171 : vector<64x128xf32>
    %c1_i32_131 = arith.constant 1 : i32
    %173 = arith.addi %0, %c1_i32_131 : i32
    %c0_132 = arith.constant 0 : index
    %174 = arith.index_cast %173 : i32 to index
    %c2_133 = arith.constant 2 : index
    %c0_134 = arith.constant 0 : index
    %175 = vector.load %arg4[%c0_132, %174, %c2_133, %c0_134] : memref<1x10x10x4xbf16, #tpu.memory_space<vmem>>, vector<1x8x8x4xbf16>
    %176 = vector.shape_cast %175 : vector<1x8x8x4xbf16> to vector<8x8x4xbf16>
    %177 = vector.shape_cast %176 : vector<8x8x4xbf16> to vector<64x4xbf16>
    %c19 = arith.constant 19 : index
    %c0_135 = arith.constant 0 : index
    %c0_136 = arith.constant 0 : index
    %178 = vector.load %arg6[%c19, %c0_135, %c0_136] : memref<25x4x128xbf16, #tpu.memory_space<vmem>>, vector<1x4x128xbf16>
    %179 = vector.shape_cast %178 : vector<1x4x128xbf16> to vector<4x128xbf16>
    %cst_137 = arith.constant dense<0.000000e+00> : vector<64x128xf32>
    %180 = tpu.matmul %177, %179, %cst_137 {dimension_numbers = #tpu.dot_dimension_numbers<[1], [0], [0], [1], [0, 0, 1, 1], [], []>} : vector<64x4xbf16>, vector<4x128xbf16>, vector<64x128xf32> -> vector<64x128xf32>
    %181 = arith.addf %172, %180 : vector<64x128xf32>
    %c2_i32 = arith.constant 2 : i32
    %182 = arith.addi %0, %c2_i32 : i32
    %c0_138 = arith.constant 0 : index
    %183 = arith.index_cast %182 : i32 to index
    %c0_139 = arith.constant 0 : index
    %c0_140 = arith.constant 0 : index
    %184 = vector.load %arg2[%c0_138, %183, %c0_139, %c0_140] : memref<1x10x10x4xbf16, #tpu.memory_space<vmem>>, vector<1x8x8x4xbf16>
    %185 = vector.shape_cast %184 : vector<1x8x8x4xbf16> to vector<8x8x4xbf16>
    %186 = vector.shape_cast %185 : vector<8x8x4xbf16> to vector<64x4xbf16>
    %c20 = arith.constant 20 : index
    %c0_141 = arith.constant 0 : index
    %c0_142 = arith.constant 0 : index
    %187 = vector.load %arg6[%c20, %c0_141, %c0_142] : memref<25x4x128xbf16, #tpu.memory_space<vmem>>, vector<1x4x128xbf16>
    %188 = vector.shape_cast %187 : vector<1x4x128xbf16> to vector<4x128xbf16>
    %cst_143 = arith.constant dense<0.000000e+00> : vector<64x128xf32>
    %189 = tpu.matmul %186, %188, %cst_143 {dimension_numbers = #tpu.dot_dimension_numbers<[1], [0], [0], [1], [0, 0, 1, 1], [], []>} : vector<64x4xbf16>, vector<4x128xbf16>, vector<64x128xf32> -> vector<64x128xf32>
    %190 = arith.addf %181, %189 : vector<64x128xf32>
    %c2_i32_144 = arith.constant 2 : i32
    %191 = arith.addi %0, %c2_i32_144 : i32
    %c0_145 = arith.constant 0 : index
    %192 = arith.index_cast %191 : i32 to index
    %c0_146 = arith.constant 0 : index
    %c0_147 = arith.constant 0 : index
    %193 = vector.load %arg3[%c0_145, %192, %c0_146, %c0_147] : memref<1x10x10x4xbf16, #tpu.memory_space<vmem>>, vector<1x8x8x4xbf16>
    %194 = vector.shape_cast %193 : vector<1x8x8x4xbf16> to vector<8x8x4xbf16>
    %195 = vector.shape_cast %194 : vector<8x8x4xbf16> to vector<64x4xbf16>
    %c21 = arith.constant 21 : index
    %c0_148 = arith.constant 0 : index
    %c0_149 = arith.constant 0 : index
    %196 = vector.load %arg6[%c21, %c0_148, %c0_149] : memref<25x4x128xbf16, #tpu.memory_space<vmem>>, vector<1x4x128xbf16>
    %197 = vector.shape_cast %196 : vector<1x4x128xbf16> to vector<4x128xbf16>
    %cst_150 = arith.constant dense<0.000000e+00> : vector<64x128xf32>
    %198 = tpu.matmul %195, %197, %cst_150 {dimension_numbers = #tpu.dot_dimension_numbers<[1], [0], [0], [1], [0, 0, 1, 1], [], []>} : vector<64x4xbf16>, vector<4x128xbf16>, vector<64x128xf32> -> vector<64x128xf32>
    %199 = arith.addf %190, %198 : vector<64x128xf32>
    %c2_i32_151 = arith.constant 2 : i32
    %200 = arith.addi %0, %c2_i32_151 : i32
    %c0_152 = arith.constant 0 : index
    %201 = arith.index_cast %200 : i32 to index
    %c1_153 = arith.constant 1 : index
    %c0_154 = arith.constant 0 : index
    %202 = vector.load %arg2[%c0_152, %201, %c1_153, %c0_154] : memref<1x10x10x4xbf16, #tpu.memory_space<vmem>>, vector<1x8x8x4xbf16>
    %203 = vector.shape_cast %202 : vector<1x8x8x4xbf16> to vector<8x8x4xbf16>
    %204 = vector.shape_cast %203 : vector<8x8x4xbf16> to vector<64x4xbf16>
    %c22 = arith.constant 22 : index
    %c0_155 = arith.constant 0 : index
    %c0_156 = arith.constant 0 : index
    %205 = vector.load %arg6[%c22, %c0_155, %c0_156] : memref<25x4x128xbf16, #tpu.memory_space<vmem>>, vector<1x4x128xbf16>
    %206 = vector.shape_cast %205 : vector<1x4x128xbf16> to vector<4x128xbf16>
    %cst_157 = arith.constant dense<0.000000e+00> : vector<64x128xf32>
    %207 = tpu.matmul %204, %206, %cst_157 {dimension_numbers = #tpu.dot_dimension_numbers<[1], [0], [0], [1], [0, 0, 1, 1], [], []>} : vector<64x4xbf16>, vector<4x128xbf16>, vector<64x128xf32> -> vector<64x128xf32>
    %208 = arith.addf %199, %207 : vector<64x128xf32>
    %c2_i32_158 = arith.constant 2 : i32
    %209 = arith.addi %0, %c2_i32_158 : i32
    %c0_159 = arith.constant 0 : index
    %210 = arith.index_cast %209 : i32 to index
    %c1_160 = arith.constant 1 : index
    %c0_161 = arith.constant 0 : index
    %211 = vector.load %arg3[%c0_159, %210, %c1_160, %c0_161] : memref<1x10x10x4xbf16, #tpu.memory_space<vmem>>, vector<1x8x8x4xbf16>
    %212 = vector.shape_cast %211 : vector<1x8x8x4xbf16> to vector<8x8x4xbf16>
    %213 = vector.shape_cast %212 : vector<8x8x4xbf16> to vector<64x4xbf16>
    %c23 = arith.constant 23 : index
    %c0_162 = arith.constant 0 : index
    %c0_163 = arith.constant 0 : index
    %214 = vector.load %arg6[%c23, %c0_162, %c0_163] : memref<25x4x128xbf16, #tpu.memory_space<vmem>>, vector<1x4x128xbf16>
    %215 = vector.shape_cast %214 : vector<1x4x128xbf16> to vector<4x128xbf16>
    %cst_164 = arith.constant dense<0.000000e+00> : vector<64x128xf32>
    %216 = tpu.matmul %213, %215, %cst_164 {dimension_numbers = #tpu.dot_dimension_numbers<[1], [0], [0], [1], [0, 0, 1, 1], [], []>} : vector<64x4xbf16>, vector<4x128xbf16>, vector<64x128xf32> -> vector<64x128xf32>
    %217 = arith.addf %208, %216 : vector<64x128xf32>
    %c2_i32_165 = arith.constant 2 : i32
    %218 = arith.addi %0, %c2_i32_165 : i32
    %c0_166 = arith.constant 0 : index
    %219 = arith.index_cast %218 : i32 to index
    %c2_167 = arith.constant 2 : index
    %c0_168 = arith.constant 0 : index
    %220 = vector.load %arg2[%c0_166, %219, %c2_167, %c0_168] : memref<1x10x10x4xbf16, #tpu.memory_space<vmem>>, vector<1x8x8x4xbf16>
    %221 = vector.shape_cast %220 : vector<1x8x8x4xbf16> to vector<8x8x4xbf16>
    %222 = vector.shape_cast %221 : vector<8x8x4xbf16> to vector<64x4xbf16>
    %c24 = arith.constant 24 : index
    %c0_169 = arith.constant 0 : index
    %c0_170 = arith.constant 0 : index
    %223 = vector.load %arg6[%c24, %c0_169, %c0_170] : memref<25x4x128xbf16, #tpu.memory_space<vmem>>, vector<1x4x128xbf16>
    %224 = vector.shape_cast %223 : vector<1x4x128xbf16> to vector<4x128xbf16>
    %cst_171 = arith.constant dense<0.000000e+00> : vector<64x128xf32>
    %225 = tpu.matmul %222, %224, %cst_171 {dimension_numbers = #tpu.dot_dimension_numbers<[1], [0], [0], [1], [0, 0, 1, 1], [], []>} : vector<64x4xbf16>, vector<4x128xbf16>, vector<64x128xf32> -> vector<64x128xf32>
    %226 = arith.addf %217, %225 : vector<64x128xf32>
    %c0_172 = arith.constant 0 : index
    %c0_173 = arith.constant 0 : index
    %227 = vector.load %arg7[%c0_172, %c0_173] : memref<1x128xf32, #tpu.memory_space<vmem>>, vector<1x128xf32>
    %228 = vector.broadcast %227 : vector<1x128xf32> to vector<64x128xf32>
    %229 = arith.addf %226, %228 : vector<64x128xf32>
    %cst_174 = arith.constant 0.000000e+00 : f32
    %230 = vector.broadcast %cst_174 : f32 to vector<64x128xf32>
    %231 = arith.cmpf oge, %229, %230 : vector<64x128xf32>
    %cst_175 = arith.constant 2.000000e-01 : f32
    %232 = vector.broadcast %cst_175 : f32 to vector<64x128xf32>
    %233 = arith.mulf %232, %229 : vector<64x128xf32>
    %234 = arith.select %231, %229, %233 : vector<64x128xi1>, vector<64x128xf32>
    %235 = vector.shape_cast %234 : vector<64x128xf32> to vector<8x8x128xf32>
    %236 = arith.truncf %235 : vector<8x8x128xf32> to vector<8x8x128xbf16>
    %c0_176 = arith.constant 0 : index
    %c0_177 = arith.constant 0 : index
    %c0_178 = arith.constant 0 : index
    %c0_179 = arith.constant 0 : index
    %237 = vector.load %arg8[%c0_176, %c0_177, %c0_178, %c0_179] : memref<1x8x8x128xbf16, #tpu.memory_space<vmem>>, vector<1x8x8x128xbf16>
    %238 = vector.shape_cast %237 : vector<1x8x8x128xbf16> to vector<8x8x128xbf16>
    %239 = vector.shape_cast %236 : vector<8x8x128xbf16> to vector<1x8x8x128xbf16>
    tpu.vector_store %arg8[%c0_176, %c0_177, %c0_178, %c0_179], %239 {strides = array<i32>} : memref<1x8x8x128xbf16, #tpu.memory_space<vmem>>, vector<1x8x8x128xbf16>,
    return
  }
  func.func @transform_0(%arg0: i32, %arg1: i32) -> (i32, i32, i32, i32) {
    %c0_i32 = arith.constant 0 : i32
    %c0_i32_0 = arith.constant 0 : i32
    %c0_i32_1 = arith.constant 0 : i32
    %c0_i32_2 = arith.constant 0 : i32
    return %arg0, %c0_i32, %c0_i32_0, %c0_i32_1 : i32, i32, i32, i32
  }
  func.func @transform_1(%arg0: i32, %arg1: i32) -> (i32, i32, i32, i32) {
    %c0_i32 = arith.constant 0 : i32
    %c0_i32_0 = arith.constant 0 : i32
    %c0_i32_1 = arith.constant 0 : i32
    %c0_i32_2 = arith.constant 0 : i32
    return %arg0, %c0_i32, %c0_i32_0, %c0_i32_1 : i32, i32, i32, i32
  }
  func.func @transform_2(%arg0: i32, %arg1: i32) -> (i32, i32, i32, i32) {
    %c0_i32 = arith.constant 0 : i32
    %c0_i32_0 = arith.constant 0 : i32
    %c0_i32_1 = arith.constant 0 : i32
    %c0_i32_2 = arith.constant 0 : i32
    return %arg0, %c0_i32, %c0_i32_0, %c0_i32_1 : i32, i32, i32, i32
  }
  func.func @transform_3(%arg0: i32, %arg1: i32) -> (i32, i32, i32, i32) {
    %c0_i32 = arith.constant 0 : i32
    %c0_i32_0 = arith.constant 0 : i32
    %c0_i32_1 = arith.constant 0 : i32
    %c0_i32_2 = arith.constant 0 : i32
    return %arg0, %c0_i32, %c0_i32_0, %c0_i32_1 : i32, i32, i32, i32
  }
  func.func @transform_4(%arg0: i32, %arg1: i32) -> (i32, i32, i32) {
    %c0_i32 = arith.constant 0 : i32
    %c0_i32_0 = arith.constant 0 : i32
    %c0_i32_1 = arith.constant 0 : i32
    %c0_i32_2 = arith.constant 0 : i32
    return %c0_i32, %c0_i32_0, %c0_i32_1 : i32, i32, i32
  }
  func.func @transform_5(%arg0: i32, %arg1: i32) -> (i32, i32) {
    %c0_i32 = arith.constant 0 : i32
    %c0_i32_0 = arith.constant 0 : i32
    %c0_i32_1 = arith.constant 0 : i32
    return %c0_i32, %c0_i32_0 : i32, i32
  }
  func.func @transform_6(%arg0: i32, %arg1: i32) -> (i32, i32, i32, i32) {
    %c0_i32 = arith.constant 0 : i32
    %c0_i32_0 = arith.constant 0 : i32
    %c0_i32_1 = arith.constant 0 : i32
    return %arg0, %arg1, %c0_i32, %c0_i32_0 : i32, i32, i32, i32
  }
}

module attributes {stable_mosaic.version = 11 : i64} {
  func.func @_dconv_kernel(%arg0: i32, %arg1: i32, %arg2: memref<1x6x10x8xbf16, #tpu.memory_space<vmem>>, %arg3: memref<1x6x10x8xbf16, #tpu.memory_space<vmem>>, %arg4: memref<1x6x10x8xbf16, #tpu.memory_space<vmem>>, %arg5: memref<1x6x10x8xbf16, #tpu.memory_space<vmem>>, %arg6: memref<25x8x128xbf16, #tpu.memory_space<vmem>>, %arg7: memref<1x128xf32, #tpu.memory_space<vmem>>, %arg8: memref<1x4x8x128xbf16, #tpu.memory_space<vmem>>) attributes {dimension_semantics = [#tpu.dimension_semantics<parallel>, #tpu.dimension_semantics<arbitrary>], iteration_bounds = array<i64: 2, 1>, scalar_prefetch = 0 : i64, scratch_operands = 0 : i64, tpu.core_type = #tpu.core_type<tc>, window_params = [{transform_indices = @transform_0, window_bounds = array<i64: 1, 6, 10, 8>}, {transform_indices = @transform_1, window_bounds = array<i64: 1, 6, 10, 8>}, {transform_indices = @transform_2, window_bounds = array<i64: 1, 6, 10, 8>}, {transform_indices = @transform_3, window_bounds = array<i64: 1, 6, 10, 8>}, {pipeline_mode = #tpu.pipeline_mode<synchronous>, transform_indices = @transform_4, window_bounds = array<i64: 25, 8, 128>}, {pipeline_mode = #tpu.pipeline_mode<synchronous>, transform_indices = @transform_5, window_bounds = array<i64: 1, 128>}, {transform_indices = @transform_6, window_bounds = array<i64: 1, 4, 8, 128>}]} {
    %c4_i32 = arith.constant 4 : i32
    %0 = arith.muli %arg1, %c4_i32 : i32
    %cst = arith.constant 0.000000e+00 : f32
    %1 = vector.broadcast %cst : f32 to vector<32x128xf32>
    %c0_i32 = arith.constant 0 : i32
    %2 = arith.addi %0, %c0_i32 : i32
    %c0 = arith.constant 0 : index
    %3 = arith.index_cast %2 : i32 to index
    %c0_0 = arith.constant 0 : index
    %c0_1 = arith.constant 0 : index
    %4 = vector.load %arg2[%c0, %3, %c0_0, %c0_1] : memref<1x6x10x8xbf16, #tpu.memory_space<vmem>>, vector<1x4x8x8xbf16>
    %5 = vector.shape_cast %4 : vector<1x4x8x8xbf16> to vector<4x8x8xbf16>
    %6 = vector.shape_cast %5 : vector<4x8x8xbf16> to vector<32x8xbf16>
    %c0_2 = arith.constant 0 : index
    %c0_3 = arith.constant 0 : index
    %c0_4 = arith.constant 0 : index
    %7 = vector.load %arg6[%c0_2, %c0_3, %c0_4] : memref<25x8x128xbf16, #tpu.memory_space<vmem>>, vector<1x8x128xbf16>
    %8 = vector.shape_cast %7 : vector<1x8x128xbf16> to vector<8x128xbf16>
    %cst_5 = arith.constant dense<0.000000e+00> : vector<32x128xf32>
    %9 = tpu.matmul %6, %8, %cst_5 {dimension_numbers = #tpu.dot_dimension_numbers<[1], [0], [0], [1], [0, 0, 1, 1], [], []>} : vector<32x8xbf16>, vector<8x128xbf16>, vector<32x128xf32> -> vector<32x128xf32>
    %10 = arith.addf %1, %9 : vector<32x128xf32>
    %c0_i32_6 = arith.constant 0 : i32
    %11 = arith.addi %0, %c0_i32_6 : i32
    %c0_7 = arith.constant 0 : index
    %12 = arith.index_cast %11 : i32 to index
    %c0_8 = arith.constant 0 : index
    %c0_9 = arith.constant 0 : index
    %13 = vector.load %arg3[%c0_7, %12, %c0_8, %c0_9] : memref<1x6x10x8xbf16, #tpu.memory_space<vmem>>, vector<1x4x8x8xbf16>
    %14 = vector.shape_cast %13 : vector<1x4x8x8xbf16> to vector<4x8x8xbf16>
    %15 = vector.shape_cast %14 : vector<4x8x8xbf16> to vector<32x8xbf16>
    %c1 = arith.constant 1 : index
    %c0_10 = arith.constant 0 : index
    %c0_11 = arith.constant 0 : index
    %16 = vector.load %arg6[%c1, %c0_10, %c0_11] : memref<25x8x128xbf16, #tpu.memory_space<vmem>>, vector<1x8x128xbf16>
    %17 = vector.shape_cast %16 : vector<1x8x128xbf16> to vector<8x128xbf16>
    %cst_12 = arith.constant dense<0.000000e+00> : vector<32x128xf32>
    %18 = tpu.matmul %15, %17, %cst_12 {dimension_numbers = #tpu.dot_dimension_numbers<[1], [0], [0], [1], [0, 0, 1, 1], [], []>} : vector<32x8xbf16>, vector<8x128xbf16>, vector<32x128xf32> -> vector<32x128xf32>
    %19 = arith.addf %10, %18 : vector<32x128xf32>
    %c0_i32_13 = arith.constant 0 : i32
    %20 = arith.addi %0, %c0_i32_13 : i32
    %c0_14 = arith.constant 0 : index
    %21 = arith.index_cast %20 : i32 to index
    %c1_15 = arith.constant 1 : index
    %c0_16 = arith.constant 0 : index
    %22 = vector.load %arg2[%c0_14, %21, %c1_15, %c0_16] : memref<1x6x10x8xbf16, #tpu.memory_space<vmem>>, vector<1x4x8x8xbf16>
    %23 = vector.shape_cast %22 : vector<1x4x8x8xbf16> to vector<4x8x8xbf16>
    %24 = vector.shape_cast %23 : vector<4x8x8xbf16> to vector<32x8xbf16>
    %c2 = arith.constant 2 : index
    %c0_17 = arith.constant 0 : index
    %c0_18 = arith.constant 0 : index
    %25 = vector.load %arg6[%c2, %c0_17, %c0_18] : memref<25x8x128xbf16, #tpu.memory_space<vmem>>, vector<1x8x128xbf16>
    %26 = vector.shape_cast %25 : vector<1x8x128xbf16> to vector<8x128xbf16>
    %cst_19 = arith.constant dense<0.000000e+00> : vector<32x128xf32>
    %27 = tpu.matmul %24, %26, %cst_19 {dimension_numbers = #tpu.dot_dimension_numbers<[1], [0], [0], [1], [0, 0, 1, 1], [], []>} : vector<32x8xbf16>, vector<8x128xbf16>, vector<32x128xf32> -> vector<32x128xf32>
    %28 = arith.addf %19, %27 : vector<32x128xf32>
    %c0_i32_20 = arith.constant 0 : i32
    %29 = arith.addi %0, %c0_i32_20 : i32
    %c0_21 = arith.constant 0 : index
    %30 = arith.index_cast %29 : i32 to index
    %c1_22 = arith.constant 1 : index
    %c0_23 = arith.constant 0 : index
    %31 = vector.load %arg3[%c0_21, %30, %c1_22, %c0_23] : memref<1x6x10x8xbf16, #tpu.memory_space<vmem>>, vector<1x4x8x8xbf16>
    %32 = vector.shape_cast %31 : vector<1x4x8x8xbf16> to vector<4x8x8xbf16>
    %33 = vector.shape_cast %32 : vector<4x8x8xbf16> to vector<32x8xbf16>
    %c3 = arith.constant 3 : index
    %c0_24 = arith.constant 0 : index
    %c0_25 = arith.constant 0 : index
    %34 = vector.load %arg6[%c3, %c0_24, %c0_25] : memref<25x8x128xbf16, #tpu.memory_space<vmem>>, vector<1x8x128xbf16>
    %35 = vector.shape_cast %34 : vector<1x8x128xbf16> to vector<8x128xbf16>
    %cst_26 = arith.constant dense<0.000000e+00> : vector<32x128xf32>
    %36 = tpu.matmul %33, %35, %cst_26 {dimension_numbers = #tpu.dot_dimension_numbers<[1], [0], [0], [1], [0, 0, 1, 1], [], []>} : vector<32x8xbf16>, vector<8x128xbf16>, vector<32x128xf32> -> vector<32x128xf32>
    %37 = arith.addf %28, %36 : vector<32x128xf32>
    %c0_i32_27 = arith.constant 0 : i32
    %38 = arith.addi %0, %c0_i32_27 : i32
    %c0_28 = arith.constant 0 : index
    %39 = arith.index_cast %38 : i32 to index
    %c2_29 = arith.constant 2 : index
    %c0_30 = arith.constant 0 : index
    %40 = vector.load %arg2[%c0_28, %39, %c2_29, %c0_30] : memref<1x6x10x8xbf16, #tpu.memory_space<vmem>>, vector<1x4x8x8xbf16>
    %41 = vector.shape_cast %40 : vector<1x4x8x8xbf16> to vector<4x8x8xbf16>
    %42 = vector.shape_cast %41 : vector<4x8x8xbf16> to vector<32x8xbf16>
    %c4 = arith.constant 4 : index
    %c0_31 = arith.constant 0 : index
    %c0_32 = arith.constant 0 : index
    %43 = vector.load %arg6[%c4, %c0_31, %c0_32] : memref<25x8x128xbf16, #tpu.memory_space<vmem>>, vector<1x8x128xbf16>
    %44 = vector.shape_cast %43 : vector<1x8x128xbf16> to vector<8x128xbf16>
    %cst_33 = arith.constant dense<0.000000e+00> : vector<32x128xf32>
    %45 = tpu.matmul %42, %44, %cst_33 {dimension_numbers = #tpu.dot_dimension_numbers<[1], [0], [0], [1], [0, 0, 1, 1], [], []>} : vector<32x8xbf16>, vector<8x128xbf16>, vector<32x128xf32> -> vector<32x128xf32>
    %46 = arith.addf %37, %45 : vector<32x128xf32>
    %c0_i32_34 = arith.constant 0 : i32
    %47 = arith.addi %0, %c0_i32_34 : i32
    %c0_35 = arith.constant 0 : index
    %48 = arith.index_cast %47 : i32 to index
    %c0_36 = arith.constant 0 : index
    %c0_37 = arith.constant 0 : index
    %49 = vector.load %arg4[%c0_35, %48, %c0_36, %c0_37] : memref<1x6x10x8xbf16, #tpu.memory_space<vmem>>, vector<1x4x8x8xbf16>
    %50 = vector.shape_cast %49 : vector<1x4x8x8xbf16> to vector<4x8x8xbf16>
    %51 = vector.shape_cast %50 : vector<4x8x8xbf16> to vector<32x8xbf16>
    %c5 = arith.constant 5 : index
    %c0_38 = arith.constant 0 : index
    %c0_39 = arith.constant 0 : index
    %52 = vector.load %arg6[%c5, %c0_38, %c0_39] : memref<25x8x128xbf16, #tpu.memory_space<vmem>>, vector<1x8x128xbf16>
    %53 = vector.shape_cast %52 : vector<1x8x128xbf16> to vector<8x128xbf16>
    %cst_40 = arith.constant dense<0.000000e+00> : vector<32x128xf32>
    %54 = tpu.matmul %51, %53, %cst_40 {dimension_numbers = #tpu.dot_dimension_numbers<[1], [0], [0], [1], [0, 0, 1, 1], [], []>} : vector<32x8xbf16>, vector<8x128xbf16>, vector<32x128xf32> -> vector<32x128xf32>
    %55 = arith.addf %46, %54 : vector<32x128xf32>
    %c0_i32_41 = arith.constant 0 : i32
    %56 = arith.addi %0, %c0_i32_41 : i32
    %c0_42 = arith.constant 0 : index
    %57 = arith.index_cast %56 : i32 to index
    %c0_43 = arith.constant 0 : index
    %c0_44 = arith.constant 0 : index
    %58 = vector.load %arg5[%c0_42, %57, %c0_43, %c0_44] : memref<1x6x10x8xbf16, #tpu.memory_space<vmem>>, vector<1x4x8x8xbf16>
    %59 = vector.shape_cast %58 : vector<1x4x8x8xbf16> to vector<4x8x8xbf16>
    %60 = vector.shape_cast %59 : vector<4x8x8xbf16> to vector<32x8xbf16>
    %c6 = arith.constant 6 : index
    %c0_45 = arith.constant 0 : index
    %c0_46 = arith.constant 0 : index
    %61 = vector.load %arg6[%c6, %c0_45, %c0_46] : memref<25x8x128xbf16, #tpu.memory_space<vmem>>, vector<1x8x128xbf16>
    %62 = vector.shape_cast %61 : vector<1x8x128xbf16> to vector<8x128xbf16>
    %cst_47 = arith.constant dense<0.000000e+00> : vector<32x128xf32>
    %63 = tpu.matmul %60, %62, %cst_47 {dimension_numbers = #tpu.dot_dimension_numbers<[1], [0], [0], [1], [0, 0, 1, 1], [], []>} : vector<32x8xbf16>, vector<8x128xbf16>, vector<32x128xf32> -> vector<32x128xf32>
    %64 = arith.addf %55, %63 : vector<32x128xf32>
    %c0_i32_48 = arith.constant 0 : i32
    %65 = arith.addi %0, %c0_i32_48 : i32
    %c0_49 = arith.constant 0 : index
    %66 = arith.index_cast %65 : i32 to index
    %c1_50 = arith.constant 1 : index
    %c0_51 = arith.constant 0 : index
    %67 = vector.load %arg4[%c0_49, %66, %c1_50, %c0_51] : memref<1x6x10x8xbf16, #tpu.memory_space<vmem>>, vector<1x4x8x8xbf16>
    %68 = vector.shape_cast %67 : vector<1x4x8x8xbf16> to vector<4x8x8xbf16>
    %69 = vector.shape_cast %68 : vector<4x8x8xbf16> to vector<32x8xbf16>
    %c7 = arith.constant 7 : index
    %c0_52 = arith.constant 0 : index
    %c0_53 = arith.constant 0 : index
    %70 = vector.load %arg6[%c7, %c0_52, %c0_53] : memref<25x8x128xbf16, #tpu.memory_space<vmem>>, vector<1x8x128xbf16>
    %71 = vector.shape_cast %70 : vector<1x8x128xbf16> to vector<8x128xbf16>
    %cst_54 = arith.constant dense<0.000000e+00> : vector<32x128xf32>
    %72 = tpu.matmul %69, %71, %cst_54 {dimension_numbers = #tpu.dot_dimension_numbers<[1], [0], [0], [1], [0, 0, 1, 1], [], []>} : vector<32x8xbf16>, vector<8x128xbf16>, vector<32x128xf32> -> vector<32x128xf32>
    %73 = arith.addf %64, %72 : vector<32x128xf32>
    %c0_i32_55 = arith.constant 0 : i32
    %74 = arith.addi %0, %c0_i32_55 : i32
    %c0_56 = arith.constant 0 : index
    %75 = arith.index_cast %74 : i32 to index
    %c1_57 = arith.constant 1 : index
    %c0_58 = arith.constant 0 : index
    %76 = vector.load %arg5[%c0_56, %75, %c1_57, %c0_58] : memref<1x6x10x8xbf16, #tpu.memory_space<vmem>>, vector<1x4x8x8xbf16>
    %77 = vector.shape_cast %76 : vector<1x4x8x8xbf16> to vector<4x8x8xbf16>
    %78 = vector.shape_cast %77 : vector<4x8x8xbf16> to vector<32x8xbf16>
    %c8 = arith.constant 8 : index
    %c0_59 = arith.constant 0 : index
    %c0_60 = arith.constant 0 : index
    %79 = vector.load %arg6[%c8, %c0_59, %c0_60] : memref<25x8x128xbf16, #tpu.memory_space<vmem>>, vector<1x8x128xbf16>
    %80 = vector.shape_cast %79 : vector<1x8x128xbf16> to vector<8x128xbf16>
    %cst_61 = arith.constant dense<0.000000e+00> : vector<32x128xf32>
    %81 = tpu.matmul %78, %80, %cst_61 {dimension_numbers = #tpu.dot_dimension_numbers<[1], [0], [0], [1], [0, 0, 1, 1], [], []>} : vector<32x8xbf16>, vector<8x128xbf16>, vector<32x128xf32> -> vector<32x128xf32>
    %82 = arith.addf %73, %81 : vector<32x128xf32>
    %c0_i32_62 = arith.constant 0 : i32
    %83 = arith.addi %0, %c0_i32_62 : i32
    %c0_63 = arith.constant 0 : index
    %84 = arith.index_cast %83 : i32 to index
    %c2_64 = arith.constant 2 : index
    %c0_65 = arith.constant 0 : index
    %85 = vector.load %arg4[%c0_63, %84, %c2_64, %c0_65] : memref<1x6x10x8xbf16, #tpu.memory_space<vmem>>, vector<1x4x8x8xbf16>
    %86 = vector.shape_cast %85 : vector<1x4x8x8xbf16> to vector<4x8x8xbf16>
    %87 = vector.shape_cast %86 : vector<4x8x8xbf16> to vector<32x8xbf16>
    %c9 = arith.constant 9 : index
    %c0_66 = arith.constant 0 : index
    %c0_67 = arith.constant 0 : index
    %88 = vector.load %arg6[%c9, %c0_66, %c0_67] : memref<25x8x128xbf16, #tpu.memory_space<vmem>>, vector<1x8x128xbf16>
    %89 = vector.shape_cast %88 : vector<1x8x128xbf16> to vector<8x128xbf16>
    %cst_68 = arith.constant dense<0.000000e+00> : vector<32x128xf32>
    %90 = tpu.matmul %87, %89, %cst_68 {dimension_numbers = #tpu.dot_dimension_numbers<[1], [0], [0], [1], [0, 0, 1, 1], [], []>} : vector<32x8xbf16>, vector<8x128xbf16>, vector<32x128xf32> -> vector<32x128xf32>
    %91 = arith.addf %82, %90 : vector<32x128xf32>
    %c1_i32 = arith.constant 1 : i32
    %92 = arith.addi %0, %c1_i32 : i32
    %c0_69 = arith.constant 0 : index
    %93 = arith.index_cast %92 : i32 to index
    %c0_70 = arith.constant 0 : index
    %c0_71 = arith.constant 0 : index
    %94 = vector.load %arg2[%c0_69, %93, %c0_70, %c0_71] : memref<1x6x10x8xbf16, #tpu.memory_space<vmem>>, vector<1x4x8x8xbf16>
    %95 = vector.shape_cast %94 : vector<1x4x8x8xbf16> to vector<4x8x8xbf16>
    %96 = vector.shape_cast %95 : vector<4x8x8xbf16> to vector<32x8xbf16>
    %c10 = arith.constant 10 : index
    %c0_72 = arith.constant 0 : index
    %c0_73 = arith.constant 0 : index
    %97 = vector.load %arg6[%c10, %c0_72, %c0_73] : memref<25x8x128xbf16, #tpu.memory_space<vmem>>, vector<1x8x128xbf16>
    %98 = vector.shape_cast %97 : vector<1x8x128xbf16> to vector<8x128xbf16>
    %cst_74 = arith.constant dense<0.000000e+00> : vector<32x128xf32>
    %99 = tpu.matmul %96, %98, %cst_74 {dimension_numbers = #tpu.dot_dimension_numbers<[1], [0], [0], [1], [0, 0, 1, 1], [], []>} : vector<32x8xbf16>, vector<8x128xbf16>, vector<32x128xf32> -> vector<32x128xf32>
    %100 = arith.addf %91, %99 : vector<32x128xf32>
    %c1_i32_75 = arith.constant 1 : i32
    %101 = arith.addi %0, %c1_i32_75 : i32
    %c0_76 = arith.constant 0 : index
    %102 = arith.index_cast %101 : i32 to index
    %c0_77 = arith.constant 0 : index
    %c0_78 = arith.constant 0 : index
    %103 = vector.load %arg3[%c0_76, %102, %c0_77, %c0_78] : memref<1x6x10x8xbf16, #tpu.memory_space<vmem>>, vector<1x4x8x8xbf16>
    %104 = vector.shape_cast %103 : vector<1x4x8x8xbf16> to vector<4x8x8xbf16>
    %105 = vector.shape_cast %104 : vector<4x8x8xbf16> to vector<32x8xbf16>
    %c11 = arith.constant 11 : index
    %c0_79 = arith.constant 0 : index
    %c0_80 = arith.constant 0 : index
    %106 = vector.load %arg6[%c11, %c0_79, %c0_80] : memref<25x8x128xbf16, #tpu.memory_space<vmem>>, vector<1x8x128xbf16>
    %107 = vector.shape_cast %106 : vector<1x8x128xbf16> to vector<8x128xbf16>
    %cst_81 = arith.constant dense<0.000000e+00> : vector<32x128xf32>
    %108 = tpu.matmul %105, %107, %cst_81 {dimension_numbers = #tpu.dot_dimension_numbers<[1], [0], [0], [1], [0, 0, 1, 1], [], []>} : vector<32x8xbf16>, vector<8x128xbf16>, vector<32x128xf32> -> vector<32x128xf32>
    %109 = arith.addf %100, %108 : vector<32x128xf32>
    %c1_i32_82 = arith.constant 1 : i32
    %110 = arith.addi %0, %c1_i32_82 : i32
    %c0_83 = arith.constant 0 : index
    %111 = arith.index_cast %110 : i32 to index
    %c1_84 = arith.constant 1 : index
    %c0_85 = arith.constant 0 : index
    %112 = vector.load %arg2[%c0_83, %111, %c1_84, %c0_85] : memref<1x6x10x8xbf16, #tpu.memory_space<vmem>>, vector<1x4x8x8xbf16>
    %113 = vector.shape_cast %112 : vector<1x4x8x8xbf16> to vector<4x8x8xbf16>
    %114 = vector.shape_cast %113 : vector<4x8x8xbf16> to vector<32x8xbf16>
    %c12 = arith.constant 12 : index
    %c0_86 = arith.constant 0 : index
    %c0_87 = arith.constant 0 : index
    %115 = vector.load %arg6[%c12, %c0_86, %c0_87] : memref<25x8x128xbf16, #tpu.memory_space<vmem>>, vector<1x8x128xbf16>
    %116 = vector.shape_cast %115 : vector<1x8x128xbf16> to vector<8x128xbf16>
    %cst_88 = arith.constant dense<0.000000e+00> : vector<32x128xf32>
    %117 = tpu.matmul %114, %116, %cst_88 {dimension_numbers = #tpu.dot_dimension_numbers<[1], [0], [0], [1], [0, 0, 1, 1], [], []>} : vector<32x8xbf16>, vector<8x128xbf16>, vector<32x128xf32> -> vector<32x128xf32>
    %118 = arith.addf %109, %117 : vector<32x128xf32>
    %c1_i32_89 = arith.constant 1 : i32
    %119 = arith.addi %0, %c1_i32_89 : i32
    %c0_90 = arith.constant 0 : index
    %120 = arith.index_cast %119 : i32 to index
    %c1_91 = arith.constant 1 : index
    %c0_92 = arith.constant 0 : index
    %121 = vector.load %arg3[%c0_90, %120, %c1_91, %c0_92] : memref<1x6x10x8xbf16, #tpu.memory_space<vmem>>, vector<1x4x8x8xbf16>
    %122 = vector.shape_cast %121 : vector<1x4x8x8xbf16> to vector<4x8x8xbf16>
    %123 = vector.shape_cast %122 : vector<4x8x8xbf16> to vector<32x8xbf16>
    %c13 = arith.constant 13 : index
    %c0_93 = arith.constant 0 : index
    %c0_94 = arith.constant 0 : index
    %124 = vector.load %arg6[%c13, %c0_93, %c0_94] : memref<25x8x128xbf16, #tpu.memory_space<vmem>>, vector<1x8x128xbf16>
    %125 = vector.shape_cast %124 : vector<1x8x128xbf16> to vector<8x128xbf16>
    %cst_95 = arith.constant dense<0.000000e+00> : vector<32x128xf32>
    %126 = tpu.matmul %123, %125, %cst_95 {dimension_numbers = #tpu.dot_dimension_numbers<[1], [0], [0], [1], [0, 0, 1, 1], [], []>} : vector<32x8xbf16>, vector<8x128xbf16>, vector<32x128xf32> -> vector<32x128xf32>
    %127 = arith.addf %118, %126 : vector<32x128xf32>
    %c1_i32_96 = arith.constant 1 : i32
    %128 = arith.addi %0, %c1_i32_96 : i32
    %c0_97 = arith.constant 0 : index
    %129 = arith.index_cast %128 : i32 to index
    %c2_98 = arith.constant 2 : index
    %c0_99 = arith.constant 0 : index
    %130 = vector.load %arg2[%c0_97, %129, %c2_98, %c0_99] : memref<1x6x10x8xbf16, #tpu.memory_space<vmem>>, vector<1x4x8x8xbf16>
    %131 = vector.shape_cast %130 : vector<1x4x8x8xbf16> to vector<4x8x8xbf16>
    %132 = vector.shape_cast %131 : vector<4x8x8xbf16> to vector<32x8xbf16>
    %c14 = arith.constant 14 : index
    %c0_100 = arith.constant 0 : index
    %c0_101 = arith.constant 0 : index
    %133 = vector.load %arg6[%c14, %c0_100, %c0_101] : memref<25x8x128xbf16, #tpu.memory_space<vmem>>, vector<1x8x128xbf16>
    %134 = vector.shape_cast %133 : vector<1x8x128xbf16> to vector<8x128xbf16>
    %cst_102 = arith.constant dense<0.000000e+00> : vector<32x128xf32>
    %135 = tpu.matmul %132, %134, %cst_102 {dimension_numbers = #tpu.dot_dimension_numbers<[1], [0], [0], [1], [0, 0, 1, 1], [], []>} : vector<32x8xbf16>, vector<8x128xbf16>, vector<32x128xf32> -> vector<32x128xf32>
    %136 = arith.addf %127, %135 : vector<32x128xf32>
    %c1_i32_103 = arith.constant 1 : i32
    %137 = arith.addi %0, %c1_i32_103 : i32
    %c0_104 = arith.constant 0 : index
    %138 = arith.index_cast %137 : i32 to index
    %c0_105 = arith.constant 0 : index
    %c0_106 = arith.constant 0 : index
    %139 = vector.load %arg4[%c0_104, %138, %c0_105, %c0_106] : memref<1x6x10x8xbf16, #tpu.memory_space<vmem>>, vector<1x4x8x8xbf16>
    %140 = vector.shape_cast %139 : vector<1x4x8x8xbf16> to vector<4x8x8xbf16>
    %141 = vector.shape_cast %140 : vector<4x8x8xbf16> to vector<32x8xbf16>
    %c15 = arith.constant 15 : index
    %c0_107 = arith.constant 0 : index
    %c0_108 = arith.constant 0 : index
    %142 = vector.load %arg6[%c15, %c0_107, %c0_108] : memref<25x8x128xbf16, #tpu.memory_space<vmem>>, vector<1x8x128xbf16>
    %143 = vector.shape_cast %142 : vector<1x8x128xbf16> to vector<8x128xbf16>
    %cst_109 = arith.constant dense<0.000000e+00> : vector<32x128xf32>
    %144 = tpu.matmul %141, %143, %cst_109 {dimension_numbers = #tpu.dot_dimension_numbers<[1], [0], [0], [1], [0, 0, 1, 1], [], []>} : vector<32x8xbf16>, vector<8x128xbf16>, vector<32x128xf32> -> vector<32x128xf32>
    %145 = arith.addf %136, %144 : vector<32x128xf32>
    %c1_i32_110 = arith.constant 1 : i32
    %146 = arith.addi %0, %c1_i32_110 : i32
    %c0_111 = arith.constant 0 : index
    %147 = arith.index_cast %146 : i32 to index
    %c0_112 = arith.constant 0 : index
    %c0_113 = arith.constant 0 : index
    %148 = vector.load %arg5[%c0_111, %147, %c0_112, %c0_113] : memref<1x6x10x8xbf16, #tpu.memory_space<vmem>>, vector<1x4x8x8xbf16>
    %149 = vector.shape_cast %148 : vector<1x4x8x8xbf16> to vector<4x8x8xbf16>
    %150 = vector.shape_cast %149 : vector<4x8x8xbf16> to vector<32x8xbf16>
    %c16 = arith.constant 16 : index
    %c0_114 = arith.constant 0 : index
    %c0_115 = arith.constant 0 : index
    %151 = vector.load %arg6[%c16, %c0_114, %c0_115] : memref<25x8x128xbf16, #tpu.memory_space<vmem>>, vector<1x8x128xbf16>
    %152 = vector.shape_cast %151 : vector<1x8x128xbf16> to vector<8x128xbf16>
    %cst_116 = arith.constant dense<0.000000e+00> : vector<32x128xf32>
    %153 = tpu.matmul %150, %152, %cst_116 {dimension_numbers = #tpu.dot_dimension_numbers<[1], [0], [0], [1], [0, 0, 1, 1], [], []>} : vector<32x8xbf16>, vector<8x128xbf16>, vector<32x128xf32> -> vector<32x128xf32>
    %154 = arith.addf %145, %153 : vector<32x128xf32>
    %c1_i32_117 = arith.constant 1 : i32
    %155 = arith.addi %0, %c1_i32_117 : i32
    %c0_118 = arith.constant 0 : index
    %156 = arith.index_cast %155 : i32 to index
    %c1_119 = arith.constant 1 : index
    %c0_120 = arith.constant 0 : index
    %157 = vector.load %arg4[%c0_118, %156, %c1_119, %c0_120] : memref<1x6x10x8xbf16, #tpu.memory_space<vmem>>, vector<1x4x8x8xbf16>
    %158 = vector.shape_cast %157 : vector<1x4x8x8xbf16> to vector<4x8x8xbf16>
    %159 = vector.shape_cast %158 : vector<4x8x8xbf16> to vector<32x8xbf16>
    %c17 = arith.constant 17 : index
    %c0_121 = arith.constant 0 : index
    %c0_122 = arith.constant 0 : index
    %160 = vector.load %arg6[%c17, %c0_121, %c0_122] : memref<25x8x128xbf16, #tpu.memory_space<vmem>>, vector<1x8x128xbf16>
    %161 = vector.shape_cast %160 : vector<1x8x128xbf16> to vector<8x128xbf16>
    %cst_123 = arith.constant dense<0.000000e+00> : vector<32x128xf32>
    %162 = tpu.matmul %159, %161, %cst_123 {dimension_numbers = #tpu.dot_dimension_numbers<[1], [0], [0], [1], [0, 0, 1, 1], [], []>} : vector<32x8xbf16>, vector<8x128xbf16>, vector<32x128xf32> -> vector<32x128xf32>
    %163 = arith.addf %154, %162 : vector<32x128xf32>
    %c1_i32_124 = arith.constant 1 : i32
    %164 = arith.addi %0, %c1_i32_124 : i32
    %c0_125 = arith.constant 0 : index
    %165 = arith.index_cast %164 : i32 to index
    %c1_126 = arith.constant 1 : index
    %c0_127 = arith.constant 0 : index
    %166 = vector.load %arg5[%c0_125, %165, %c1_126, %c0_127] : memref<1x6x10x8xbf16, #tpu.memory_space<vmem>>, vector<1x4x8x8xbf16>
    %167 = vector.shape_cast %166 : vector<1x4x8x8xbf16> to vector<4x8x8xbf16>
    %168 = vector.shape_cast %167 : vector<4x8x8xbf16> to vector<32x8xbf16>
    %c18 = arith.constant 18 : index
    %c0_128 = arith.constant 0 : index
    %c0_129 = arith.constant 0 : index
    %169 = vector.load %arg6[%c18, %c0_128, %c0_129] : memref<25x8x128xbf16, #tpu.memory_space<vmem>>, vector<1x8x128xbf16>
    %170 = vector.shape_cast %169 : vector<1x8x128xbf16> to vector<8x128xbf16>
    %cst_130 = arith.constant dense<0.000000e+00> : vector<32x128xf32>
    %171 = tpu.matmul %168, %170, %cst_130 {dimension_numbers = #tpu.dot_dimension_numbers<[1], [0], [0], [1], [0, 0, 1, 1], [], []>} : vector<32x8xbf16>, vector<8x128xbf16>, vector<32x128xf32> -> vector<32x128xf32>
    %172 = arith.addf %163, %171 : vector<32x128xf32>
    %c1_i32_131 = arith.constant 1 : i32
    %173 = arith.addi %0, %c1_i32_131 : i32
    %c0_132 = arith.constant 0 : index
    %174 = arith.index_cast %173 : i32 to index
    %c2_133 = arith.constant 2 : index
    %c0_134 = arith.constant 0 : index
    %175 = vector.load %arg4[%c0_132, %174, %c2_133, %c0_134] : memref<1x6x10x8xbf16, #tpu.memory_space<vmem>>, vector<1x4x8x8xbf16>
    %176 = vector.shape_cast %175 : vector<1x4x8x8xbf16> to vector<4x8x8xbf16>
    %177 = vector.shape_cast %176 : vector<4x8x8xbf16> to vector<32x8xbf16>
    %c19 = arith.constant 19 : index
    %c0_135 = arith.constant 0 : index
    %c0_136 = arith.constant 0 : index
    %178 = vector.load %arg6[%c19, %c0_135, %c0_136] : memref<25x8x128xbf16, #tpu.memory_space<vmem>>, vector<1x8x128xbf16>
    %179 = vector.shape_cast %178 : vector<1x8x128xbf16> to vector<8x128xbf16>
    %cst_137 = arith.constant dense<0.000000e+00> : vector<32x128xf32>
    %180 = tpu.matmul %177, %179, %cst_137 {dimension_numbers = #tpu.dot_dimension_numbers<[1], [0], [0], [1], [0, 0, 1, 1], [], []>} : vector<32x8xbf16>, vector<8x128xbf16>, vector<32x128xf32> -> vector<32x128xf32>
    %181 = arith.addf %172, %180 : vector<32x128xf32>
    %c2_i32 = arith.constant 2 : i32
    %182 = arith.addi %0, %c2_i32 : i32
    %c0_138 = arith.constant 0 : index
    %183 = arith.index_cast %182 : i32 to index
    %c0_139 = arith.constant 0 : index
    %c0_140 = arith.constant 0 : index
    %184 = vector.load %arg2[%c0_138, %183, %c0_139, %c0_140] : memref<1x6x10x8xbf16, #tpu.memory_space<vmem>>, vector<1x4x8x8xbf16>
    %185 = vector.shape_cast %184 : vector<1x4x8x8xbf16> to vector<4x8x8xbf16>
    %186 = vector.shape_cast %185 : vector<4x8x8xbf16> to vector<32x8xbf16>
    %c20 = arith.constant 20 : index
    %c0_141 = arith.constant 0 : index
    %c0_142 = arith.constant 0 : index
    %187 = vector.load %arg6[%c20, %c0_141, %c0_142] : memref<25x8x128xbf16, #tpu.memory_space<vmem>>, vector<1x8x128xbf16>
    %188 = vector.shape_cast %187 : vector<1x8x128xbf16> to vector<8x128xbf16>
    %cst_143 = arith.constant dense<0.000000e+00> : vector<32x128xf32>
    %189 = tpu.matmul %186, %188, %cst_143 {dimension_numbers = #tpu.dot_dimension_numbers<[1], [0], [0], [1], [0, 0, 1, 1], [], []>} : vector<32x8xbf16>, vector<8x128xbf16>, vector<32x128xf32> -> vector<32x128xf32>
    %190 = arith.addf %181, %189 : vector<32x128xf32>
    %c2_i32_144 = arith.constant 2 : i32
    %191 = arith.addi %0, %c2_i32_144 : i32
    %c0_145 = arith.constant 0 : index
    %192 = arith.index_cast %191 : i32 to index
    %c0_146 = arith.constant 0 : index
    %c0_147 = arith.constant 0 : index
    %193 = vector.load %arg3[%c0_145, %192, %c0_146, %c0_147] : memref<1x6x10x8xbf16, #tpu.memory_space<vmem>>, vector<1x4x8x8xbf16>
    %194 = vector.shape_cast %193 : vector<1x4x8x8xbf16> to vector<4x8x8xbf16>
    %195 = vector.shape_cast %194 : vector<4x8x8xbf16> to vector<32x8xbf16>
    %c21 = arith.constant 21 : index
    %c0_148 = arith.constant 0 : index
    %c0_149 = arith.constant 0 : index
    %196 = vector.load %arg6[%c21, %c0_148, %c0_149] : memref<25x8x128xbf16, #tpu.memory_space<vmem>>, vector<1x8x128xbf16>
    %197 = vector.shape_cast %196 : vector<1x8x128xbf16> to vector<8x128xbf16>
    %cst_150 = arith.constant dense<0.000000e+00> : vector<32x128xf32>
    %198 = tpu.matmul %195, %197, %cst_150 {dimension_numbers = #tpu.dot_dimension_numbers<[1], [0], [0], [1], [0, 0, 1, 1], [], []>} : vector<32x8xbf16>, vector<8x128xbf16>, vector<32x128xf32> -> vector<32x128xf32>
    %199 = arith.addf %190, %198 : vector<32x128xf32>
    %c2_i32_151 = arith.constant 2 : i32
    %200 = arith.addi %0, %c2_i32_151 : i32
    %c0_152 = arith.constant 0 : index
    %201 = arith.index_cast %200 : i32 to index
    %c1_153 = arith.constant 1 : index
    %c0_154 = arith.constant 0 : index
    %202 = vector.load %arg2[%c0_152, %201, %c1_153, %c0_154] : memref<1x6x10x8xbf16, #tpu.memory_space<vmem>>, vector<1x4x8x8xbf16>
    %203 = vector.shape_cast %202 : vector<1x4x8x8xbf16> to vector<4x8x8xbf16>
    %204 = vector.shape_cast %203 : vector<4x8x8xbf16> to vector<32x8xbf16>
    %c22 = arith.constant 22 : index
    %c0_155 = arith.constant 0 : index
    %c0_156 = arith.constant 0 : index
    %205 = vector.load %arg6[%c22, %c0_155, %c0_156] : memref<25x8x128xbf16, #tpu.memory_space<vmem>>, vector<1x8x128xbf16>
    %206 = vector.shape_cast %205 : vector<1x8x128xbf16> to vector<8x128xbf16>
    %cst_157 = arith.constant dense<0.000000e+00> : vector<32x128xf32>
    %207 = tpu.matmul %204, %206, %cst_157 {dimension_numbers = #tpu.dot_dimension_numbers<[1], [0], [0], [1], [0, 0, 1, 1], [], []>} : vector<32x8xbf16>, vector<8x128xbf16>, vector<32x128xf32> -> vector<32x128xf32>
    %208 = arith.addf %199, %207 : vector<32x128xf32>
    %c2_i32_158 = arith.constant 2 : i32
    %209 = arith.addi %0, %c2_i32_158 : i32
    %c0_159 = arith.constant 0 : index
    %210 = arith.index_cast %209 : i32 to index
    %c1_160 = arith.constant 1 : index
    %c0_161 = arith.constant 0 : index
    %211 = vector.load %arg3[%c0_159, %210, %c1_160, %c0_161] : memref<1x6x10x8xbf16, #tpu.memory_space<vmem>>, vector<1x4x8x8xbf16>
    %212 = vector.shape_cast %211 : vector<1x4x8x8xbf16> to vector<4x8x8xbf16>
    %213 = vector.shape_cast %212 : vector<4x8x8xbf16> to vector<32x8xbf16>
    %c23 = arith.constant 23 : index
    %c0_162 = arith.constant 0 : index
    %c0_163 = arith.constant 0 : index
    %214 = vector.load %arg6[%c23, %c0_162, %c0_163] : memref<25x8x128xbf16, #tpu.memory_space<vmem>>, vector<1x8x128xbf16>
    %215 = vector.shape_cast %214 : vector<1x8x128xbf16> to vector<8x128xbf16>
    %cst_164 = arith.constant dense<0.000000e+00> : vector<32x128xf32>
    %216 = tpu.matmul %213, %215, %cst_164 {dimension_numbers = #tpu.dot_dimension_numbers<[1], [0], [0], [1], [0, 0, 1, 1], [], []>} : vector<32x8xbf16>, vector<8x128xbf16>, vector<32x128xf32> -> vector<32x128xf32>
    %217 = arith.addf %208, %216 : vector<32x128xf32>
    %c2_i32_165 = arith.constant 2 : i32
    %218 = arith.addi %0, %c2_i32_165 : i32
    %c0_166 = arith.constant 0 : index
    %219 = arith.index_cast %218 : i32 to index
    %c2_167 = arith.constant 2 : index
    %c0_168 = arith.constant 0 : index
    %220 = vector.load %arg2[%c0_166, %219, %c2_167, %c0_168] : memref<1x6x10x8xbf16, #tpu.memory_space<vmem>>, vector<1x4x8x8xbf16>
    %221 = vector.shape_cast %220 : vector<1x4x8x8xbf16> to vector<4x8x8xbf16>
    %222 = vector.shape_cast %221 : vector<4x8x8xbf16> to vector<32x8xbf16>
    %c24 = arith.constant 24 : index
    %c0_169 = arith.constant 0 : index
    %c0_170 = arith.constant 0 : index
    %223 = vector.load %arg6[%c24, %c0_169, %c0_170] : memref<25x8x128xbf16, #tpu.memory_space<vmem>>, vector<1x8x128xbf16>
    %224 = vector.shape_cast %223 : vector<1x8x128xbf16> to vector<8x128xbf16>
    %cst_171 = arith.constant dense<0.000000e+00> : vector<32x128xf32>
    %225 = tpu.matmul %222, %224, %cst_171 {dimension_numbers = #tpu.dot_dimension_numbers<[1], [0], [0], [1], [0, 0, 1, 1], [], []>} : vector<32x8xbf16>, vector<8x128xbf16>, vector<32x128xf32> -> vector<32x128xf32>
    %226 = arith.addf %217, %225 : vector<32x128xf32>
    %c0_172 = arith.constant 0 : index
    %c0_173 = arith.constant 0 : index
    %227 = vector.load %arg7[%c0_172, %c0_173] : memref<1x128xf32, #tpu.memory_space<vmem>>, vector<1x128xf32>
    %228 = vector.broadcast %227 : vector<1x128xf32> to vector<32x128xf32>
    %229 = arith.addf %226, %228 : vector<32x128xf32>
    %cst_174 = arith.constant 0.000000e+00 : f32
    %230 = vector.broadcast %cst_174 : f32 to vector<32x128xf32>
    %231 = arith.cmpf oge, %229, %230 : vector<32x128xf32>
    %cst_175 = arith.constant 2.000000e-01 : f32
    %232 = vector.broadcast %cst_175 : f32 to vector<32x128xf32>
    %233 = arith.mulf %232, %229 : vector<32x128xf32>
    %234 = arith.select %231, %229, %233 : vector<32x128xi1>, vector<32x128xf32>
    %235 = vector.shape_cast %234 : vector<32x128xf32> to vector<4x8x128xf32>
    %236 = arith.truncf %235 : vector<4x8x128xf32> to vector<4x8x128xbf16>
    %c0_176 = arith.constant 0 : index
    %c0_177 = arith.constant 0 : index
    %c0_178 = arith.constant 0 : index
    %c0_179 = arith.constant 0 : index
    %237 = vector.load %arg8[%c0_176, %c0_177, %c0_178, %c0_179] : memref<1x4x8x128xbf16, #tpu.memory_space<vmem>>, vector<1x4x8x128xbf16>
    %238 = vector.shape_cast %237 : vector<1x4x8x128xbf16> to vector<4x8x128xbf16>
    %239 = vector.shape_cast %236 : vector<4x8x128xbf16> to vector<1x4x8x128xbf16>
    tpu.vector_store %arg8[%c0_176, %c0_177, %c0_178, %c0_179], %239 {strides = array<i32>} : memref<1x4x8x128xbf16, #tpu.memory_space<vmem>>, vector<1x4x8x128xbf16>,
    return
  }
  func.func @transform_0(%arg0: i32, %arg1: i32) -> (i32, i32, i32, i32) {
    %c0_i32 = arith.constant 0 : i32
    %c0_i32_0 = arith.constant 0 : i32
    %c0_i32_1 = arith.constant 0 : i32
    %c0_i32_2 = arith.constant 0 : i32
    return %arg0, %c0_i32, %c0_i32_0, %c0_i32_1 : i32, i32, i32, i32
  }
  func.func @transform_1(%arg0: i32, %arg1: i32) -> (i32, i32, i32, i32) {
    %c0_i32 = arith.constant 0 : i32
    %c0_i32_0 = arith.constant 0 : i32
    %c0_i32_1 = arith.constant 0 : i32
    %c0_i32_2 = arith.constant 0 : i32
    return %arg0, %c0_i32, %c0_i32_0, %c0_i32_1 : i32, i32, i32, i32
  }
  func.func @transform_2(%arg0: i32, %arg1: i32) -> (i32, i32, i32, i32) {
    %c0_i32 = arith.constant 0 : i32
    %c0_i32_0 = arith.constant 0 : i32
    %c0_i32_1 = arith.constant 0 : i32
    %c0_i32_2 = arith.constant 0 : i32
    return %arg0, %c0_i32, %c0_i32_0, %c0_i32_1 : i32, i32, i32, i32
  }
  func.func @transform_3(%arg0: i32, %arg1: i32) -> (i32, i32, i32, i32) {
    %c0_i32 = arith.constant 0 : i32
    %c0_i32_0 = arith.constant 0 : i32
    %c0_i32_1 = arith.constant 0 : i32
    %c0_i32_2 = arith.constant 0 : i32
    return %arg0, %c0_i32, %c0_i32_0, %c0_i32_1 : i32, i32, i32, i32
  }
  func.func @transform_4(%arg0: i32, %arg1: i32) -> (i32, i32, i32) {
    %c0_i32 = arith.constant 0 : i32
    %c0_i32_0 = arith.constant 0 : i32
    %c0_i32_1 = arith.constant 0 : i32
    %c0_i32_2 = arith.constant 0 : i32
    return %c0_i32, %c0_i32_0, %c0_i32_1 : i32, i32, i32
  }
  func.func @transform_5(%arg0: i32, %arg1: i32) -> (i32, i32) {
    %c0_i32 = arith.constant 0 : i32
    %c0_i32_0 = arith.constant 0 : i32
    %c0_i32_1 = arith.constant 0 : i32
    return %c0_i32, %c0_i32_0 : i32, i32
  }
  func.func @transform_6(%arg0: i32, %arg1: i32) -> (i32, i32, i32, i32) {
    %c0_i32 = arith.constant 0 : i32
    %c0_i32_0 = arith.constant 0 : i32
    %c0_i32_1 = arith.constant 0 : i32
    return %arg0, %arg1, %c0_i32, %c0_i32_0 : i32, i32, i32, i32
  }
}

module attributes {stable_mosaic.version = 11 : i64} {
  func.func @_dconv_kernel(%arg0: i32, %arg1: i32, %arg2: memref<1x4x10x16xbf16, #tpu.memory_space<vmem>>, %arg3: memref<1x4x10x16xbf16, #tpu.memory_space<vmem>>, %arg4: memref<1x4x10x16xbf16, #tpu.memory_space<vmem>>, %arg5: memref<1x4x10x16xbf16, #tpu.memory_space<vmem>>, %arg6: memref<25x16x128xbf16, #tpu.memory_space<vmem>>, %arg7: memref<1x128xf32, #tpu.memory_space<vmem>>, %arg8: memref<1x2x8x128xbf16, #tpu.memory_space<vmem>>) attributes {dimension_semantics = [#tpu.dimension_semantics<parallel>, #tpu.dimension_semantics<arbitrary>], iteration_bounds = array<i64: 2, 1>, scalar_prefetch = 0 : i64, scratch_operands = 0 : i64, tpu.core_type = #tpu.core_type<tc>, window_params = [{transform_indices = @transform_0, window_bounds = array<i64: 1, 4, 10, 16>}, {transform_indices = @transform_1, window_bounds = array<i64: 1, 4, 10, 16>}, {transform_indices = @transform_2, window_bounds = array<i64: 1, 4, 10, 16>}, {transform_indices = @transform_3, window_bounds = array<i64: 1, 4, 10, 16>}, {pipeline_mode = #tpu.pipeline_mode<synchronous>, transform_indices = @transform_4, window_bounds = array<i64: 25, 16, 128>}, {pipeline_mode = #tpu.pipeline_mode<synchronous>, transform_indices = @transform_5, window_bounds = array<i64: 1, 128>}, {transform_indices = @transform_6, window_bounds = array<i64: 1, 2, 8, 128>}]} {
    %c2_i32 = arith.constant 2 : i32
    %0 = arith.muli %arg1, %c2_i32 : i32
    %cst = arith.constant 0.000000e+00 : f32
    %1 = vector.broadcast %cst : f32 to vector<16x128xf32>
    %c0_i32 = arith.constant 0 : i32
    %2 = arith.addi %0, %c0_i32 : i32
    %c0 = arith.constant 0 : index
    %3 = arith.index_cast %2 : i32 to index
    %c0_0 = arith.constant 0 : index
    %c0_1 = arith.constant 0 : index
    %4 = vector.load %arg2[%c0, %3, %c0_0, %c0_1] : memref<1x4x10x16xbf16, #tpu.memory_space<vmem>>, vector<1x2x8x16xbf16>
    %5 = vector.shape_cast %4 : vector<1x2x8x16xbf16> to vector<2x8x16xbf16>
    %6 = vector.shape_cast %5 : vector<2x8x16xbf16> to vector<16x16xbf16>
    %c0_2 = arith.constant 0 : index
    %c0_3 = arith.constant 0 : index
    %c0_4 = arith.constant 0 : index
    %7 = vector.load %arg6[%c0_2, %c0_3, %c0_4] : memref<25x16x128xbf16, #tpu.memory_space<vmem>>, vector<1x16x128xbf16>
    %8 = vector.shape_cast %7 : vector<1x16x128xbf16> to vector<16x128xbf16>
    %cst_5 = arith.constant dense<0.000000e+00> : vector<16x128xf32>
    %9 = tpu.matmul %6, %8, %cst_5 {dimension_numbers = #tpu.dot_dimension_numbers<[1], [0], [0], [1], [0, 0, 1, 1], [], []>} : vector<16x16xbf16>, vector<16x128xbf16>, vector<16x128xf32> -> vector<16x128xf32>
    %10 = arith.addf %1, %9 : vector<16x128xf32>
    %c0_i32_6 = arith.constant 0 : i32
    %11 = arith.addi %0, %c0_i32_6 : i32
    %c0_7 = arith.constant 0 : index
    %12 = arith.index_cast %11 : i32 to index
    %c0_8 = arith.constant 0 : index
    %c0_9 = arith.constant 0 : index
    %13 = vector.load %arg3[%c0_7, %12, %c0_8, %c0_9] : memref<1x4x10x16xbf16, #tpu.memory_space<vmem>>, vector<1x2x8x16xbf16>
    %14 = vector.shape_cast %13 : vector<1x2x8x16xbf16> to vector<2x8x16xbf16>
    %15 = vector.shape_cast %14 : vector<2x8x16xbf16> to vector<16x16xbf16>
    %c1 = arith.constant 1 : index
    %c0_10 = arith.constant 0 : index
    %c0_11 = arith.constant 0 : index
    %16 = vector.load %arg6[%c1, %c0_10, %c0_11] : memref<25x16x128xbf16, #tpu.memory_space<vmem>>, vector<1x16x128xbf16>
    %17 = vector.shape_cast %16 : vector<1x16x128xbf16> to vector<16x128xbf16>
    %cst_12 = arith.constant dense<0.000000e+00> : vector<16x128xf32>
    %18 = tpu.matmul %15, %17, %cst_12 {dimension_numbers = #tpu.dot_dimension_numbers<[1], [0], [0], [1], [0, 0, 1, 1], [], []>} : vector<16x16xbf16>, vector<16x128xbf16>, vector<16x128xf32> -> vector<16x128xf32>
    %19 = arith.addf %10, %18 : vector<16x128xf32>
    %c0_i32_13 = arith.constant 0 : i32
    %20 = arith.addi %0, %c0_i32_13 : i32
    %c0_14 = arith.constant 0 : index
    %21 = arith.index_cast %20 : i32 to index
    %c1_15 = arith.constant 1 : index
    %c0_16 = arith.constant 0 : index
    %22 = vector.load %arg2[%c0_14, %21, %c1_15, %c0_16] : memref<1x4x10x16xbf16, #tpu.memory_space<vmem>>, vector<1x2x8x16xbf16>
    %23 = vector.shape_cast %22 : vector<1x2x8x16xbf16> to vector<2x8x16xbf16>
    %24 = vector.shape_cast %23 : vector<2x8x16xbf16> to vector<16x16xbf16>
    %c2 = arith.constant 2 : index
    %c0_17 = arith.constant 0 : index
    %c0_18 = arith.constant 0 : index
    %25 = vector.load %arg6[%c2, %c0_17, %c0_18] : memref<25x16x128xbf16, #tpu.memory_space<vmem>>, vector<1x16x128xbf16>
    %26 = vector.shape_cast %25 : vector<1x16x128xbf16> to vector<16x128xbf16>
    %cst_19 = arith.constant dense<0.000000e+00> : vector<16x128xf32>
    %27 = tpu.matmul %24, %26, %cst_19 {dimension_numbers = #tpu.dot_dimension_numbers<[1], [0], [0], [1], [0, 0, 1, 1], [], []>} : vector<16x16xbf16>, vector<16x128xbf16>, vector<16x128xf32> -> vector<16x128xf32>
    %28 = arith.addf %19, %27 : vector<16x128xf32>
    %c0_i32_20 = arith.constant 0 : i32
    %29 = arith.addi %0, %c0_i32_20 : i32
    %c0_21 = arith.constant 0 : index
    %30 = arith.index_cast %29 : i32 to index
    %c1_22 = arith.constant 1 : index
    %c0_23 = arith.constant 0 : index
    %31 = vector.load %arg3[%c0_21, %30, %c1_22, %c0_23] : memref<1x4x10x16xbf16, #tpu.memory_space<vmem>>, vector<1x2x8x16xbf16>
    %32 = vector.shape_cast %31 : vector<1x2x8x16xbf16> to vector<2x8x16xbf16>
    %33 = vector.shape_cast %32 : vector<2x8x16xbf16> to vector<16x16xbf16>
    %c3 = arith.constant 3 : index
    %c0_24 = arith.constant 0 : index
    %c0_25 = arith.constant 0 : index
    %34 = vector.load %arg6[%c3, %c0_24, %c0_25] : memref<25x16x128xbf16, #tpu.memory_space<vmem>>, vector<1x16x128xbf16>
    %35 = vector.shape_cast %34 : vector<1x16x128xbf16> to vector<16x128xbf16>
    %cst_26 = arith.constant dense<0.000000e+00> : vector<16x128xf32>
    %36 = tpu.matmul %33, %35, %cst_26 {dimension_numbers = #tpu.dot_dimension_numbers<[1], [0], [0], [1], [0, 0, 1, 1], [], []>} : vector<16x16xbf16>, vector<16x128xbf16>, vector<16x128xf32> -> vector<16x128xf32>
    %37 = arith.addf %28, %36 : vector<16x128xf32>
    %c0_i32_27 = arith.constant 0 : i32
    %38 = arith.addi %0, %c0_i32_27 : i32
    %c0_28 = arith.constant 0 : index
    %39 = arith.index_cast %38 : i32 to index
    %c2_29 = arith.constant 2 : index
    %c0_30 = arith.constant 0 : index
    %40 = vector.load %arg2[%c0_28, %39, %c2_29, %c0_30] : memref<1x4x10x16xbf16, #tpu.memory_space<vmem>>, vector<1x2x8x16xbf16>
    %41 = vector.shape_cast %40 : vector<1x2x8x16xbf16> to vector<2x8x16xbf16>
    %42 = vector.shape_cast %41 : vector<2x8x16xbf16> to vector<16x16xbf16>
    %c4 = arith.constant 4 : index
    %c0_31 = arith.constant 0 : index
    %c0_32 = arith.constant 0 : index
    %43 = vector.load %arg6[%c4, %c0_31, %c0_32] : memref<25x16x128xbf16, #tpu.memory_space<vmem>>, vector<1x16x128xbf16>
    %44 = vector.shape_cast %43 : vector<1x16x128xbf16> to vector<16x128xbf16>
    %cst_33 = arith.constant dense<0.000000e+00> : vector<16x128xf32>
    %45 = tpu.matmul %42, %44, %cst_33 {dimension_numbers = #tpu.dot_dimension_numbers<[1], [0], [0], [1], [0, 0, 1, 1], [], []>} : vector<16x16xbf16>, vector<16x128xbf16>, vector<16x128xf32> -> vector<16x128xf32>
    %46 = arith.addf %37, %45 : vector<16x128xf32>
    %c0_i32_34 = arith.constant 0 : i32
    %47 = arith.addi %0, %c0_i32_34 : i32
    %c0_35 = arith.constant 0 : index
    %48 = arith.index_cast %47 : i32 to index
    %c0_36 = arith.constant 0 : index
    %c0_37 = arith.constant 0 : index
    %49 = vector.load %arg4[%c0_35, %48, %c0_36, %c0_37] : memref<1x4x10x16xbf16, #tpu.memory_space<vmem>>, vector<1x2x8x16xbf16>
    %50 = vector.shape_cast %49 : vector<1x2x8x16xbf16> to vector<2x8x16xbf16>
    %51 = vector.shape_cast %50 : vector<2x8x16xbf16> to vector<16x16xbf16>
    %c5 = arith.constant 5 : index
    %c0_38 = arith.constant 0 : index
    %c0_39 = arith.constant 0 : index
    %52 = vector.load %arg6[%c5, %c0_38, %c0_39] : memref<25x16x128xbf16, #tpu.memory_space<vmem>>, vector<1x16x128xbf16>
    %53 = vector.shape_cast %52 : vector<1x16x128xbf16> to vector<16x128xbf16>
    %cst_40 = arith.constant dense<0.000000e+00> : vector<16x128xf32>
    %54 = tpu.matmul %51, %53, %cst_40 {dimension_numbers = #tpu.dot_dimension_numbers<[1], [0], [0], [1], [0, 0, 1, 1], [], []>} : vector<16x16xbf16>, vector<16x128xbf16>, vector<16x128xf32> -> vector<16x128xf32>
    %55 = arith.addf %46, %54 : vector<16x128xf32>
    %c0_i32_41 = arith.constant 0 : i32
    %56 = arith.addi %0, %c0_i32_41 : i32
    %c0_42 = arith.constant 0 : index
    %57 = arith.index_cast %56 : i32 to index
    %c0_43 = arith.constant 0 : index
    %c0_44 = arith.constant 0 : index
    %58 = vector.load %arg5[%c0_42, %57, %c0_43, %c0_44] : memref<1x4x10x16xbf16, #tpu.memory_space<vmem>>, vector<1x2x8x16xbf16>
    %59 = vector.shape_cast %58 : vector<1x2x8x16xbf16> to vector<2x8x16xbf16>
    %60 = vector.shape_cast %59 : vector<2x8x16xbf16> to vector<16x16xbf16>
    %c6 = arith.constant 6 : index
    %c0_45 = arith.constant 0 : index
    %c0_46 = arith.constant 0 : index
    %61 = vector.load %arg6[%c6, %c0_45, %c0_46] : memref<25x16x128xbf16, #tpu.memory_space<vmem>>, vector<1x16x128xbf16>
    %62 = vector.shape_cast %61 : vector<1x16x128xbf16> to vector<16x128xbf16>
    %cst_47 = arith.constant dense<0.000000e+00> : vector<16x128xf32>
    %63 = tpu.matmul %60, %62, %cst_47 {dimension_numbers = #tpu.dot_dimension_numbers<[1], [0], [0], [1], [0, 0, 1, 1], [], []>} : vector<16x16xbf16>, vector<16x128xbf16>, vector<16x128xf32> -> vector<16x128xf32>
    %64 = arith.addf %55, %63 : vector<16x128xf32>
    %c0_i32_48 = arith.constant 0 : i32
    %65 = arith.addi %0, %c0_i32_48 : i32
    %c0_49 = arith.constant 0 : index
    %66 = arith.index_cast %65 : i32 to index
    %c1_50 = arith.constant 1 : index
    %c0_51 = arith.constant 0 : index
    %67 = vector.load %arg4[%c0_49, %66, %c1_50, %c0_51] : memref<1x4x10x16xbf16, #tpu.memory_space<vmem>>, vector<1x2x8x16xbf16>
    %68 = vector.shape_cast %67 : vector<1x2x8x16xbf16> to vector<2x8x16xbf16>
    %69 = vector.shape_cast %68 : vector<2x8x16xbf16> to vector<16x16xbf16>
    %c7 = arith.constant 7 : index
    %c0_52 = arith.constant 0 : index
    %c0_53 = arith.constant 0 : index
    %70 = vector.load %arg6[%c7, %c0_52, %c0_53] : memref<25x16x128xbf16, #tpu.memory_space<vmem>>, vector<1x16x128xbf16>
    %71 = vector.shape_cast %70 : vector<1x16x128xbf16> to vector<16x128xbf16>
    %cst_54 = arith.constant dense<0.000000e+00> : vector<16x128xf32>
    %72 = tpu.matmul %69, %71, %cst_54 {dimension_numbers = #tpu.dot_dimension_numbers<[1], [0], [0], [1], [0, 0, 1, 1], [], []>} : vector<16x16xbf16>, vector<16x128xbf16>, vector<16x128xf32> -> vector<16x128xf32>
    %73 = arith.addf %64, %72 : vector<16x128xf32>
    %c0_i32_55 = arith.constant 0 : i32
    %74 = arith.addi %0, %c0_i32_55 : i32
    %c0_56 = arith.constant 0 : index
    %75 = arith.index_cast %74 : i32 to index
    %c1_57 = arith.constant 1 : index
    %c0_58 = arith.constant 0 : index
    %76 = vector.load %arg5[%c0_56, %75, %c1_57, %c0_58] : memref<1x4x10x16xbf16, #tpu.memory_space<vmem>>, vector<1x2x8x16xbf16>
    %77 = vector.shape_cast %76 : vector<1x2x8x16xbf16> to vector<2x8x16xbf16>
    %78 = vector.shape_cast %77 : vector<2x8x16xbf16> to vector<16x16xbf16>
    %c8 = arith.constant 8 : index
    %c0_59 = arith.constant 0 : index
    %c0_60 = arith.constant 0 : index
    %79 = vector.load %arg6[%c8, %c0_59, %c0_60] : memref<25x16x128xbf16, #tpu.memory_space<vmem>>, vector<1x16x128xbf16>
    %80 = vector.shape_cast %79 : vector<1x16x128xbf16> to vector<16x128xbf16>
    %cst_61 = arith.constant dense<0.000000e+00> : vector<16x128xf32>
    %81 = tpu.matmul %78, %80, %cst_61 {dimension_numbers = #tpu.dot_dimension_numbers<[1], [0], [0], [1], [0, 0, 1, 1], [], []>} : vector<16x16xbf16>, vector<16x128xbf16>, vector<16x128xf32> -> vector<16x128xf32>
    %82 = arith.addf %73, %81 : vector<16x128xf32>
    %c0_i32_62 = arith.constant 0 : i32
    %83 = arith.addi %0, %c0_i32_62 : i32
    %c0_63 = arith.constant 0 : index
    %84 = arith.index_cast %83 : i32 to index
    %c2_64 = arith.constant 2 : index
    %c0_65 = arith.constant 0 : index
    %85 = vector.load %arg4[%c0_63, %84, %c2_64, %c0_65] : memref<1x4x10x16xbf16, #tpu.memory_space<vmem>>, vector<1x2x8x16xbf16>
    %86 = vector.shape_cast %85 : vector<1x2x8x16xbf16> to vector<2x8x16xbf16>
    %87 = vector.shape_cast %86 : vector<2x8x16xbf16> to vector<16x16xbf16>
    %c9 = arith.constant 9 : index
    %c0_66 = arith.constant 0 : index
    %c0_67 = arith.constant 0 : index
    %88 = vector.load %arg6[%c9, %c0_66, %c0_67] : memref<25x16x128xbf16, #tpu.memory_space<vmem>>, vector<1x16x128xbf16>
    %89 = vector.shape_cast %88 : vector<1x16x128xbf16> to vector<16x128xbf16>
    %cst_68 = arith.constant dense<0.000000e+00> : vector<16x128xf32>
    %90 = tpu.matmul %87, %89, %cst_68 {dimension_numbers = #tpu.dot_dimension_numbers<[1], [0], [0], [1], [0, 0, 1, 1], [], []>} : vector<16x16xbf16>, vector<16x128xbf16>, vector<16x128xf32> -> vector<16x128xf32>
    %91 = arith.addf %82, %90 : vector<16x128xf32>
    %c1_i32 = arith.constant 1 : i32
    %92 = arith.addi %0, %c1_i32 : i32
    %c0_69 = arith.constant 0 : index
    %93 = arith.index_cast %92 : i32 to index
    %c0_70 = arith.constant 0 : index
    %c0_71 = arith.constant 0 : index
    %94 = vector.load %arg2[%c0_69, %93, %c0_70, %c0_71] : memref<1x4x10x16xbf16, #tpu.memory_space<vmem>>, vector<1x2x8x16xbf16>
    %95 = vector.shape_cast %94 : vector<1x2x8x16xbf16> to vector<2x8x16xbf16>
    %96 = vector.shape_cast %95 : vector<2x8x16xbf16> to vector<16x16xbf16>
    %c10 = arith.constant 10 : index
    %c0_72 = arith.constant 0 : index
    %c0_73 = arith.constant 0 : index
    %97 = vector.load %arg6[%c10, %c0_72, %c0_73] : memref<25x16x128xbf16, #tpu.memory_space<vmem>>, vector<1x16x128xbf16>
    %98 = vector.shape_cast %97 : vector<1x16x128xbf16> to vector<16x128xbf16>
    %cst_74 = arith.constant dense<0.000000e+00> : vector<16x128xf32>
    %99 = tpu.matmul %96, %98, %cst_74 {dimension_numbers = #tpu.dot_dimension_numbers<[1], [0], [0], [1], [0, 0, 1, 1], [], []>} : vector<16x16xbf16>, vector<16x128xbf16>, vector<16x128xf32> -> vector<16x128xf32>
    %100 = arith.addf %91, %99 : vector<16x128xf32>
    %c1_i32_75 = arith.constant 1 : i32
    %101 = arith.addi %0, %c1_i32_75 : i32
    %c0_76 = arith.constant 0 : index
    %102 = arith.index_cast %101 : i32 to index
    %c0_77 = arith.constant 0 : index
    %c0_78 = arith.constant 0 : index
    %103 = vector.load %arg3[%c0_76, %102, %c0_77, %c0_78] : memref<1x4x10x16xbf16, #tpu.memory_space<vmem>>, vector<1x2x8x16xbf16>
    %104 = vector.shape_cast %103 : vector<1x2x8x16xbf16> to vector<2x8x16xbf16>
    %105 = vector.shape_cast %104 : vector<2x8x16xbf16> to vector<16x16xbf16>
    %c11 = arith.constant 11 : index
    %c0_79 = arith.constant 0 : index
    %c0_80 = arith.constant 0 : index
    %106 = vector.load %arg6[%c11, %c0_79, %c0_80] : memref<25x16x128xbf16, #tpu.memory_space<vmem>>, vector<1x16x128xbf16>
    %107 = vector.shape_cast %106 : vector<1x16x128xbf16> to vector<16x128xbf16>
    %cst_81 = arith.constant dense<0.000000e+00> : vector<16x128xf32>
    %108 = tpu.matmul %105, %107, %cst_81 {dimension_numbers = #tpu.dot_dimension_numbers<[1], [0], [0], [1], [0, 0, 1, 1], [], []>} : vector<16x16xbf16>, vector<16x128xbf16>, vector<16x128xf32> -> vector<16x128xf32>
    %109 = arith.addf %100, %108 : vector<16x128xf32>
    %c1_i32_82 = arith.constant 1 : i32
    %110 = arith.addi %0, %c1_i32_82 : i32
    %c0_83 = arith.constant 0 : index
    %111 = arith.index_cast %110 : i32 to index
    %c1_84 = arith.constant 1 : index
    %c0_85 = arith.constant 0 : index
    %112 = vector.load %arg2[%c0_83, %111, %c1_84, %c0_85] : memref<1x4x10x16xbf16, #tpu.memory_space<vmem>>, vector<1x2x8x16xbf16>
    %113 = vector.shape_cast %112 : vector<1x2x8x16xbf16> to vector<2x8x16xbf16>
    %114 = vector.shape_cast %113 : vector<2x8x16xbf16> to vector<16x16xbf16>
    %c12 = arith.constant 12 : index
    %c0_86 = arith.constant 0 : index
    %c0_87 = arith.constant 0 : index
    %115 = vector.load %arg6[%c12, %c0_86, %c0_87] : memref<25x16x128xbf16, #tpu.memory_space<vmem>>, vector<1x16x128xbf16>
    %116 = vector.shape_cast %115 : vector<1x16x128xbf16> to vector<16x128xbf16>
    %cst_88 = arith.constant dense<0.000000e+00> : vector<16x128xf32>
    %117 = tpu.matmul %114, %116, %cst_88 {dimension_numbers = #tpu.dot_dimension_numbers<[1], [0], [0], [1], [0, 0, 1, 1], [], []>} : vector<16x16xbf16>, vector<16x128xbf16>, vector<16x128xf32> -> vector<16x128xf32>
    %118 = arith.addf %109, %117 : vector<16x128xf32>
    %c1_i32_89 = arith.constant 1 : i32
    %119 = arith.addi %0, %c1_i32_89 : i32
    %c0_90 = arith.constant 0 : index
    %120 = arith.index_cast %119 : i32 to index
    %c1_91 = arith.constant 1 : index
    %c0_92 = arith.constant 0 : index
    %121 = vector.load %arg3[%c0_90, %120, %c1_91, %c0_92] : memref<1x4x10x16xbf16, #tpu.memory_space<vmem>>, vector<1x2x8x16xbf16>
    %122 = vector.shape_cast %121 : vector<1x2x8x16xbf16> to vector<2x8x16xbf16>
    %123 = vector.shape_cast %122 : vector<2x8x16xbf16> to vector<16x16xbf16>
    %c13 = arith.constant 13 : index
    %c0_93 = arith.constant 0 : index
    %c0_94 = arith.constant 0 : index
    %124 = vector.load %arg6[%c13, %c0_93, %c0_94] : memref<25x16x128xbf16, #tpu.memory_space<vmem>>, vector<1x16x128xbf16>
    %125 = vector.shape_cast %124 : vector<1x16x128xbf16> to vector<16x128xbf16>
    %cst_95 = arith.constant dense<0.000000e+00> : vector<16x128xf32>
    %126 = tpu.matmul %123, %125, %cst_95 {dimension_numbers = #tpu.dot_dimension_numbers<[1], [0], [0], [1], [0, 0, 1, 1], [], []>} : vector<16x16xbf16>, vector<16x128xbf16>, vector<16x128xf32> -> vector<16x128xf32>
    %127 = arith.addf %118, %126 : vector<16x128xf32>
    %c1_i32_96 = arith.constant 1 : i32
    %128 = arith.addi %0, %c1_i32_96 : i32
    %c0_97 = arith.constant 0 : index
    %129 = arith.index_cast %128 : i32 to index
    %c2_98 = arith.constant 2 : index
    %c0_99 = arith.constant 0 : index
    %130 = vector.load %arg2[%c0_97, %129, %c2_98, %c0_99] : memref<1x4x10x16xbf16, #tpu.memory_space<vmem>>, vector<1x2x8x16xbf16>
    %131 = vector.shape_cast %130 : vector<1x2x8x16xbf16> to vector<2x8x16xbf16>
    %132 = vector.shape_cast %131 : vector<2x8x16xbf16> to vector<16x16xbf16>
    %c14 = arith.constant 14 : index
    %c0_100 = arith.constant 0 : index
    %c0_101 = arith.constant 0 : index
    %133 = vector.load %arg6[%c14, %c0_100, %c0_101] : memref<25x16x128xbf16, #tpu.memory_space<vmem>>, vector<1x16x128xbf16>
    %134 = vector.shape_cast %133 : vector<1x16x128xbf16> to vector<16x128xbf16>
    %cst_102 = arith.constant dense<0.000000e+00> : vector<16x128xf32>
    %135 = tpu.matmul %132, %134, %cst_102 {dimension_numbers = #tpu.dot_dimension_numbers<[1], [0], [0], [1], [0, 0, 1, 1], [], []>} : vector<16x16xbf16>, vector<16x128xbf16>, vector<16x128xf32> -> vector<16x128xf32>
    %136 = arith.addf %127, %135 : vector<16x128xf32>
    %c1_i32_103 = arith.constant 1 : i32
    %137 = arith.addi %0, %c1_i32_103 : i32
    %c0_104 = arith.constant 0 : index
    %138 = arith.index_cast %137 : i32 to index
    %c0_105 = arith.constant 0 : index
    %c0_106 = arith.constant 0 : index
    %139 = vector.load %arg4[%c0_104, %138, %c0_105, %c0_106] : memref<1x4x10x16xbf16, #tpu.memory_space<vmem>>, vector<1x2x8x16xbf16>
    %140 = vector.shape_cast %139 : vector<1x2x8x16xbf16> to vector<2x8x16xbf16>
    %141 = vector.shape_cast %140 : vector<2x8x16xbf16> to vector<16x16xbf16>
    %c15 = arith.constant 15 : index
    %c0_107 = arith.constant 0 : index
    %c0_108 = arith.constant 0 : index
    %142 = vector.load %arg6[%c15, %c0_107, %c0_108] : memref<25x16x128xbf16, #tpu.memory_space<vmem>>, vector<1x16x128xbf16>
    %143 = vector.shape_cast %142 : vector<1x16x128xbf16> to vector<16x128xbf16>
    %cst_109 = arith.constant dense<0.000000e+00> : vector<16x128xf32>
    %144 = tpu.matmul %141, %143, %cst_109 {dimension_numbers = #tpu.dot_dimension_numbers<[1], [0], [0], [1], [0, 0, 1, 1], [], []>} : vector<16x16xbf16>, vector<16x128xbf16>, vector<16x128xf32> -> vector<16x128xf32>
    %145 = arith.addf %136, %144 : vector<16x128xf32>
    %c1_i32_110 = arith.constant 1 : i32
    %146 = arith.addi %0, %c1_i32_110 : i32
    %c0_111 = arith.constant 0 : index
    %147 = arith.index_cast %146 : i32 to index
    %c0_112 = arith.constant 0 : index
    %c0_113 = arith.constant 0 : index
    %148 = vector.load %arg5[%c0_111, %147, %c0_112, %c0_113] : memref<1x4x10x16xbf16, #tpu.memory_space<vmem>>, vector<1x2x8x16xbf16>
    %149 = vector.shape_cast %148 : vector<1x2x8x16xbf16> to vector<2x8x16xbf16>
    %150 = vector.shape_cast %149 : vector<2x8x16xbf16> to vector<16x16xbf16>
    %c16 = arith.constant 16 : index
    %c0_114 = arith.constant 0 : index
    %c0_115 = arith.constant 0 : index
    %151 = vector.load %arg6[%c16, %c0_114, %c0_115] : memref<25x16x128xbf16, #tpu.memory_space<vmem>>, vector<1x16x128xbf16>
    %152 = vector.shape_cast %151 : vector<1x16x128xbf16> to vector<16x128xbf16>
    %cst_116 = arith.constant dense<0.000000e+00> : vector<16x128xf32>
    %153 = tpu.matmul %150, %152, %cst_116 {dimension_numbers = #tpu.dot_dimension_numbers<[1], [0], [0], [1], [0, 0, 1, 1], [], []>} : vector<16x16xbf16>, vector<16x128xbf16>, vector<16x128xf32> -> vector<16x128xf32>
    %154 = arith.addf %145, %153 : vector<16x128xf32>
    %c1_i32_117 = arith.constant 1 : i32
    %155 = arith.addi %0, %c1_i32_117 : i32
    %c0_118 = arith.constant 0 : index
    %156 = arith.index_cast %155 : i32 to index
    %c1_119 = arith.constant 1 : index
    %c0_120 = arith.constant 0 : index
    %157 = vector.load %arg4[%c0_118, %156, %c1_119, %c0_120] : memref<1x4x10x16xbf16, #tpu.memory_space<vmem>>, vector<1x2x8x16xbf16>
    %158 = vector.shape_cast %157 : vector<1x2x8x16xbf16> to vector<2x8x16xbf16>
    %159 = vector.shape_cast %158 : vector<2x8x16xbf16> to vector<16x16xbf16>
    %c17 = arith.constant 17 : index
    %c0_121 = arith.constant 0 : index
    %c0_122 = arith.constant 0 : index
    %160 = vector.load %arg6[%c17, %c0_121, %c0_122] : memref<25x16x128xbf16, #tpu.memory_space<vmem>>, vector<1x16x128xbf16>
    %161 = vector.shape_cast %160 : vector<1x16x128xbf16> to vector<16x128xbf16>
    %cst_123 = arith.constant dense<0.000000e+00> : vector<16x128xf32>
    %162 = tpu.matmul %159, %161, %cst_123 {dimension_numbers = #tpu.dot_dimension_numbers<[1], [0], [0], [1], [0, 0, 1, 1], [], []>} : vector<16x16xbf16>, vector<16x128xbf16>, vector<16x128xf32> -> vector<16x128xf32>
    %163 = arith.addf %154, %162 : vector<16x128xf32>
    %c1_i32_124 = arith.constant 1 : i32
    %164 = arith.addi %0, %c1_i32_124 : i32
    %c0_125 = arith.constant 0 : index
    %165 = arith.index_cast %164 : i32 to index
    %c1_126 = arith.constant 1 : index
    %c0_127 = arith.constant 0 : index
    %166 = vector.load %arg5[%c0_125, %165, %c1_126, %c0_127] : memref<1x4x10x16xbf16, #tpu.memory_space<vmem>>, vector<1x2x8x16xbf16>
    %167 = vector.shape_cast %166 : vector<1x2x8x16xbf16> to vector<2x8x16xbf16>
    %168 = vector.shape_cast %167 : vector<2x8x16xbf16> to vector<16x16xbf16>
    %c18 = arith.constant 18 : index
    %c0_128 = arith.constant 0 : index
    %c0_129 = arith.constant 0 : index
    %169 = vector.load %arg6[%c18, %c0_128, %c0_129] : memref<25x16x128xbf16, #tpu.memory_space<vmem>>, vector<1x16x128xbf16>
    %170 = vector.shape_cast %169 : vector<1x16x128xbf16> to vector<16x128xbf16>
    %cst_130 = arith.constant dense<0.000000e+00> : vector<16x128xf32>
    %171 = tpu.matmul %168, %170, %cst_130 {dimension_numbers = #tpu.dot_dimension_numbers<[1], [0], [0], [1], [0, 0, 1, 1], [], []>} : vector<16x16xbf16>, vector<16x128xbf16>, vector<16x128xf32> -> vector<16x128xf32>
    %172 = arith.addf %163, %171 : vector<16x128xf32>
    %c1_i32_131 = arith.constant 1 : i32
    %173 = arith.addi %0, %c1_i32_131 : i32
    %c0_132 = arith.constant 0 : index
    %174 = arith.index_cast %173 : i32 to index
    %c2_133 = arith.constant 2 : index
    %c0_134 = arith.constant 0 : index
    %175 = vector.load %arg4[%c0_132, %174, %c2_133, %c0_134] : memref<1x4x10x16xbf16, #tpu.memory_space<vmem>>, vector<1x2x8x16xbf16>
    %176 = vector.shape_cast %175 : vector<1x2x8x16xbf16> to vector<2x8x16xbf16>
    %177 = vector.shape_cast %176 : vector<2x8x16xbf16> to vector<16x16xbf16>
    %c19 = arith.constant 19 : index
    %c0_135 = arith.constant 0 : index
    %c0_136 = arith.constant 0 : index
    %178 = vector.load %arg6[%c19, %c0_135, %c0_136] : memref<25x16x128xbf16, #tpu.memory_space<vmem>>, vector<1x16x128xbf16>
    %179 = vector.shape_cast %178 : vector<1x16x128xbf16> to vector<16x128xbf16>
    %cst_137 = arith.constant dense<0.000000e+00> : vector<16x128xf32>
    %180 = tpu.matmul %177, %179, %cst_137 {dimension_numbers = #tpu.dot_dimension_numbers<[1], [0], [0], [1], [0, 0, 1, 1], [], []>} : vector<16x16xbf16>, vector<16x128xbf16>, vector<16x128xf32> -> vector<16x128xf32>
    %181 = arith.addf %172, %180 : vector<16x128xf32>
    %c2_i32_138 = arith.constant 2 : i32
    %182 = arith.addi %0, %c2_i32_138 : i32
    %c0_139 = arith.constant 0 : index
    %183 = arith.index_cast %182 : i32 to index
    %c0_140 = arith.constant 0 : index
    %c0_141 = arith.constant 0 : index
    %184 = vector.load %arg2[%c0_139, %183, %c0_140, %c0_141] : memref<1x4x10x16xbf16, #tpu.memory_space<vmem>>, vector<1x2x8x16xbf16>
    %185 = vector.shape_cast %184 : vector<1x2x8x16xbf16> to vector<2x8x16xbf16>
    %186 = vector.shape_cast %185 : vector<2x8x16xbf16> to vector<16x16xbf16>
    %c20 = arith.constant 20 : index
    %c0_142 = arith.constant 0 : index
    %c0_143 = arith.constant 0 : index
    %187 = vector.load %arg6[%c20, %c0_142, %c0_143] : memref<25x16x128xbf16, #tpu.memory_space<vmem>>, vector<1x16x128xbf16>
    %188 = vector.shape_cast %187 : vector<1x16x128xbf16> to vector<16x128xbf16>
    %cst_144 = arith.constant dense<0.000000e+00> : vector<16x128xf32>
    %189 = tpu.matmul %186, %188, %cst_144 {dimension_numbers = #tpu.dot_dimension_numbers<[1], [0], [0], [1], [0, 0, 1, 1], [], []>} : vector<16x16xbf16>, vector<16x128xbf16>, vector<16x128xf32> -> vector<16x128xf32>
    %190 = arith.addf %181, %189 : vector<16x128xf32>
    %c2_i32_145 = arith.constant 2 : i32
    %191 = arith.addi %0, %c2_i32_145 : i32
    %c0_146 = arith.constant 0 : index
    %192 = arith.index_cast %191 : i32 to index
    %c0_147 = arith.constant 0 : index
    %c0_148 = arith.constant 0 : index
    %193 = vector.load %arg3[%c0_146, %192, %c0_147, %c0_148] : memref<1x4x10x16xbf16, #tpu.memory_space<vmem>>, vector<1x2x8x16xbf16>
    %194 = vector.shape_cast %193 : vector<1x2x8x16xbf16> to vector<2x8x16xbf16>
    %195 = vector.shape_cast %194 : vector<2x8x16xbf16> to vector<16x16xbf16>
    %c21 = arith.constant 21 : index
    %c0_149 = arith.constant 0 : index
    %c0_150 = arith.constant 0 : index
    %196 = vector.load %arg6[%c21, %c0_149, %c0_150] : memref<25x16x128xbf16, #tpu.memory_space<vmem>>, vector<1x16x128xbf16>
    %197 = vector.shape_cast %196 : vector<1x16x128xbf16> to vector<16x128xbf16>
    %cst_151 = arith.constant dense<0.000000e+00> : vector<16x128xf32>
    %198 = tpu.matmul %195, %197, %cst_151 {dimension_numbers = #tpu.dot_dimension_numbers<[1], [0], [0], [1], [0, 0, 1, 1], [], []>} : vector<16x16xbf16>, vector<16x128xbf16>, vector<16x128xf32> -> vector<16x128xf32>
    %199 = arith.addf %190, %198 : vector<16x128xf32>
    %c2_i32_152 = arith.constant 2 : i32
    %200 = arith.addi %0, %c2_i32_152 : i32
    %c0_153 = arith.constant 0 : index
    %201 = arith.index_cast %200 : i32 to index
    %c1_154 = arith.constant 1 : index
    %c0_155 = arith.constant 0 : index
    %202 = vector.load %arg2[%c0_153, %201, %c1_154, %c0_155] : memref<1x4x10x16xbf16, #tpu.memory_space<vmem>>, vector<1x2x8x16xbf16>
    %203 = vector.shape_cast %202 : vector<1x2x8x16xbf16> to vector<2x8x16xbf16>
    %204 = vector.shape_cast %203 : vector<2x8x16xbf16> to vector<16x16xbf16>
    %c22 = arith.constant 22 : index
    %c0_156 = arith.constant 0 : index
    %c0_157 = arith.constant 0 : index
    %205 = vector.load %arg6[%c22, %c0_156, %c0_157] : memref<25x16x128xbf16, #tpu.memory_space<vmem>>, vector<1x16x128xbf16>
    %206 = vector.shape_cast %205 : vector<1x16x128xbf16> to vector<16x128xbf16>
    %cst_158 = arith.constant dense<0.000000e+00> : vector<16x128xf32>
    %207 = tpu.matmul %204, %206, %cst_158 {dimension_numbers = #tpu.dot_dimension_numbers<[1], [0], [0], [1], [0, 0, 1, 1], [], []>} : vector<16x16xbf16>, vector<16x128xbf16>, vector<16x128xf32> -> vector<16x128xf32>
    %208 = arith.addf %199, %207 : vector<16x128xf32>
    %c2_i32_159 = arith.constant 2 : i32
    %209 = arith.addi %0, %c2_i32_159 : i32
    %c0_160 = arith.constant 0 : index
    %210 = arith.index_cast %209 : i32 to index
    %c1_161 = arith.constant 1 : index
    %c0_162 = arith.constant 0 : index
    %211 = vector.load %arg3[%c0_160, %210, %c1_161, %c0_162] : memref<1x4x10x16xbf16, #tpu.memory_space<vmem>>, vector<1x2x8x16xbf16>
    %212 = vector.shape_cast %211 : vector<1x2x8x16xbf16> to vector<2x8x16xbf16>
    %213 = vector.shape_cast %212 : vector<2x8x16xbf16> to vector<16x16xbf16>
    %c23 = arith.constant 23 : index
    %c0_163 = arith.constant 0 : index
    %c0_164 = arith.constant 0 : index
    %214 = vector.load %arg6[%c23, %c0_163, %c0_164] : memref<25x16x128xbf16, #tpu.memory_space<vmem>>, vector<1x16x128xbf16>
    %215 = vector.shape_cast %214 : vector<1x16x128xbf16> to vector<16x128xbf16>
    %cst_165 = arith.constant dense<0.000000e+00> : vector<16x128xf32>
    %216 = tpu.matmul %213, %215, %cst_165 {dimension_numbers = #tpu.dot_dimension_numbers<[1], [0], [0], [1], [0, 0, 1, 1], [], []>} : vector<16x16xbf16>, vector<16x128xbf16>, vector<16x128xf32> -> vector<16x128xf32>
    %217 = arith.addf %208, %216 : vector<16x128xf32>
    %c2_i32_166 = arith.constant 2 : i32
    %218 = arith.addi %0, %c2_i32_166 : i32
    %c0_167 = arith.constant 0 : index
    %219 = arith.index_cast %218 : i32 to index
    %c2_168 = arith.constant 2 : index
    %c0_169 = arith.constant 0 : index
    %220 = vector.load %arg2[%c0_167, %219, %c2_168, %c0_169] : memref<1x4x10x16xbf16, #tpu.memory_space<vmem>>, vector<1x2x8x16xbf16>
    %221 = vector.shape_cast %220 : vector<1x2x8x16xbf16> to vector<2x8x16xbf16>
    %222 = vector.shape_cast %221 : vector<2x8x16xbf16> to vector<16x16xbf16>
    %c24 = arith.constant 24 : index
    %c0_170 = arith.constant 0 : index
    %c0_171 = arith.constant 0 : index
    %223 = vector.load %arg6[%c24, %c0_170, %c0_171] : memref<25x16x128xbf16, #tpu.memory_space<vmem>>, vector<1x16x128xbf16>
    %224 = vector.shape_cast %223 : vector<1x16x128xbf16> to vector<16x128xbf16>
    %cst_172 = arith.constant dense<0.000000e+00> : vector<16x128xf32>
    %225 = tpu.matmul %222, %224, %cst_172 {dimension_numbers = #tpu.dot_dimension_numbers<[1], [0], [0], [1], [0, 0, 1, 1], [], []>} : vector<16x16xbf16>, vector<16x128xbf16>, vector<16x128xf32> -> vector<16x128xf32>
    %226 = arith.addf %217, %225 : vector<16x128xf32>
    %c0_173 = arith.constant 0 : index
    %c0_174 = arith.constant 0 : index
    %227 = vector.load %arg7[%c0_173, %c0_174] : memref<1x128xf32, #tpu.memory_space<vmem>>, vector<1x128xf32>
    %228 = vector.broadcast %227 : vector<1x128xf32> to vector<16x128xf32>
    %229 = arith.addf %226, %228 : vector<16x128xf32>
    %cst_175 = arith.constant 0.000000e+00 : f32
    %230 = vector.broadcast %cst_175 : f32 to vector<16x128xf32>
    %231 = arith.cmpf oge, %229, %230 : vector<16x128xf32>
    %cst_176 = arith.constant 2.000000e-01 : f32
    %232 = vector.broadcast %cst_176 : f32 to vector<16x128xf32>
    %233 = arith.mulf %232, %229 : vector<16x128xf32>
    %234 = arith.select %231, %229, %233 : vector<16x128xi1>, vector<16x128xf32>
    %235 = vector.shape_cast %234 : vector<16x128xf32> to vector<2x8x128xf32>
    %236 = arith.truncf %235 : vector<2x8x128xf32> to vector<2x8x128xbf16>
    %c0_177 = arith.constant 0 : index
    %c0_178 = arith.constant 0 : index
    %c0_179 = arith.constant 0 : index
    %c0_180 = arith.constant 0 : index
    %237 = vector.load %arg8[%c0_177, %c0_178, %c0_179, %c0_180] : memref<1x2x8x128xbf16, #tpu.memory_space<vmem>>, vector<1x2x8x128xbf16>
    %238 = vector.shape_cast %237 : vector<1x2x8x128xbf16> to vector<2x8x128xbf16>
    %239 = vector.shape_cast %236 : vector<2x8x128xbf16> to vector<1x2x8x128xbf16>
    tpu.vector_store %arg8[%c0_177, %c0_178, %c0_179, %c0_180], %239 {strides = array<i32>} : memref<1x2x8x128xbf16, #tpu.memory_space<vmem>>, vector<1x2x8x128xbf16>,
    return
  }
  func.func @transform_0(%arg0: i32, %arg1: i32) -> (i32, i32, i32, i32) {
    %c0_i32 = arith.constant 0 : i32
    %c0_i32_0 = arith.constant 0 : i32
    %c0_i32_1 = arith.constant 0 : i32
    %c0_i32_2 = arith.constant 0 : i32
    return %arg0, %c0_i32, %c0_i32_0, %c0_i32_1 : i32, i32, i32, i32
  }
  func.func @transform_1(%arg0: i32, %arg1: i32) -> (i32, i32, i32, i32) {
    %c0_i32 = arith.constant 0 : i32
    %c0_i32_0 = arith.constant 0 : i32
    %c0_i32_1 = arith.constant 0 : i32
    %c0_i32_2 = arith.constant 0 : i32
    return %arg0, %c0_i32, %c0_i32_0, %c0_i32_1 : i32, i32, i32, i32
  }
  func.func @transform_2(%arg0: i32, %arg1: i32) -> (i32, i32, i32, i32) {
    %c0_i32 = arith.constant 0 : i32
    %c0_i32_0 = arith.constant 0 : i32
    %c0_i32_1 = arith.constant 0 : i32
    %c0_i32_2 = arith.constant 0 : i32
    return %arg0, %c0_i32, %c0_i32_0, %c0_i32_1 : i32, i32, i32, i32
  }
  func.func @transform_3(%arg0: i32, %arg1: i32) -> (i32, i32, i32, i32) {
    %c0_i32 = arith.constant 0 : i32
    %c0_i32_0 = arith.constant 0 : i32
    %c0_i32_1 = arith.constant 0 : i32
    %c0_i32_2 = arith.constant 0 : i32
    return %arg0, %c0_i32, %c0_i32_0, %c0_i32_1 : i32, i32, i32, i32
  }
  func.func @transform_4(%arg0: i32, %arg1: i32) -> (i32, i32, i32) {
    %c0_i32 = arith.constant 0 : i32
    %c0_i32_0 = arith.constant 0 : i32
    %c0_i32_1 = arith.constant 0 : i32
    %c0_i32_2 = arith.constant 0 : i32
    return %c0_i32, %c0_i32_0, %c0_i32_1 : i32, i32, i32
  }
  func.func @transform_5(%arg0: i32, %arg1: i32) -> (i32, i32) {
    %c0_i32 = arith.constant 0 : i32
    %c0_i32_0 = arith.constant 0 : i32
    %c0_i32_1 = arith.constant 0 : i32
    return %c0_i32, %c0_i32_0 : i32, i32
  }
  func.func @transform_6(%arg0: i32, %arg1: i32) -> (i32, i32, i32, i32) {
    %c0_i32 = arith.constant 0 : i32
    %c0_i32_0 = arith.constant 0 : i32
    %c0_i32_1 = arith.constant 0 : i32
    return %arg0, %arg1, %c0_i32, %c0_i32_0 : i32, i32, i32, i32
  }
}

module attributes {stable_mosaic.version = 11 : i64} {
  func.func @_dconv_kernel(%arg0: i32, %arg1: i32, %arg2: memref<1x3x10x32xbf16, #tpu.memory_space<vmem>>, %arg3: memref<1x3x10x32xbf16, #tpu.memory_space<vmem>>, %arg4: memref<1x3x10x32xbf16, #tpu.memory_space<vmem>>, %arg5: memref<1x3x10x32xbf16, #tpu.memory_space<vmem>>, %arg6: memref<25x32x128xbf16, #tpu.memory_space<vmem>>, %arg7: memref<1x128xf32, #tpu.memory_space<vmem>>, %arg8: memref<1x1x8x128xbf16, #tpu.memory_space<vmem>>) attributes {dimension_semantics = [#tpu.dimension_semantics<parallel>, #tpu.dimension_semantics<arbitrary>], iteration_bounds = array<i64: 2, 1>, scalar_prefetch = 0 : i64, scratch_operands = 0 : i64, tpu.core_type = #tpu.core_type<tc>, window_params = [{transform_indices = @transform_0, window_bounds = array<i64: 1, 3, 10, 32>}, {transform_indices = @transform_1, window_bounds = array<i64: 1, 3, 10, 32>}, {transform_indices = @transform_2, window_bounds = array<i64: 1, 3, 10, 32>}, {transform_indices = @transform_3, window_bounds = array<i64: 1, 3, 10, 32>}, {pipeline_mode = #tpu.pipeline_mode<synchronous>, transform_indices = @transform_4, window_bounds = array<i64: 25, 32, 128>}, {pipeline_mode = #tpu.pipeline_mode<synchronous>, transform_indices = @transform_5, window_bounds = array<i64: 1, 128>}, {transform_indices = @transform_6, window_bounds = array<i64: 1, 1, 8, 128>}]} {
    %c1_i32 = arith.constant 1 : i32
    %0 = arith.muli %arg1, %c1_i32 : i32
    %cst = arith.constant 0.000000e+00 : f32
    %1 = vector.broadcast %cst : f32 to vector<8x128xf32>
    %c1_i32_0 = arith.constant 1 : i32
    %2 = arith.addi %0, %c1_i32_0 : i32
    %c0 = arith.constant 0 : index
    %3 = arith.index_cast %2 : i32 to index
    %c1 = arith.constant 1 : index
    %c0_1 = arith.constant 0 : index
    %4 = vector.load %arg2[%c0, %3, %c1, %c0_1] : memref<1x3x10x32xbf16, #tpu.memory_space<vmem>>, vector<1x1x8x32xbf16>
    %5 = vector.shape_cast %4 : vector<1x1x8x32xbf16> to vector<1x8x32xbf16>
    %6 = vector.shape_cast %5 : vector<1x8x32xbf16> to vector<8x32xbf16>
    %c12 = arith.constant 12 : index
    %c0_2 = arith.constant 0 : index
    %c0_3 = arith.constant 0 : index
    %7 = vector.load %arg6[%c12, %c0_2, %c0_3] : memref<25x32x128xbf16, #tpu.memory_space<vmem>>, vector<1x32x128xbf16>
    %8 = vector.shape_cast %7 : vector<1x32x128xbf16> to vector<32x128xbf16>
    %cst_4 = arith.constant dense<0.000000e+00> : vector<8x128xf32>
    %9 = tpu.matmul %6, %8, %cst_4 {dimension_numbers = #tpu.dot_dimension_numbers<[1], [0], [0], [1], [0, 0, 1, 1], [], []>} : vector<8x32xbf16>, vector<32x128xbf16>, vector<8x128xf32> -> vector<8x128xf32>
    %10 = arith.addf %1, %9 : vector<8x128xf32>
    %c1_i32_5 = arith.constant 1 : i32
    %11 = arith.addi %0, %c1_i32_5 : i32
    %c0_6 = arith.constant 0 : index
    %12 = arith.index_cast %11 : i32 to index
    %c1_7 = arith.constant 1 : index
    %c0_8 = arith.constant 0 : index
    %13 = vector.load %arg3[%c0_6, %12, %c1_7, %c0_8] : memref<1x3x10x32xbf16, #tpu.memory_space<vmem>>, vector<1x1x8x32xbf16>
    %14 = vector.shape_cast %13 : vector<1x1x8x32xbf16> to vector<1x8x32xbf16>
    %15 = vector.shape_cast %14 : vector<1x8x32xbf16> to vector<8x32xbf16>
    %c13 = arith.constant 13 : index
    %c0_9 = arith.constant 0 : index
    %c0_10 = arith.constant 0 : index
    %16 = vector.load %arg6[%c13, %c0_9, %c0_10] : memref<25x32x128xbf16, #tpu.memory_space<vmem>>, vector<1x32x128xbf16>
    %17 = vector.shape_cast %16 : vector<1x32x128xbf16> to vector<32x128xbf16>
    %cst_11 = arith.constant dense<0.000000e+00> : vector<8x128xf32>
    %18 = tpu.matmul %15, %17, %cst_11 {dimension_numbers = #tpu.dot_dimension_numbers<[1], [0], [0], [1], [0, 0, 1, 1], [], []>} : vector<8x32xbf16>, vector<32x128xbf16>, vector<8x128xf32> -> vector<8x128xf32>
    %19 = arith.addf %10, %18 : vector<8x128xf32>
    %c1_i32_12 = arith.constant 1 : i32
    %20 = arith.addi %0, %c1_i32_12 : i32
    %c0_13 = arith.constant 0 : index
    %21 = arith.index_cast %20 : i32 to index
    %c1_14 = arith.constant 1 : index
    %c0_15 = arith.constant 0 : index
    %22 = vector.load %arg4[%c0_13, %21, %c1_14, %c0_15] : memref<1x3x10x32xbf16, #tpu.memory_space<vmem>>, vector<1x1x8x32xbf16>
    %23 = vector.shape_cast %22 : vector<1x1x8x32xbf16> to vector<1x8x32xbf16>
    %24 = vector.shape_cast %23 : vector<1x8x32xbf16> to vector<8x32xbf16>
    %c17 = arith.constant 17 : index
    %c0_16 = arith.constant 0 : index
    %c0_17 = arith.constant 0 : index
    %25 = vector.load %arg6[%c17, %c0_16, %c0_17] : memref<25x32x128xbf16, #tpu.memory_space<vmem>>, vector<1x32x128xbf16>
    %26 = vector.shape_cast %25 : vector<1x32x128xbf16> to vector<32x128xbf16>
    %cst_18 = arith.constant dense<0.000000e+00> : vector<8x128xf32>
    %27 = tpu.matmul %24, %26, %cst_18 {dimension_numbers = #tpu.dot_dimension_numbers<[1], [0], [0], [1], [0, 0, 1, 1], [], []>} : vector<8x32xbf16>, vector<32x128xbf16>, vector<8x128xf32> -> vector<8x128xf32>
    %28 = arith.addf %19, %27 : vector<8x128xf32>
    %c1_i32_19 = arith.constant 1 : i32
    %29 = arith.addi %0, %c1_i32_19 : i32
    %c0_20 = arith.constant 0 : index
    %30 = arith.index_cast %29 : i32 to index
    %c1_21 = arith.constant 1 : index
    %c0_22 = arith.constant 0 : index
    %31 = vector.load %arg5[%c0_20, %30, %c1_21, %c0_22] : memref<1x3x10x32xbf16, #tpu.memory_space<vmem>>, vector<1x1x8x32xbf16>
    %32 = vector.shape_cast %31 : vector<1x1x8x32xbf16> to vector<1x8x32xbf16>
    %33 = vector.shape_cast %32 : vector<1x8x32xbf16> to vector<8x32xbf16>
    %c18 = arith.constant 18 : index
    %c0_23 = arith.constant 0 : index
    %c0_24 = arith.constant 0 : index
    %34 = vector.load %arg6[%c18, %c0_23, %c0_24] : memref<25x32x128xbf16, #tpu.memory_space<vmem>>, vector<1x32x128xbf16>
    %35 = vector.shape_cast %34 : vector<1x32x128xbf16> to vector<32x128xbf16>
    %cst_25 = arith.constant dense<0.000000e+00> : vector<8x128xf32>
    %36 = tpu.matmul %33, %35, %cst_25 {dimension_numbers = #tpu.dot_dimension_numbers<[1], [0], [0], [1], [0, 0, 1, 1], [], []>} : vector<8x32xbf16>, vector<32x128xbf16>, vector<8x128xf32> -> vector<8x128xf32>
    %37 = arith.addf %28, %36 : vector<8x128xf32>
    %c0_26 = arith.constant 0 : index
    %c0_27 = arith.constant 0 : index
    %38 = vector.load %arg7[%c0_26, %c0_27] : memref<1x128xf32, #tpu.memory_space<vmem>>, vector<1x128xf32>
    %39 = vector.broadcast %38 : vector<1x128xf32> to vector<8x128xf32>
    %40 = arith.addf %37, %39 : vector<8x128xf32>
    %cst_28 = arith.constant 0.000000e+00 : f32
    %41 = vector.broadcast %cst_28 : f32 to vector<8x128xf32>
    %42 = arith.cmpf oge, %40, %41 : vector<8x128xf32>
    %cst_29 = arith.constant 2.000000e-01 : f32
    %43 = vector.broadcast %cst_29 : f32 to vector<8x128xf32>
    %44 = arith.mulf %43, %40 : vector<8x128xf32>
    %45 = arith.select %42, %40, %44 : vector<8x128xi1>, vector<8x128xf32>
    %46 = vector.shape_cast %45 : vector<8x128xf32> to vector<1x8x128xf32>
    %47 = arith.truncf %46 : vector<1x8x128xf32> to vector<1x8x128xbf16>
    %c0_30 = arith.constant 0 : index
    %c0_31 = arith.constant 0 : index
    %c0_32 = arith.constant 0 : index
    %c0_33 = arith.constant 0 : index
    %48 = vector.load %arg8[%c0_30, %c0_31, %c0_32, %c0_33] : memref<1x1x8x128xbf16, #tpu.memory_space<vmem>>, vector<1x1x8x128xbf16>
    %49 = vector.shape_cast %48 : vector<1x1x8x128xbf16> to vector<1x8x128xbf16>
    %50 = vector.shape_cast %47 : vector<1x8x128xbf16> to vector<1x1x8x128xbf16>
    tpu.vector_store %arg8[%c0_30, %c0_31, %c0_32, %c0_33], %50 {strides = array<i32>} : memref<1x1x8x128xbf16, #tpu.memory_space<vmem>>, vector<1x1x8x128xbf16>,
    return
  }
  func.func @transform_0(%arg0: i32, %arg1: i32) -> (i32, i32, i32, i32) {
    %c0_i32 = arith.constant 0 : i32
    %c0_i32_0 = arith.constant 0 : i32
    %c0_i32_1 = arith.constant 0 : i32
    %c0_i32_2 = arith.constant 0 : i32
    return %arg0, %c0_i32, %c0_i32_0, %c0_i32_1 : i32, i32, i32, i32
  }
  func.func @transform_1(%arg0: i32, %arg1: i32) -> (i32, i32, i32, i32) {
    %c0_i32 = arith.constant 0 : i32
    %c0_i32_0 = arith.constant 0 : i32
    %c0_i32_1 = arith.constant 0 : i32
    %c0_i32_2 = arith.constant 0 : i32
    return %arg0, %c0_i32, %c0_i32_0, %c0_i32_1 : i32, i32, i32, i32
  }
  func.func @transform_2(%arg0: i32, %arg1: i32) -> (i32, i32, i32, i32) {
    %c0_i32 = arith.constant 0 : i32
    %c0_i32_0 = arith.constant 0 : i32
    %c0_i32_1 = arith.constant 0 : i32
    %c0_i32_2 = arith.constant 0 : i32
    return %arg0, %c0_i32, %c0_i32_0, %c0_i32_1 : i32, i32, i32, i32
  }
  func.func @transform_3(%arg0: i32, %arg1: i32) -> (i32, i32, i32, i32) {
    %c0_i32 = arith.constant 0 : i32
    %c0_i32_0 = arith.constant 0 : i32
    %c0_i32_1 = arith.constant 0 : i32
    %c0_i32_2 = arith.constant 0 : i32
    return %arg0, %c0_i32, %c0_i32_0, %c0_i32_1 : i32, i32, i32, i32
  }
  func.func @transform_4(%arg0: i32, %arg1: i32) -> (i32, i32, i32) {
    %c0_i32 = arith.constant 0 : i32
    %c0_i32_0 = arith.constant 0 : i32
    %c0_i32_1 = arith.constant 0 : i32
    %c0_i32_2 = arith.constant 0 : i32
    return %c0_i32, %c0_i32_0, %c0_i32_1 : i32, i32, i32
  }
  func.func @transform_5(%arg0: i32, %arg1: i32) -> (i32, i32) {
    %c0_i32 = arith.constant 0 : i32
    %c0_i32_0 = arith.constant 0 : i32
    %c0_i32_1 = arith.constant 0 : i32
    return %c0_i32, %c0_i32_0 : i32, i32
  }
  func.func @transform_6(%arg0: i32, %arg1: i32) -> (i32, i32, i32, i32) {
    %c0_i32 = arith.constant 0 : i32
    %c0_i32_0 = arith.constant 0 : i32
    %c0_i32_1 = arith.constant 0 : i32
    return %arg0, %arg1, %c0_i32, %c0_i32_0 : i32, i32, i32, i32
  }
}

module attributes {stable_mosaic.version = 11 : i64} {
  func.func @_dconv_kernel(%arg0: i32, %arg1: i32, %arg2: memref<1x3x10x32xbf16, #tpu.memory_space<vmem>>, %arg3: memref<1x3x10x32xbf16, #tpu.memory_space<vmem>>, %arg4: memref<1x3x10x32xbf16, #tpu.memory_space<vmem>>, %arg5: memref<1x3x10x32xbf16, #tpu.memory_space<vmem>>, %arg6: memref<25x32x128xbf16, #tpu.memory_space<vmem>>, %arg7: memref<1x128xf32, #tpu.memory_space<vmem>>, %arg8: memref<1x1x8x128xf32, #tpu.memory_space<vmem>>) attributes {dimension_semantics = [#tpu.dimension_semantics<parallel>, #tpu.dimension_semantics<arbitrary>], iteration_bounds = array<i64: 2, 1>, scalar_prefetch = 0 : i64, scratch_operands = 0 : i64, tpu.core_type = #tpu.core_type<tc>, window_params = [{transform_indices = @transform_0, window_bounds = array<i64: 1, 3, 10, 32>}, {transform_indices = @transform_1, window_bounds = array<i64: 1, 3, 10, 32>}, {transform_indices = @transform_2, window_bounds = array<i64: 1, 3, 10, 32>}, {transform_indices = @transform_3, window_bounds = array<i64: 1, 3, 10, 32>}, {pipeline_mode = #tpu.pipeline_mode<synchronous>, transform_indices = @transform_4, window_bounds = array<i64: 25, 32, 128>}, {pipeline_mode = #tpu.pipeline_mode<synchronous>, transform_indices = @transform_5, window_bounds = array<i64: 1, 128>}, {transform_indices = @transform_6, window_bounds = array<i64: 1, 1, 8, 128>}]} {
    %c1_i32 = arith.constant 1 : i32
    %0 = arith.muli %arg1, %c1_i32 : i32
    %cst = arith.constant 0.000000e+00 : f32
    %1 = vector.broadcast %cst : f32 to vector<8x128xf32>
    %c1_i32_0 = arith.constant 1 : i32
    %2 = arith.addi %0, %c1_i32_0 : i32
    %c0 = arith.constant 0 : index
    %3 = arith.index_cast %2 : i32 to index
    %c1 = arith.constant 1 : index
    %c0_1 = arith.constant 0 : index
    %4 = vector.load %arg2[%c0, %3, %c1, %c0_1] : memref<1x3x10x32xbf16, #tpu.memory_space<vmem>>, vector<1x1x8x32xbf16>
    %5 = vector.shape_cast %4 : vector<1x1x8x32xbf16> to vector<1x8x32xbf16>
    %6 = vector.shape_cast %5 : vector<1x8x32xbf16> to vector<8x32xbf16>
    %c12 = arith.constant 12 : index
    %c0_2 = arith.constant 0 : index
    %c0_3 = arith.constant 0 : index
    %7 = vector.load %arg6[%c12, %c0_2, %c0_3] : memref<25x32x128xbf16, #tpu.memory_space<vmem>>, vector<1x32x128xbf16>
    %8 = vector.shape_cast %7 : vector<1x32x128xbf16> to vector<32x128xbf16>
    %cst_4 = arith.constant dense<0.000000e+00> : vector<8x128xf32>
    %9 = tpu.matmul %6, %8, %cst_4 {dimension_numbers = #tpu.dot_dimension_numbers<[1], [0], [0], [1], [0, 0, 1, 1], [], []>} : vector<8x32xbf16>, vector<32x128xbf16>, vector<8x128xf32> -> vector<8x128xf32>
    %10 = arith.addf %1, %9 : vector<8x128xf32>
    %c0_5 = arith.constant 0 : index
    %c0_6 = arith.constant 0 : index
    %11 = vector.load %arg7[%c0_5, %c0_6] : memref<1x128xf32, #tpu.memory_space<vmem>>, vector<1x128xf32>
    %12 = vector.broadcast %11 : vector<1x128xf32> to vector<8x128xf32>
    %13 = arith.addf %10, %12 : vector<8x128xf32>
    %cst_7 = arith.constant 0.000000e+00 : f32
    %14 = vector.broadcast %cst_7 : f32 to vector<8x128xf32>
    %15 = arith.cmpf oge, %13, %14 : vector<8x128xf32>
    %cst_8 = arith.constant 2.000000e-01 : f32
    %16 = vector.broadcast %cst_8 : f32 to vector<8x128xf32>
    %17 = arith.mulf %16, %13 : vector<8x128xf32>
    %18 = arith.select %15, %13, %17 : vector<8x128xi1>, vector<8x128xf32>
    %19 = vector.shape_cast %18 : vector<8x128xf32> to vector<1x8x128xf32>
    %c0_9 = arith.constant 0 : index
    %c0_10 = arith.constant 0 : index
    %c0_11 = arith.constant 0 : index
    %c0_12 = arith.constant 0 : index
    %20 = vector.load %arg8[%c0_9, %c0_10, %c0_11, %c0_12] : memref<1x1x8x128xf32, #tpu.memory_space<vmem>>, vector<1x1x8x128xf32>
    %21 = vector.shape_cast %20 : vector<1x1x8x128xf32> to vector<1x8x128xf32>
    %22 = vector.shape_cast %19 : vector<1x8x128xf32> to vector<1x1x8x128xf32>
    tpu.vector_store %arg8[%c0_9, %c0_10, %c0_11, %c0_12], %22 {strides = array<i32>} : memref<1x1x8x128xf32, #tpu.memory_space<vmem>>, vector<1x1x8x128xf32>,
    return
  }
  func.func @transform_0(%arg0: i32, %arg1: i32) -> (i32, i32, i32, i32) {
    %c0_i32 = arith.constant 0 : i32
    %c0_i32_0 = arith.constant 0 : i32
    %c0_i32_1 = arith.constant 0 : i32
    %c0_i32_2 = arith.constant 0 : i32
    return %arg0, %c0_i32, %c0_i32_0, %c0_i32_1 : i32, i32, i32, i32
  }
  func.func @transform_1(%arg0: i32, %arg1: i32) -> (i32, i32, i32, i32) {
    %c0_i32 = arith.constant 0 : i32
    %c0_i32_0 = arith.constant 0 : i32
    %c0_i32_1 = arith.constant 0 : i32
    %c0_i32_2 = arith.constant 0 : i32
    return %arg0, %c0_i32, %c0_i32_0, %c0_i32_1 : i32, i32, i32, i32
  }
  func.func @transform_2(%arg0: i32, %arg1: i32) -> (i32, i32, i32, i32) {
    %c0_i32 = arith.constant 0 : i32
    %c0_i32_0 = arith.constant 0 : i32
    %c0_i32_1 = arith.constant 0 : i32
    %c0_i32_2 = arith.constant 0 : i32
    return %arg0, %c0_i32, %c0_i32_0, %c0_i32_1 : i32, i32, i32, i32
  }
  func.func @transform_3(%arg0: i32, %arg1: i32) -> (i32, i32, i32, i32) {
    %c0_i32 = arith.constant 0 : i32
    %c0_i32_0 = arith.constant 0 : i32
    %c0_i32_1 = arith.constant 0 : i32
    %c0_i32_2 = arith.constant 0 : i32
    return %arg0, %c0_i32, %c0_i32_0, %c0_i32_1 : i32, i32, i32, i32
  }
  func.func @transform_4(%arg0: i32, %arg1: i32) -> (i32, i32, i32) {
    %c0_i32 = arith.constant 0 : i32
    %c0_i32_0 = arith.constant 0 : i32
    %c0_i32_1 = arith.constant 0 : i32
    %c0_i32_2 = arith.constant 0 : i32
    return %c0_i32, %c0_i32_0, %c0_i32_1 : i32, i32, i32
  }
  func.func @transform_5(%arg0: i32, %arg1: i32) -> (i32, i32) {
    %c0_i32 = arith.constant 0 : i32
    %c0_i32_0 = arith.constant 0 : i32
    %c0_i32_1 = arith.constant 0 : i32
    return %c0_i32, %c0_i32_0 : i32, i32
  }
  func.func @transform_6(%arg0: i32, %arg1: i32) -> (i32, i32, i32, i32) {
    %c0_i32 = arith.constant 0 : i32
    %c0_i32_0 = arith.constant 0 : i32
    %c0_i32_1 = arith.constant 0 : i32
    return %arg0, %arg1, %c0_i32, %c0_i32_0 : i32, i32, i32, i32
  }
}

module attributes {stable_mosaic.version = 11 : i64} {
  func.func @_dconv_kernel(%arg0: i32, %arg1: i32, %arg2: memref<1x3x10x32xbf16, #tpu.memory_space<vmem>>, %arg3: memref<1x3x10x32xbf16, #tpu.memory_space<vmem>>, %arg4: memref<1x3x10x32xbf16, #tpu.memory_space<vmem>>, %arg5: memref<1x3x10x32xbf16, #tpu.memory_space<vmem>>, %arg6: memref<25x32x128xbf16, #tpu.memory_space<vmem>>, %arg7: memref<1x128xf32, #tpu.memory_space<vmem>>, %arg8: memref<1x1x8x128xbf16, #tpu.memory_space<vmem>>) attributes {dimension_semantics = [#tpu.dimension_semantics<parallel>, #tpu.dimension_semantics<arbitrary>], iteration_bounds = array<i64: 2, 1>, scalar_prefetch = 0 : i64, scratch_operands = 0 : i64, tpu.core_type = #tpu.core_type<tc>, window_params = [{transform_indices = @transform_0, window_bounds = array<i64: 1, 3, 10, 32>}, {transform_indices = @transform_1, window_bounds = array<i64: 1, 3, 10, 32>}, {transform_indices = @transform_2, window_bounds = array<i64: 1, 3, 10, 32>}, {transform_indices = @transform_3, window_bounds = array<i64: 1, 3, 10, 32>}, {pipeline_mode = #tpu.pipeline_mode<synchronous>, transform_indices = @transform_4, window_bounds = array<i64: 25, 32, 128>}, {pipeline_mode = #tpu.pipeline_mode<synchronous>, transform_indices = @transform_5, window_bounds = array<i64: 1, 128>}, {transform_indices = @transform_6, window_bounds = array<i64: 1, 1, 8, 128>}]} {
    %c1_i32 = arith.constant 1 : i32
    %0 = arith.muli %arg1, %c1_i32 : i32
    %cst = arith.constant 0.000000e+00 : f32
    %1 = vector.broadcast %cst : f32 to vector<8x128xf32>
    %c1_i32_0 = arith.constant 1 : i32
    %2 = arith.addi %0, %c1_i32_0 : i32
    %c0 = arith.constant 0 : index
    %3 = arith.index_cast %2 : i32 to index
    %c1 = arith.constant 1 : index
    %c0_1 = arith.constant 0 : index
    %4 = vector.load %arg2[%c0, %3, %c1, %c0_1] : memref<1x3x10x32xbf16, #tpu.memory_space<vmem>>, vector<1x1x8x32xbf16>
    %5 = vector.shape_cast %4 : vector<1x1x8x32xbf16> to vector<1x8x32xbf16>
    %6 = vector.shape_cast %5 : vector<1x8x32xbf16> to vector<8x32xbf16>
    %c12 = arith.constant 12 : index
    %c0_2 = arith.constant 0 : index
    %c0_3 = arith.constant 0 : index
    %7 = vector.load %arg6[%c12, %c0_2, %c0_3] : memref<25x32x128xbf16, #tpu.memory_space<vmem>>, vector<1x32x128xbf16>
    %8 = vector.shape_cast %7 : vector<1x32x128xbf16> to vector<32x128xbf16>
    %cst_4 = arith.constant dense<0.000000e+00> : vector<8x128xf32>
    %9 = tpu.matmul %6, %8, %cst_4 {dimension_numbers = #tpu.dot_dimension_numbers<[1], [0], [0], [1], [0, 0, 1, 1], [], []>} : vector<8x32xbf16>, vector<32x128xbf16>, vector<8x128xf32> -> vector<8x128xf32>
    %10 = arith.addf %1, %9 : vector<8x128xf32>
    %c0_5 = arith.constant 0 : index
    %c0_6 = arith.constant 0 : index
    %11 = vector.load %arg7[%c0_5, %c0_6] : memref<1x128xf32, #tpu.memory_space<vmem>>, vector<1x128xf32>
    %12 = vector.broadcast %11 : vector<1x128xf32> to vector<8x128xf32>
    %13 = arith.addf %10, %12 : vector<8x128xf32>
    %cst_7 = arith.constant 0.000000e+00 : f32
    %14 = vector.broadcast %cst_7 : f32 to vector<8x128xf32>
    %15 = arith.cmpf oge, %13, %14 : vector<8x128xf32>
    %cst_8 = arith.constant 2.000000e-01 : f32
    %16 = vector.broadcast %cst_8 : f32 to vector<8x128xf32>
    %17 = arith.mulf %16, %13 : vector<8x128xf32>
    %18 = arith.select %15, %13, %17 : vector<8x128xi1>, vector<8x128xf32>
    %19 = vector.shape_cast %18 : vector<8x128xf32> to vector<1x8x128xf32>
    %20 = arith.truncf %19 : vector<1x8x128xf32> to vector<1x8x128xbf16>
    %c0_9 = arith.constant 0 : index
    %c0_10 = arith.constant 0 : index
    %c0_11 = arith.constant 0 : index
    %c0_12 = arith.constant 0 : index
    %21 = vector.load %arg8[%c0_9, %c0_10, %c0_11, %c0_12] : memref<1x1x8x128xbf16, #tpu.memory_space<vmem>>, vector<1x1x8x128xbf16>
    %22 = vector.shape_cast %21 : vector<1x1x8x128xbf16> to vector<1x8x128xbf16>
    %23 = vector.shape_cast %20 : vector<1x8x128xbf16> to vector<1x1x8x128xbf16>
    tpu.vector_store %arg8[%c0_9, %c0_10, %c0_11, %c0_12], %23 {strides = array<i32>} : memref<1x1x8x128xbf16, #tpu.memory_space<vmem>>, vector<1x1x8x128xbf16>,
    return
  }
  func.func @transform_0(%arg0: i32, %arg1: i32) -> (i32, i32, i32, i32) {
    %c0_i32 = arith.constant 0 : i32
    %c0_i32_0 = arith.constant 0 : i32
    %c0_i32_1 = arith.constant 0 : i32
    %c0_i32_2 = arith.constant 0 : i32
    return %arg0, %c0_i32, %c0_i32_0, %c0_i32_1 : i32, i32, i32, i32
  }
  func.func @transform_1(%arg0: i32, %arg1: i32) -> (i32, i32, i32, i32) {
    %c0_i32 = arith.constant 0 : i32
    %c0_i32_0 = arith.constant 0 : i32
    %c0_i32_1 = arith.constant 0 : i32
    %c0_i32_2 = arith.constant 0 : i32
    return %arg0, %c0_i32, %c0_i32_0, %c0_i32_1 : i32, i32, i32, i32
  }
  func.func @transform_2(%arg0: i32, %arg1: i32) -> (i32, i32, i32, i32) {
    %c0_i32 = arith.constant 0 : i32
    %c0_i32_0 = arith.constant 0 : i32
    %c0_i32_1 = arith.constant 0 : i32
    %c0_i32_2 = arith.constant 0 : i32
    return %arg0, %c0_i32, %c0_i32_0, %c0_i32_1 : i32, i32, i32, i32
  }
  func.func @transform_3(%arg0: i32, %arg1: i32) -> (i32, i32, i32, i32) {
    %c0_i32 = arith.constant 0 : i32
    %c0_i32_0 = arith.constant 0 : i32
    %c0_i32_1 = arith.constant 0 : i32
    %c0_i32_2 = arith.constant 0 : i32
    return %arg0, %c0_i32, %c0_i32_0, %c0_i32_1 : i32, i32, i32, i32
  }
  func.func @transform_4(%arg0: i32, %arg1: i32) -> (i32, i32, i32) {
    %c0_i32 = arith.constant 0 : i32
    %c0_i32_0 = arith.constant 0 : i32
    %c0_i32_1 = arith.constant 0 : i32
    %c0_i32_2 = arith.constant 0 : i32
    return %c0_i32, %c0_i32_0, %c0_i32_1 : i32, i32, i32
  }
  func.func @transform_5(%arg0: i32, %arg1: i32) -> (i32, i32) {
    %c0_i32 = arith.constant 0 : i32
    %c0_i32_0 = arith.constant 0 : i32
    %c0_i32_1 = arith.constant 0 : i32
    return %c0_i32, %c0_i32_0 : i32, i32
  }
  func.func @transform_6(%arg0: i32, %arg1: i32) -> (i32, i32, i32, i32) {
    %c0_i32 = arith.constant 0 : i32
    %c0_i32_0 = arith.constant 0 : i32
    %c0_i32_1 = arith.constant 0 : i32
    return %arg0, %arg1, %c0_i32, %c0_i32_0 : i32, i32, i32, i32
  }
}

</mosaic_0001>

<bundles_post_ra>
// kernel: _discriminator_forward_impl.6
= control target key start
LH: loop header
LB: loop body
LE: loop exit
PB: predicated region body
PF: predicated region fallthrough
CT: control target
= control target key end

     0   :  { %s6021_s21 = smov 0   ;;  %s6023_s22 = smov 0   ;;  %s7026_s0 = inlined_call_operand.vmem [shape: bf16[2,10,10,4], index: 0, kind: input, shape index: {}]   ;;  %s7027_s1 = inlined_call_operand.vmem [shape: bf16[2,10,10,4], index: 1, kind: input, shape index: {}]   ;;  %s7028_s2 = inlined_call_operand.vmem [shape: bf16[2,10,10,4], index: 2, kind: input, shape index: {}]   ;;  %s7029_s3 = inlined_call_operand.vmem [shape: bf16[2,10,10,4], index: 3, kind: input, shape index: {}]   ;;  %s7030_s4 = inlined_call_operand.vmem [shape: bf16[25,4,128], index: 4, kind: input, shape index: {}]   ;;  %s7031_s5 = inlined_call_operand.vmem [shape: f32[1,128], index: 5, kind: input, shape index: {}]   ;;  %s7032_s6 = inlined_call_operand.vmem [shape: bf16[2,8,8,128], index: 6, kind: output, shape index: {}]  }
   0x1   :  { %s6025_s23 = smov 0  }
   0x2 LB: > { %s28_s24 = sadd.s32 1, %s5980_s22  ;;  %p4831_p0 = scmp.ge.s32.totalorder %s5984_s23, 1  ;;  %s5984_s23 = sphi %s6025_s23, %s16_s23   ;;  %s5980_s22 = sphi %s6023_s22, %s7038_s22   ;;  %s5976_s21 = sphi %s6021_s21, %s7037_s21  }
   0x3   : > { %p30_p1 = scmp.ge.s32.totalorder %s28_s24, 2  ;;  %p256_p2 = scmp.lt.s32.totalorder %s5984_s23, 3 }
   0x5   : > { %s7040_s24 = smov (%p30_p1, %s28_s24), 0  ;;  %p257_p3 = pnand %p4831_p0, %p256_p2 }
   0x6   : > { %v4838_v0 = vld [vmem:[%s7030_s4 + $0x2] sm:$0x3] (!%p257_p3)  ;;  %vm394_vm0 = vcmask (!%p257_p3), 1041408   ;;  %p305_p4 = scmp.lt.s32.totalorder (!%p257_p3), %s5976_s21, 1  ;;  %v4993_v2 = vld [vmem:[%s7030_s4 + $0x18] sm:$0x3] (!%p257_p3) }
   0x7   : > { %260 = sbr.rel (%p257_p3) target bundleno = 482 (0x1e2), region = 44  ;;  %5866 = vmatprep.subr.msk.bf16.mxu1 (!%p257_p3), %vm394_vm0, %v4838_v0  ;;  %v396_v1 = vsel (!%p257_p3), %vm394_vm0, %v4838_v0, 0  ;;  %v348_v3 = vld [vmem:[%s7030_s4] sm:$0x3] (!%p257_p3)  ;;  %5878 = vmatprep.subr.msk.bf16.mxu0 (!%p257_p3), %vm394_vm0, %v4993_v2  ;;  %v6054_v4 = vsel (!%p257_p3), %vm394_vm0, %v4993_v2, 0  ;;  %vm381_vm1 = vcmask (!%p257_p3), 31744  }
   0x8   : > { %5423 = vmatpush3.bf16.msra.mxu1 (!%p257_p3), %v396_v1  ;;  %5543 = vmatpush3.bf16.msra.mxu0 (!%p257_p3), %v6054_v4  ;;  %v5018_v5 = vld [vmem:[%s7030_s4 + $0x1a] sm:$0x3] (!%p257_p3)  ;;  %v6064_v6 = vld [vmem:[%s7030_s4 + $0x1c] sm:$0x3] (!%p257_p3)  ;;  %v4855_v7 = vld [vmem:[%s7030_s4 + $0x4] sm:$0x3] (!%p257_p3) }
   0x9   : > { %5867 = vmatprep.subr.msk.bf16.mxu1 (!%p257_p3), %vm394_vm0, %v348_v3  ;;  %5880 = vmatprep.subr.msk.bf16.mxu0 (!%p257_p3), %vm394_vm0, %v5018_v5  ;;  %v496_v8 = vsel (!%p257_p3), %vm394_vm0, %v348_v3, 0  ;;  %v6075_v9 = vsel (!%p257_p3), %vm394_vm0, %v5018_v5, 0  ;;  %vm579_vm2 = vsmask.f32 (!%p257_p3), 3328  ;;  %vm580_vm3 = vsmask.f32 (!%p257_p3), 7440 }
   0xa   : > { %v6085_v10 = vsel (!%p257_p3), %vm394_vm0, %v6064_v6, 0  ;;  %v6088_v11 = vsel (!%p257_p3), %vm394_vm0, %v4855_v7, 0  ;;  %v6093_v12 = vld [vmem:[%s7030_s4 + $0x1e] sm:$0x3] (!%p257_p3)  ;;  %v6098_v13 = vld [vmem:[%s7030_s4 + $0x6] sm:$0x3] (!%p257_p3)  ;;  %vm6145_vm4 = vmor (!%p257_p3), %vm579_vm2, %vm580_vm3 }
   0xb   : > { %v6113_v17 = vsel (!%p257_p3), %vm394_vm0, %v6093_v12, 0  ;;  %v6117_v18 = vsel (!%p257_p3), %vm394_vm0, %v6098_v13, 0  ;;  %vm1050_vm5 = vcmask (!%p257_p3), 1042432   ;;  %vm1051_vm6 = vcmask (!%p257_p3), 1046532  }
   0xc   : > { %vm6239_vm7 = vmor (!%p257_p3), %vm1050_vm5, %vm1051_vm6 }
   0xe   : > { %s7042_s21 = smov (!%p305_p4, %s5976_s21), 1 }
   0xf   : > { %s6067_s11 = smul.u32 80, %s7042_s21  ;;  %s5273_s12 = sshll.u32 %s7042_s21, 5 }
  0x10   : > { %s7011_s15 = scalar_lea.vmem %s7032_s6, %s5273_s12 }
  0x11   : > { %s6081_s16 = scalar_lea.vmem %s7027_s1, %s6067_s11  ;;  %s6105_s27 = scalar_lea.vmem %s7026_s0, %s6067_s11 }
  0x12   : > { %v5917_v14 = vld [vmem:[%s6081_s16] ss:$8 sps:$4 sm:$0xff]   ;;  %v5918_v15 = vld [vmem:[%s6081_s16 + $0x10] ss:$8 sps:$4 sm:$0xff]   ;;  %v6122_v20 = vld [vmem:[%s6105_s27 + $0xc] sm:$0x1]  ;;  %s6316_s10 = scalar_lea.vmem %s7028_s2, %s6067_s11  ;;  %s6373_s14 = scalar_lea.vmem %s7029_s3, %s6067_s11 }
  0x13   : > { %5424 = vmatprep.mubr.msk.bf16.mxu1 %vm381_vm1, %v5917_v14  ;;  %v5919_v16 = vld [vmem:[%s6081_s16 + $0x20] ss:$8 sps:$4 sm:$0xff]   ;;  %v4979_v21 = vld [vmem:[%s6105_s27 + $0x10] sm:$0xf]  ;;  %v6127_v23 = vld [vmem:[%s6105_s27 + $0x14] sm:$0x1] }
  0x14   : > { %5425 = vmatmul.mubr.msk.bf16.vlgmr.msra.gmra.mrb[0].mxu1 %vm381_vm1, %v5918_v15  ;;  %v4977_v19 = vld [vmem:[%s6105_s27 + $0x8] sm:$0xf]  ;;  %v5920_v22 = vld [vmem:[%s6081_s16 + $0x30] ss:$8 sps:$4 sm:$0xff]   ;;  %v2313_v26 = vshll.u32 %v6122_v20, 16  ;;  %v2318_v27 = vshrl.u32 %v4979_v21, 16 }
  0x15   : > { %5428 = vmatprep.mubr.msk.bf16.mxu1 %vm381_vm1, %v5919_v16  ;;  %5433 = vmatpush3.bf16.msra.mxu1 %v496_v8  ;;  %v2304_v24 = vshrl.u32 %v4977_v19, 16  ;;  %v2307_v25 = vshll.u32 %v4977_v19, 16  ;;  %v2321_v28 = vshll.u32 %v4979_v21, 16  ;;  %v2327_v29 = vshll.u32 %v6127_v23, 16  ;;  %v4981_v32 = vld [vmem:[%s6105_s27 + $0x18] sm:$0xf] }
  0x16   : > { %5868 = vmatprep.subr.msk.bf16.mxu1 %vm394_vm0, %v4855_v7  ;;  %v2773_v30 = vrot.slane %v6122_v20, 5  ;;  %v2777_v31 = vrot.slane %v6127_v23, 5  ;;  %v2315_v35 = vrot.slane %v2313_v26, 5  ;;  %v2320_v36 = vrot.slane %v2318_v27, 4  ;;  %v6136_v37 = vld [vmem:[%s6105_s27 + $0x1c] sm:$0x1] }
  0x17   : > { %v2306_v33 = vrot.slane %v2304_v24, 4  ;;  %v2309_v34 = vrot.slane %v2307_v25, 5  ;;  %v2323_v38 = vrot.slane %v2321_v28, 5  ;;  %v2329_v39 = vrot.slane %v2327_v29, 5  ;;  %v4983_v40 = vld [vmem:[%s6105_s27 + $0x20] sm:$0xf] }
  0x18   : > { %v6140_v41 = vld [vmem:[%s6105_s27 + $0x24] sm:$0x1]  ;;  %v2332_v43 = vshrl.u32 %v4981_v32, 16  ;;  %v2335_v44 = vshll.u32 %v4981_v32, 16  ;;  %v2341_v45 = vshll.u32 %v6136_v37, 16  ;;  %v2346_v48 = vshrl.u32 %v4983_v40, 16 }
  0x19   : > { %v2310_v42 = vor.u32 %v2309_v34, %v2306_v33  ;;  %v2324_v47 = vor.u32 %v2323_v38, %v2320_v36  ;;  %v2349_v49 = vshll.u32 %v4983_v40, 16  ;;  %v2355_v50 = vshll.u32 %v6140_v41, 16  ;;  %v5921_v55 = vld [vmem:[%s6105_s27] ss:$8 sps:$4 sm:$0xff]   ;;  %v5922_v0 = vld [vmem:[%s6105_s27 + $0x10] ss:$8 sps:$4 sm:$0xff]  }
  0x1a   : > { %v2334_v52 = vrot.slane %v2332_v43, 4  ;;  %v2337_v53 = vrot.slane %v2335_v44, 5  ;;  %v2343_v54 = vrot.slane %v2341_v45, 5  ;;  %v2348_v57 = vrot.slane %v2346_v48, 4  ;;  %v5002_v3 = vld [vmem:[%s6081_s16 + $0x8] sm:$0xf] }
  0x1b   : > { %v2311_v51 = vrot.slane %v2310_v42, 4  ;;  %v2325_v56 = vrot.slane %v2324_v47, 4  ;;  %v2351_v58 = vrot.slane %v2349_v49, 5  ;;  %v2357_v59 = vrot.slane %v2355_v50, 5  ;;  %v5003_v5 = vld [vmem:[%s6081_s16 + $0xc] sm:$0x1] }
  0x1c   : > { %5429 = vmatmul.mubr.msk.bf16.gmra.mrb[4].mxu1 %vm381_vm1, %v5920_v22  ;;  %v2338_v61 = vor.u32 %v2337_v53, %v2334_v52  ;;  %v2781_v62 = vrot.slane %v6136_v37, 5  ;;  %v2785_v63 = vrot.slane %v6140_v41, 5  ;;  %v5004_v7 = vld [vmem:[%s6081_s16 + $0x10] sm:$0xf]  ;;  %v5005_v15 = vld [vmem:[%s6081_s16 + $0x14] sm:$0x1] }
  0x1d   : > { %v2316_v60 = vsel %vm6145_vm4, %v2311_v51, %v2315_v35  ;;  %5434 = vmatprep.mubr.msk.bf16.mxu1 %vm381_vm1, %v5921_v55  ;;  %v2330_v1 = vsel %vm6145_vm4, %v2325_v56, %v2329_v39  ;;  %v2352_v2 = vor.u32 %v2351_v58, %v2348_v57  ;;  %v2534_v16 = vshrl.u32 %v5002_v3, 16  ;;  %v5006_v26 = vld [vmem:[%s6081_s16 + $0x18] sm:$0xf]  ;;  %v5007_v33 = vld [vmem:[%s6081_s16 + $0x1c] sm:$0x1] }
  0x1e   : > { %v4994_v8 = vcombine.low %v2316_v60, %v2330_v1  ;;  %v2339_v14 = vrot.slane %v2338_v61, 4  ;;  %v2537_v19 = vshll.u32 %v5002_v3, 16  ;;  %v2543_v22 = vshll.u32 %v5003_v5, 16  ;;  %v5008_v39 = vld [vmem:[%s6081_s16 + $0x20] sm:$0xf] }
  0x1f   : > { %v2353_v21 = vrot.slane %v2352_v2, 4  ;;  %v2548_v24 = vshrl.u32 %v5004_v7, 16  ;;  %v2551_v25 = vshll.u32 %v5004_v7, 16  ;;  %v2536_v28 = vrot.slane %v2534_v16, 4  ;;  %v5009_v44 = vld [vmem:[%s6081_s16 + $0x24] sm:$0x1] }
  0x20   : > { %5544 = vmatprep.mubr.msk.bf16.mxu0 %vm381_vm1, %v4994_v8  ;;  %v2344_v27 = vsel %vm6145_vm4, %v2339_v14, %v2343_v54  ;;  %v2539_v29 = vrot.slane %v2537_v19, 5  ;;  %v2557_v32 = vshll.u32 %v5005_v15, 16  ;;  %v2545_v35 = vrot.slane %v2543_v22, 5  ;;  %v5923_v55 = vld [vmem:[%s6105_s27 + $0x20] ss:$8 sps:$4 sm:$0xff]  }
  0x21   : > { %v2358_v34 = vsel %vm6145_vm4, %v2353_v21, %v2357_v59  ;;  %v2550_v36 = vrot.slane %v2548_v24, 4  ;;  %v2553_v38 = vrot.slane %v2551_v25, 5  ;;  %v2562_v45 = vshrl.u32 %v5006_v26, 16  ;;  %v5010_v1 = vld [vmem:[%s6081_s16 + $0x28] sm:$0xf] }
  0x22   : > { %v4995_v40 = vcombine.low %v2344_v27, %v2358_v34  ;;  %v2540_v42 = vor.u32 %v2539_v29, %v2536_v28  ;;  %v2559_v43 = vrot.slane %v2557_v32, 5  ;;  %v2565_v48 = vshll.u32 %v5006_v26, 16  ;;  %v5011_v2 = vld [vmem:[%s6081_s16 + $0x2c] sm:$0x1]  ;;  %v5012_v3 = vld [vmem:[%s6081_s16 + $0x30] sm:$0xf] }
  0x23   : > { %v2554_v47 = vor.u32 %v2553_v38, %v2550_v36  ;;  %v2571_v49 = vshll.u32 %v5007_v33, 16  ;;  %v2576_v50 = vshrl.u32 %v5008_v39, 16  ;;  %v2564_v52 = vrot.slane %v2562_v45, 4  ;;  %v5013_v8 = vld [vmem:[%s6081_s16 + $0x34] sm:$0x1] }
  0x24   : > { %5435 = vmatmul.mubr.msk.bf16.vlgmr.msra.gmra.mrb[0].mxu1 %vm381_vm1, %v5922_v0  ;;  %5545 = vmatmul.mubr.msk.bf16.vlgmr.msra.gmra.mrb[0].mxu0 %vm381_vm1, %v4995_v40  ;;  %v2541_v51 = vrot.slane %v2540_v42, 4  ;;  %v2579_v53 = vshll.u32 %v5008_v39, 16  ;;  %v2585_v54 = vshll.u32 %v5009_v44, 16  ;;  %v2567_v57 = vrot.slane %v2565_v48, 5  ;;  %v5014_v22 = vld [vmem:[%s6081_s16 + $0x38] sm:$0xf] }
  0x25   : > { %5443 = vmatpush3.bf16.msra.mxu1 %v6088_v11  ;;  %5553 = vmatpush3.bf16.msra.mxu0 %v6075_v9  ;;  %v2555_v56 = vrot.slane %v2554_v47, 4  ;;  %v2573_v11 = vrot.slane %v2571_v49, 5  ;;  %v2578_v58 = vrot.slane %v2576_v50, 4  ;;  %v2590_v14 = vshrl.u32 %v5010_v1, 16  ;;  %v5015_v28 = vld [vmem:[%s6081_s16 + $0x3c] sm:$0x1] }
  0x26   : > { %5869 = vmatprep.subr.msk.bf16.mxu1 %vm394_vm0, %v6098_v13  ;;  %v2546_v59 = vsel %vm6145_vm4, %v2541_v51, %v2545_v35  ;;  %5881 = vmatprep.subr.msk.bf16.mxu0 %vm394_vm0, %v6064_v6  ;;  %v2581_v60 = vrot.slane %v2579_v53, 5  ;;  %v2587_v61 = vrot.slane %v2585_v54, 5  ;;  %v5924_v13 = vld [vmem:[%s6105_s27 + $0x30] ss:$8 sps:$4 sm:$0xff]   ;;  %v2568_v0 = vor.u32 %v2567_v57, %v2564_v52  ;;  %v5016_v35 = vld [vmem:[%s6081_s16 + $0x40] sm:$0xf] }
  0x27   : > { %5438 = vmatprep.mubr.msk.bf16.mxu1 %vm381_vm1, %v5923_v55  ;;  %v2560_v9 = vsel %vm6145_vm4, %v2555_v56, %v2559_v43  ;;  %v2593_v15 = vshll.u32 %v5010_v1, 16  ;;  %v2599_v16 = vshll.u32 %v5011_v2, 16  ;;  %v2604_v19 = vshrl.u32 %v5012_v3, 16  ;;  %v5017_v40 = vld [vmem:[%s6081_s16 + $0x44] sm:$0x1] }
  0x28   : > { %v5019_v5 = vcombine.low %v2546_v59, %v2560_v9  ;;  %v2582_v7 = vor.u32 %v2581_v60, %v2578_v58  ;;  %v2569_v6 = vrot.slane %v2568_v0, 4  ;;  %v2607_v21 = vshll.u32 %v5012_v3, 16  ;;  %v563_v48 = vld [vmem:[%s6105_s27] sm:$0xf]  ;;  %v6204_v57 = vld [vmem:[%s6105_s27 + $0x4] sm:$0x1] }
  0x29   : > { %v2592_v25 = vrot.slane %v2590_v14, 4  ;;  %v2595_v26 = vrot.slane %v2593_v15, 5  ;;  %v2613_v27 = vshll.u32 %v5013_v8, 16  ;;  %v2601_v32 = vrot.slane %v2599_v16, 5  ;;  %v565_v60 = vld [vmem:[%s6105_s27 + $0x8] sm:$0xf] }
  0x2a   : > { %5554 = vmatprep.mubr.msk.bf16.mxu0 %vm381_vm1, %v5019_v5  ;;  %v2583_v24 = vrot.slane %v2582_v7, 4  ;;  %v2574_v29 = vsel %vm6145_vm4, %v2569_v6, %v2573_v11  ;;  %v2606_v33 = vrot.slane %v2604_v19, 4  ;;  %v2609_v34 = vrot.slane %v2607_v21, 5  ;;  %v6214_v1 = vld [vmem:[%s6105_s27 + $0xc] sm:$0x1] }
  0x2b   : > { %v2596_v38 = vor.u32 %v2595_v26, %v2592_v25  ;;  %v2615_v39 = vrot.slane %v2613_v27, 5  ;;  %v2618_v42 = vshrl.u32 %v5014_v22, 16  ;;  %v2621_v45 = vshll.u32 %v5014_v22, 16  ;;  %v567_v3 = vld [vmem:[%s6105_s27 + $0x10] sm:$0xf] }
  0x2c   : > { %5439 = vmatmul.mubr.msk.bf16.gmra.mrb[4].mxu1 %vm381_vm1, %v5924_v13  ;;  %v2588_v36 = vsel %vm6145_vm4, %v2583_v24, %v2587_v61  ;;  %v2610_v44 = vor.u32 %v2609_v34, %v2606_v33  ;;  %v2627_v47 = vshll.u32 %v5015_v28, 16  ;;  %v2632_v51 = vshrl.u32 %v5016_v35, 16  ;;  %v6223_v24 = vld [vmem:[%s6105_s27 + $0x14] sm:$0x1]  ;;  %v575_v37 = vld [vmem:[%s6105_s27 + $0x30] sm:$0xf] }
  0x2d   : > { %v5020_v43 = vcombine.low %v2574_v29, %v2588_v36  ;;  %v2597_v49 = vrot.slane %v2596_v38, 4  ;;  %v2620_v50 = vrot.slane %v2618_v42, 4  ;;  %v2635_v52 = vshll.u32 %v5016_v35, 16  ;;  %v569_v29 = vld [vmem:[%s6105_s27 + $0x18] sm:$0xf] }
  0x2e   : > { %v2611_v53 = vrot.slane %v2610_v44, 4  ;;  %v2623_v54 = vrot.slane %v2621_v45, 5  ;;  %v2629_v55 = vrot.slane %v2627_v47, 5  ;;  %v2641_v56 = vshll.u32 %v5017_v40, 16  ;;  %v5027_v38 = vld [vmem:[%s6105_s27 + $0x8] sm:$0xe] }
  0x2f   : > { %v2602_v11 = vsel %vm6145_vm4, %v2597_v49, %v2601_v32  ;;  %v2634_v58 = vrot.slane %v2632_v51, 4  ;;  %v2637_v59 = vrot.slane %v2635_v52, 5  ;;  %v583_v61 = vshrl.u32 %v563_v48, 16  ;;  %v6229_v32 = vld [vmem:[%s6105_s27 + $0x1c] sm:$0x1] }
  0x30   : > { %5555 = vmatmul.mubr.msk.bf16.vlgmr.msra.gmra.mrb[0].mxu0 %vm381_vm1, %v5020_v43  ;;  %v2616_v13 = vsel %vm6145_vm4, %v2611_v53, %v2615_v39  ;;  %v2624_v9 = vor.u32 %v2623_v54, %v2620_v50  ;;  %v2643_v0 = vrot.slane %v2641_v56, 5  ;;  %v586_v2 = vshll.u32 %v563_v48, 16  ;;  %v5028_v44 = vld [vmem:[%s6105_s27 + $0x10] sm:$0xe]  ;;  %v5029_v51 = vld [vmem:[%s6105_s27 + $0x18] sm:$0xe] }
  0x31   : > { %5563 = vmatpush3.bf16.msra.mxu0 %v6085_v10  ;;  %v5021_v5 = vcombine.low %v2602_v11, %v2616_v13  ;;  %v2638_v7 = vor.u32 %v2637_v59, %v2634_v58  ;;  %v585_v8 = vrot.slane %v583_v61, 4  ;;  %v592_v14 = vshll.u32 %v6204_v57, 16  ;;  %v5030_v56 = vld [vmem:[%s6105_s27 + $0x20] sm:$0xe] }
  0x32   : > { %5882 = vmatprep.subr.msk.bf16.mxu0 %vm394_vm0, %v6093_v12  ;;  %v2625_v10 = vrot.slane %v2624_v9, 4  ;;  %v588_v15 = vrot.slane %v586_v2, 5  ;;  %v597_v6 = vshrl.u32 %v565_v60, 16  ;;  %v600_v16 = vshll.u32 %v565_v60, 16  ;;  %v571_v61 = vld [vmem:[%s6105_s27 + $0x20] sm:$0xf] }
  0x33   : > { %5558 = vmatprep.mubr.msk.bf16.mxu0 %vm381_vm1, %v5021_v5  ;;  %v2639_v19 = vrot.slane %v2638_v7, 4  ;;  %v594_v21 = vrot.slane %v592_v14, 5  ;;  %v606_v22 = vshll.u32 %v6214_v1, 16  ;;  %v611_v25 = vshrl.u32 %v567_v3, 16  ;;  %v6256_v14 = vld [vmem:[%s6105_s27 + $0x24] sm:$0x1] }
  0x34   : > { %v2630_v26 = vsel %vm6145_vm4, %v2625_v10, %v2629_v55  ;;  %v589_v12 = vor.u32 %v588_v15, %v585_v8  ;;  %v599_v27 = vrot.slane %v597_v6, 4  ;;  %v602_v28 = vrot.slane %v600_v16, 5  ;;  %v6268_v15 = vld [vmem:[%s6105_s27 + $0x2c] sm:$0x1] }
  0x35   : > { %v2644_v33 = vsel %vm6145_vm4, %v2639_v19, %v2643_v0  ;;  %v608_v34 = vrot.slane %v606_v22, 5  ;;  %v613_v35 = vrot.slane %v611_v25, 4  ;;  %v614_v36 = vshll.u32 %v567_v3, 16 }
  0x36   : > { %v5022_v39 = vcombine.low %v2630_v26, %v2644_v33  ;;  %v590_v40 = vrot.slane %v589_v12, 4  ;;  %v603_v42 = vor.u32 %v602_v28, %v599_v27  ;;  %v620_v43 = vshll.u32 %v6223_v24, 16  ;;  %v6285_v27 = vld [vmem:[%s6105_s27 + $0x34] sm:$0x1]  ;;  %v577_v33 = vld [vmem:[%s6105_s27 + $0x38] sm:$0xf] }
  0x37   : > { %v616_v45 = vrot.slane %v614_v36, 5  ;;  %v625_v47 = vshrl.u32 %v569_v29, 16  ;;  %v628_v48 = vshll.u32 %v569_v29, 16  ;;  %v634_v49 = vshll.u32 %v6229_v32, 16 }
  0x38   : > { %5559 = vmatmul.mubr.msk.bf16.gmra.mrb[4].mxu0 %vm381_vm1, %v5022_v39  ;;  %v595_v52 = vsel %vm6145_vm4, %v590_v40, %v594_v21  ;;  %v604_v53 = vrot.slane %v603_v42, 4  ;;  %v622_v54 = vrot.slane %v620_v43, 5  ;;  %v5035_v55 = vrot.slane %v5027_v38, 9  ;;  %v6294_v38 = vld [vmem:[%s6105_s27 + $0x3c] sm:$0x1] }
  0x39   : > { %v617_v11 = vor.u32 %v616_v45, %v613_v35  ;;  %v627_v58 = vrot.slane %v625_v47, 4  ;;  %v630_v59 = vrot.slane %v628_v48, 5  ;;  %v636_v60 = vrot.slane %v634_v49, 5  ;;  %v6299_v40 = vld [vmem:[%s7030_s4 + $0x8] sm:$0x3] }
  0x3a   : > { %v609_v13 = vsel %vm6145_vm4, %v604_v53, %v608_v34  ;;  %v2774_v9 = vsel %vm6239_vm7, %v5035_v55, %v2773_v30  ;;  %v5036_v0 = vrot.slane %v5028_v44, 9  ;;  %v5037_v2 = vrot.slane %v5029_v51, 9  ;;  %v573_v30 = vld [vmem:[%s6105_s27 + $0x28] sm:$0xf]  ;;  %v4986_v47 = vld [vmem:[%s6105_s27 + $0x2c] sm:$0x1] }
  0x3b   : > { %v4856_v3 = vcombine.low %v595_v52, %v609_v13  ;;  %v618_v5 = vrot.slane %v617_v11, 4  ;;  %v631_v7 = vor.u32 %v630_v59, %v627_v58  ;;  %v5038_v8 = vrot.slane %v5030_v56, 9  ;;  %v5031_v48 = vld [vmem:[%s6105_s27 + $0x28] sm:$0xe]  ;;  %v5032_v58 = vld [vmem:[%s6105_s27 + $0x30] sm:$0xe] }
  0x3c   : > { %v2778_v10 = vsel %vm6239_vm7, %v5036_v0, %v2777_v31  ;;  %v2782_v20 = vsel %vm6239_vm7, %v5037_v2, %v2781_v62  ;;  %v639_v6 = vshrl.u32 %v571_v61, 16  ;;  %v642_v16 = vshll.u32 %v571_v61, 16  ;;  %v6281_v62 = vld [vmem:[%s7030_s4 + $0x20] sm:$0x3]  ;;  %v4990_v2 = vld [vmem:[%s6105_s27 + $0x3c] sm:$0x1] }
  0x3d   : > { %5444 = vmatprep.mubr.msk.bf16.mxu1 %vm381_vm1, %v4856_v3  ;;  %v623_v19 = vsel %vm6145_vm4, %v618_v5, %v622_v54  ;;  %v632_v23 = vrot.slane %v631_v7, 4  ;;  %v5044_v21 = vcombine.low %v2774_v9, %v2778_v10  ;;  %v2786_v31 = vsel %vm6239_vm7, %v5038_v8, %v2785_v63  ;;  %v4988_v54 = vld [vmem:[%s6105_s27 + $0x34] sm:$0x1]  ;;  %v4992_v3 = vld [vmem:[%s6105_s27 + $0x44] sm:$0x1] }
  0x3e   : > { %v5045_v22 = vcombine.low %v2782_v20, %v2786_v31  ;;  %v641_v25 = vrot.slane %v639_v6, 4  ;;  %v644_v26 = vrot.slane %v642_v16, 5  ;;  %v648_v12 = vshll.u32 %v6256_v14, 16  ;;  %v5033_v5 = vld [vmem:[%s6105_s27 + $0x38] sm:$0xe] }
  0x3f   : > { %v637_v41 = vsel %vm6145_vm4, %v632_v23, %v636_v60  ;;  %5564 = vmatprep.mubr.msk.bf16.mxu0 %vm381_vm1, %v5044_v21  ;;  %v653_v63 = vshrl.u32 %v573_v30, 16  ;;  %v656_v28 = vshll.u32 %v573_v30, 16  ;;  %v662_v29 = vshll.u32 %v6268_v15, 16  ;;  %v5034_v20 = vld [vmem:[%s6105_s27 + $0x40] sm:$0xe] }
  0x40   : > { %v4857_v34 = vcombine.low %v623_v19, %v637_v41  ;;  %5565 = vmatmul.mubr.msk.bf16.vlgmr.msra.gmra.mrb[0].mxu0 %vm381_vm1, %v5045_v22  ;;  %v645_v35 = vor.u32 %v644_v26, %v641_v25  ;;  %v650_v36 = vrot.slane %v648_v12, 5  ;;  %v667_v39 = vshrl.u32 %v575_v37, 16  ;;  %v797_v22 = vld [vmem:[%s6081_s16 + $0x4] sm:$0x1]  ;;  %v798_v41 = vld [vmem:[%s6081_s16 + $0x8] sm:$0xf] }
  0x41   : > { %5573 = vmatpush3.bf16.msra.mxu0 %v6113_v17  ;;  %v655_v42 = vrot.slane %v653_v63, 4  ;;  %v658_v43 = vrot.slane %v656_v28, 5  ;;  %v664_v44 = vrot.slane %v662_v29, 5  ;;  %v670_v45 = vshll.u32 %v575_v37, 16  ;;  %v796_v37 = vld [vmem:[%s6081_s16] sm:$0xf] }
  0x42   : > { %5445 = vmatmul.mubr.msk.bf16.vlgmr.msra.gmra.mrb[0].mxu1 %vm381_vm1, %v4857_v34  ;;  %v646_v49 = vrot.slane %v645_v35, 4  ;;  %v669_v51 = vrot.slane %v667_v39, 4  ;;  %v676_v52 = vshll.u32 %v6285_v27, 16  ;;  %v681_v53 = vshrl.u32 %v577_v33, 16  ;;  %5883 = vmatprep.subr.msk.bf16.mxu0 %vm394_vm0, %v6281_v62  ;;  %v799_v63 = vld [vmem:[%s6081_s16 + $0xc] sm:$0x1] }
  0x43   : > { %v659_v17 = vor.u32 %v658_v43, %v655_v42  ;;  %v672_v55 = vrot.slane %v670_v45, 5  ;;  %v684_v56 = vshll.u32 %v577_v33, 16  ;;  %v690_v11 = vshll.u32 %v6294_v38, 16  ;;  %5453 = vmatpush3.bf16.msra.mxu1 %v6117_v18  ;;  %v800_v35 = vld [vmem:[%s6081_s16 + $0x10] sm:$0xf] }
  0x44   : > { %v651_v59 = vsel %vm6145_vm4, %v646_v49, %v650_v36  ;;  %v683_v60 = vrot.slane %v681_v53, 4  ;;  %v5039_v61 = vrot.slane %v5031_v48, 9  ;;  %5870 = vmatprep.subr.msk.bf16.mxu1 %vm394_vm0, %v6299_v40  ;;  %v678_v0 = vrot.slane %v676_v52, 5  ;;  %v5925_v52 = vld [vmem:[%s6316_s10 + $0x8] ss:$8 sps:$4 sm:$0xff]  }
  0x45   : > { %v660_v13 = vrot.slane %v659_v17, 4  ;;  %v673_v9 = vor.u32 %v672_v55, %v669_v51  ;;  %v686_v18 = vrot.slane %v684_v56, 5  ;;  %v2789_v7 = vrot.slane %v4986_v47, 5  ;;  %v802_v51 = vld [vmem:[%s6081_s16 + $0x18] sm:$0xf] }
  0x46   : > { %v5040_v8 = vrot.slane %v5032_v58, 9  ;;  %v2793_v10 = vrot.slane %v4988_v54, 5  ;;  %v692_v19 = vrot.slane %v690_v11, 5  ;;  %v5041_v28 = vrot.slane %v5033_v5, 9  ;;  %v803_v56 = vld [vmem:[%s6081_s16 + $0x1c] sm:$0x1] }
  0x47   : > { %v665_v30 = vsel %vm6145_vm4, %v660_v13, %v664_v44  ;;  %v674_v6 = vrot.slane %v673_v9, 4  ;;  %v687_v16 = vor.u32 %v686_v18, %v683_v60  ;;  %v2790_v21 = vsel %vm6239_vm7, %v5039_v61, %v2789_v7  ;;  %v801_v44 = vld [vmem:[%s6081_s16 + $0x14] sm:$0x1]  ;;  %v804_v61 = vld [vmem:[%s6081_s16 + $0x20] sm:$0xf] }
  0x48   : > { %v4858_v23 = vcombine.low %v651_v59, %v665_v30  ;;  %v2794_v31 = vsel %vm6239_vm7, %v5040_v8, %v2793_v10  ;;  %v2797_v29 = vrot.slane %v4990_v2, 5  ;;  %v5042_v33 = vrot.slane %v5034_v20, 9  ;;  %v805_v2 = vld [vmem:[%s6081_s16 + $0x24] sm:$0x1]  ;;  %v806_v10 = vld [vmem:[%s6081_s16 + $0x28] sm:$0xf] }
  0x49   : > { %v679_v25 = vsel %vm6145_vm4, %v674_v6, %v678_v0  ;;  %v688_v26 = vrot.slane %v687_v16, 4  ;;  %v5046_v12 = vcombine.low %v2790_v21, %v2794_v31  ;;  %v2801_v34 = vrot.slane %v4992_v3, 5 }
  0x4a   : > { %5448 = vmatprep.mubr.msk.bf16.mxu1 %vm381_vm1, %v4858_v23  ;;  %v813_v39 = vshrl.u32 %v796_v37, 16  ;;  %v816_v42 = vshll.u32 %v796_v37, 16  ;;  %v822_v43 = vshll.u32 %v797_v22, 16  ;;  %v2798_v47 = vsel %vm6239_vm7, %v5041_v28, %v2797_v29 }
  0x4b   : > { %v693_v36 = vsel %vm6145_vm4, %v688_v26, %v692_v19  ;;  %5568 = vmatprep.mubr.msk.bf16.mxu0 %vm381_vm1, %v5046_v12  ;;  %v2802_v48 = vsel %vm6239_vm7, %v5042_v33, %v2801_v34  ;;  %v827_v49 = vshrl.u32 %v798_v41, 16  ;;  %v830_v58 = vshll.u32 %v798_v41, 16  ;;  %v5926_v19 = vld [vmem:[%s6316_s10 + $0x18] ss:$8 sps:$4 sm:$0xff]   ;;  %v807_v26 = vld [vmem:[%s6081_s16 + $0x2c] sm:$0x1] }
  0x4c   : > { %v4859_v45 = vcombine.low %v679_v25, %v693_v36  ;;  %v5047_v53 = vcombine.low %v2798_v47, %v2802_v48  ;;  %v815_v54 = vrot.slane %v813_v39, 4  ;;  %v818_v17 = vrot.slane %v816_v42, 5 }
  0x4d   : > { %v824_v55 = vrot.slane %v822_v43, 5  ;;  %v829_v11 = vrot.slane %v827_v49, 4  ;;  %v836_v59 = vshll.u32 %v799_v63, 16  ;;  %v841_v60 = vshrl.u32 %v800_v35, 16  ;;  %v808_v63 = vld [vmem:[%s6081_s16 + $0x30] sm:$0xf] }
  0x4e   : > { %5449 = vmatmul.mubr.msk.bf16.gmra.mrb[4].mxu1 %vm381_vm1, %v4859_v45  ;;  %5569 = vmatmul.mubr.msk.bf16.gmra.mrb[4].mxu0 %vm381_vm1, %v5047_v53  ;;  %v819_v13 = vor.u32 %v818_v17, %v815_v54  ;;  %v844_v9 = vshll.u32 %v800_v35, 16  ;;  %v850_v0 = vshll.u32 %v801_v44, 16  ;;  %v855_v18 = vshrl.u32 %v802_v51, 16  ;;  %v5927_v35 = vld [vmem:[%s6316_s10 + $0x28] ss:$8 sps:$4 sm:$0xff]  }
  0x4f   : > { %v832_v3 = vrot.slane %v830_v58, 5  ;;  %v838_v5 = vrot.slane %v836_v59, 5  ;;  %v843_v7 = vrot.slane %v841_v60, 4  ;;  %v858_v8 = vshll.u32 %v802_v51, 16  ;;  %5574 = vmatprep.mubr.msk.bf16.mxu0 %vm381_vm1, %v5925_v52  ;;  %v809_v43 = vld [vmem:[%s6081_s16 + $0x34] sm:$0x1] }
  0x50   : > { %v820_v20 = vrot.slane %v819_v13, 4  ;;  %v846_v30 = vrot.slane %v844_v9, 5  ;;  %v852_v6 = vrot.slane %v850_v0, 5  ;;  %v857_v16 = vrot.slane %v855_v18, 4  ;;  %v810_v49 = vld [vmem:[%s6081_s16 + $0x38] sm:$0xf] }
  0x51   : > { %v833_v23 = vor.u32 %v832_v3, %v829_v11  ;;  %v860_v21 = vrot.slane %v858_v8, 5  ;;  %v864_v31 = vshll.u32 %v803_v56, 16  ;;  %v3070_v37 = vsel %vm394_vm0, %v6281_v62, 0  ;;  %v811_v17 = vld [vmem:[%s6081_s16 + $0x3c] sm:$0x1] }
  0x52   : > { %v825_v22 = vsel %vm6145_vm4, %v820_v20, %v824_v55  ;;  %v847_v25 = vor.u32 %v846_v30, %v843_v7  ;;  %v869_v12 = vshrl.u32 %v804_v61, 16  ;;  %v872_v41 = vshll.u32 %v804_v61, 16  ;;  %v1026_v59 = vld [vmem:[%s6105_s27] sm:$0xe]  ;;  %v1027_v18 = vld [vmem:[%s6105_s27 + $0x8] sm:$0xe] }
  0x53   : > { %v834_v28 = vrot.slane %v833_v23, 4  ;;  %v861_v29 = vor.u32 %v860_v21, %v857_v16  ;;  %v866_v33 = vrot.slane %v864_v31, 5  ;;  %v878_v34 = vshll.u32 %v805_v2, 16  ;;  %v5928_v0 = vld [vmem:[%s6316_s10 + $0x38] ss:$8 sps:$4 sm:$0xff]  }
  0x54   : > { %v848_v36 = vrot.slane %v847_v25, 4  ;;  %v871_v39 = vrot.slane %v869_v12, 4  ;;  %v874_v62 = vrot.slane %v872_v41, 5  ;;  %v883_v42 = vshrl.u32 %v806_v10, 16  ;;  %v5102_v2 = vld [vmem:[%s7030_s4 + $0x22] sm:$0x3] }
  0x55   : > { %v839_v44 = vsel %vm6145_vm4, %v834_v28, %v838_v5  ;;  %v862_v45 = vrot.slane %v861_v29, 4  ;;  %v880_v47 = vrot.slane %v878_v34, 5  ;;  %v886_v48 = vshll.u32 %v806_v10, 16  ;;  %v1028_v16 = vld [vmem:[%s6105_s27 + $0x10] sm:$0xe] }
  0x56   : > { %v4865_v51 = vcombine.low %v825_v22, %v839_v44  ;;  %v853_v52 = vsel %vm6145_vm4, %v848_v36, %v852_v6  ;;  %5575 = vmatmul.mubr.msk.bf16.vlgmr.msra.gmra.mrb[0].mxu0 %vm381_vm1, %v5926_v19  ;;  %v875_v53 = vor.u32 %v874_v62, %v871_v39  ;;  %v885_v54 = vrot.slane %v883_v42, 4  ;;  %v1029_v41 = vld [vmem:[%s6105_s27 + $0x18] sm:$0xe]  ;;  %v1030_v39 = vld [vmem:[%s6105_s27 + $0x20] sm:$0xe] }
  0x57   : > { %v867_v55 = vsel %vm6145_vm4, %v862_v45, %v866_v33  ;;  %5583 = vmatpush3.bf16.msra.mxu0 %v3070_v37  ;;  %v888_v56 = vrot.slane %v886_v48, 5  ;;  %v892_v11 = vshll.u32 %v807_v26, 16  ;;  %v897_v58 = vshrl.u32 %v808_v63, 16  ;;  %5578 = vmatprep.mubr.msk.bf16.mxu0 %vm381_vm1, %v5927_v35  ;;  %v5929_v37 = vld [vmem:[%s6373_s14 + $0x8] ss:$8 sps:$4 sm:$0xff]  }
  0x58   : > { %5454 = vmatprep.mubr.msk.bf16.mxu1 %vm381_vm1, %v4865_v51  ;;  %v4866_v60 = vcombine.low %v853_v52, %v867_v55  ;;  %v876_v61 = vrot.slane %v875_v53, 4  ;;  %v900_v13 = vshll.u32 %v808_v63, 16  ;;  %v906_v9 = vshll.u32 %v809_v43, 16  ;;  %5884 = vmatprep.subr.msk.bf16.mxu0 %vm394_vm0, %v5102_v2  ;;  %v4890_v44 = vld [vmem:[%s7030_s4 + $0xa] sm:$0x3] }
  0x59   : > { %v889_v3 = vor.u32 %v888_v56, %v885_v54  ;;  %v894_v5 = vrot.slane %v892_v11, 5  ;;  %v899_v7 = vrot.slane %v897_v58, 4  ;;  %v911_v8 = vshrl.u32 %v810_v49, 16  ;;  %v1032_v52 = vld [vmem:[%s6105_s27 + $0x30] sm:$0xe] }
  0x5a   : > { %5455 = vmatmul.mubr.msk.bf16.vlgmr.msra.gmra.mrb[0].mxu1 %vm381_vm1, %v4866_v60  ;;  %v881_v10 = vsel %vm6145_vm4, %v876_v61, %v880_v47  ;;  %v902_v20 = vrot.slane %v900_v13, 5  ;;  %v908_v30 = vrot.slane %v906_v9, 5  ;;  %v914_v6 = vshll.u32 %v810_v49, 16  ;;  %v5930_v49 = vld [vmem:[%s6373_s14 + $0x18] ss:$8 sps:$4 sm:$0xff]  }
  0x5b   : > { %v890_v19 = vrot.slane %v889_v3, 4  ;;  %v913_v23 = vrot.slane %v911_v8, 4  ;;  %v920_v21 = vshll.u32 %v811_v17, 16  ;;  %v1112_v31 = vsel %vm394_vm0, %v6299_v40, 0  ;;  %v1033_v53 = vld [vmem:[%s6105_s27 + $0x38] sm:$0xe] }
  0x5c   : > { %v903_v22 = vor.u32 %v902_v20, %v899_v7  ;;  %v916_v25 = vrot.slane %v914_v6, 5  ;;  %5463 = vmatpush3.bf16.msra.mxu1 %v1112_v31  ;;  %v4873_v26 = vrot.slane %v1026_v59, 9  ;;  %v1055_v12 = vrot.slane %v6204_v57, 5  ;;  %v1031_v57 = vld [vmem:[%s6105_s27 + $0x28] sm:$0xe] }
  0x5d   : > { %v895_v63 = vsel %vm6145_vm4, %v890_v19, %v894_v5  ;;  %v922_v28 = vrot.slane %v920_v21, 5  ;;  %v4874_v29 = vrot.slane %v1027_v18, 9  ;;  %v1059_v33 = vrot.slane %v6214_v1, 5  ;;  %5871 = vmatprep.subr.msk.bf16.mxu1 %vm394_vm0, %v4890_v44  ;;  %v5931_v58 = vld [vmem:[%s6373_s14 + $0x28] ss:$8 sps:$4 sm:$0xff]  }
  0x5e   : > { %v4867_v34 = vcombine.low %v881_v10, %v895_v63  ;;  %v904_v35 = vrot.slane %v903_v22, 4  ;;  %v917_v40 = vor.u32 %v916_v25, %v913_v23  ;;  %5579 = vmatmul.mubr.msk.bf16.gmra.mrb[4].mxu0 %vm381_vm1, %v5928_v0  ;;  %v1056_v36 = vsel %vm6239_vm7, %v4873_v26, %v1055_v12  ;;  %v5088_v5 = vld [vmem:[%s6316_s10 + $0x10] sm:$0xf]  ;;  %v6449_v7 = vld [vmem:[%s6316_s10 + $0x14] sm:$0x1] }
  0x5f   : > { %v1060_v62 = vsel %vm6239_vm7, %v4874_v29, %v1059_v33  ;;  %v4875_v42 = vrot.slane %v1028_v16, 9  ;;  %v1063_v43 = vrot.slane %v6223_v24, 5  ;;  %v4876_v1 = vrot.slane %v1029_v41, 9  ;;  %5584 = vmatprep.mubr.msk.bf16.mxu0 %vm381_vm1, %v5929_v37  ;;  %v5932_v19 = vld [vmem:[%s6373_s14 + $0x38] ss:$8 sps:$4 sm:$0xff]  }
  0x60   : > { %5458 = vmatprep.mubr.msk.bf16.mxu1 %vm381_vm1, %v4867_v34  ;;  %v909_v45 = vsel %vm6145_vm4, %v904_v35, %v908_v30  ;;  %v918_v47 = vrot.slane %v917_v40, 4  ;;  %v1067_v48 = vrot.slane %v6229_v32, 5  ;;  %v4877_v24 = vrot.slane %v1030_v39, 9  ;;  %v5127_v30 = vld [vmem:[%s7030_s4 + $0x24] sm:$0x3] }
  0x61   : > { %v1071_v51 = vrot.slane %v6256_v14, 5  ;;  %v4882_v17 = vcombine.low %v1056_v36, %v1060_v62  ;;  %v4878_v55 = vrot.slane %v1031_v57, 9  ;;  %v1075_v56 = vrot.slane %v6268_v15, 5  ;;  %v5090_v31 = vld [vmem:[%s6316_s10 + $0x18] sm:$0xf] }
  0x62   : > { %v923_v54 = vsel %vm6145_vm4, %v918_v47, %v922_v28  ;;  %v1064_v32 = vsel %vm6239_vm7, %v4875_v42, %v1063_v43  ;;  %v1068_v59 = vsel %vm6239_vm7, %v4876_v1, %v1067_v48  ;;  %v3300_v14 = vsel %vm394_vm0, %v5102_v2, 0  ;;  %v5086_v2 = vld [vmem:[%s6316_s10 + $0x8] sm:$0xf]  ;;  %v6464_v37 = vld [vmem:[%s6316_s10 + $0x1c] sm:$0x1] }
  0x63   : > { %v4868_v11 = vcombine.low %v909_v45, %v923_v54  ;;  %v4879_v60 = vrot.slane %v1032_v52, 9  ;;  %v1079_v61 = vrot.slane %v6285_v27, 5  ;;  %v4880_v15 = vrot.slane %v1033_v53, 9  ;;  %v6445_v27 = vld [vmem:[%s6316_s10 + $0xc] sm:$0x1] }
  0x64   : > { %v1072_v13 = vsel %vm6239_vm7, %v4877_v24, %v1071_v51  ;;  %v1076_v9 = vsel %vm6239_vm7, %v4878_v55, %v1075_v56  ;;  %v1083_v0 = vrot.slane %v6294_v38, 5  ;;  %v1232_v18 = vsel %vm394_vm0, %v4890_v44, 0  ;;  %v5092_v41 = vld [vmem:[%s6316_s10 + $0x20] sm:$0xf]  ;;  %v6468_v29 = vld [vmem:[%s6316_s10 + $0x24] sm:$0x1] }
  0x65   : > { %5459 = vmatmul.mubr.msk.bf16.gmra.mrb[4].mxu1 %vm381_vm1, %v4868_v11  ;;  %v4883_v3 = vcombine.low %v1064_v32, %v1068_v59  ;;  %v3162_v8 = vshrl.u32 %v5086_v2, 16  ;;  %v3165_v10 = vshll.u32 %v5086_v2, 16  ;;  %v3171_v38 = vshll.u32 %v6445_v27, 16  ;;  %v5933_v51 = vld [vmem:[%s6316_s10] ss:$8 sps:$4 sm:$0xff]  }
  0x66   : > { %5464 = vmatprep.mubr.msk.bf16.mxu1 %vm381_vm1, %v4882_v17  ;;  %5585 = vmatmul.mubr.msk.bf16.vlgmr.msra.gmra.mrb[0].mxu0 %vm381_vm1, %v5930_v49  ;;  %v3176_v20 = vshrl.u32 %v5088_v5, 16  ;;  %v4884_v6 = vcombine.low %v1072_v13, %v1076_v9  ;;  %v6457_v16 = vsel %vm6239_vm7, %v4879_v60, %v1079_v61  ;;  %v3179_v23 = vshll.u32 %v5088_v5, 16  ;;  %v4899_v17 = vld [vmem:[%s7030_s4 + $0xc] sm:$0x3]  ;;  %v5094_v32 = vld [vmem:[%s6316_s10 + $0x28] sm:$0xf] }
  0x67   : > { %5593 = vmatpush3.bf16.msra.mxu0 %v3300_v14  ;;  %5588 = vmatprep.mubr.msk.bf16.mxu0 %vm381_vm1, %v5931_v58  ;;  %v3185_v21 = vshll.u32 %v6449_v7, 16  ;;  %v3164_v22 = vrot.slane %v3162_v8, 4  ;;  %v3167_v25 = vrot.slane %v3165_v10, 5  ;;  %v3173_v26 = vrot.slane %v3171_v38, 5  ;;  %v6490_v59 = vld [vmem:[%s6316_s10 + $0x2c] sm:$0x1] }
  0x68   : > { %5885 = vmatprep.subr.msk.bf16.mxu0 %vm394_vm0, %v5127_v30  ;;  %v3178_v12 = vrot.slane %v3176_v20, 4  ;;  %v3181_v63 = vrot.slane %v3179_v23, 5  ;;  %v3190_v33 = vshrl.u32 %v5090_v31, 16  ;;  %v3193_v34 = vshll.u32 %v5090_v31, 16  ;;  %v5096_v61 = vld [vmem:[%s6316_s10 + $0x30] sm:$0xf] }
  0x69   : > { %v3187_v28 = vrot.slane %v3185_v21, 5  ;;  %v3168_v35 = vor.u32 %v3167_v25, %v3164_v22  ;;  %v3199_v40 = vshll.u32 %v6464_v37, 16  ;;  %v3204_v36 = vshrl.u32 %v5092_v41, 16  ;;  %v6505_v20 = vld [vmem:[%s6316_s10 + $0x3c] sm:$0x1] }
  0x6a   : > { %v3207_v39 = vshll.u32 %v5092_v41, 16  ;;  %v3182_v57 = vor.u32 %v3181_v63, %v3178_v12  ;;  %v3192_v62 = vrot.slane %v3190_v33, 4  ;;  %v3195_v42 = vrot.slane %v3193_v34, 5  ;;  %v5100_v23 = vld [vmem:[%s6316_s10 + $0x40] sm:$0xf] }
  0x6b   : > { %v3213_v43 = vshll.u32 %v6468_v29, 16  ;;  %v1084_v1 = vsel %vm6239_vm7, %v4880_v15, %v1083_v0  ;;  %v3169_v44 = vrot.slane %v3168_v35, 4  ;;  %v3206_v45 = vrot.slane %v3204_v36, 4  ;;  %v6494_v15 = vld [vmem:[%s6316_s10 + $0x34] sm:$0x1] }
  0x6c   : > { %v3209_v47 = vrot.slane %v3207_v39, 5  ;;  %v3183_v48 = vrot.slane %v3182_v57, 4  ;;  %v3196_v49 = vor.u32 %v3195_v42, %v3192_v62  ;;  %v3201_v24 = vrot.slane %v3199_v40, 5  ;;  %v6511_v22 = vld [vmem:[%s6316_s10 + $0x44] sm:$0x1] }
  0x6d   : > { %5465 = vmatmul.mubr.msk.bf16.vlgmr.msra.gmra.mrb[0].mxu1 %vm381_vm1, %v4883_v3  ;;  %v3174_v52 = vsel %vm6145_vm4, %v3169_v44, %v3173_v26  ;;  %v3215_v54 = vrot.slane %v3213_v43, 5  ;;  %v4885_v55 = vcombine.low %v6457_v16, %v1084_v1  ;;  %v3530_v58 = vsel %vm394_vm0, %v5127_v30, 0  ;;  %v5098_v3 = vld [vmem:[%s6316_s10 + $0x38] sm:$0xf]  ;;  %v5935_v39 = vld [vmem:[%s6316_s10 + $0x20] ss:$8 sps:$4 sm:$0xff]  }
  0x6e   : > { %5468 = vmatprep.mubr.msk.bf16.mxu1 %vm381_vm1, %v4884_v6  ;;  %5473 = vmatpush3.bf16.msra.mxu1 %v1232_v18  ;;  %v3210_v53 = vor.u32 %v3209_v47, %v3206_v45  ;;  %v3188_v56 = vsel %vm6145_vm4, %v3183_v48, %v3187_v28  ;;  %v3197_v11 = vrot.slane %v3196_v49, 4  ;;  %v3218_v13 = vshrl.u32 %v5094_v32, 16  ;;  %v5934_v12 = vld [vmem:[%s6316_s10 + $0x10] ss:$8 sps:$4 sm:$0xff]  }
  0x6f   : > { %5589 = vmatmul.mubr.msk.bf16.gmra.mrb[4].mxu0 %vm381_vm1, %v5932_v19  ;;  %5872 = vmatprep.subr.msk.bf16.mxu1 %vm394_vm0, %v4899_v17  ;;  %v5103_v14 = vcombine.low %v3174_v52, %v3188_v56  ;;  %v3221_v0 = vshll.u32 %v5094_v32, 16  ;;  %v3227_v18 = vshll.u32 %v6490_v59, 16  ;;  %v3232_v2 = vshrl.u32 %v5096_v61, 16 }
  0x70   : > { %v3211_v60 = vrot.slane %v3210_v53, 4  ;;  %v3202_v9 = vsel %vm6145_vm4, %v3197_v11, %v3201_v24  ;;  %v3220_v8 = vrot.slane %v3218_v13, 4  ;;  %v3235_v10 = vshll.u32 %v5096_v61, 16  ;;  %v5111_v24 = vld [vmem:[%s6373_s14 + $0x8] sm:$0xf] }
  0x71   : > { %5594 = vmatprep.mubr.msk.bf16.mxu0 %vm381_vm1, %v5103_v14  ;;  %v3241_v38 = vshll.u32 %v6494_v15, 16  ;;  %v3223_v6 = vrot.slane %v3221_v0, 5  ;;  %v3229_v16 = vrot.slane %v3227_v18, 5  ;;  %v3234_v19 = vrot.slane %v3232_v2, 4  ;;  %v5152_v14 = vld [vmem:[%s7030_s4 + $0x26] sm:$0x3] }
  0x72   : > { %v3216_v5 = vsel %vm6145_vm4, %v3211_v60, %v3215_v54  ;;  %v3237_v21 = vrot.slane %v3235_v10, 5  ;;  %v3246_v25 = vshrl.u32 %v5098_v3, 16  ;;  %v3249_v26 = vshll.u32 %v5098_v3, 16  ;;  %v5113_v54 = vld [vmem:[%s6373_s14 + $0x10] sm:$0xf] }
  0x73   : > { %v5104_v30 = vcombine.low %v3202_v9, %v3216_v5  ;;  %v3243_v31 = vrot.slane %v3241_v38, 5  ;;  %v3224_v41 = vor.u32 %v3223_v6, %v3220_v8  ;;  %v3255_v63 = vshll.u32 %v6505_v20, 16  ;;  %v5115_v0 = vld [vmem:[%s6373_s14 + $0x18] sm:$0xf]  ;;  %v5116_v10 = vld [vmem:[%s6373_s14 + $0x1c] sm:$0x1] }
  0x74   : > { %v3260_v28 = vshrl.u32 %v5100_v23, 16  ;;  %v3263_v33 = vshll.u32 %v5100_v23, 16  ;;  %v3238_v34 = vor.u32 %v3237_v21, %v3234_v19  ;;  %v3248_v35 = vrot.slane %v3246_v25, 4  ;;  %v5936_v18 = vld [vmem:[%s6316_s10 + $0x30] ss:$8 sps:$4 sm:$0xff]  }
  0x75   : > { %5469 = vmatmul.mubr.msk.bf16.gmra.mrb[4].mxu1 %vm381_vm1, %v4885_v55  ;;  %v3251_v40 = vrot.slane %v3249_v26, 5  ;;  %v3269_v36 = vshll.u32 %v6511_v22, 16  ;;  %v3225_v57 = vrot.slane %v3224_v41, 4  ;;  %v3257_v44 = vrot.slane %v3255_v63, 5  ;;  %v5114_v55 = vld [vmem:[%s6373_s14 + $0x14] sm:$0x1] }
  0x76   : > { %5474 = vmatprep.mubr.msk.bf16.mxu1 %vm381_vm1, %v5933_v51  ;;  %v3262_v62 = vrot.slane %v3260_v28, 4  ;;  %v3265_v42 = vrot.slane %v3263_v33, 5  ;;  %v3239_v43 = vrot.slane %v3238_v34, 4  ;;  %v1352_v45 = vsel %vm394_vm0, %v4899_v17, 0  ;;  %v5112_v51 = vld [vmem:[%s6373_s14 + $0xc] sm:$0x1] }
  0x77   : > { %5595 = vmatmul.mubr.msk.bf16.vlgmr.msra.gmra.mrb[0].mxu0 %vm381_vm1, %v5104_v30  ;;  %v3252_v1 = vor.u32 %v3251_v40, %v3248_v35  ;;  %v3230_v47 = vsel %vm6145_vm4, %v3225_v57, %v3229_v16  ;;  %v3271_v49 = vrot.slane %v3269_v36, 5  ;;  %v3392_v56 = vshrl.u32 %v5111_v24, 16  ;;  %v5937_v30 = vld [vmem:[%s6373_s14] ss:$8 sps:$4 sm:$0xff]   ;;  %v5118_v23 = vld [vmem:[%s6373_s14 + $0x24] sm:$0x1] }
  0x78   : > { %5603 = vmatpush3.bf16.msra.mxu0 %v3530_v58  ;;  %v3266_v48 = vor.u32 %v3265_v42, %v3262_v62  ;;  %v3244_v52 = vsel %vm6145_vm4, %v3239_v43, %v3243_v31  ;;  %v3395_v58 = vshll.u32 %v5111_v24, 16  ;;  %v3401_v32 = vshll.u32 %v5112_v51, 16  ;;  %v5117_v19 = vld [vmem:[%s6373_s14 + $0x20] sm:$0xf]  ;;  %v5120_v24 = vld [vmem:[%s6373_s14 + $0x2c] sm:$0x1] }
  0x79   : > { %v3253_v53 = vrot.slane %v3252_v1, 4  ;;  %v5105_v11 = vcombine.low %v3230_v47, %v3244_v52  ;;  %v3394_v61 = vrot.slane %v3392_v56, 4  ;;  %v3406_v13 = vshrl.u32 %v5113_v54, 16  ;;  %5886 = vmatprep.subr.msk.bf16.mxu0 %vm394_vm0, %v5152_v14  ;;  %v5938_v51 = vld [vmem:[%s6373_s14 + $0x10] ss:$8 sps:$4 sm:$0xff]  }
  0x7a   : > { %v3267_v17 = vrot.slane %v3266_v48, 4  ;;  %v3409_v9 = vshll.u32 %v5113_v54, 16  ;;  %v3397_v3 = vrot.slane %v3395_v58, 5  ;;  %v3403_v5 = vrot.slane %v3401_v32, 5  ;;  %v4908_v48 = vld [vmem:[%s7030_s4 + $0xe] sm:$0x3] }
  0x7b   : > { %v3258_v60 = vsel %vm6145_vm4, %v3253_v53, %v3257_v44  ;;  %5598 = vmatprep.mubr.msk.bf16.mxu0 %vm381_vm1, %v5105_v11  ;;  %v3415_v8 = vshll.u32 %v5114_v55, 16  ;;  %v3408_v6 = vrot.slane %v3406_v13, 4  ;;  %v3420_v25 = vshrl.u32 %v5115_v0, 16  ;;  %v5121_v55 = vld [vmem:[%s6373_s14 + $0x30] sm:$0xf] }
  0x7c   : > { %v3272_v2 = vsel %vm6145_vm4, %v3267_v17, %v3271_v49  ;;  %v3411_v16 = vrot.slane %v3409_v9, 5  ;;  %v3398_v21 = vor.u32 %v3397_v3, %v3394_v61  ;;  %v3423_v26 = vshll.u32 %v5115_v0, 16  ;;  %v5119_v49 = vld [vmem:[%s6373_s14 + $0x28] sm:$0xf]  ;;  %v5122_v56 = vld [vmem:[%s6373_s14 + $0x34] sm:$0x1] }
  0x7d   : > { %5475 = vmatmul.mubr.msk.bf16.vlgmr.msra.gmra.mrb[0].mxu1 %vm381_vm1, %v5934_v12  ;;  %v5106_v38 = vcombine.low %v3258_v60, %v3272_v2  ;;  %v3417_v31 = vrot.slane %v3415_v8, 5  ;;  %v3429_v41 = vshll.u32 %v5116_v10, 16  ;;  %v3434_v63 = vshrl.u32 %v5117_v19, 16  ;;  %v5939_v17 = vld [vmem:[%s6373_s14 + $0x20] ss:$8 sps:$4 sm:$0xff]  }
  0x7e   : > { %5478 = vmatprep.mubr.msk.bf16.mxu1 %vm381_vm1, %v5935_v39  ;;  %5483 = vmatpush3.bf16.msra.mxu1 %v1352_v45  ;;  %v3412_v12 = vor.u32 %v3411_v16, %v3408_v6  ;;  %v3437_v28 = vshll.u32 %v5117_v19, 16  ;;  %v3399_v33 = vrot.slane %v3398_v21, 4  ;;  %v3422_v34 = vrot.slane %v3420_v25, 4  ;;  %v5123_v60 = vld [vmem:[%s6373_s14 + $0x38] sm:$0xf] }
  0x7f   : > { %5599 = vmatmul.mubr.msk.bf16.gmra.mrb[4].mxu0 %vm381_vm1, %v5106_v38  ;;  %v3425_v35 = vrot.slane %v3423_v26, 5  ;;  %v3443_v40 = vshll.u32 %v5118_v23, 16  ;;  %v3431_v39 = vrot.slane %v3429_v41, 5  ;;  %v3436_v57 = vrot.slane %v3434_v63, 4  ;;  %5873 = vmatprep.subr.msk.bf16.mxu1 %vm394_vm0, %v4908_v48  ;;  %v5125_v10 = vld [vmem:[%s6373_s14 + $0x40] sm:$0xf] }
  0x80   : > { %v3413_v36 = vrot.slane %v3412_v12, 4  ;;  %v3439_v62 = vrot.slane %v3437_v28, 5  ;;  %v3404_v42 = vsel %vm6145_vm4, %v3399_v33, %v3403_v5  ;;  %v3688_v44 = vsel %vm394_vm0, %v5152_v14, 0  ;;  %v5126_v19 = vld [vmem:[%s6373_s14 + $0x44] sm:$0x1] }
  0x81   : > { %v3426_v43 = vor.u32 %v3425_v35, %v3422_v34  ;;  %v3445_v1 = vrot.slane %v3443_v40, 5  ;;  %v1582_v54 = vsel %vm394_vm0, %v4908_v48, 0  ;;  %v3448_v58 = vshrl.u32 %v5119_v49, 16  ;;  %v1427_v26 = vld [vmem:[%s6316_s10] sm:$0xf] }
  0x82   : > { %v3418_v45 = vsel %vm6145_vm4, %v3413_v36, %v3417_v31  ;;  %v3440_v47 = vor.u32 %v3439_v62, %v3436_v57  ;;  %v3451_v32 = vshll.u32 %v5119_v49, 16  ;;  %v3457_v14 = vshll.u32 %v5120_v24, 16  ;;  %v6576_v33 = vld [vmem:[%s6316_s10 + $0x4] sm:$0x1] }
  0x83   : > { %v5128_v52 = vcombine.low %v3404_v42, %v3418_v45  ;;  %v3427_v53 = vrot.slane %v3426_v43, 4  ;;  %v3462_v13 = vshrl.u32 %v5121_v55, 16  ;;  %v3465_v9 = vshll.u32 %v5121_v55, 16 }
  0x84   : > { %v3441_v11 = vrot.slane %v3440_v47, 4  ;;  %v3471_v0 = vshll.u32 %v5122_v56, 16  ;;  %v3450_v3 = vrot.slane %v3448_v58, 4  ;;  %v3453_v5 = vrot.slane %v3451_v32, 5  ;;  %v6591_v58 = vld [vmem:[%s6316_s10 + $0x14] sm:$0x1] }
  0x85   : > { %5479 = vmatmul.mubr.msk.bf16.gmra.mrb[4].mxu1 %vm381_vm1, %v5936_v18  ;;  %5604 = vmatprep.mubr.msk.bf16.mxu0 %vm381_vm1, %v5128_v52  ;;  %v3432_v61 = vsel %vm6145_vm4, %v3427_v53, %v3431_v39  ;;  %v5124_v18 = vld [vmem:[%s6373_s14 + $0x3c] sm:$0x1]  ;;  %v3459_v8 = vrot.slane %v3457_v14, 5  ;;  %v3467_v6 = vrot.slane %v3465_v9, 5  ;;  %v3476_v21 = vshrl.u32 %v5123_v60, 16 }
  0x86   : > { %5484 = vmatprep.mubr.msk.bf16.mxu1 %vm381_vm1, %v5937_v30  ;;  %v3446_v2 = vsel %vm6145_vm4, %v3441_v11, %v3445_v1  ;;  %v3464_v30 = vrot.slane %v3462_v13, 4  ;;  %v3473_v16 = vrot.slane %v3471_v0, 5  ;;  %v3454_v23 = vor.u32 %v3453_v5, %v3450_v3  ;;  %v1429_v39 = vld [vmem:[%s6316_s10 + $0x8] sm:$0xf]  ;;  %v5940_v1 = vld [vmem:[%s6373_s14 + $0x30] ss:$8 sps:$4 sm:$0xff]  }
  0x87   : > { %v5129_v38 = vcombine.low %v3432_v61, %v3446_v2  ;;  %v3479_v31 = vshll.u32 %v5123_v60, 16  ;;  %v3485_v25 = vshll.u32 %v5124_v18, 16  ;;  %v3490_v41 = vshrl.u32 %v5125_v10, 16  ;;  %v1433_v13 = vld [vmem:[%s6316_s10 + $0x18] sm:$0xf] }
  0x88   : > { %v3468_v12 = vor.u32 %v3467_v6, %v3464_v30  ;;  %v3493_v63 = vshll.u32 %v5125_v10, 16  ;;  %v3499_v28 = vshll.u32 %v5126_v19, 16  ;;  %v3455_v34 = vrot.slane %v3454_v23, 4  ;;  %v6599_v2 = vld [vmem:[%s6316_s10 + $0x1c] sm:$0x1] }
  0x89   : > { %5605 = vmatmul.mubr.msk.bf16.vlgmr.msra.gmra.mrb[0].mxu0 %vm381_vm1, %v5129_v38  ;;  %v3478_v35 = vrot.slane %v3476_v21, 4  ;;  %v3481_v40 = vrot.slane %v3479_v31, 5  ;;  %v3487_v36 = vrot.slane %v3485_v25, 5  ;;  %v3492_v62 = vrot.slane %v3490_v41, 4  ;;  %v5169_v5 = vld [vmem:[%s7030_s4 + $0x28] sm:$0x3] }
  0x8a   : > { %5613 = vmatpush3.bf16.msra.mxu0 %v3688_v44  ;;  %v3469_v57 = vrot.slane %v3468_v12, 4  ;;  %v3495_v42 = vrot.slane %v3493_v63, 5  ;;  %v3501_v43 = vrot.slane %v3499_v28, 5  ;;  %v3460_v45 = vsel %vm6145_vm4, %v3455_v34, %v3459_v8  ;;  %v5136_v6 = vld [vmem:[%s6316_s10 + $0x8] sm:$0xe] }
  0x8b   : > { %v3482_v44 = vor.u32 %v3481_v40, %v3478_v35  ;;  %v1444_v47 = vshrl.u32 %v1427_v26, 16  ;;  %v1447_v48 = vshll.u32 %v1427_v26, 16  ;;  %v1453_v52 = vshll.u32 %v6576_v33, 16  ;;  %5887 = vmatprep.subr.msk.bf16.mxu0 %vm394_vm0, %v5169_v5  ;;  %v5137_v41 = vld [vmem:[%s6316_s10 + $0x10] sm:$0xe] }
  0x8c   : > { %v3474_v49 = vsel %vm6145_vm4, %v3469_v57, %v3473_v16  ;;  %v3496_v24 = vor.u32 %v3495_v42, %v3492_v62  ;;  %v1458_v53 = vshrl.u32 %v1429_v39, 16  ;;  %v1461_v61 = vshll.u32 %v1429_v39, 16  ;;  %v5138_v40 = vld [vmem:[%s6316_s10 + $0x18] sm:$0xe] }
  0x8d   : > { %5485 = vmatmul.mubr.msk.bf16.vlgmr.msra.gmra.mrb[0].mxu1 %vm381_vm1, %v5938_v51  ;;  %v6586_v51 = vld [vmem:[%s6316_s10 + $0xc] sm:$0x1]  ;;  %v5130_v55 = vcombine.low %v3460_v45, %v3474_v49  ;;  %v3483_v56 = vrot.slane %v3482_v44, 4  ;;  %v1446_v11 = vrot.slane %v1444_v47, 4  ;;  %v1455_v14 = vrot.slane %v1453_v52, 5 }
  0x8e   : > { %5488 = vmatprep.mubr.msk.bf16.mxu1 %vm381_vm1, %v5939_v17  ;;  %5493 = vmatpush3.bf16.msra.mxu1 %v1582_v54  ;;  %v1431_v54 = vld [vmem:[%s6316_s10 + $0x10] sm:$0xf]  ;;  %v1449_v17 = vrot.slane %v1447_v48, 5  ;;  %v3497_v32 = vrot.slane %v3496_v24, 4  ;;  %v1460_v60 = vrot.slane %v1458_v53, 4  ;;  %v1467_v18 = vshll.u32 %v6586_v51, 16 }
  0x8f   : > { %5608 = vmatprep.mubr.msk.bf16.mxu0 %vm381_vm1, %v5130_v55  ;;  %v3488_v9 = vsel %vm6145_vm4, %v3483_v56, %v3487_v36  ;;  %v1472_v3 = vshrl.u32 %v1431_v54, 16  ;;  %v1463_v10 = vrot.slane %v1461_v61, 5  ;;  %v1475_v38 = vshll.u32 %v1431_v54, 16  ;;  %v5139_v44 = vld [vmem:[%s6316_s10 + $0x20] sm:$0xe] }
  0x90   : > { %v1450_v0 = vor.u32 %v1449_v17, %v1446_v11  ;;  %v3502_v8 = vsel %vm6145_vm4, %v3497_v32, %v3501_v43  ;;  %v1481_v30 = vshll.u32 %v6591_v58, 16  ;;  %v1469_v23 = vrot.slane %v1467_v18, 5  ;;  %v1435_v52 = vld [vmem:[%s6316_s10 + $0x20] sm:$0xf]  ;;  %v6625_v53 = vld [vmem:[%s6316_s10 + $0x24] sm:$0x1] }
  0x91   : > { %v5131_v16 = vcombine.low %v3488_v9, %v3502_v8  ;;  %v1474_v21 = vrot.slane %v1472_v3, 4  ;;  %v1464_v31 = vor.u32 %v1463_v10, %v1460_v60  ;;  %v1477_v25 = vrot.slane %v1475_v38, 5  ;;  %v1437_v56 = vld [vmem:[%s6316_s10 + $0x28] sm:$0xf]  ;;  %v4917_v11 = vld [vmem:[%s7030_s4 + $0x10] sm:$0x3] }
  0x92   : > { %v1451_v19 = vrot.slane %v1450_v0, 4  ;;  %v1483_v26 = vrot.slane %v1481_v30, 5  ;;  %v1486_v12 = vshrl.u32 %v1433_v13, 16  ;;  %v1489_v28 = vshll.u32 %v1433_v13, 16  ;;  %5874 = vmatprep.subr.msk.bf16.mxu1 %vm394_vm0, %v4917_v11  ;;  %v6643_v9 = vld [vmem:[%s6316_s10 + $0x2c] sm:$0x1] }
  0x93   : > { %5609 = vmatmul.mubr.msk.bf16.gmra.mrb[4].mxu0 %vm381_vm1, %v5131_v16  ;;  %v1495_v34 = vshll.u32 %v6599_v2, 16  ;;  %v5144_v35 = vrot.slane %v5136_v6, 9  ;;  %v1465_v36 = vrot.slane %v1464_v31, 4  ;;  %v1478_v39 = vor.u32 %v1477_v25, %v1474_v21  ;;  %v1439_v10 = vld [vmem:[%s6316_s10 + $0x30] sm:$0xf] }
  0x94   : > { %v1456_v63 = vsel %vm6145_vm4, %v1451_v19, %v1455_v14  ;;  %v1488_v57 = vrot.slane %v1486_v12, 4  ;;  %v3631_v62 = vrot.slane %v6445_v27, 5  ;;  %v1491_v42 = vrot.slane %v1489_v28, 5  ;;  %v6653_v16 = vld [vmem:[%s6316_s10 + $0x34] sm:$0x1] }
  0x95   : > { %5489 = vmatmul.mubr.msk.bf16.gmra.mrb[4].mxu1 %vm381_vm1, %v5940_v1  ;;  %v1497_v43 = vrot.slane %v1495_v34, 5  ;;  %v5145_v1 = vrot.slane %v5137_v41, 9  ;;  %v3635_v45 = vrot.slane %v6449_v7, 5  ;;  %v1470_v47 = vsel %vm6145_vm4, %v1465_v36, %v1469_v23  ;;  %v1441_v19 = vld [vmem:[%s6316_s10 + $0x38] sm:$0xf] }
  0x96   : > { %v1479_v48 = vrot.slane %v1478_v39, 4  ;;  %v3632_v49 = vsel %vm6239_vm7, %v5144_v35, %v3631_v62  ;;  %v5146_v24 = vrot.slane %v5138_v40, 9  ;;  %v4909_v27 = vcombine.low %v1456_v63, %v1470_v47  ;;  %v6659_v41 = vld [vmem:[%s6316_s10 + $0x3c] sm:$0x1]  ;;  %v5140_v39 = vld [vmem:[%s6316_s10 + $0x28] sm:$0xe] }
  0x97   : > { %v1492_v54 = vor.u32 %v1491_v42, %v1488_v57  ;;  %v3636_v55 = vsel %vm6239_vm7, %v5145_v1, %v3635_v45  ;;  %v3639_v7 = vrot.slane %v6464_v37, 5  ;;  %v5147_v14 = vrot.slane %v5139_v44, 9  ;;  %v5141_v1 = vld [vmem:[%s6316_s10 + $0x30] sm:$0xe] }
  0x98   : > { %v1484_v17 = vsel %vm6145_vm4, %v1479_v48, %v1483_v26  ;;  %v5153_v32 = vcombine.low %v3632_v49, %v3636_v55  ;;  %v3643_v60 = vrot.slane %v6468_v29, 5  ;;  %5494 = vmatprep.mubr.msk.bf16.mxu1 %vm381_vm1, %v4909_v27  ;;  %v3810_v13 = vsel %vm394_vm0, %v5169_v5, 0  ;;  %v5142_v49 = vld [vmem:[%s6316_s10 + $0x38] sm:$0xe] }
  0x99   : > { %v1493_v61 = vrot.slane %v1492_v54, 4  ;;  %v3640_v37 = vsel %vm6239_vm7, %v5146_v24, %v3639_v7  ;;  %v1500_v0 = vshrl.u32 %v1435_v52, 16  ;;  %v1503_v18 = vshll.u32 %v1435_v52, 16  ;;  %v5143_v24 = vld [vmem:[%s6316_s10 + $0x40] sm:$0xe] }
  0x9a   : > { %5614 = vmatprep.mubr.msk.bf16.mxu0 %vm381_vm1, %v5153_v32  ;;  %v3644_v29 = vsel %vm6239_vm7, %v5147_v14, %v3643_v60  ;;  %v1509_v3 = vshll.u32 %v6625_v53, 16  ;;  %v1514_v8 = vshrl.u32 %v1437_v56, 16  ;;  %v1517_v5 = vshll.u32 %v1437_v56, 16  ;;  %v1657_v7 = vld [vmem:[%s6373_s14] sm:$0xf] }
  0x9b   : > { %v1498_v38 = vsel %vm6145_vm4, %v1493_v61, %v1497_v43  ;;  %v5154_v30 = vcombine.low %v3640_v37, %v3644_v29  ;;  %v1502_v6 = vrot.slane %v1500_v0, 4  ;;  %v1505_v21 = vrot.slane %v1503_v18, 5  ;;  %v1658_v0 = vld [vmem:[%s6373_s14 + $0x4] sm:$0x1]  ;;  %v1659_v29 = vld [vmem:[%s6373_s14 + $0x8] sm:$0xf] }
  0x9c   : > { %v4910_v23 = vcombine.low %v1484_v17, %v1498_v38  ;;  %v1511_v31 = vrot.slane %v1509_v3, 5  ;;  %v1516_v25 = vrot.slane %v1514_v8, 4  ;;  %v1519_v26 = vrot.slane %v1517_v5, 5 }
  0x9d   : > { %5615 = vmatmul.mubr.msk.bf16.vlgmr.msra.gmra.mrb[0].mxu0 %vm381_vm1, %v5154_v30  ;;  %v1523_v12 = vshll.u32 %v6643_v9, 16  ;;  %v1528_v63 = vshrl.u32 %v1439_v10, 16  ;;  %v1531_v28 = vshll.u32 %v1439_v10, 16  ;;  %v1506_v34 = vor.u32 %v1505_v21, %v1502_v6 }
  0x9e   : > { %5495 = vmatmul.mubr.msk.bf16.vlgmr.msra.gmra.mrb[0].mxu1 %vm381_vm1, %v4910_v23  ;;  %5623 = vmatpush3.bf16.msra.mxu0 %v3810_v13  ;;  %v1537_v35 = vshll.u32 %v6653_v16, 16  ;;  %v1542_v40 = vshrl.u32 %v1441_v19, 16  ;;  %v1545_v36 = vshll.u32 %v1441_v19, 16  ;;  %v1520_v57 = vor.u32 %v1519_v26, %v1516_v25  ;;  %v1660_v23 = vld [vmem:[%s6373_s14 + $0xc] sm:$0x1] }
  0x9f   : > { %v1525_v62 = vrot.slane %v1523_v12, 5  ;;  %v1530_v42 = vrot.slane %v1528_v63, 4  ;;  %v1533_v43 = vrot.slane %v1531_v28, 5  ;;  %v1507_v45 = vrot.slane %v1506_v34, 4  ;;  %v1662_v63 = vld [vmem:[%s6373_s14 + $0x14] sm:$0x1] }
  0xa0   : > { %v1539_v44 = vrot.slane %v1537_v35, 5  ;;  %v1544_v47 = vrot.slane %v1542_v40, 4  ;;  %v1547_v48 = vrot.slane %v1545_v36, 5  ;;  %v1521_v52 = vrot.slane %v1520_v57, 4  ;;  %v1663_v28 = vld [vmem:[%s6373_s14 + $0x18] sm:$0xf] }
  0xa1   : > { %v1534_v27 = vor.u32 %v1533_v43, %v1530_v42  ;;  %v1551_v54 = vshll.u32 %v6659_v41, 16  ;;  %v1812_v55 = vsel %vm394_vm0, %v4917_v11, 0  ;;  %v1512_v56 = vsel %vm6145_vm4, %v1507_v45, %v1511_v31  ;;  %v1661_v31 = vld [vmem:[%s6373_s14 + $0x10] sm:$0xf]  ;;  %v1664_v43 = vld [vmem:[%s6373_s14 + $0x1c] sm:$0x1] }
  0xa2   : > { %v1548_v17 = vor.u32 %v1547_v48, %v1544_v47  ;;  %5503 = vmatpush3.bf16.msra.mxu1 %v1812_v55  ;;  %v5148_v32 = vrot.slane %v5140_v39, 9  ;;  %v3647_v14 = vrot.slane %v6490_v59, 5  ;;  %v1526_v60 = vsel %vm6145_vm4, %v1521_v52, %v1525_v62  ;;  %v5186_v59 = vld [vmem:[%s7030_s4 + $0x2a] sm:$0x3]  ;;  %v1665_v48 = vld [vmem:[%s6373_s14 + $0x20] sm:$0xf] }
  0xa3   : > { %v1535_v61 = vrot.slane %v1534_v27, 4  ;;  %v1553_v37 = vrot.slane %v1551_v54, 5  ;;  %v5149_v13 = vrot.slane %v5141_v1, 9  ;;  %v4911_v18 = vcombine.low %v1512_v56, %v1526_v60  ;;  %5888 = vmatprep.subr.msk.bf16.mxu0 %vm394_vm0, %v5186_v59  ;;  %v1666_v54 = vld [vmem:[%s6373_s14 + $0x24] sm:$0x1] }
  0xa4   : > { %v1549_v11 = vrot.slane %v1548_v17, 4  ;;  %v3648_v3 = vsel %vm6239_vm7, %v5148_v32, %v3647_v14  ;;  %v3651_v8 = vrot.slane %v6494_v15, 5  ;;  %v5150_v38 = vrot.slane %v5142_v49, 9  ;;  %v1667_v32 = vld [vmem:[%s6373_s14 + $0x28] sm:$0xf] }
  0xa5   : > { %v1540_v10 = vsel %vm6145_vm4, %v1535_v61, %v1539_v44  ;;  %v3655_v30 = vrot.slane %v6505_v20, 5  ;;  %v5151_v6 = vrot.slane %v5143_v24, 9  ;;  %5498 = vmatprep.mubr.msk.bf16.mxu1 %vm381_vm1, %v4911_v18  ;;  %v3659_v19 = vrot.slane %v6511_v22, 5  ;;  %v5941_v22 = vld [vmem:[%s6105_s27 + $0x10] ss:$8 sps:$4 sm:$0xff]  }
  0xa6   : > { %v1554_v15 = vsel %vm6145_vm4, %v1549_v11, %v1553_v37  ;;  %v3652_v5 = vsel %vm6239_vm7, %v5149_v13, %v3651_v8  ;;  %v1674_v21 = vshrl.u32 %v1657_v7, 16  ;;  %v1677_v12 = vshll.u32 %v1657_v7, 16  ;;  %v5942_v13 = vld [vmem:[%s6105_s27 + $0x20] ss:$8 sps:$4 sm:$0xff]   ;;  %v1668_v8 = vld [vmem:[%s6373_s14 + $0x2c] sm:$0x1] }
  0xa7   : > { %v4912_v25 = vcombine.low %v1540_v10, %v1554_v15  ;;  %v5155_v26 = vcombine.low %v3648_v3, %v3652_v5  ;;  %v3656_v20 = vsel %vm6239_vm7, %v5150_v38, %v3655_v30  ;;  %v3660_v34 = vsel %vm6239_vm7, %v5151_v6, %v3659_v19  ;;  %v1669_v15 = vld [vmem:[%s6373_s14 + $0x30] sm:$0xf] }
  0xa8   : > { %v1676_v35 = vrot.slane %v1674_v21, 4  ;;  %v1683_v40 = vshll.u32 %v1658_v0, 16  ;;  %v1688_v36 = vshrl.u32 %v1659_v29, 16  ;;  %v5156_v39 = vcombine.low %v3656_v20, %v3660_v34  ;;  %v4934_v0 = vld [vmem:[%s7030_s4 + $0x12] sm:$0x3] }
  0xa9   : > { %5499 = vmatmul.mubr.msk.bf16.gmra.mrb[4].mxu1 %vm381_vm1, %v4912_v25  ;;  %5618 = vmatprep.mubr.msk.bf16.mxu0 %vm381_vm1, %v5155_v26  ;;  %v1679_v57 = vrot.slane %v1677_v12, 5  ;;  %v1691_v62 = vshll.u32 %v1659_v29, 16  ;;  %v1697_v42 = vshll.u32 %v1660_v23, 16  ;;  %v1702_v44 = vshrl.u32 %v1661_v31, 16 }
  0xaa   : > { %v1685_v1 = vrot.slane %v1683_v40, 5  ;;  %v1690_v45 = vrot.slane %v1688_v36, 4  ;;  %v1705_v47 = vshll.u32 %v1661_v31, 16  ;;  %5619 = vmatmul.mubr.msk.bf16.gmra.mrb[4].mxu0 %vm381_vm1, %v5156_v39  ;;  %v1711_v27 = vshll.u32 %v1662_v63, 16  ;;  %5875 = vmatprep.subr.msk.bf16.mxu1 %vm394_vm0, %v4934_v0  ;;  %v5943_v31 = vld [vmem:[%s6105_s27 + $0x30] ss:$8 sps:$4 sm:$0xff]  }
  0xab   : > { %v1680_v49 = vor.u32 %v1679_v57, %v1676_v35  ;;  %v1693_v24 = vrot.slane %v1691_v62, 5  ;;  %v1699_v52 = vrot.slane %v1697_v42, 5  ;;  %v1704_v55 = vrot.slane %v1702_v44, 4  ;;  %5624 = vmatprep.mubr.msk.bf16.mxu0 %vm381_vm1, %v5941_v22  ;;  %v1670_v35 = vld [vmem:[%s6373_s14 + $0x34] sm:$0x1] }
  0xac   : > { %v1707_v7 = vrot.slane %v1705_v47, 5  ;;  %v1716_v56 = vshrl.u32 %v1663_v28, 16  ;;  %v1719_v17 = vshll.u32 %v1663_v28, 16  ;;  %v1713_v61 = vrot.slane %v1711_v27, 5  ;;  %v1671_v57 = vld [vmem:[%s6373_s14 + $0x38] sm:$0xf] }
  0xad   : > { %v1681_v14 = vrot.slane %v1680_v49, 4  ;;  %v1694_v60 = vor.u32 %v1693_v24, %v1690_v45  ;;  %v1725_v37 = vshll.u32 %v1664_v43, 16  ;;  %v3930_v3 = vsel %vm394_vm0, %v5186_v59, 0  ;;  %v1672_v43 = vld [vmem:[%s6373_s14 + $0x3c] sm:$0x1] }
  0xae   : > { %v1708_v29 = vor.u32 %v1707_v7, %v1704_v55  ;;  %v1718_v18 = vrot.slane %v1716_v56, 4  ;;  %v1721_v11 = vrot.slane %v1719_v17, 5  ;;  %v1730_v6 = vshrl.u32 %v1665_v48, 16  ;;  %v1887_v44 = vld [vmem:[%s6316_s10] sm:$0xe] }
  0xaf   : > { %v1686_v10 = vsel %vm6145_vm4, %v1681_v14, %v1685_v1  ;;  %v1695_v38 = vrot.slane %v1694_v60, 4  ;;  %v1727_v30 = vrot.slane %v1725_v37, 5  ;;  %v1733_v23 = vshll.u32 %v1665_v48, 16  ;;  %v1888_v27 = vld [vmem:[%s6316_s10 + $0x8] sm:$0xe] }
  0xb0   : > { %v1709_v5 = vrot.slane %v1708_v29, 4  ;;  %v1722_v19 = vor.u32 %v1721_v11, %v1718_v18  ;;  %v1739_v21 = vshll.u32 %v1666_v54, 16  ;;  %v1732_v25 = vrot.slane %v1730_v6, 4  ;;  %v1889_v17 = vld [vmem:[%s6316_s10 + $0x10] sm:$0xe] }
  0xb1   : > { %v1700_v59 = vsel %vm6145_vm4, %v1695_v38, %v1699_v52  ;;  %v1744_v26 = vshrl.u32 %v1667_v32, 16  ;;  %v1747_v20 = vshll.u32 %v1667_v32, 16  ;;  %v1735_v34 = vrot.slane %v1733_v23, 5  ;;  %v5944_v52 = vld [vmem:[%s6105_s27 + $0x40] ss:$8 sps:$4 sm:$0xff]  }
  0xb2   : > { %v4918_v12 = vcombine.low %v1686_v10, %v1700_v59  ;;  %v1714_v63 = vsel %vm6145_vm4, %v1709_v5, %v1713_v61  ;;  %v1723_v28 = vrot.slane %v1722_v19, 4  ;;  %5625 = vmatmul.mubr.msk.bf16.vlgmr.msra.gmra.mrb[0].mxu0 %vm381_vm1, %v5942_v13  ;;  %v1741_v40 = vrot.slane %v1739_v21, 5  ;;  %v1890_v61 = vld [vmem:[%s6316_s10 + $0x18] sm:$0xe]  ;;  %v1891_v59 = vld [vmem:[%s6316_s10 + $0x20] sm:$0xe] }
  0xb3   : > { %v1746_v36 = vrot.slane %v1744_v26, 4  ;;  %v1749_v22 = vrot.slane %v1747_v20, 5  ;;  %v1753_v39 = vshll.u32 %v1668_v8, 16  ;;  %5633 = vmatpush3.bf16.msra.mxu0 %v3930_v3  ;;  %v1736_v42 = vor.u32 %v1735_v34, %v1732_v25  ;;  %5628 = vmatprep.mubr.msk.bf16.mxu0 %vm381_vm1, %v5943_v31  ;;  %v5945_v37 = vld [vmem:[%s6081_s16 + $0x10] ss:$8 sps:$4 sm:$0xff]  }
  0xb4   : > { %5504 = vmatprep.mubr.msk.bf16.mxu1 %vm381_vm1, %v4918_v12  ;;  %v1728_v62 = vsel %vm6145_vm4, %v1723_v28, %v1727_v30  ;;  %v1758_v1 = vshrl.u32 %v1669_v15, 16  ;;  %v1761_v45 = vshll.u32 %v1669_v15, 16  ;;  %v1767_v24 = vshll.u32 %v1670_v35, 16  ;;  %v5211_v3 = vld [vmem:[%s7030_s4 + $0x2c] sm:$0x3] }
  0xb5   : > { %v4919_v47 = vcombine.low %v1714_v63, %v1728_v62  ;;  %v1750_v48 = vor.u32 %v1749_v22, %v1746_v36  ;;  %v1755_v49 = vrot.slane %v1753_v39, 5  ;;  %v1737_v54 = vrot.slane %v1736_v42, 4  ;;  %5889 = vmatprep.subr.msk.bf16.mxu0 %vm394_vm0, %v5211_v3  ;;  %v1893_v12 = vld [vmem:[%s6316_s10 + $0x30] sm:$0xe]  ;;  %v5946_v35 = vld [vmem:[%s6081_s16 + $0x20] ss:$8 sps:$4 sm:$0xff]  }
  0xb6   : > { %v1760_v55 = vrot.slane %v1758_v1, 4  ;;  %v1763_v7 = vrot.slane %v1761_v45, 5  ;;  %v1772_v56 = vshrl.u32 %v1671_v57, 16  ;;  %v1775_v14 = vshll.u32 %v1671_v57, 16  ;;  %v5947_v45 = vld [vmem:[%s6081_s16 + $0x30] ss:$8 sps:$4 sm:$0xff]  }
  0xb7   : > { %5505 = vmatmul.mubr.msk.bf16.vlgmr.msra.gmra.mrb[0].mxu1 %vm381_vm1, %v4919_v47  ;;  %v1751_v32 = vrot.slane %v1750_v48, 4  ;;  %v1781_v60 = vshll.u32 %v1672_v43, 16  ;;  %v1742_v13 = vsel %vm6145_vm4, %v1737_v54, %v1741_v40  ;;  %v1970_v11 = vsel %vm394_vm0, %v4934_v0, 0  ;;  %v6767_v40 = vld [vmem:[%s6316_s10 + $0x38] sm:$0xe] }
  0xb8   : > { %v1764_v29 = vor.u32 %v1763_v7, %v1760_v55  ;;  %v1774_v18 = vrot.slane %v1772_v56, 4  ;;  %v1769_v10 = vrot.slane %v1767_v24, 5  ;;  %v1777_v38 = vrot.slane %v1775_v14, 5  ;;  %5513 = vmatpush3.bf16.msra.mxu1 %v1970_v11  ;;  %v5195_v55 = vld [vmem:[%s6105_s27 + $0x10] sm:$0xf] }
  0xb9   : > { %v1756_v8 = vsel %vm6145_vm4, %v1751_v32, %v1755_v49  ;;  %v4926_v30 = vrot.slane %v1887_v44, 9  ;;  %v1913_v0 = vrot.slane %v6576_v33, 5  ;;  %v4927_v5 = vrot.slane %v1888_v27, 9  ;;  %v1892_v33 = vld [vmem:[%s6316_s10 + $0x28] sm:$0xe] }
  0xba   : > { %v4920_v6 = vcombine.low %v1742_v13, %v1756_v8  ;;  %v1765_v15 = vrot.slane %v1764_v29, 4  ;;  %v1778_v19 = vor.u32 %v1777_v38, %v1774_v18  ;;  %v1783_v23 = vrot.slane %v1781_v60, 5  ;;  %5629 = vmatmul.mubr.msk.bf16.gmra.mrb[4].mxu0 %vm381_vm1, %v5944_v52  ;;  %v5197_v56 = vld [vmem:[%s6105_s27 + $0x18] sm:$0xf]  ;;  %v5948_v29 = vld [vmem:[%s6081_s16 + $0x40] ss:$8 sps:$4 sm:$0xff]  }
  0xbb   : > { %v1917_v21 = vrot.slane %v6586_v51, 5  ;;  %v4928_v31 = vrot.slane %v1889_v17, 9  ;;  %v1914_v25 = vsel %vm6239_vm7, %v4926_v30, %v1913_v0  ;;  %v1921_v26 = vrot.slane %v6591_v58, 5  ;;  %5634 = vmatprep.mubr.msk.bf16.mxu0 %vm381_vm1, %v5945_v37  ;;  %v4951_v58 = vld [vmem:[%s7030_s4 + $0x14] sm:$0x3] }
  0xbc   : > { %5508 = vmatprep.mubr.msk.bf16.mxu1 %vm381_vm1, %v4920_v6  ;;  %v4929_v20 = vrot.slane %v1890_v61, 9  ;;  %v1770_v63 = vsel %vm6145_vm4, %v1765_v15, %v1769_v10  ;;  %v1779_v28 = vrot.slane %v1778_v19, 4  ;;  %v1925_v34 = vrot.slane %v6599_v2, 5  ;;  %5876 = vmatprep.subr.msk.bf16.mxu1 %vm394_vm0, %v4951_v58  ;;  %v6778_v2 = vld [vmem:[%s6105_s27 + $0x3c] sm:$0x1] }
  0xbd   : > { %v1918_v51 = vsel %vm6239_vm7, %v4927_v5, %v1917_v21  ;;  %v4930_v22 = vrot.slane %v1891_v59, 9  ;;  %v1929_v57 = vrot.slane %v6625_v53, 5  ;;  %v4931_v62 = vrot.slane %v1892_v33, 9  ;;  %v6805_v17 = vld [vmem:[%s6105_s27 + $0x1c] sm:$0x1] }
  0xbe   : > { %v4935_v36 = vcombine.low %v1914_v25, %v1918_v51  ;;  %v1784_v39 = vsel %vm6145_vm4, %v1779_v28, %v1783_v23  ;;  %v1933_v42 = vrot.slane %v6643_v9, 5  ;;  %v2397_v43 = vshll.u32 %v6778_v2, 16  ;;  %v5236_v61 = vld [vmem:[%s7030_s4 + $0x2e] sm:$0x3]  ;;  %v6820_v8 = vld [vmem:[%s6105_s27 + $0x24] sm:$0x1] }
  0xbf   : > { %v4921_v1 = vcombine.low %v1770_v63, %v1784_v39  ;;  %v1922_v44 = vsel %vm6239_vm7, %v4928_v31, %v1921_v26  ;;  %v1926_v47 = vsel %vm6239_vm7, %v4929_v20, %v1925_v34  ;;  %v4160_v48 = vsel %vm394_vm0, %v5211_v3, 0  ;;  %v5199_v3 = vld [vmem:[%s6105_s27 + $0x20] sm:$0xf]  ;;  %v5201_v15 = vld [vmem:[%s6105_s27 + $0x28] sm:$0xf] }
  0xc0   : > { %v4932_v53 = vrot.slane %v1893_v12, 9  ;;  %v1937_v9 = vrot.slane %v6653_v16, 5  ;;  %v4933_v49 = vrot.slane %v6767_v40, 9  ;;  %v1930_v24 = vsel %vm6239_vm7, %v4930_v22, %v1929_v57  ;;  %v6801_v16 = vld [vmem:[%s6105_s27 + $0x14] sm:$0x1] }
  0xc1   : > { %5509 = vmatmul.mubr.msk.bf16.gmra.mrb[4].mxu1 %vm381_vm1, %v4921_v1  ;;  %v1934_v52 = vsel %vm6239_vm7, %v4931_v62, %v1933_v42  ;;  %v1941_v27 = vrot.slane %v6659_v41, 5  ;;  %v2092_v54 = vsel %vm394_vm0, %v4951_v58, 0  ;;  %v4936_v7 = vcombine.low %v1922_v44, %v1926_v47  ;;  %v6824_v19 = vld [vmem:[%s6105_s27 + $0x2c] sm:$0x1]  ;;  %v5958_v40 = vld [vmem:[%s6105_s27 + $0x44] sm:$0x1] }
  0xc2   : > { %5514 = vmatprep.mubr.msk.bf16.mxu1 %vm381_vm1, %v4935_v36  ;;  %5635 = vmatmul.mubr.msk.bf16.vlgmr.msra.gmra.mrb[0].mxu0 %vm381_vm1, %v5946_v35  ;;  %v4022_v32 = vshrl.u32 %v5195_v55, 16  ;;  %v4025_v14 = vshll.u32 %v5195_v55, 16  ;;  %v4031_v41 = vshll.u32 %v6801_v16, 16  ;;  %v4036_v60 = vshrl.u32 %v5197_v56, 16  ;;  %v5949_v62 = vld [vmem:[%s6105_s27 + $0x8] ss:$8 sps:$4 sm:$0xff]  }
  0xc3   : > { %5643 = vmatpush3.bf16.msra.mxu0 %v4160_v48  ;;  %5638 = vmatprep.mubr.msk.bf16.mxu0 %vm381_vm1, %v5947_v45  ;;  %v4937_v37 = vcombine.low %v1930_v24, %v1934_v52  ;;  %v6813_v13 = vsel %vm6239_vm7, %v4932_v53, %v1937_v9  ;;  %v4039_v18 = vshll.u32 %v5197_v56, 16  ;;  %v4045_v11 = vshll.u32 %v6805_v17, 16  ;;  %v4968_v44 = vld [vmem:[%s7030_s4 + $0x16] sm:$0x3]  ;;  %v5203_v53 = vld [vmem:[%s6105_s27 + $0x30] sm:$0xf] }
  0xc4   : > { %5890 = vmatprep.subr.msk.bf16.mxu0 %vm394_vm0, %v5236_v61  ;;  %v4024_v10 = vrot.slane %v4022_v32, 4  ;;  %v4027_v38 = vrot.slane %v4025_v14, 5  ;;  %v4033_v30 = vrot.slane %v4031_v41, 5  ;;  %v4038_v6 = vrot.slane %v4036_v60, 4  ;;  %v6851_v9 = vld [vmem:[%s6105_s27 + $0x34] sm:$0x1] }
  0xc5   : > { %v4041_v0 = vrot.slane %v4039_v18, 5  ;;  %v4047_v5 = vrot.slane %v4045_v11, 5  ;;  %v4050_v23 = vshrl.u32 %v5199_v3, 16  ;;  %v4053_v21 = vshll.u32 %v5199_v3, 16  ;;  %v5205_v52 = vld [vmem:[%s6105_s27 + $0x38] sm:$0xf] }
  0xc6   : > { %v4028_v31 = vor.u32 %v4027_v38, %v4024_v10  ;;  %v4059_v59 = vshll.u32 %v6820_v8, 16  ;;  %v4064_v25 = vshrl.u32 %v5201_v15, 16  ;;  %v4067_v26 = vshll.u32 %v5201_v15, 16  ;;  %v5207_v14 = vld [vmem:[%s6105_s27 + $0x40] sm:$0xf] }
  0xc7   : > { %v4042_v20 = vor.u32 %v4041_v0, %v4038_v6  ;;  %v4052_v33 = vrot.slane %v4050_v23, 4  ;;  %v4055_v12 = vrot.slane %v4053_v21, 5  ;;  %v4073_v63 = vshll.u32 %v6824_v19, 16  ;;  %v5209_v10 = vld [vmem:[%s6105_s27 + $0x48] sm:$0xf] }
  0xc8   : > { %v1942_v28 = vsel %vm6239_vm7, %v4933_v49, %v1941_v27  ;;  %v4029_v51 = vrot.slane %v4028_v31, 4  ;;  %v4066_v34 = vrot.slane %v4064_v25, 4  ;;  %v4069_v35 = vrot.slane %v4067_v26, 5  ;;  %v6855_v27 = vld [vmem:[%s6105_s27 + $0x3c] sm:$0x1] }
  0xc9   : > { %5515 = vmatmul.mubr.msk.bf16.vlgmr.msra.gmra.mrb[0].mxu1 %vm381_vm1, %v4936_v7  ;;  %v2411_v58 = vshll.u32 %v5958_v40, 16  ;;  %v4043_v36 = vrot.slane %v4042_v20, 4  ;;  %v4056_v22 = vor.u32 %v4055_v12, %v4052_v33  ;;  %v4061_v39 = vrot.slane %v4059_v59, 5  ;;  %v6872_v6 = vld [vmem:[%s6105_s27 + $0x4c] sm:$0x1] }
  0xca   : > { %5518 = vmatprep.mubr.msk.bf16.mxu1 %vm381_vm1, %v4937_v37  ;;  %5523 = vmatpush3.bf16.msra.mxu1 %v2092_v54  ;;  %v6836_v57 = vrot.slane %v2397_v43, 5  ;;  %v4034_v42 = vsel %vm6145_vm4, %v4029_v51, %v4033_v30  ;;  %v4070_v1 = vor.u32 %v4069_v35, %v4066_v34  ;;  %v4075_v45 = vrot.slane %v4073_v63, 5  ;;  %v5951_v63 = vld [vmem:[%s6105_s27 + $0x28] ss:$8 sps:$4 sm:$0xff]  }
  0xcb   : > { %5639 = vmatmul.mubr.msk.bf16.gmra.mrb[4].mxu0 %vm381_vm1, %v5948_v29  ;;  %v4938_v47 = vcombine.low %v6813_v13, %v1942_v28  ;;  %v4048_v2 = vsel %vm6145_vm4, %v4043_v36, %v4047_v5  ;;  %v4057_v48 = vrot.slane %v4056_v22, 4  ;;  %v4390_v43 = vsel %vm394_vm0, %v5236_v61, 0  ;;  %5877 = vmatprep.subr.msk.bf16.mxu1 %vm394_vm0, %v4968_v44  ;;  %v6866_v13 = vld [vmem:[%s6105_s27 + $0x44] sm:$0x1]  ;;  %v5950_v5 = vld [vmem:[%s6105_s27 + $0x18] ss:$8 sps:$4 sm:$0xff]  }
  0xcc   : > { %v5212_v49 = vcombine.low %v4034_v42, %v4048_v2  ;;  %v4071_v24 = vrot.slane %v4070_v1, 4  ;;  %v4078_v54 = vshrl.u32 %v5203_v53, 16  ;;  %v4081_v7 = vshll.u32 %v5203_v53, 16  ;;  %v5220_v1 = vld [vmem:[%s6081_s16 + $0x10] sm:$0xf] }
  0xcd   : > { %v4062_v55 = vsel %vm6145_vm4, %v4057_v48, %v4061_v39  ;;  %v4087_v56 = vshll.u32 %v6851_v9, 16  ;;  %v4092_v32 = vshrl.u32 %v5205_v52, 16  ;;  %v4095_v61 = vshll.u32 %v5205_v52, 16  ;;  %v5222_v2 = vld [vmem:[%s6081_s16 + $0x18] sm:$0xf] }
  0xce   : > { %5644 = vmatprep.mubr.msk.bf16.mxu0 %vm381_vm1, %v5212_v49  ;;  %v4076_v41 = vsel %vm6145_vm4, %v4071_v24, %v4075_v45  ;;  %v4080_v60 = vrot.slane %v4078_v54, 4  ;;  %v4101_v37 = vshll.u32 %v6855_v27, 16  ;;  %v4083_v18 = vrot.slane %v4081_v7, 5  ;;  %v5221_v45 = vld [vmem:[%s6081_s16 + $0x14] sm:$0x1] }
  0xcf   : > { %v5213_v29 = vcombine.low %v4062_v55, %v4076_v41  ;;  %v4089_v11 = vrot.slane %v4087_v56, 5  ;;  %v4094_v3 = vrot.slane %v4092_v32, 4  ;;  %v4097_v38 = vrot.slane %v4095_v61, 5  ;;  %v5223_v48 = vld [vmem:[%s6081_s16 + $0x1c] sm:$0x1] }
  0xd0   : > { %v4103_v30 = vrot.slane %v4101_v37, 5  ;;  %v4106_v15 = vshrl.u32 %v5207_v14, 16  ;;  %v4109_v0 = vshll.u32 %v5207_v14, 16  ;;  %v4084_v23 = vor.u32 %v4083_v18, %v4080_v60  ;;  %v5261_v52 = vld [vmem:[%s7030_s4 + $0x30] sm:$0x3] }
  0xd1   : > { %5519 = vmatmul.mubr.msk.bf16.gmra.mrb[4].mxu1 %vm381_vm1, %v4938_v47  ;;  %v4115_v21 = vshll.u32 %v6866_v13, 16  ;;  %v4120_v31 = vshrl.u32 %v5209_v10, 16  ;;  %v4123_v59 = vshll.u32 %v5209_v10, 16  ;;  %v4098_v25 = vor.u32 %v4097_v38, %v4094_v3  ;;  %v5224_v32 = vld [vmem:[%s6081_s16 + $0x20] sm:$0xf] }
  0xd2   : > { %5524 = vmatprep.mubr.msk.bf16.mxu1 %vm381_vm1, %v5949_v62  ;;  %v4108_v26 = vrot.slane %v4106_v15, 4  ;;  %v4111_v20 = vrot.slane %v4109_v0, 5  ;;  %v4129_v33 = vshll.u32 %v6872_v6, 16  ;;  %v6878_v12 = vrot.slane %v2411_v58, 5  ;;  %v5952_v14 = vld [vmem:[%s6105_s27 + $0x38] ss:$8 sps:$4 sm:$0xff]  }
  0xd3   : > { %5645 = vmatmul.mubr.msk.bf16.vlgmr.msra.gmra.mrb[0].mxu0 %vm381_vm1, %v5213_v29  ;;  %v4085_v28 = vrot.slane %v4084_v23, 4  ;;  %v4122_v51 = vrot.slane %v4120_v31, 4  ;;  %v4125_v34 = vrot.slane %v4123_v59, 5  ;;  %v4099_v35 = vrot.slane %v4098_v25, 4  ;;  %v5225_v29 = vld [vmem:[%s6081_s16 + $0x24] sm:$0x1] }
  0xd4   : > { %5653 = vmatpush3.bf16.msra.mxu0 %v4390_v43  ;;  %v4112_v40 = vor.u32 %v4111_v20, %v4108_v26  ;;  %v4117_v36 = vrot.slane %v4115_v21, 5  ;;  %v2212_v22 = vsel %vm394_vm0, %v4968_v44, 0  ;;  %v4131_v42 = vrot.slane %v4129_v33, 5  ;;  %v5226_v38 = vld [vmem:[%s6081_s16 + $0x28] sm:$0xf] }
  0xd5   : > { %v4090_v39 = vsel %vm6145_vm4, %v4085_v28, %v4089_v11  ;;  %v4126_v62 = vor.u32 %v4125_v34, %v4122_v51  ;;  %v4104_v58 = vsel %vm6145_vm4, %v4099_v35, %v4103_v30  ;;  %v4252_v43 = vshrl.u32 %v5220_v1, 16  ;;  %5891 = vmatprep.subr.msk.bf16.mxu0 %vm394_vm0, %v5261_v52  ;;  %v5953_v11 = vld [vmem:[%s6081_s16 + $0x8] ss:$8 sps:$4 sm:$0xff]   ;;  %v5227_v30 = vld [vmem:[%s6081_s16 + $0x2c] sm:$0x1] }
  0xd6   : > { %v4113_v47 = vrot.slane %v4112_v40, 4  ;;  %v5214_v53 = vcombine.low %v4090_v39, %v4104_v58  ;;  %v4255_v49 = vshll.u32 %v5220_v1, 16  ;;  %v4261_v24 = vshll.u32 %v5221_v45, 16  ;;  %v5959_v15 = vld [vmem:[%s7030_s4 + $0x18] sm:$0x3] }
  0xd7   : > { %v4127_v44 = vrot.slane %v4126_v62, 4  ;;  %v4254_v55 = vrot.slane %v4252_v43, 4  ;;  %v4266_v7 = vshrl.u32 %v5222_v2, 16  ;;  %v4269_v56 = vshll.u32 %v5222_v2, 16  ;;  %v5228_v45 = vld [vmem:[%s6081_s16 + $0x30] sm:$0xf] }
  0xd8   : > { %v4118_v54 = vsel %vm6145_vm4, %v4113_v47, %v4117_v36  ;;  %5648 = vmatprep.mubr.msk.bf16.mxu0 %vm381_vm1, %v5214_v53  ;;  %v4257_v60 = vrot.slane %v4255_v49, 5  ;;  %v4263_v61 = vrot.slane %v4261_v24, 5  ;;  %v4275_v37 = vshll.u32 %v5223_v48, 16  ;;  %v5229_v58 = vld [vmem:[%s6081_s16 + $0x34] sm:$0x1] }
  0xd9   : > { %5525 = vmatmul.mubr.msk.bf16.vlgmr.msra.gmra.mrb[0].mxu1 %vm381_vm1, %v5950_v5  ;;  %v4132_v41 = vsel %vm6145_vm4, %v4127_v44, %v4131_v42  ;;  %v4268_v3 = vrot.slane %v4266_v7, 4  ;;  %v4271_v10 = vrot.slane %v4269_v56, 5  ;;  %v4280_v23 = vshrl.u32 %v5224_v32, 16  ;;  %v5230_v47 = vld [vmem:[%s6081_s16 + $0x38] sm:$0xf] }
  0xda   : > { %5528 = vmatprep.mubr.msk.bf16.mxu1 %vm381_vm1, %v5951_v63  ;;  %5533 = vmatpush3.bf16.msra.mxu1 %v2212_v22  ;;  %v5215_v18 = vcombine.low %v4118_v54, %v4132_v41  ;;  %v4258_v0 = vor.u32 %v4257_v60, %v4254_v55  ;;  %v4277_v5 = vrot.slane %v4275_v37, 5  ;;  %v4283_v21 = vshll.u32 %v5224_v32, 16  ;;  %v5954_v2 = vld [vmem:[%s6081_s16 + $0x18] ss:$8 sps:$4 sm:$0xff]   ;;  %v5231_v53 = vld [vmem:[%s6081_s16 + $0x3c] sm:$0x1] }
  0xdb   : > { %5879 = vmatprep.subr.msk.bf16.mxu1 %vm394_vm0, %v5959_v15  ;;  %v4272_v31 = vor.u32 %v4271_v10, %v4268_v3  ;;  %v4289_v59 = vshll.u32 %v5225_v29, 16  ;;  %v4294_v25 = vshrl.u32 %v5226_v38, 16  ;;  %v4297_v26 = vshll.u32 %v5226_v38, 16  ;;  %v5232_v56 = vld [vmem:[%s6081_s16 + $0x40] sm:$0xf] }
  0xdc   : > { %5649 = vmatmul.mubr.msk.bf16.gmra.mrb[4].mxu0 %vm381_vm1, %v5215_v18  ;;  %v4259_v20 = vrot.slane %v4258_v0, 4  ;;  %v4282_v33 = vrot.slane %v4280_v23, 4  ;;  %v4285_v63 = vrot.slane %v4283_v21, 5  ;;  %v4303_v28 = vshll.u32 %v5227_v30, 16  ;;  %v5234_v3 = vld [vmem:[%s6081_s16 + $0x48] sm:$0xf] }
  0xdd   : > { %v4273_v51 = vrot.slane %v4272_v31, 4  ;;  %v4291_v34 = vrot.slane %v4289_v59, 5  ;;  %v4296_v35 = vrot.slane %v4294_v25, 4  ;;  %v4299_v40 = vrot.slane %v4297_v26, 5  ;;  %v5235_v15 = vld [vmem:[%s6081_s16 + $0x4c] sm:$0x1] }
  0xde   : > { %v4264_v36 = vsel %vm6145_vm4, %v4259_v20, %v4263_v61  ;;  %v4286_v22 = vor.u32 %v4285_v63, %v4282_v33  ;;  %v4305_v39 = vrot.slane %v4303_v28, 5  ;;  %v4548_v62 = vsel %vm394_vm0, %v5261_v52, 0  ;;  %v5955_v52 = vld [vmem:[%s6081_s16 + $0x28] ss:$8 sps:$4 sm:$0xff]   ;;  %v5233_v61 = vld [vmem:[%s6081_s16 + $0x44] sm:$0x1] }
  0xdf   : > { %v4278_v42 = vsel %vm6145_vm4, %v4273_v51, %v4277_v5  ;;  %v4300_v1 = vor.u32 %v4299_v40, %v4296_v35  ;;  %v4308_v44 = vshrl.u32 %v5228_v45, 16  ;;  %v4311_v49 = vshll.u32 %v5228_v45, 16  ;;  %v4985_v59 = vld [vmem:[%s6105_s27 + $0x28] sm:$0xf]  ;;  %v4987_v35 = vld [vmem:[%s6105_s27 + $0x30] sm:$0xf] }
  0xe0   : > { %v5237_v48 = vcombine.low %v4264_v36, %v4278_v42  ;;  %v4287_v43 = vrot.slane %v4286_v22, 4  ;;  %v4317_v54 = vshll.u32 %v5229_v58, 16  ;;  %v4322_v55 = vshrl.u32 %v5230_v47, 16  ;;  %v5960_v45 = vld [vmem:[%s6105_s27 + $0x2c] sm:$0x1] }
  0xe1   : > { %5529 = vmatmul.mubr.msk.bf16.gmra.mrb[4].mxu1 %vm381_vm1, %v5952_v14  ;;  %v4301_v24 = vrot.slane %v4300_v1, 4  ;;  %v4325_v7 = vshll.u32 %v5230_v47, 16  ;;  %v4310_v14 = vrot.slane %v4308_v44, 4  ;;  %v4313_v41 = vrot.slane %v4311_v49, 5  ;;  %v4989_v47 = vld [vmem:[%s6105_s27 + $0x38] sm:$0xf] }
  0xe2   : > { %5534 = vmatprep.mubr.msk.bf16.mxu1 %vm381_vm1, %v5953_v11  ;;  %5654 = vmatprep.mubr.msk.bf16.mxu0 %vm381_vm1, %v5237_v48  ;;  %v4292_v32 = vsel %vm6145_vm4, %v4287_v43, %v4291_v34  ;;  %v4331_v60 = vshll.u32 %v5231_v53, 16  ;;  %v4319_v29 = vrot.slane %v4317_v54, 5  ;;  %v4324_v18 = vrot.slane %v4322_v55, 4  ;;  %v4991_v54 = vld [vmem:[%s6105_s27 + $0x40] sm:$0xf] }
  0xe3   : > { %v4306_v37 = vsel %vm6145_vm4, %v4301_v24, %v4305_v39  ;;  %v4327_v11 = vrot.slane %v4325_v7, 5  ;;  %v4314_v38 = vor.u32 %v4313_v41, %v4310_v14  ;;  %v4336_v0 = vshrl.u32 %v5232_v56, 16 }
  0xe4   : > { %v5238_v10 = vcombine.low %v4292_v32, %v4306_v37  ;;  %v4333_v30 = vrot.slane %v4331_v60, 5  ;;  %v4339_v23 = vshll.u32 %v5232_v56, 16  ;;  %v4345_v21 = vshll.u32 %v5233_v61, 16  ;;  %v5961_v56 = vld [vmem:[%s6105_s27 + $0x34] sm:$0x1] }
  0xe5   : > { %v4328_v5 = vor.u32 %v4327_v11, %v4324_v18  ;;  %v4350_v31 = vshrl.u32 %v5234_v3, 16  ;;  %v4315_v25 = vrot.slane %v4314_v38, 4  ;;  %v4338_v26 = vrot.slane %v4336_v0, 4  ;;  %v5246_v38 = vld [vmem:[%s6105_s27 + $0x18] sm:$0xe] }
  0xe6   : > { %5655 = vmatmul.mubr.msk.bf16.vlgmr.msra.gmra.mrb[0].mxu0 %vm381_vm1, %v5238_v10  ;;  %v4353_v20 = vshll.u32 %v5234_v3, 16  ;;  %v4359_v33 = vshll.u32 %v5235_v15, 16  ;;  %v4341_v28 = vrot.slane %v4339_v23, 5  ;;  %v4347_v51 = vrot.slane %v4345_v21, 5  ;;  %v5247_v23 = vld [vmem:[%s6105_s27 + $0x20] sm:$0xe] }
  0xe7   : > { %5663 = vmatpush3.bf16.msra.mxu0 %v4548_v62  ;;  %v4329_v63 = vrot.slane %v4328_v5, 4  ;;  %v4352_v34 = vrot.slane %v4350_v31, 4  ;;  %v4320_v40 = vsel %vm6145_vm4, %v4315_v25, %v4319_v29  ;;  %v2360_v39 = vshrl.u32 %v4985_v59, 16  ;;  %v5245_v29 = vld [vmem:[%s6105_s27 + $0x10] sm:$0xe] }
  0xe8   : > { %v4355_v36 = vrot.slane %v4353_v20, 5  ;;  %v4361_v22 = vrot.slane %v4359_v33, 5  ;;  %v4342_v42 = vor.u32 %v4341_v28, %v4338_v26  ;;  %v2363_v1 = vshll.u32 %v4985_v59, 16  ;;  %v5248_v26 = vld [vmem:[%s6105_s27 + $0x28] sm:$0xe] }
  0xe9   : > { %5535 = vmatmul.mubr.msk.bf16.vlgmr.msra.gmra.mrb[0].mxu1 %vm381_vm1, %v5954_v2  ;;  %v4334_v62 = vsel %vm6145_vm4, %v4329_v63, %v4333_v30  ;;  %v2369_v58 = vshll.u32 %v5960_v45, 16  ;;  %v5956_v2 = vld [vmem:[%s6081_s16 + $0x38] ss:$8 sps:$4 sm:$0xff]   ;;  %v2374_v53 = vshrl.u32 %v4987_v35, 16  ;;  %v2383_v32 = vshll.u32 %v5961_v56, 16 }
  0xea   : > { %5538 = vmatprep.mubr.msk.bf16.mxu1 %vm381_vm1, %v5955_v52  ;;  %5673 = vmatpush3.bf16.msra.mxu1 %v6054_v4  ;;  %v5239_v48 = vcombine.low %v4320_v40, %v4334_v62  ;;  %v4356_v43 = vor.u32 %v4355_v36, %v4352_v34  ;;  %v2362_v4 = vrot.slane %v2360_v39, 4  ;;  %v4343_v44 = vrot.slane %v4342_v42, 4  ;;  %v5250_v42 = vld [vmem:[%s6105_s27 + $0x38] sm:$0xe] }
  0xeb   : > { %v2365_v49 = vrot.slane %v2363_v1, 5  ;;  %v2371_v24 = vrot.slane %v2369_v58, 5  ;;  %v2377_v52 = vshll.u32 %v4987_v35, 16  ;;  %v2376_v7 = vrot.slane %v2374_v53, 4 }
  0xec   : > { %5658 = vmatprep.mubr.msk.bf16.mxu0 %vm381_vm1, %v5239_v48  ;;  %v4357_v55 = vrot.slane %v4356_v43, 4  ;;  %v2388_v14 = vshrl.u32 %v4989_v47, 16  ;;  %v4348_v41 = vsel %vm6145_vm4, %v4343_v44, %v4347_v51  ;;  %v2391_v37 = vshll.u32 %v4989_v47, 16 }
  0xed   : > { %v2366_v60 = vor.u32 %v2365_v49, %v2362_v4  ;;  %v2379_v61 = vrot.slane %v2377_v52, 5  ;;  %v2385_v11 = vrot.slane %v2383_v32, 5  ;;  %v2402_v10 = vshrl.u32 %v4991_v54, 16 }
  0xee   : > { %v4362_v18 = vsel %vm6145_vm4, %v4357_v55, %v4361_v22  ;;  %v2390_v3 = vrot.slane %v2388_v14, 4  ;;  %v2393_v5 = vrot.slane %v2391_v37, 5  ;;  %v2405_v31 = vshll.u32 %v4991_v54, 16 }
  0xef   : > { %v5240_v30 = vcombine.low %v4348_v41, %v4362_v18  ;;  %v2367_v15 = vrot.slane %v2366_v60, 4  ;;  %v2380_v0 = vor.u32 %v2379_v61, %v2376_v7  ;;  %v2404_v21 = vrot.slane %v2402_v10, 4 }
  0xf0   : > { %v5253_v59 = vrot.slane %v5245_v29, 9  ;;  %v4491_v25 = vrot.slane %v6801_v16, 5  ;;  %v2394_v63 = vor.u32 %v2393_v5, %v2390_v3  ;;  %v5254_v28 = vrot.slane %v5246_v38, 9  ;;  %v5249_v16 = vld [vmem:[%s6105_s27 + $0x30] sm:$0xe] }
  0xf1   : > { %5539 = vmatmul.mubr.msk.bf16.gmra.mrb[4].mxu1 %vm381_vm1, %v5956_v2  ;;  %5659 = vmatmul.mubr.msk.bf16.gmra.mrb[4].mxu0 %vm381_vm1, %v5240_v30  ;;  %v2372_v20 = vsel %vm6145_vm4, %v2367_v15, %v2371_v24  ;;  %v2381_v33 = vrot.slane %v2380_v0, 4  ;;  %v2407_v51 = vrot.slane %v2405_v31, 5  ;;  %v4495_v35 = vrot.slane %v6805_v17, 5  ;;  %v5251_v2 = vld [vmem:[%s6105_s27 + $0x40] sm:$0xe] }
  0xf2   : > { %v4492_v34 = vsel %vm6239_vm7, %v5253_v59, %v4491_v25  ;;  %v5255_v40 = vrot.slane %v5247_v23, 9  ;;  %v2395_v22 = vrot.slane %v2394_v63, 4  ;;  %v4499_v39 = vrot.slane %v6820_v8, 5  ;;  %v5252_v8 = vld [vmem:[%s6105_s27 + $0x48] sm:$0xe] }
  0xf3   : > { %v2386_v36 = vsel %vm6145_vm4, %v2381_v33, %v2385_v11  ;;  %v5256_v62 = vrot.slane %v5248_v26, 9  ;;  %v2408_v45 = vor.u32 %v2407_v51, %v2404_v21  ;;  %v4496_v58 = vsel %vm6239_vm7, %v5254_v28, %v4495_v35  ;;  %v5270_v29 = vld [vmem:[%s7031_s5] ss:$0 sm:$0xff] }
  0xf4   : > { %v4996_v1 = vcombine.low %v2372_v20, %v2386_v36  ;;  %v4503_v47 = vrot.slane %v6824_v19, 5  ;;  %v2400_v17 = vsel %vm6145_vm4, %v2395_v22, %v6836_v57  ;;  %v5262_v48 = vcombine.low %v4492_v34, %v4496_v58 }
  0xf5   : > { %v4500_v43 = vsel %vm6239_vm7, %v5255_v40, %v4499_v39  ;;  %v5257_v4 = vrot.slane %v5249_v16, 9  ;;  %v2409_v53 = vrot.slane %v2408_v45, 4  ;;  %v4507_v49 = vrot.slane %v6851_v9, 5 }
  0xf6   : > { %5548 = vmatprep.mubr.msk.bf16.mxu1 %vm381_vm1, %v4996_v1  ;;  %v4504_v44 = vsel %vm6239_vm7, %v5256_v62, %v4503_v47  ;;  %v5258_v19 = vrot.slane %v5250_v42, 9  ;;  %5664 = vmatprep.mubr.msk.bf16.mxu0 %vm381_vm1, %v5262_v48  ;;  %v4511_v57 = vrot.slane %v6855_v27, 5  ;;  %v5259_v52 = vrot.slane %v5251_v2, 9 }
  0xf7   : > { %v5263_v24 = vcombine.low %v4500_v43, %v4504_v44  ;;  %v4515_v54 = vrot.slane %v6866_v13, 5  ;;  %v2414_v55 = vsel %vm6145_vm4, %v2409_v53, %v6878_v12  ;;  %v4508_v7 = vsel %vm6239_vm7, %v5257_v4, %v4507_v49 }
  0xf8   : > { %v5260_v56 = vrot.slane %v5252_v8, 9  ;;  %v4519_v32 = vrot.slane %v6872_v6, 5  ;;  %v4997_v9 = vcombine.low %v2400_v17, %v2414_v55  ;;  %v4512_v14 = vsel %vm6239_vm7, %v5258_v19, %v4511_v57 }
  0xf9   : > { %5665 = vmatmul.mubr.msk.bf16.vlgmr.msra.gmra.mrb[0].mxu0 %vm381_vm1, %v5263_v24  ;;  %v5264_v27 = vcombine.low %v4508_v7, %v4512_v14  ;;  %v4516_v13 = vsel %vm6239_vm7, %v5259_v52, %v4515_v54 }
  0xfa   : > { %v4520_v46 = vsel %vm6239_vm7, %v5260_v56, %v4519_v32 }
  0xfb   : > { %5668 = vmatprep.mubr.msk.bf16.mxu0 %vm381_vm1, %v5264_v27  ;;  %v5265_v12 = vcombine.low %v4516_v13, %v4520_v46 }
  0xfd   : > { %5549 = vmatmul.mubr.msk.bf16.vlgmr.msra.gmra.mrb[4].mxu1 %vm381_vm1, %v4997_v9 }
 0x101   : > { %5669 = vmatmul.mubr.msk.bf16.gmra.mrb[4].mxu0 %vm381_vm1, %v5265_v12 }
 0x1bc   : > { %v5536_v6 = vpop.f32.mrb[0].mxu1 }
 0x1bd   : > { %v2248_v41 = vpop.f32.mrb[1].mxu1 }
 0x1be   : > { %v5537_v60 = vpop.f32.mrb[2].mxu1 }
 0x1bf   : > { %v2251_v61 = vpop.f32.mrb[3].mxu1 }
 0x1cc   : > { %v5666_v37 = vpop.f32.mrb[0].mxu0 }
 0x1cd   : > { %v5674_v18 = vadd.f32 %v5666_v37, %v5536_v6  ;;  %v4584_v11 = vpop.f32.mrb[1].mxu0 }
 0x1ce   : > { %v5675_v3 = vadd.f32 %v4584_v11, %v2248_v41  ;;  %v5667_v10 = vpop.f32.mrb[2].mxu0 }
 0x1cf   : > { %v4632_v30 = vadd.f32 %v5674_v18, %v5270_v29  ;;  %v5676_v15 = vadd.f32 %v5667_v10, %v5537_v60  ;;  %v4587_v0 = vpop.f32.mrb[3].mxu0 }
 0x1d0   : > { %v5550_v50 = vpop.f32.mrb[4].mxu1  ;;  %v4630_v23 = vadd.f32 %v5675_v3, %v5270_v29  ;;  %v5677_v21 = vadd.f32 %v4587_v0, %v2251_v61 }
 0x1d1   : > { %v2494_v38 = vpop.f32.mrb[5].mxu1  ;;  %v4648_v31 = vmul.f32 0.2, %v4632_v30  ;;  %v4633_v25 = vadd.f32 %v5676_v15, %v5270_v29  ;;  %vm4640_vm8 = vcmp.ge.f32.partialorder %v4632_v30, 0.0 }
 0x1d2   : > { %v5551_v5 = vpop.f32.mrb[6].mxu1  ;;  %v4646_v26 = vmul.f32 0.2, %v4630_v23  ;;  %v4631_v20 = vadd.f32 %v5677_v21, %v5270_v29  ;;  %vm4638_vm9 = vcmp.ge.f32.partialorder %v4630_v23, 0.0 }
 0x1d3   : > { %v2497_v59 = vpop.f32.mrb[7].mxu1  ;;  %vm4641_vm10 = vcmp.ge.f32.partialorder %v4633_v25, 0.0  ;;  %v4649_v33 = vmul.f32 0.2, %v4633_v25  ;;  %v4656_v51 = vsel %vm4640_vm8, %v4632_v30, %v4648_v31 }
 0x1d4   : > { %vm4639_vm11 = vcmp.ge.f32.partialorder %v4631_v20, 0.0  ;;  %v4647_v63 = vmul.f32 0.2, %v4631_v20  ;;  %v5670_v28 = vpop.f32.mrb[4].mxu0  ;;  %v4654_v16 = vsel %vm4638_vm9, %v4630_v23, %v4646_v26 }
 0x1d5   : > { %v4657_v34 = vsel %vm4641_vm10, %v4633_v25, %v4649_v33  ;;  %v5678_v35 = vadd.f32 %v5670_v28, %v5550_v50  ;;  %v4600_v40 = vpop.f32.mrb[5].mxu0 }
 0x1d6   : > { %v5282_v36 = vpack.c.bf16 %v4657_v34, %v4656_v51  ;;  %v4655_v22 = vsel %vm4639_vm11, %v4631_v20, %v4647_v63  ;;  %v5679_v39 = vadd.f32 %v4600_v40, %v2494_v38  ;;  %v5671_v62 = vpop.f32.mrb[6].mxu0 }
 0x1d7   : > { %v5277_v42 = vpack.c.bf16 %v4655_v22, %v4654_v16  ;;  %v4636_v1 = vadd.f32 %v5678_v35, %v5270_v29  ;;  %v5680_v45 = vadd.f32 %v5671_v62, %v5551_v5  ;;  %v4603_v58 = vpop.f32.mrb[7].mxu0 }
 0x1d8   : > { %5294 = vst [vmem:[%s7011_s15 + $0x8] sm:$0xff] %v5282_v36   ;;  %v4634_v47 = vadd.f32 %v5679_v39, %v5270_v29  ;;  %v5681_v2 = vadd.f32 %v4603_v58, %v2497_v59 }
 0x1d9   : > { %5278 = vst [vmem:[%s7011_s15] sm:$0xff] %v5277_v42   ;;  %v4652_v17 = vmul.f32 0.2, %v4636_v1  ;;  %v4637_v48 = vadd.f32 %v5680_v45, %v5270_v29  ;;  %vm4644_vm12 = vcmp.ge.f32.partialorder %v4636_v1, 0.0 }
 0x1da   : > { %v4650_v43 = vmul.f32 0.2, %v4634_v47  ;;  %v4635_v4 = vadd.f32 %v5681_v2, %v5270_v29  ;;  %vm4642_vm13 = vcmp.ge.f32.partialorder %v4634_v47, 0.0 }
 0x1db   : > { %vm4645_vm14 = vcmp.ge.f32.partialorder %v4637_v48, 0.0  ;;  %v4653_v8 = vmul.f32 0.2, %v4637_v48  ;;  %v4660_v44 = vsel %vm4644_vm12, %v4636_v1, %v4652_v17 }
 0x1dc   : > { %vm4643_vm15 = vcmp.ge.f32.partialorder %v4635_v4, 0.0  ;;  %v4651_v53 = vmul.f32 0.2, %v4635_v4  ;;  %v4658_v19 = vsel %vm4642_vm13, %v4634_v47, %v4650_v43 }
 0x1dd   : > { %v4661_v49 = vsel %vm4645_vm14, %v4637_v48, %v4653_v8 }
 0x1de   : > { %v5292_v24 = vpack.c.bf16 %v4661_v49, %v4660_v44  ;;  %v4659_v57 = vsel %vm4643_vm15, %v4635_v4, %v4651_v53 }
 0x1df   : > { %v5287_v52 = vpack.c.bf16 %v4659_v57, %v4658_v19 }
 0x1e0   : > { %5296 = vst [vmem:[%s7011_s15 + $0x18] sm:$0xff] %v5292_v24  }
 0x1e1   : > { %5295 = vst [vmem:[%s7011_s15 + $0x10] sm:$0xff] %v5287_v52  }
 0x1e2 PF: > { %s16_s23 = sadd.s32 1, %s5984_s23   ;;  %s7037_s21 = smov %s5980_s22 }
 0x1e3   : > { %p13_p5 = scmp.ge.s32.totalorder %s16_s23, 4   ;;  %s7038_s22 = smov %s7040_s24 }
 0x1e5   :  { %15 = sbr.rel (!%p13_p5) target bundleno = 2 (0x2), region = 117 }

// kernel: _discriminator_forward_impl.7
= control target key start
LH: loop header
LB: loop body
LE: loop exit
PB: predicated region body
PF: predicated region fallthrough
CT: control target
= control target key end

     0   :  { %s3855_s21 = smov 0   ;;  %s3857_s22 = smov 0   ;;  %s4486_s0 = inlined_call_operand.vmem [shape: bf16[2,6,10,8], index: 0, kind: input, shape index: {}]   ;;  %s4487_s1 = inlined_call_operand.vmem [shape: bf16[2,6,10,8], index: 1, kind: input, shape index: {}]   ;;  %s4488_s2 = inlined_call_operand.vmem [shape: bf16[2,6,10,8], index: 2, kind: input, shape index: {}]   ;;  %s4489_s3 = inlined_call_operand.vmem [shape: bf16[2,6,10,8], index: 3, kind: input, shape index: {}]   ;;  %s4490_s4 = inlined_call_operand.vmem [shape: bf16[25,8,128], index: 4, kind: input, shape index: {}]   ;;  %s4491_s5 = inlined_call_operand.vmem [shape: f32[1,128], index: 5, kind: input, shape index: {}]   ;;  %s4492_s6 = inlined_call_operand.vmem [shape: bf16[2,4,8,128], index: 6, kind: output, shape index: {}]  }
   0x1   :  { %s3859_s23 = smov 0  }
   0x2 LB: > { %s28_s24 = sadd.s32 1, %s3814_s22  ;;  %p3155_p0 = scmp.ge.s32.totalorder %s3818_s23, 1  ;;  %s3818_s23 = sphi %s3859_s23, %s16_s23   ;;  %s3814_s22 = sphi %s3857_s22, %s4498_s22   ;;  %s3810_s21 = sphi %s3855_s21, %s4497_s21  }
   0x3   : > { %p30_p1 = scmp.ge.s32.totalorder %s28_s24, 2  ;;  %p256_p2 = scmp.lt.s32.totalorder %s3818_s23, 3 }
   0x5   : > { %s4500_s24 = smov (%p30_p1, %s28_s24), 0  ;;  %p257_p3 = pnand %p3155_p0, %p256_p2 }
   0x6   : > { %v3162_v0 = vld [vmem:[%s4490_s4 + $0x4] sm:$0xf] (!%p257_p3)  ;;  %vm370_vm0 = vcmask (!%p257_p3), 1043456   ;;  %p305_p4 = scmp.lt.s32.totalorder (!%p257_p3), %s3810_s21, 1  ;;  %v3245_v2 = vld [vmem:[%s4490_s4 + $0x30] sm:$0xf] (!%p257_p3) }
   0x7   : > { %260 = sbr.rel (%p257_p3) target bundleno = 404 (0x194), region = 44  ;;  %3726 = vmatprep.subr.msk.bf16.mxu1 (!%p257_p3), %vm370_vm0, %v3162_v0  ;;  %v372_v1 = vsel (!%p257_p3), %vm370_vm0, %v3162_v0, 0  ;;  %v344_v3 = vld [vmem:[%s4490_s4] sm:$0xf] (!%p257_p3)  ;;  %3738 = vmatprep.subr.msk.bf16.mxu0 (!%p257_p3), %vm370_vm0, %v3245_v2  ;;  %v1630_v4 = vsel (!%p257_p3), %vm370_vm0, %v3245_v2, 0  ;;  %vm363_vm2 = vcmask (!%p257_p3), 64512  }
   0x8   : > { %3481 = vmatpush3.bf16.msra.mxu1 (!%p257_p3), %v372_v1  ;;  %3553 = vmatpush3.bf16.msra.mxu0 (!%p257_p3), %v1630_v4  ;;  %v3258_v5 = vld [vmem:[%s4490_s4 + $0x34] sm:$0xf] (!%p257_p3)  ;;  %v3171_v6 = vld [vmem:[%s4490_s4 + $0x8] sm:$0xf] (!%p257_p3)  ;;  %vm499_vm1 = vsmask.f32 (!%p257_p3), 3328 }
   0x9   : > { %3727 = vmatprep.subr.msk.bf16.mxu1 (!%p257_p3), %vm370_vm0, %v344_v3  ;;  %3739 = vmatprep.subr.msk.bf16.mxu0 (!%p257_p3), %vm370_vm0, %v3258_v5  ;;  %v3902_v7 = vld [vmem:[%s4490_s4 + $0x38] sm:$0xf] (!%p257_p3)  ;;  %vm500_vm3 = vsmask.f32 (!%p257_p3), 7440  ;;  %v440_v8 = vsel (!%p257_p3), %vm370_vm0, %v344_v3, 0  ;;  %v3923_v10 = vsel (!%p257_p3), %vm370_vm0, %v3258_v5, 0 }
   0xa   : > { %v3908_v9 = vld [vmem:[%s4490_s4 + $0xc] sm:$0xf] (!%p257_p3)  ;;  %v3926_v11 = vsel (!%p257_p3), %vm370_vm0, %v3171_v6, 0  ;;  %v3930_v12 = vsel (!%p257_p3), %vm370_vm0, %v3902_v7, 0  ;;  %vm3964_vm4 = vmor (!%p257_p3), %vm499_vm1, %vm500_vm3  ;;  %vm774_vm5 = vcmask (!%p257_p3), 1042432   ;;  %vm775_vm6 = vcmask (!%p257_p3), 1046532  }
   0xb   : > { %v3934_v13 = vsel (!%p257_p3), %vm370_vm0, %v3908_v9, 0  ;;  %vm4038_vm7 = vmor (!%p257_p3), %vm774_vm5, %vm775_vm6 }
   0xe   : > { %s4502_s21 = smov (!%p305_p4, %s3810_s21), 1 }
   0xf   : > { %s3896_s11 = smul.u32 48, %s4502_s21  ;;  %s3393_s9 = sshll.u32 %s4502_s21, 4 }
  0x10   : > { %s333_s14 = scalar_lea.vmem %s4492_s6, %s3393_s9 }
  0x11   : > { %s3914_s18 = scalar_lea.vmem %s4486_s0, %s3896_s11  ;;  %s3920_s25 = scalar_lea.vmem %s4487_s1, %s3896_s11 }
  0x12   : > { %v3776_v14 = vld [vmem:[%s3920_s25] ss:$8 sps:$4 sm:$0xff]   ;;  %v3777_v15 = vld [vmem:[%s3920_s25 + $0x10] ss:$8 sps:$4 sm:$0xff]   ;;  %v3941_v17 = vld [vmem:[%s3914_s18 + $0xc] sm:$0x1]  ;;  %s4053_s30 = scalar_lea.vmem %s4488_s2, %s3896_s11  ;;  %s4096_s12 = scalar_lea.vmem %s4489_s3, %s3896_s11 }
  0x13   : > { %3482 = vmatprep.mubr.msk.bf16.mxu1 %vm363_vm2, %v3776_v14  ;;  %v3237_v16 = vld [vmem:[%s3914_s18 + $0x8] sm:$0xf]  ;;  %v3239_v18 = vld [vmem:[%s3914_s18 + $0x10] sm:$0xf]  ;;  %v3946_v19 = vld [vmem:[%s3914_s18 + $0x14] sm:$0x1] }
  0x14   : > { %3483 = vmatmul.mubr.msk.bf16.vlgmr.msra.gmra.mrb[0].mxu1 %vm363_vm2, %v3777_v15  ;;  %v1560_v20 = vshrl.u32 %v3237_v16, 16  ;;  %v1563_v21 = vshll.u32 %v3237_v16, 16  ;;  %v1569_v22 = vshll.u32 %v3941_v17, 16  ;;  %v1574_v23 = vshrl.u32 %v3239_v18, 16  ;;  %v3241_v28 = vld [vmem:[%s3914_s18 + $0x18] sm:$0xf] }
  0x15   : > { %v1577_v24 = vshll.u32 %v3239_v18, 16  ;;  %v1583_v25 = vshll.u32 %v3946_v19, 16  ;;  %v1833_v26 = vrot.slane %v3941_v17, 5  ;;  %v1837_v27 = vrot.slane %v3946_v19, 5  ;;  %3487 = vmatpush3.bf16.msra.mxu1 %v440_v8  ;;  %v3954_v33 = vld [vmem:[%s3914_s18 + $0x1c] sm:$0x1] }
  0x16   : > { %v1562_v29 = vrot.slane %v1560_v20, 4  ;;  %v1565_v30 = vrot.slane %v1563_v21, 5  ;;  %v1571_v31 = vrot.slane %v1569_v22, 5  ;;  %v1576_v32 = vrot.slane %v1574_v23, 4  ;;  %3728 = vmatprep.subr.msk.bf16.mxu1 %vm370_vm0, %v3171_v6  ;;  %v3243_v36 = vld [vmem:[%s3914_s18 + $0x20] sm:$0xf] }
  0x17   : > { %v1579_v34 = vrot.slane %v1577_v24, 5  ;;  %v1585_v35 = vrot.slane %v1583_v25, 5  ;;  %v3959_v37 = vld [vmem:[%s3914_s18 + $0x24] sm:$0x1]  ;;  %v1588_v39 = vshrl.u32 %v3241_v28, 16  ;;  %v1591_v40 = vshll.u32 %v3241_v28, 16 }
  0x18   : > { %v1566_v38 = vor.u32 %v1565_v30, %v1562_v29  ;;  %v1597_v41 = vshll.u32 %v3954_v33, 16  ;;  %v1602_v44 = vshrl.u32 %v3243_v36, 16  ;;  %v1605_v45 = vshll.u32 %v3243_v36, 16  ;;  %v3778_v51 = vld [vmem:[%s3914_s18] ss:$8 sps:$4 sm:$0xff]  }
  0x19   : > { %v1580_v43 = vor.u32 %v1579_v34, %v1576_v32  ;;  %v1611_v46 = vshll.u32 %v3959_v37, 16  ;;  %v1590_v48 = vrot.slane %v1588_v39, 4  ;;  %v1593_v49 = vrot.slane %v1591_v40, 5  ;;  %3488 = vmatprep.mubr.msk.bf16.mxu1 %vm363_vm2, %v3778_v51  ;;  %v3779_v60 = vld [vmem:[%s3914_s18 + $0x10] ss:$8 sps:$4 sm:$0xff]  }
  0x1a   : > { %v1567_v47 = vrot.slane %v1566_v38, 4  ;;  %v1599_v50 = vrot.slane %v1597_v41, 5  ;;  %v1604_v53 = vrot.slane %v1602_v44, 4  ;;  %v1607_v54 = vrot.slane %v1605_v45, 5  ;;  %v3250_v63 = vld [vmem:[%s3920_s25 + $0x8] sm:$0xf] }
  0x1b   : > { %v1581_v52 = vrot.slane %v1580_v43, 4  ;;  %v1613_v55 = vrot.slane %v1611_v46, 5  ;;  %v1594_v57 = vor.u32 %v1593_v49, %v1590_v48  ;;  %v1841_v58 = vrot.slane %v3954_v33, 5  ;;  %v3251_v0 = vld [vmem:[%s3920_s25 + $0xc] sm:$0x1] }
  0x1c   : > { %v1572_v56 = vsel %vm3964_vm4, %v1567_v47, %v1571_v31  ;;  %v1845_v59 = vrot.slane %v3959_v37, 5  ;;  %v1608_v62 = vor.u32 %v1607_v54, %v1604_v53  ;;  %v3252_v1 = vld [vmem:[%s3920_s25 + $0x10] sm:$0xf]  ;;  %v3253_v4 = vld [vmem:[%s3920_s25 + $0x14] sm:$0x1]  ;;  %v1694_v5 = vshrl.u32 %v3250_v63, 16 }
  0x1d   : > { %v1586_v61 = vsel %vm3964_vm4, %v1581_v52, %v1585_v35  ;;  %v1595_v3 = vrot.slane %v1594_v57, 4  ;;  %v1697_v6 = vshll.u32 %v3250_v63, 16  ;;  %v1703_v14 = vshll.u32 %v3251_v0, 16  ;;  %v3254_v18 = vld [vmem:[%s3920_s25 + $0x18] sm:$0xf] }
  0x1e   : > { %v3246_v2 = vcombine.low %v1572_v56, %v1586_v61  ;;  %v1609_v8 = vrot.slane %v1608_v62, 4  ;;  %v1708_v15 = vshrl.u32 %v3252_v1, 16  ;;  %v1711_v16 = vshll.u32 %v3252_v1, 16  ;;  %v3255_v24 = vld [vmem:[%s3920_s25 + $0x1c] sm:$0x1] }
  0x1f   : > { %v1600_v20 = vsel %vm3964_vm4, %v1595_v3, %v1599_v50  ;;  %v1696_v21 = vrot.slane %v1694_v5, 4  ;;  %v1699_v22 = vrot.slane %v1697_v6, 5  ;;  %v1717_v23 = vshll.u32 %v3253_v4, 16  ;;  %v3256_v31 = vld [vmem:[%s3920_s25 + $0x20] sm:$0xf] }
  0x20   : > { %3554 = vmatprep.mubr.msk.bf16.mxu0 %vm363_vm2, %v3246_v2  ;;  %3489 = vmatmul.mubr.msk.bf16.vlgmr.msra.gmra.mrb[0].mxu1 %vm363_vm2, %v3779_v60  ;;  %v1614_v25 = vsel %vm3964_vm4, %v1609_v8, %v1613_v55  ;;  %v1705_v28 = vrot.slane %v1703_v14, 5  ;;  %v1710_v29 = vrot.slane %v1708_v15, 4  ;;  %v1713_v30 = vrot.slane %v1711_v16, 5  ;;  %v3257_v36 = vld [vmem:[%s3920_s25 + $0x24] sm:$0x1] }
  0x21   : > { %3493 = vmatpush3.bf16.msra.mxu1 %v3926_v11  ;;  %v3247_v32 = vcombine.low %v1600_v20, %v1614_v25  ;;  %v1700_v34 = vor.u32 %v1699_v22, %v1696_v21  ;;  %v1719_v35 = vrot.slane %v1717_v23, 5  ;;  %v1722_v38 = vshrl.u32 %v3254_v18, 16  ;;  %v491_v44 = vld [vmem:[%s3914_s18] sm:$0xf]  ;;  %v3998_v48 = vld [vmem:[%s3914_s18 + $0x4] sm:$0x1] }
  0x22   : > { %3729 = vmatprep.subr.msk.bf16.mxu1 %vm370_vm0, %v3908_v9  ;;  %v1714_v39 = vor.u32 %v1713_v30, %v1710_v29  ;;  %v1725_v40 = vshll.u32 %v3254_v18, 16  ;;  %v1731_v41 = vshll.u32 %v3255_v24, 16  ;;  %v1736_v43 = vshrl.u32 %v3256_v31, 16  ;;  %v493_v52 = vld [vmem:[%s3914_s18 + $0x8] sm:$0xf] }
  0x23   : > { %3555 = vmatmul.mubr.msk.bf16.vlgmr.msra.gmra.mrb[0].mxu0 %vm363_vm2, %v3247_v32  ;;  %v1701_v11 = vrot.slane %v1700_v34, 4  ;;  %v1724_v45 = vrot.slane %v1722_v38, 4  ;;  %v1739_v46 = vshll.u32 %v3256_v31, 16  ;;  %v1745_v47 = vshll.u32 %v3257_v36, 16  ;;  %v4009_v60 = vld [vmem:[%s3914_s18 + $0xc] sm:$0x1] }
  0x24   : > { %3559 = vmatpush3.bf16.msra.mxu0 %v3923_v10  ;;  %v1715_v9 = vrot.slane %v1714_v39, 4  ;;  %v1727_v49 = vrot.slane %v1725_v40, 5  ;;  %v1733_v50 = vrot.slane %v1731_v41, 5  ;;  %v1738_v51 = vrot.slane %v1736_v43, 4  ;;  %v495_v63 = vld [vmem:[%s3914_s18 + $0x10] sm:$0xf] }
  0x25   : > { %v1706_v53 = vsel %vm3964_vm4, %v1701_v11, %v1705_v28  ;;  %3740 = vmatprep.subr.msk.bf16.mxu0 %vm370_vm0, %v3902_v7  ;;  %v1741_v54 = vrot.slane %v1739_v46, 5  ;;  %v1747_v55 = vrot.slane %v1745_v47, 5  ;;  %v503_v56 = vshrl.u32 %v491_v44, 16  ;;  %v4014_v8 = vld [vmem:[%s3914_s18 + $0x14] sm:$0x1] }
  0x26   : > { %v1720_v57 = vsel %vm3964_vm4, %v1715_v9, %v1719_v35  ;;  %v1728_v10 = vor.u32 %v1727_v49, %v1724_v45  ;;  %v506_v61 = vshll.u32 %v491_v44, 16  ;;  %v512_v62 = vshll.u32 %v3998_v48, 16  ;;  %v497_v23 = vld [vmem:[%s3914_s18 + $0x18] sm:$0xf]  ;;  %v4022_v24 = vld [vmem:[%s3914_s18 + $0x1c] sm:$0x1] }
  0x27   : > { %v3259_v0 = vcombine.low %v1706_v53, %v1720_v57  ;;  %v1742_v1 = vor.u32 %v1741_v54, %v1738_v51  ;;  %v505_v2 = vrot.slane %v503_v56, 4  ;;  %v517_v7 = vshrl.u32 %v493_v52, 16  ;;  %v3263_v32 = vld [vmem:[%s3914_s18 + $0x8] sm:$0xe]  ;;  %v3264_v39 = vld [vmem:[%s3914_s18 + $0x10] sm:$0xe] }
  0x28   : > { %v1729_v3 = vrot.slane %v1728_v10, 4  ;;  %v508_v4 = vrot.slane %v506_v61, 5  ;;  %v514_v5 = vrot.slane %v512_v62, 5  ;;  %v520_v6 = vshll.u32 %v493_v52, 16  ;;  %v4032_v40 = vld [vmem:[%s4490_s4 + $0x3c] sm:$0xf] }
  0x29   : > { %3560 = vmatprep.mubr.msk.bf16.mxu0 %vm363_vm2, %v3259_v0  ;;  %v1743_v14 = vrot.slane %v1742_v1, 4  ;;  %v519_v15 = vrot.slane %v517_v7, 4  ;;  %v526_v16 = vshll.u32 %v4009_v60, 16  ;;  %v531_v18 = vshrl.u32 %v495_v63, 16  ;;  %v3265_v41 = vld [vmem:[%s3914_s18 + $0x18] sm:$0xe] }
  0x2a   : > { %v1734_v20 = vsel %vm3964_vm4, %v1729_v3, %v1733_v50  ;;  %v509_v21 = vor.u32 %v508_v4, %v505_v2  ;;  %v522_v22 = vrot.slane %v520_v6, 5  ;;  %v534_v25 = vshll.u32 %v495_v63, 16  ;;  %v3266_v47 = vld [vmem:[%s3914_s18 + $0x20] sm:$0xe]  ;;  %v629_v53 = vld [vmem:[%s3920_s25 + $0x4] sm:$0x1] }
  0x2b   : > { %v1748_v28 = vsel %vm3964_vm4, %v1743_v14, %v1747_v55  ;;  %v528_v29 = vrot.slane %v526_v16, 5  ;;  %v533_v30 = vrot.slane %v531_v18, 4  ;;  %v540_v31 = vshll.u32 %v4014_v8, 16  ;;  %v628_v52 = vld [vmem:[%s3920_s25] sm:$0xf] }
  0x2c   : > { %v3260_v34 = vcombine.low %v1734_v20, %v1748_v28  ;;  %v510_v35 = vrot.slane %v509_v21, 4  ;;  %v523_v36 = vor.u32 %v522_v22, %v519_v15  ;;  %v536_v38 = vrot.slane %v534_v25, 5  ;;  %v630_v10 = vld [vmem:[%s3920_s25 + $0x8] sm:$0xf]  ;;  %v631_v3 = vld [vmem:[%s3920_s25 + $0xc] sm:$0x1] }
  0x2d   : > { %v542_v43 = vrot.slane %v540_v31, 5  ;;  %v545_v44 = vshrl.u32 %v497_v23, 16  ;;  %v548_v11 = vshll.u32 %v497_v23, 16  ;;  %v554_v45 = vshll.u32 %v4022_v24, 16  ;;  %v632_v19 = vld [vmem:[%s3920_s25 + $0x10] sm:$0xf] }
  0x2e   : > { %v515_v9 = vsel %vm3964_vm4, %v510_v35, %v514_v5  ;;  %v524_v49 = vrot.slane %v523_v36, 4  ;;  %v537_v50 = vor.u32 %v536_v38, %v533_v30  ;;  %v3267_v51 = vrot.slane %v3263_v32, 9  ;;  %v633_v16 = vld [vmem:[%s3920_s25 + $0x14] sm:$0x1]  ;;  %v634_v21 = vld [vmem:[%s3920_s25 + $0x18] sm:$0xf] }
  0x2f   : > { %3561 = vmatmul.mubr.msk.bf16.vlgmr.msra.gmra.mrb[0].mxu0 %vm363_vm2, %v3260_v34  ;;  %v547_v54 = vrot.slane %v545_v44, 4  ;;  %v550_v55 = vrot.slane %v548_v11, 5  ;;  %v556_v56 = vrot.slane %v554_v45, 5  ;;  %v3268_v57 = vrot.slane %v3264_v39, 9  ;;  %v3185_v28 = vld [vmem:[%s4490_s4 + $0x10] sm:$0xf] }
  0x30   : > { %3565 = vmatpush3.bf16.msra.mxu0 %v3930_v12  ;;  %v529_v61 = vsel %vm3964_vm4, %v524_v49, %v528_v29  ;;  %v538_v62 = vrot.slane %v537_v50, 4  ;;  %v1834_v63 = vsel %vm4038_vm7, %v3267_v51, %v1833_v26  ;;  %v3269_v0 = vrot.slane %v3265_v41, 9  ;;  %v3780_v34 = vld [vmem:[%s4053_s30 + $0x8] ss:$8 sps:$4 sm:$0xff]   ;;  %v762_v41 = vld [vmem:[%s3914_s18] sm:$0xe] }
  0x31   : > { %v3172_v1 = vcombine.low %v515_v9, %v529_v61  ;;  %v551_v2 = vor.u32 %v550_v55, %v547_v54  ;;  %v1838_v7 = vsel %vm4038_vm7, %v3268_v57, %v1837_v27  ;;  %3741 = vmatprep.subr.msk.bf16.mxu0 %vm370_vm0, %v4032_v40  ;;  %v3270_v12 = vrot.slane %v3266_v47, 9  ;;  %v3289_v47 = vld [vmem:[%s4490_s4 + $0x40] sm:$0xf]  ;;  %v763_v55 = vld [vmem:[%s3914_s18 + $0x8] sm:$0xe] }
  0x32   : > { %v543_v17 = vsel %vm3964_vm4, %v538_v62, %v542_v43  ;;  %v3272_v4 = vcombine.low %v1834_v63, %v1838_v7  ;;  %v1842_v26 = vsel %vm4038_vm7, %v3269_v0, %v1841_v58  ;;  %v637_v5 = vshrl.u32 %v628_v52, 16 }
  0x33   : > { %3494 = vmatprep.mubr.msk.bf16.mxu1 %vm363_vm2, %v3172_v1  ;;  %v552_v27 = vrot.slane %v551_v2, 4  ;;  %v1846_v6 = vsel %vm4038_vm7, %v3270_v12, %v1845_v59  ;;  %v640_v14 = vshll.u32 %v628_v52, 16  ;;  %v646_v15 = vshll.u32 %v629_v53, 16  ;;  %v635_v59 = vld [vmem:[%s3920_s25 + $0x1c] sm:$0x1] }
  0x34   : > { %3566 = vmatprep.mubr.msk.bf16.mxu0 %vm363_vm2, %v3272_v4  ;;  %v3273_v33 = vcombine.low %v1842_v26, %v1846_v6  ;;  %v639_v18 = vrot.slane %v637_v5, 4  ;;  %v651_v58 = vshrl.u32 %v630_v10, 16  ;;  %v654_v20 = vshll.u32 %v630_v10, 16  ;;  %v3781_v6 = vld [vmem:[%s4053_s30 + $0x18] ss:$8 sps:$4 sm:$0xff]  }
  0x35   : > { %v557_v22 = vsel %vm3964_vm4, %v552_v27, %v556_v56  ;;  %v642_v37 = vrot.slane %v640_v14, 5  ;;  %v648_v23 = vrot.slane %v646_v15, 5  ;;  %v660_v25 = vshll.u32 %v631_v3, 16 }
  0x36   : > { %v3173_v29 = vcombine.low %v543_v17, %v557_v22  ;;  %v653_v30 = vrot.slane %v651_v58, 4  ;;  %v656_v31 = vrot.slane %v654_v20, 5  ;;  %v665_v32 = vshrl.u32 %v632_v19, 16  ;;  %v764_v17 = vld [vmem:[%s3914_s18 + $0x10] sm:$0xe] }
  0x37   : > { %v643_v35 = vor.u32 %v642_v37, %v639_v18  ;;  %v662_v36 = vrot.slane %v660_v25, 5  ;;  %v668_v38 = vshll.u32 %v632_v19, 16  ;;  %v674_v39 = vshll.u32 %v633_v16, 16  ;;  %v765_v19 = vld [vmem:[%s3914_s18 + $0x18] sm:$0xe] }
  0x38   : > { %3495 = vmatmul.mubr.msk.bf16.vlgmr.msra.gmra.mrb[0].mxu1 %vm363_vm2, %v3173_v29  ;;  %v657_v43 = vor.u32 %v656_v31, %v653_v30  ;;  %v667_v44 = vrot.slane %v665_v32, 4  ;;  %v679_v11 = vshrl.u32 %v634_v21, 16  ;;  %v682_v45 = vshll.u32 %v634_v21, 16  ;;  %v3294_v18 = vld [vmem:[%s4053_s30 + $0x8] sm:$0xf] }
  0x39   : > { %3499 = vmatpush3.bf16.msra.mxu1 %v3934_v13  ;;  %v1942_v9 = vsel %vm370_vm0, %v4032_v40, 0  ;;  %v644_v49 = vrot.slane %v643_v35, 4  ;;  %v670_v50 = vrot.slane %v668_v38, 5  ;;  %v688_v51 = vshll.u32 %v635_v59, 16  ;;  %v4136_v58 = vld [vmem:[%s4053_s30 + $0xc] sm:$0x1] }
  0x3a   : > { %v658_v52 = vrot.slane %v657_v43, 4  ;;  %v681_v53 = vrot.slane %v679_v11, 4  ;;  %v684_v54 = vrot.slane %v682_v45, 5  ;;  %3730 = vmatprep.subr.msk.bf16.mxu1 %vm370_vm0, %v3185_v28  ;;  %v676_v13 = vrot.slane %v674_v39, 5  ;;  %v3296_v20 = vld [vmem:[%s4053_s30 + $0x10] sm:$0xf] }
  0x3b   : > { %3567 = vmatmul.mubr.msk.bf16.vlgmr.msra.gmra.mrb[0].mxu0 %vm363_vm2, %v3273_v33  ;;  %v649_v56 = vsel %vm3964_vm4, %v644_v49, %v648_v23  ;;  %v671_v57 = vor.u32 %v670_v50, %v667_v44  ;;  %v690_v10 = vrot.slane %v688_v51, 5  ;;  %v3181_v62 = vrot.slane %v762_v41, 9  ;;  %v3190_v33 = vld [vmem:[%s4490_s4 + $0x14] sm:$0xf]  ;;  %v3782_v22 = vld [vmem:[%s4096_s12 + $0x8] ss:$8 sps:$4 sm:$0xff]  }
  0x3c   : > { %3571 = vmatpush3.bf16.msra.mxu0 %v1942_v9  ;;  %v663_v40 = vsel %vm3964_vm4, %v658_v52, %v662_v36  ;;  %v685_v61 = vor.u32 %v684_v54, %v681_v53  ;;  %3572 = vmatprep.mubr.msk.bf16.mxu0 %vm363_vm2, %v3780_v34  ;;  %v779_v63 = vrot.slane %v3998_v48, 5  ;;  %v3182_v2 = vrot.slane %v763_v55, 9  ;;  %v4140_v21 = vld [vmem:[%s4053_s30 + $0x14] sm:$0x1]  ;;  %v3298_v31 = vld [vmem:[%s4053_s30 + $0x18] sm:$0xf] }
  0x3d   : > { %v3177_v0 = vcombine.low %v649_v56, %v663_v40  ;;  %v672_v1 = vrot.slane %v671_v57, 4  ;;  %3742 = vmatprep.subr.msk.bf16.mxu0 %vm370_vm0, %v3289_v47  ;;  %v783_v7 = vrot.slane %v4009_v60, 5  ;;  %v808_v26 = vsel %vm370_vm0, %v3185_v28, 0  ;;  %v3302_v32 = vld [vmem:[%s4490_s4 + $0x44] sm:$0xf] }
  0x3e   : > { %v686_v12 = vrot.slane %v685_v61, 4  ;;  %v780_v3 = vsel %vm4038_vm7, %v3181_v62, %v779_v63  ;;  %v2022_v5 = vsel %vm370_vm0, %v3289_v47, 0  ;;  %v3183_v15 = vrot.slane %v764_v17, 9  ;;  %v4164_v43 = vld [vmem:[%s4490_s4 + $0x48] sm:$0xf] }
  0x3f   : > { %3500 = vmatprep.mubr.msk.bf16.mxu1 %vm363_vm2, %v3177_v0  ;;  %v677_v48 = vsel %vm3964_vm4, %v672_v1, %v676_v13  ;;  %v784_v4 = vsel %vm4038_vm7, %v3182_v2, %v783_v7  ;;  %v787_v16 = vrot.slane %v4014_v8, 5  ;;  %v2086_v37 = vshrl.u32 %v3294_v18, 16  ;;  %v3300_v44 = vld [vmem:[%s4053_s30 + $0x20] sm:$0xf]  ;;  %v4171_v47 = vld [vmem:[%s4053_s30 + $0x1c] sm:$0x1] }
  0x40   : > { %v691_v60 = vsel %vm3964_vm4, %v686_v12, %v690_v10  ;;  %v3186_v14 = vcombine.low %v780_v3, %v784_v4  ;;  %v2089_v23 = vshll.u32 %v3294_v18, 16  ;;  %v2095_v25 = vshll.u32 %v4136_v58, 16  ;;  %v4177_v52 = vld [vmem:[%s4053_s30 + $0x24] sm:$0x1]  ;;  %v3307_v17 = vld [vmem:[%s4096_s12 + $0x8] sm:$0xf] }
  0x41   : > { %v3178_v27 = vcombine.low %v677_v48, %v691_v60  ;;  %v2100_v59 = vshrl.u32 %v3296_v20, 16  ;;  %v3184_v8 = vrot.slane %v765_v19, 9  ;;  %v791_v28 = vrot.slane %v4022_v24, 5  ;;  %v4159_v24 = vld [vmem:[%s4490_s4 + $0x18] sm:$0xf] }
  0x42   : > { %v4147_v29 = vsel %vm370_vm0, %v3190_v33, 0  ;;  %v2103_v30 = vshll.u32 %v3296_v20, 16  ;;  %v2088_v34 = vrot.slane %v2086_v37, 4  ;;  %v2091_v35 = vrot.slane %v2089_v23, 5  ;;  %v3308_v48 = vld [vmem:[%s4096_s12 + $0xc] sm:$0x1] }
  0x43   : > { %v2102_v36 = vrot.slane %v2100_v59, 4  ;;  %v2109_v38 = vshll.u32 %v4140_v21, 16  ;;  %v2097_v39 = vrot.slane %v2095_v25, 5  ;;  %v788_v11 = vsel %vm4038_vm7, %v3183_v15, %v787_v16  ;;  %v3309_v4 = vld [vmem:[%s4096_s12 + $0x10] sm:$0xf] }
  0x44   : > { %3501 = vmatmul.mubr.msk.bf16.vlgmr.msra.gmra.mrb[0].mxu1 %vm363_vm2, %v3178_v27  ;;  %v2105_v41 = vrot.slane %v2103_v30, 5  ;;  %v2092_v45 = vor.u32 %v2091_v35, %v2088_v34  ;;  %v2114_v9 = vshrl.u32 %v3298_v31, 16  ;;  %v2117_v49 = vshll.u32 %v3298_v31, 16  ;;  %v3784_v60 = vld [vmem:[%s4053_s30] ss:$8 sps:$4 sm:$0xff]  }
  0x45   : > { %3505 = vmatpush3.bf16.msra.mxu1 %v808_v26  ;;  %3506 = vmatprep.mubr.msk.bf16.mxu1 %vm363_vm2, %v3186_v14  ;;  %v792_v50 = vsel %vm4038_vm7, %v3184_v8, %v791_v28  ;;  %v2128_v53 = vshrl.u32 %v3300_v44, 16  ;;  %v2131_v54 = vshll.u32 %v3300_v44, 16  ;;  %v2111_v56 = vrot.slane %v2109_v38, 5  ;;  %v3310_v19 = vld [vmem:[%s4096_s12 + $0x14] sm:$0x1] }
  0x46   : > { %3731 = vmatprep.subr.msk.bf16.mxu1 %vm370_vm0, %v3190_v33  ;;  %v2106_v51 = vor.u32 %v2105_v41, %v2102_v36  ;;  %v2093_v55 = vrot.slane %v2092_v45, 4  ;;  %v2116_v57 = vrot.slane %v2114_v9, 4  ;;  %v2119_v13 = vrot.slane %v2117_v49, 5  ;;  %v3783_v14 = vld [vmem:[%s4096_s12 + $0x18] ss:$8 sps:$4 sm:$0xff]  }
  0x47   : > { %3573 = vmatmul.mubr.msk.bf16.vlgmr.msra.gmra.mrb[0].mxu0 %vm363_vm2, %v3781_v6  ;;  %v2123_v40 = vshll.u32 %v4171_v47, 16  ;;  %v2130_v61 = vrot.slane %v2128_v53, 4  ;;  %v2133_v62 = vrot.slane %v2131_v54, 5  ;;  %v2156_v63 = vsel %vm370_vm0, %v3302_v32, 0  ;;  %v3311_v25 = vld [vmem:[%s4096_s12 + $0x18] sm:$0xf] }
  0x48   : > { %3577 = vmatpush3.bf16.msra.mxu0 %v2022_v5  ;;  %3578 = vmatprep.mubr.msk.bf16.mxu0 %vm363_vm2, %v3782_v22  ;;  %v2107_v10 = vrot.slane %v2106_v51, 4  ;;  %v4184_v0 = vsel %vm370_vm0, %v4159_v24, 0  ;;  %v2137_v1 = vshll.u32 %v4177_v52, 16  ;;  %v4189_v2 = vsel %vm370_vm0, %v4164_v43, 0  ;;  %v3312_v31 = vld [vmem:[%s4096_s12 + $0x1c] sm:$0x1] }
  0x49   : > { %3743 = vmatprep.subr.msk.bf16.mxu0 %vm370_vm0, %v3302_v32  ;;  %v3187_v7 = vcombine.low %v788_v11, %v792_v50  ;;  %v2098_v12 = vsel %vm3964_vm4, %v2093_v55, %v2097_v39  ;;  %v2120_v3 = vor.u32 %v2119_v13, %v2116_v57  ;;  %v2134_v5 = vor.u32 %v2133_v62, %v2130_v61  ;;  %v3313_v36 = vld [vmem:[%s4096_s12 + $0x20] sm:$0xf]  ;;  %v3314_v38 = vld [vmem:[%s4096_s12 + $0x24] sm:$0x1] }
  0x4a   : > { %v2112_v26 = vsel %vm3964_vm4, %v2107_v10, %v2111_v56  ;;  %v2220_v27 = vshrl.u32 %v3307_v17, 16  ;;  %v2223_v6 = vshll.u32 %v3307_v17, 16  ;;  %v4201_v15 = vrot.slane %v2123_v40, 5  ;;  %v1023_v50 = vld [vmem:[%s4053_s30] sm:$0xf] }
  0x4b   : > { %v2229_v16 = vshll.u32 %v3308_v48, 16  ;;  %v2234_v33 = vshrl.u32 %v3309_v4, 16  ;;  %v2237_v18 = vshll.u32 %v3309_v4, 16  ;;  %v4203_v20 = vrot.slane %v2137_v1, 5  ;;  %v4223_v13 = vld [vmem:[%s4053_s30 + $0x4] sm:$0x1] }
  0x4c   : > { %v2222_v22 = vrot.slane %v2220_v27, 4  ;;  %v2225_v37 = vrot.slane %v2223_v6, 5  ;;  %v2243_v23 = vshll.u32 %v3310_v19, 16  ;;  %v3303_v59 = vcombine.low %v2098_v12, %v2112_v26  ;;  %v1025_v10 = vld [vmem:[%s4053_s30 + $0x8] sm:$0xf] }
  0x4d   : > { %v2121_v8 = vrot.slane %v2120_v3, 4  ;;  %v2236_v28 = vrot.slane %v2234_v33, 4  ;;  %v2239_v30 = vrot.slane %v2237_v18, 5  ;;  %v2135_v32 = vrot.slane %v2134_v5, 4  ;;  %v3785_v1 = vld [vmem:[%s4053_s30 + $0x10] ss:$8 sps:$4 sm:$0xff]  }
  0x4e   : > { %v2226_v34 = vor.u32 %v2225_v37, %v2222_v22  ;;  %v2231_v35 = vrot.slane %v2229_v16, 5  ;;  %v2248_v41 = vshrl.u32 %v3311_v25, 16  ;;  %v2251_v44 = vshll.u32 %v3311_v25, 16  ;;  %v1027_v48 = vld [vmem:[%s4053_s30 + $0x10] sm:$0xf] }
  0x4f   : > { %v2240_v39 = vor.u32 %v2239_v30, %v2236_v28  ;;  %v2257_v11 = vshll.u32 %v3312_v31, 16  ;;  %v2262_v9 = vshrl.u32 %v3313_v36, 16  ;;  %v2265_v49 = vshll.u32 %v3313_v36, 16  ;;  %v3786_v4 = vld [vmem:[%s4096_s12] ss:$8 sps:$4 sm:$0xff]  }
  0x50   : > { %3507 = vmatmul.mubr.msk.bf16.vlgmr.msra.gmra.mrb[0].mxu1 %vm363_vm2, %v3187_v7  ;;  %v2227_v45 = vrot.slane %v2226_v34, 4  ;;  %v2253_v53 = vrot.slane %v2251_v44, 5  ;;  %v2271_v54 = vshll.u32 %v3314_v38, 16  ;;  %v2126_v55 = vsel %vm3964_vm4, %v2121_v8, %v4201_v15  ;;  %v3200_v27 = vld [vmem:[%s4490_s4 + $0x1c] sm:$0xf] }
  0x51   : > { %3511 = vmatpush3.bf16.msra.mxu1 %v4147_v29  ;;  %3512 = vmatprep.mubr.msk.bf16.mxu1 %vm363_vm2, %v3784_v60  ;;  %v2245_v29 = vrot.slane %v2243_v23, 5  ;;  %v2241_v51 = vrot.slane %v2240_v39, 4  ;;  %v2264_v56 = vrot.slane %v2262_v9, 4  ;;  %v2267_v57 = vrot.slane %v2265_v49, 5  ;;  %v1029_v22 = vld [vmem:[%s4053_s30 + $0x18] sm:$0xf] }
  0x52   : > { %3732 = vmatprep.subr.msk.bf16.mxu1 %vm370_vm0, %v4159_v24  ;;  %v2250_v24 = vrot.slane %v2248_v41, 4  ;;  %v2140_v40 = vsel %vm3964_vm4, %v2135_v32, %v4203_v20  ;;  %v4229_v62 = vrot.slane %v2257_v11, 5  ;;  %v2232_v7 = vsel %vm3964_vm4, %v2227_v45, %v2231_v35  ;;  %v4248_v8 = vld [vmem:[%s4053_s30 + $0x14] sm:$0x1]  ;;  %v4251_v28 = vld [vmem:[%s4053_s30 + $0x1c] sm:$0x1] }
  0x53   : > { %3579 = vmatmul.mubr.msk.bf16.vlgmr.msra.gmra.mrb[0].mxu0 %vm363_vm2, %v3783_v14  ;;  %v2246_v12 = vsel %vm3964_vm4, %v2241_v51, %v2245_v29  ;;  %v2268_v3 = vor.u32 %v2267_v57, %v2264_v56  ;;  %v1035_v17 = vshll.u32 %v1023_v50, 16  ;;  %v1041_v26 = vshll.u32 %v4223_v13, 16  ;;  %v3320_v36 = vld [vmem:[%s4053_s30 + $0x8] sm:$0xe]  ;;  %v3321_v11 = vld [vmem:[%s4053_s30 + $0x10] sm:$0xe] }
  0x54   : > { %3583 = vmatpush3.bf16.msra.mxu0 %v2156_v63  ;;  %3584 = vmatprep.mubr.msk.bf16.mxu0 %vm363_vm2, %v3303_v59  ;;  %v2254_v61 = vor.u32 %v2253_v53, %v2250_v24  ;;  %v4232_v63 = vld [vmem:[%s4053_s30 + $0xc] sm:$0x1]  ;;  %v1046_v5 = vshrl.u32 %v1025_v10, 16  ;;  %v1049_v19 = vshll.u32 %v1025_v10, 16  ;;  %v2273_v14 = vrot.slane %v2271_v54, 5 }
  0x55   : > { %3744 = vmatprep.subr.msk.bf16.mxu0 %vm370_vm0, %v4164_v43  ;;  %v1032_v43 = vshrl.u32 %v1023_v50, 16  ;;  %v1037_v15 = vrot.slane %v1035_v17, 5  ;;  %v1055_v16 = vshll.u32 %v4232_v63, 16  ;;  %v2269_v33 = vrot.slane %v2268_v3, 4  ;;  %v3328_v45 = vld [vmem:[%s4490_s4 + $0x4c] sm:$0xf] }
  0x56   : > { %v2255_v6 = vrot.slane %v2254_v61, 4  ;;  %v1048_v18 = vrot.slane %v1046_v5, 4  ;;  %v1051_v20 = vrot.slane %v1049_v19, 5  ;;  %v1060_v37 = vshrl.u32 %v1027_v48, 16  ;;  %v1159_v3 = vld [vmem:[%s4096_s12 + $0x8] sm:$0xf] }
  0x57   : > { %v1034_v60 = vrot.slane %v1032_v43, 4  ;;  %v3304_v23 = vcombine.low %v2126_v55, %v2140_v40  ;;  %v3316_v25 = vcombine.low %v2232_v7, %v2246_v12  ;;  %v1063_v30 = vshll.u32 %v1027_v48, 16  ;;  %v3787_v43 = vld [vmem:[%s4096_s12 + $0x10] ss:$8 sps:$4 sm:$0xff]   ;;  %v1157_v7 = vld [vmem:[%s4096_s12] sm:$0xf] }
  0x58   : > { %v1043_v31 = vrot.slane %v1041_v26, 5  ;;  %v1052_v32 = vor.u32 %v1051_v20, %v1048_v18  ;;  %v1057_v34 = vrot.slane %v1055_v16, 5  ;;  %v1062_v35 = vrot.slane %v1060_v37, 4  ;;  %v1158_v12 = vld [vmem:[%s4096_s12 + $0x4] sm:$0x1] }
  0x59   : > { %v1038_v59 = vor.u32 %v1037_v15, %v1034_v60  ;;  %v1065_v39 = vrot.slane %v1063_v30, 5  ;;  %v1074_v41 = vshrl.u32 %v1029_v22, 16  ;;  %v1077_v44 = vshll.u32 %v1029_v22, 16  ;;  %v1160_v60 = vld [vmem:[%s4096_s12 + $0xc] sm:$0x1] }
  0x5a   : > { %v1102_v29 = vsel %vm370_vm0, %v3200_v27, 0  ;;  %v2260_v9 = vsel %vm3964_vm4, %v2255_v6, %v4229_v62  ;;  %v1053_v49 = vrot.slane %v1052_v32, 4  ;;  %v1069_v50 = vshll.u32 %v4248_v8, 16  ;;  %v4282_v62 = vld [vmem:[%s4053_s30 + $0x18] sm:$0xe] }
  0x5b   : > { %v1039_v38 = vrot.slane %v1038_v59, 4  ;;  %v1076_v51 = vrot.slane %v1074_v41, 4  ;;  %v1079_v24 = vrot.slane %v1077_v44, 5  ;;  %v1083_v53 = vshll.u32 %v4251_v28, 16  ;;  %v1163_v6 = vld [vmem:[%s4096_s12 + $0x18] sm:$0xf] }
  0x5c   : > { %3513 = vmatmul.mubr.msk.bf16.vlgmr.msra.gmra.mrb[0].mxu1 %vm363_vm2, %v3785_v1  ;;  %v1066_v54 = vor.u32 %v1065_v39, %v1062_v35  ;;  %v3324_v55 = vrot.slane %v3320_v36, 9  ;;  %v2359_v56 = vrot.slane %v4136_v58, 5  ;;  %v3325_v57 = vrot.slane %v3321_v11, 9  ;;  %v3323_v1 = vld [vmem:[%s4053_s30 + $0x20] sm:$0xe] }
  0x5d   : > { %3517 = vmatpush3.bf16.msra.mxu1 %v4184_v0  ;;  %3518 = vmatprep.mubr.msk.bf16.mxu1 %vm363_vm2, %v3786_v4  ;;  %v2274_v0 = vsel %vm3964_vm4, %v2269_v33, %v2273_v14  ;;  %v2388_v10 = vsel %vm370_vm0, %v3328_v45, 0  ;;  %v1044_v40 = vsel %vm3964_vm4, %v1039_v38, %v1043_v31  ;;  %v2363_v61 = vrot.slane %v4140_v21, 5  ;;  %v3337_v44 = vld [vmem:[%s4490_s4 + $0x50] sm:$0xf] }
  0x5e   : > { %3733 = vmatprep.subr.msk.bf16.mxu1 %vm370_vm0, %v3200_v27  ;;  %v1080_v58 = vor.u32 %v1079_v24, %v1076_v51  ;;  %v3317_v17 = vcombine.low %v2260_v9, %v2274_v0  ;;  %v1071_v48 = vrot.slane %v1069_v50, 5  ;;  %v1085_v4 = vrot.slane %v1083_v53, 5  ;;  %v1161_v27 = vld [vmem:[%s4096_s12 + $0x10] sm:$0xf]  ;;  %v1164_v53 = vld [vmem:[%s4096_s12 + $0x1c] sm:$0x1] }
  0x5f   : > { %3585 = vmatmul.mubr.msk.bf16.vlgmr.msra.gmra.mrb[0].mxu0 %vm363_vm2, %v3304_v23  ;;  %v1067_v5 = vrot.slane %v1066_v54, 4  ;;  %v2360_v19 = vsel %vm4038_vm7, %v3324_v55, %v2359_v56  ;;  %v2364_v21 = vsel %vm4038_vm7, %v3325_v57, %v2363_v61  ;;  %v3326_v14 = vrot.slane %v4282_v62, 9  ;;  %v3205_v23 = vld [vmem:[%s4490_s4 + $0x20] sm:$0xf] }
  0x60   : > { %3589 = vmatpush3.bf16.msra.mxu0 %v4189_v2  ;;  %3590 = vmatprep.mubr.msk.bf16.mxu0 %vm363_vm2, %v3316_v25  ;;  %v1058_v2 = vsel %vm3964_vm4, %v1053_v49, %v1057_v34  ;;  %v2367_v15 = vrot.slane %v4171_v47, 5  ;;  %v1166_v16 = vshrl.u32 %v1157_v7, 16  ;;  %v1169_v33 = vshll.u32 %v1157_v7, 16  ;;  %v1162_v49 = vld [vmem:[%s4096_s12 + $0x14] sm:$0x1] }
  0x61   : > { %3745 = vmatprep.subr.msk.bf16.mxu0 %vm370_vm0, %v3328_v45  ;;  %v3201_v26 = vcombine.low %v1044_v40, %v1058_v2  ;;  %v1081_v18 = vrot.slane %v1080_v58, 4  ;;  %v1175_v20 = vshll.u32 %v1158_v12, 16  ;;  %v1180_v22 = vshrl.u32 %v1159_v3, 16 }
  0x62   : > { %v1183_v37 = vshll.u32 %v1159_v3, 16  ;;  %v3329_v25 = vcombine.low %v2360_v19, %v2364_v21  ;;  %v3327_v59 = vrot.slane %v3323_v1, 9  ;;  %v1168_v30 = vrot.slane %v1166_v16, 4  ;;  %v3214_v3 = vld [vmem:[%s4490_s4 + $0x24] sm:$0xf] }
  0x63   : > { %v1171_v31 = vrot.slane %v1169_v33, 5  ;;  %v1182_v32 = vrot.slane %v1180_v22, 4  ;;  %v1189_v35 = vshll.u32 %v1160_v60, 16  ;;  %v1194_v47 = vshrl.u32 %v1161_v27, 16  ;;  %v3788_v21 = vld [vmem:[%s3914_s18 + $0x10] ss:$8 sps:$4 sm:$0xff]  }
  0x64   : > { %v1185_v34 = vrot.slane %v1183_v37, 5  ;;  %v2371_v36 = vrot.slane %v4177_v52, 5  ;;  %v1197_v39 = vshll.u32 %v1161_v27, 16  ;;  %v1208_v41 = vshrl.u32 %v1163_v6, 16 }
  0x65   : > { %v1172_v38 = vor.u32 %v1171_v31, %v1168_v30  ;;  %v1177_v11 = vrot.slane %v1175_v20, 5  ;;  %v1191_v9 = vrot.slane %v1189_v35, 5  ;;  %v1211_v0 = vshll.u32 %v1163_v6, 16  ;;  %v3351_v6 = vld [vmem:[%s3914_s18 + $0x10] sm:$0xf] }
  0x66   : > { %v1186_v45 = vor.u32 %v1185_v34, %v1182_v32  ;;  %v1196_v50 = vrot.slane %v1194_v47, 4  ;;  %v1199_v52 = vrot.slane %v1197_v39, 5  ;;  %v1210_v51 = vrot.slane %v1208_v41, 4  ;;  %v1293_v31 = vld [vmem:[%s4053_s30 + $0x10] sm:$0xe] }
  0x67   : > { %v1213_v54 = vrot.slane %v1211_v0, 5  ;;  %v1072_v55 = vsel %vm3964_vm4, %v1067_v5, %v1071_v48  ;;  %v1086_v56 = vsel %vm3964_vm4, %v1081_v18, %v1085_v4  ;;  %v2368_v57 = vsel %vm4038_vm7, %v3326_v14, %v2367_v15  ;;  %v1291_v48 = vld [vmem:[%s4053_s30] sm:$0xe]  ;;  %v1292_v4 = vld [vmem:[%s4053_s30 + $0x8] sm:$0xe] }
  0x68   : > { %3519 = vmatmul.mubr.msk.bf16.vlgmr.msra.gmra.mrb[0].mxu1 %vm363_vm2, %v3787_v43  ;;  %v1187_v24 = vrot.slane %v1186_v45, 4  ;;  %v1200_v61 = vor.u32 %v1199_v52, %v1196_v50  ;;  %v1203_v62 = vshll.u32 %v1162_v49, 16  ;;  %v1217_v58 = vshll.u32 %v1164_v53, 16  ;;  %v3353_v14 = vld [vmem:[%s3914_s18 + $0x18] sm:$0xf] }
  0x69   : > { %3523 = vmatpush3.bf16.msra.mxu1 %v1102_v29  ;;  %3524 = vmatprep.mubr.msk.bf16.mxu1 %vm363_vm2, %v3201_v26  ;;  %v1173_v29 = vrot.slane %v1172_v38, 4  ;;  %v1214_v43 = vor.u32 %v1213_v54, %v1210_v51  ;;  %v3202_v1 = vcombine.low %v1072_v55, %v1086_v56  ;;  %v1236_v7 = vsel %vm370_vm0, %v3205_v23, 0  ;;  %v3346_v15 = vld [vmem:[%s4490_s4 + $0x54] sm:$0xf]  ;;  %v1294_v35 = vld [vmem:[%s4053_s30 + $0x18] sm:$0xe] }
  0x6a   : > { %3734 = vmatprep.subr.msk.bf16.mxu1 %vm370_vm0, %v3205_v23  ;;  %v1192_v2 = vsel %vm3964_vm4, %v1187_v24, %v1191_v9  ;;  %v1201_v60 = vrot.slane %v1200_v61, 4  ;;  %v1205_v26 = vrot.slane %v1203_v62, 5  ;;  %v1219_v19 = vrot.slane %v1217_v58, 5  ;;  %v4358_v47 = vld [vmem:[%s3914_s18 + $0x14] sm:$0x1] }
  0x6b   : > { %3591 = vmatmul.mubr.msk.bf16.vlgmr.msra.gmra.mrb[0].mxu0 %vm363_vm2, %v3317_v17  ;;  %v1178_v40 = vsel %vm3964_vm4, %v1173_v29, %v1177_v11  ;;  %v1215_v5 = vrot.slane %v1214_v43, 4  ;;  %v2470_v27 = vsel %vm370_vm0, %v3337_v44, 0  ;;  %v3210_v16 = vrot.slane %v1291_v48, 9  ;;  %v4361_v11 = vld [vmem:[%s3914_s18 + $0x1c] sm:$0x1] }
  0x6c   : > { %3595 = vmatpush3.bf16.msra.mxu0 %v2388_v10  ;;  %3596 = vmatprep.mubr.msk.bf16.mxu0 %vm363_vm2, %v3329_v25  ;;  %v2372_v10 = vsel %vm4038_vm7, %v3327_v59, %v2371_v36  ;;  %v3206_v12 = vcombine.low %v1178_v40, %v1192_v2  ;;  %v1305_v33 = vrot.slane %v4223_v13, 5  ;;  %v3211_v18 = vrot.slane %v1292_v4, 9  ;;  %v3789_v49 = vld [vmem:[%s3914_s18 + $0x20] ss:$8 sps:$4 sm:$0xff]   ;;  %v3790_v52 = vld [vmem:[%s3920_s25 + $0x10] ss:$8 sps:$4 sm:$0xff]  }
  0x6d   : > { %3746 = vmatprep.subr.msk.bf16.mxu0 %vm370_vm0, %v3337_v44  ;;  %v3330_v17 = vcombine.low %v2368_v57, %v2372_v10  ;;  %v1309_v20 = vrot.slane %v4232_v63, 5  ;;  %v1206_v22 = vsel %vm3964_vm4, %v1201_v60, %v1205_v26  ;;  %v1220_v37 = vsel %vm3964_vm4, %v1215_v5, %v1219_v19  ;;  %v3223_v50 = vld [vmem:[%s4490_s4 + $0x28] sm:$0xf]  ;;  %v3359_v10 = vld [vmem:[%s4490_s4 + $0x58] sm:$0xf] }
  0x6e   : > { %v2614_v23 = vshrl.u32 %v3351_v6, 16  ;;  %v2617_v25 = vshll.u32 %v3351_v6, 16  ;;  %v2628_v13 = vshrl.u32 %v3353_v14, 16  ;;  %v2631_v59 = vshll.u32 %v3353_v14, 16  ;;  %v3357_v55 = vld [vmem:[%s3914_s18 + $0x28] sm:$0xf] }
  0x6f   : > { %v1306_v63 = vsel %vm4038_vm7, %v3210_v16, %v1305_v33  ;;  %v1310_v30 = vsel %vm4038_vm7, %v3211_v18, %v1309_v20  ;;  %v3207_v32 = vcombine.low %v1206_v22, %v1220_v37  ;;  %v1334_v34 = vsel %vm370_vm0, %v3214_v3, 0  ;;  %v3364_v40 = vld [vmem:[%s3920_s25 + $0x10] sm:$0xf]  ;;  %v3366_v2 = vld [vmem:[%s3920_s25 + $0x18] sm:$0xf] }
  0x70   : > { %v2616_v36 = vrot.slane %v2614_v23, 4  ;;  %v2619_v38 = vrot.slane %v2617_v25, 5  ;;  %v2630_v39 = vrot.slane %v2628_v13, 4  ;;  %v2633_v41 = vrot.slane %v2631_v59, 5  ;;  %v4398_v16 = vld [vmem:[%s3914_s18 + $0x2c] sm:$0x1] }
  0x71   : > { %v3215_v44 = vcombine.low %v1306_v63, %v1310_v30  ;;  %v3212_v45 = vrot.slane %v1293_v31, 9  ;;  %v1313_v9 = vrot.slane %v4248_v8, 5  ;;  %v3213_v0 = vrot.slane %v1294_v35, 9  ;;  %v3355_v8 = vld [vmem:[%s3914_s18 + $0x20] sm:$0xf] }
  0x72   : > { %v1317_v29 = vrot.slane %v4251_v28, 5  ;;  %v2620_v51 = vor.u32 %v2619_v38, %v2616_v36  ;;  %v2623_v24 = vshll.u32 %v4358_v47, 16  ;;  %v2634_v53 = vor.u32 %v2633_v41, %v2630_v39  ;;  %v3792_v33 = vld [vmem:[%s3914_s18 + $0x8] ss:$8 sps:$4 sm:$0xff]   ;;  %v3365_v25 = vld [vmem:[%s3920_s25 + $0x14] sm:$0x1] }
  0x73   : > { %v2637_v54 = vshll.u32 %v4361_v11, 16  ;;  %v2550_v28 = vsel %vm370_vm0, %v3346_v15, 0  ;;  %v1314_v56 = vsel %vm4038_vm7, %v3212_v45, %v1313_v9  ;;  %v2642_v61 = vshrl.u32 %v3355_v8, 16  ;;  %v3367_v13 = vld [vmem:[%s3920_s25 + $0x1c] sm:$0x1] }
  0x74   : > { %3525 = vmatmul.mubr.msk.bf16.vlgmr.msra.gmra.mrb[0].mxu1 %vm363_vm2, %v3202_v1  ;;  %v1318_v57 = vsel %vm4038_vm7, %v3213_v0, %v1317_v29  ;;  %v2645_v62 = vshll.u32 %v3355_v8, 16  ;;  %v2656_v43 = vshrl.u32 %v3357_v55, 16  ;;  %v2659_v58 = vshll.u32 %v3357_v55, 16  ;;  %v3791_v59 = vld [vmem:[%s3920_s25 + $0x20] ss:$8 sps:$4 sm:$0xff]  }
  0x75   : > { %3529 = vmatpush3.bf16.msra.mxu1 %v1236_v7  ;;  %3530 = vmatprep.mubr.msk.bf16.mxu1 %vm363_vm2, %v3206_v12  ;;  %v2621_v1 = vrot.slane %v2620_v51, 4  ;;  %v2625_v7 = vrot.slane %v2623_v24, 5  ;;  %v2635_v12 = vrot.slane %v2634_v53, 4  ;;  %v2751_v48 = vshll.u32 %v3364_v40, 16  ;;  %v3232_v63 = vld [vmem:[%s4490_s4 + $0x2c] sm:$0xf] }
  0x76   : > { %3735 = vmatprep.subr.msk.bf16.mxu1 %vm370_vm0, %v3214_v3  ;;  %v2639_v3 = vrot.slane %v2637_v54, 5  ;;  %v2762_v4 = vshrl.u32 %v3366_v2, 16  ;;  %v2765_v60 = vshll.u32 %v3366_v2, 16  ;;  %v2644_v26 = vrot.slane %v2642_v61, 4  ;;  %v3368_v45 = vld [vmem:[%s3920_s25 + $0x20] sm:$0xf] }
  0x77   : > { %3597 = vmatmul.mubr.msk.bf16.vlgmr.msra.gmra.mrb[0].mxu0 %vm363_vm2, %v3330_v17  ;;  %v2748_v17 = vshrl.u32 %v3364_v40, 16  ;;  %v2647_v5 = vrot.slane %v2645_v62, 5  ;;  %v2658_v19 = vrot.slane %v2656_v43, 4  ;;  %v2626_v6 = vsel %vm3964_vm4, %v2621_v1, %v2625_v7  ;;  %v3370_v9 = vld [vmem:[%s3920_s25 + $0x28] sm:$0xf] }
  0x78   : > { %3601 = vmatpush3.bf16.msra.mxu0 %v2470_v27  ;;  %3602 = vmatprep.mubr.msk.bf16.mxu0 %vm363_vm2, %v3788_v21  ;;  %v2661_v21 = vrot.slane %v2659_v58, 5  ;;  %v3216_v27 = vcombine.low %v1314_v56, %v1318_v57  ;;  %v2640_v14 = vsel %vm3964_vm4, %v2635_v12, %v2639_v3  ;;  %v2753_v20 = vrot.slane %v2751_v48, 5  ;;  %v3372_v0 = vld [vmem:[%s4490_s4 + $0x5c] sm:$0xf]  ;;  %v3793_v57 = vld [vmem:[%s3914_s18 + $0x18] ss:$8 sps:$4 sm:$0xff]  }
  0x79   : > { %3747 = vmatprep.subr.msk.bf16.mxu0 %vm370_vm0, %v3346_v15  ;;  %v4395_v15 = vld [vmem:[%s3914_s18 + $0x24] sm:$0x1]  ;;  %v2750_v18 = vrot.slane %v2748_v17, 4  ;;  %v2764_v22 = vrot.slane %v2762_v4, 4  ;;  %v2767_v37 = vrot.slane %v2765_v60, 5  ;;  %v1416_v23 = vsel %vm370_vm0, %v3223_v50, 0 }
  0x7a   : > { %v2648_v30 = vor.u32 %v2647_v5, %v2644_v26  ;;  %v2651_v31 = vshll.u32 %v4395_v15, 16  ;;  %v2684_v35 = vsel %vm370_vm0, %v3359_v10, 0  ;;  %v3360_v36 = vcombine.low %v2626_v6, %v2640_v14  ;;  %v3369_v2 = vld [vmem:[%s3920_s25 + $0x24] sm:$0x1]  ;;  %v3794_v1 = vld [vmem:[%s3920_s25 + $0x8] ss:$8 sps:$4 sm:$0xff]  }
  0x7b   : > { %v2754_v38 = vor.u32 %v2753_v20, %v2750_v18  ;;  %v2757_v39 = vshll.u32 %v3365_v25, 16  ;;  %v2768_v41 = vor.u32 %v2767_v37, %v2764_v22  ;;  %v2776_v51 = vshrl.u32 %v3368_v45, 16  ;;  %v3371_v3 = vld [vmem:[%s3920_s25 + $0x2c] sm:$0x1]  ;;  %v3377_v6 = vld [vmem:[%s3914_s18 + $0x10] sm:$0xe] }
  0x7c   : > { %v2649_v29 = vrot.slane %v2648_v30, 4  ;;  %v2779_v24 = vshll.u32 %v3368_v45, 16  ;;  %v2790_v53 = vshrl.u32 %v3370_v9, 16  ;;  %v2793_v54 = vshll.u32 %v3370_v9, 16  ;;  %v3378_v14 = vld [vmem:[%s3914_s18 + $0x18] sm:$0xe] }
  0x7d   : > { %v2755_v8 = vrot.slane %v2754_v38, 4  ;;  %v2759_v55 = vrot.slane %v2757_v39, 5  ;;  %v2778_v61 = vrot.slane %v2776_v51, 4  ;;  %v1496_v17 = vsel %vm370_vm0, %v3232_v63, 0 }
  0x7e   : > { %v2781_v62 = vrot.slane %v2779_v24, 5  ;;  %v2792_v43 = vrot.slane %v2790_v53, 4  ;;  %v2795_v58 = vrot.slane %v2793_v54, 5  ;;  %v2785_v4 = vshll.u32 %v3369_v2, 16 }
  0x7f   : > { %v2760_v7 = vsel %vm3964_vm4, %v2755_v8, %v2759_v55  ;;  %v3381_v37 = vrot.slane %v3377_v6, 9  ;;  %v3382_v25 = vrot.slane %v3378_v14, 9  ;;  %v2895_v38 = vrot.slane %v4395_v15, 5  ;;  %v3390_v15 = vld [vmem:[%s4491_s5] ss:$0 sm:$0xff] }
  0x80   : > { %3531 = vmatmul.mubr.msk.bf16.vlgmr.msra.gmra.mrb[0].mxu1 %vm363_vm2, %v3207_v32  ;;  %v2662_v32 = vor.u32 %v2661_v21, %v2658_v19  ;;  %v2782_v26 = vor.u32 %v2781_v62, %v2778_v61  ;;  %v2796_v5 = vor.u32 %v2795_v58, %v2792_v43  ;;  %v2799_v19 = vshll.u32 %v3371_v3, 16 }
  0x81   : > { %3535 = vmatpush3.bf16.msra.mxu1 %v1334_v34  ;;  %3536 = vmatprep.mubr.msk.bf16.mxu1 %vm363_vm2, %v3215_v44  ;;  %v2665_v34 = vshll.u32 %v4398_v16, 16  ;;  %v2771_v44 = vshll.u32 %v3367_v13, 16  ;;  %v2818_v21 = vsel %vm370_vm0, %v3372_v0, 0  ;;  %v2787_v18 = vrot.slane %v2785_v4, 5 }
  0x82   : > { %3736 = vmatprep.subr.msk.bf16.mxu1 %vm370_vm0, %v3223_v50  ;;  %v2663_v50 = vrot.slane %v2662_v32, 4  ;;  %v2797_v20 = vrot.slane %v2796_v5, 4  ;;  %v2801_v22 = vrot.slane %v2799_v19, 5  ;;  %v2891_v13 = vrot.slane %v4361_v11, 5  ;;  %v3379_v11 = vld [vmem:[%s3914_s18 + $0x20] sm:$0xe] }
  0x83   : > { %3603 = vmatmul.mubr.msk.bf16.vlgmr.msra.gmra.mrb[0].mxu0 %vm363_vm2, %v3789_v49  ;;  %v2653_v49 = vrot.slane %v2651_v31, 5  ;;  %v2773_v56 = vrot.slane %v2771_v44, 5  ;;  %v3383_v42 = vrot.slane %v3379_v11, 9 }
  0x84   : > { %3607 = vmatpush3.bf16.msra.mxu0 %v2550_v28  ;;  %3608 = vmatprep.mubr.msk.bf16.mxu0 %vm363_vm2, %v3790_v52  ;;  %v2667_v52 = vrot.slane %v2665_v34, 5  ;;  %v2769_v28 = vrot.slane %v2768_v41, 4  ;;  %v2802_v30 = vsel %vm3964_vm4, %v2797_v20, %v2801_v22  ;;  %v2892_v32 = vsel %vm4038_vm7, %v3382_v25, %v2891_v13 }
  0x85   : > { %3748 = vmatprep.subr.msk.bf16.mxu0 %vm370_vm0, %v3359_v10  ;;  %v2654_v10 = vsel %vm3964_vm4, %v2649_v29, %v2653_v49  ;;  %v2899_v41 = vrot.slane %v4398_v16, 5  ;;  %v2896_v44 = vsel %vm4038_vm7, %v3383_v42, %v2895_v38 }
  0x86   : > { %v2668_v40 = vsel %vm3964_vm4, %v2663_v50, %v2667_v52  ;;  %v2774_v12 = vsel %vm3964_vm4, %v2769_v28, %v2773_v56 }
  0x87   : > { %v3361_v48 = vcombine.low %v2654_v10, %v2668_v40  ;;  %v3373_v60 = vcombine.low %v2760_v7, %v2774_v12 }
  0x8c   : > { %3537 = vmatmul.mubr.msk.bf16.vlgmr.msra.gmra.mrb[0].mxu1 %vm363_vm2, %v3216_v27  ;;  %v3385_v27 = vld [vmem:[%s4490_s4 + $0x60] sm:$0xf] }
  0x8d   : > { %3541 = vmatpush3.bf16.msra.mxu1 %v1416_v23  ;;  %3542 = vmatprep.mubr.msk.bf16.mxu1 %vm363_vm2, %v3792_v33  ;;  %v2783_v33 = vrot.slane %v2782_v26, 4  ;;  %v2887_v23 = vrot.slane %v4358_v47, 5 }
  0x8e   : > { %3737 = vmatprep.subr.msk.bf16.mxu1 %vm370_vm0, %v3232_v63 }
  0x8f   : > { %3609 = vmatmul.mubr.msk.bf16.vlgmr.msra.gmra.mrb[0].mxu0 %vm363_vm2, %v3791_v59  ;;  %v3795_v59 = vld [vmem:[%s3920_s25 + $0x18] ss:$8 sps:$4 sm:$0xff]   ;;  %v2788_v63 = vsel %vm3964_vm4, %v2783_v33, %v2787_v18  ;;  %v2888_v31 = vsel %vm4038_vm7, %v3381_v37, %v2887_v23 }
  0x90   : > { %3613 = vmatpush3.bf16.msra.mxu0 %v2684_v35  ;;  %3614 = vmatprep.mubr.msk.bf16.mxu0 %vm363_vm2, %v3360_v36  ;;  %v3374_v34 = vcombine.low %v2788_v63, %v2802_v30  ;;  %v3386_v47 = vcombine.low %v2888_v31, %v2892_v32  ;;  %v2916_v35 = vsel %vm370_vm0, %v3385_v27, 0  ;;  %v3380_v36 = vld [vmem:[%s3914_s18 + $0x28] sm:$0xe] }
  0x91   : > { %3749 = vmatprep.subr.msk.bf16.mxu0 %vm370_vm0, %v3372_v0  ;;  %v3384_v39 = vrot.slane %v3380_v36, 9 }
  0x93   : > { %v2900_v45 = vsel %vm4038_vm7, %v3384_v39, %v2899_v41 }
  0x94   : > { %v3387_v9 = vcombine.low %v2896_v44, %v2900_v45 }
  0x98   : > { %3543 = vmatmul.mubr.msk.bf16.vlgmr.msra.gmra.mrb[0].mxu1 %vm363_vm2, %v3793_v57 }
  0x99   : > { %3547 = vmatpush3.bf16.msra.mxu1 %v1496_v17  ;;  %3548 = vmatprep.mubr.msk.bf16.mxu1 %vm363_vm2, %v3794_v1 }
  0x9b   : > { %3615 = vmatmul.mubr.msk.bf16.vlgmr.msra.gmra.mrb[0].mxu0 %vm363_vm2, %v3361_v48 }
  0x9c   : > { %3619 = vmatpush3.bf16.msra.mxu0 %v2818_v21  ;;  %3620 = vmatprep.mubr.msk.bf16.mxu0 %vm363_vm2, %v3373_v60 }
  0x9d   : > { %3750 = vmatprep.subr.msk.bf16.mxu0 %vm370_vm0, %v3385_v27 }
  0xa4   : > { %3549 = vmatmul.mubr.msk.bf16.vlgmr.msra.gmra.mrb[0].mxu1 %vm363_vm2, %v3795_v59 }
  0xa7   : > { %3621 = vmatmul.mubr.msk.bf16.vlgmr.msra.gmra.mrb[0].mxu0 %vm363_vm2, %v3374_v34 }
  0xa8   : > { %3625 = vmatpush3.bf16.msra.mxu0 %v2916_v35  ;;  %3626 = vmatprep.mubr.msk.bf16.mxu0 %vm363_vm2, %v3386_v47 }
  0xb3   : > { %3627 = vmatmul.mubr.msk.bf16.vlgmr.msra.gmra.mrb[0].mxu0 %vm363_vm2, %v3387_v9 }
 0x177   : > { %v3550_v0 = vpop.f32.mrb[0].mxu1 }
 0x178   : > { %v1532_v29 = vpop.f32.mrb[1].mxu1 }
 0x179   : > { %v3551_v49 = vpop.f32.mrb[2].mxu1 }
 0x17a   : > { %v1535_v50 = vpop.f32.mrb[3].mxu1 }
 0x186   : > { %v3628_v52 = vpop.f32.mrb[0].mxu0 }
 0x187   : > { %v3630_v16 = vadd.f32 %v3628_v52, %v3550_v0  ;;  %v2952_v51 = vpop.f32.mrb[1].mxu0 }
 0x188   : > { %v3631_v24 = vadd.f32 %v2952_v51, %v1532_v29  ;;  %v3629_v53 = vpop.f32.mrb[2].mxu0 }
 0x189   : > { %v2980_v54 = vadd.f32 %v3630_v16, %v3390_v15  ;;  %v3632_v46 = vadd.f32 %v3629_v53, %v3551_v49  ;;  %v2955_v8 = vpop.f32.mrb[3].mxu0 }
 0x18a   : > { %v2978_v55 = vadd.f32 %v3631_v24, %v3390_v15  ;;  %v3633_v28 = vadd.f32 %v2955_v8, %v1535_v50 }
 0x18b   : > { %v2988_v56 = vmul.f32 0.2, %v2980_v54  ;;  %v2981_v57 = vadd.f32 %v3632_v46, %v3390_v15  ;;  %vm2984_vm8 = vcmp.ge.f32.partialorder %v2980_v54, 0.0 }
 0x18c   : > { %v2986_v10 = vmul.f32 0.2, %v2978_v55  ;;  %v2979_v40 = vadd.f32 %v3633_v28, %v3390_v15  ;;  %vm2982_vm9 = vcmp.ge.f32.partialorder %v2978_v55, 0.0 }
 0x18d   : > { %vm2985_vm10 = vcmp.ge.f32.partialorder %v2981_v57, 0.0  ;;  %v2989_v2 = vmul.f32 0.2, %v2981_v57  ;;  %v2992_v62 = vsel %vm2984_vm8, %v2980_v54, %v2988_v56 }
 0x18e   : > { %vm2983_vm11 = vcmp.ge.f32.partialorder %v2979_v40, 0.0  ;;  %v2987_v61 = vmul.f32 0.2, %v2979_v40  ;;  %v2990_v58 = vsel %vm2982_vm9, %v2978_v55, %v2986_v10 }
 0x18f   : > { %v2993_v43 = vsel %vm2985_vm10, %v2981_v57, %v2989_v2 }
 0x190   : > { %v3402_v1 = vpack.c.bf16 %v2993_v43, %v2992_v62  ;;  %v2991_v7 = vsel %vm2983_vm11, %v2979_v40, %v2987_v61 }
 0x191   : > { %v3397_v12 = vpack.c.bf16 %v2991_v7, %v2990_v58 }
 0x192   : > { %3404 = vst [vmem:[%s333_s14 + $0x8] sm:$0xff] %v3402_v1  }
 0x193   : > { %3398 = vst [vmem:[%s333_s14] sm:$0xff] %v3397_v12  }
 0x194 PF: > { %s16_s23 = sadd.s32 1, %s3818_s23   ;;  %s4497_s21 = smov %s3814_s22 }
 0x195   : > { %p13_p5 = scmp.ge.s32.totalorder %s16_s23, 4   ;;  %s4498_s22 = smov %s4500_s24 }
 0x197   :  { %15 = sbr.rel (!%p13_p5) target bundleno = 2 (0x2), region = 117 }

// kernel: _discriminator_forward_impl.8
= control target key start
LH: loop header
LB: loop body
LE: loop exit
PB: predicated region body
PF: predicated region fallthrough
CT: control target
= control target key end

     0   :  { %s2937_s21 = smov 0   ;;  %s2939_s22 = smov 0   ;;  %s3347_s0 = inlined_call_operand.vmem [shape: bf16[2,4,10,16], index: 0, kind: input, shape index: {}]   ;;  %s3348_s1 = inlined_call_operand.vmem [shape: bf16[2,4,10,16], index: 1, kind: input, shape index: {}]   ;;  %s3349_s2 = inlined_call_operand.vmem [shape: bf16[2,4,10,16], index: 2, kind: input, shape index: {}]   ;;  %s3350_s3 = inlined_call_operand.vmem [shape: bf16[2,4,10,16], index: 3, kind: input, shape index: {}]   ;;  %s3351_s4 = inlined_call_operand.vmem [shape: bf16[25,16,128], index: 4, kind: input, shape index: {}]   ;;  %s3352_s5 = inlined_call_operand.vmem [shape: f32[1,128], index: 5, kind: input, shape index: {}]   ;;  %s3353_s6 = inlined_call_operand.vmem [shape: bf16[2,2,8,128], index: 6, kind: output, shape index: {}]  }
   0x1   :  { %s2941_s23 = smov 0  }
   0x2 LB: > { %s28_s24 = sadd.s32 1, %s2894_s22  ;;  %p2416_p0 = scmp.ge.s32.totalorder %s2898_s23, 1  ;;  %s2898_s23 = sphi %s2941_s23, %s16_s23   ;;  %s2894_s22 = sphi %s2939_s22, %s3359_s22   ;;  %s2890_s21 = sphi %s2937_s21, %s3358_s21  }
   0x3   : > { %p30_p1 = scmp.ge.s32.totalorder %s28_s24, 2  ;;  %p256_p2 = scmp.lt.s32.totalorder %s2898_s23, 3 }
   0x5   : > { %s3361_s24 = smov (%p30_p1, %s28_s24), 0  ;;  %p257_p3 = pnand %p2416_p0, %p256_p2 }
   0x6   : > { %v2841_v0 = vld [vmem:[%s3351_s4 + $0x8] sm:$0xff] (!%p257_p3)   ;;  %v2900_v1 = vmov (!%p257_p3), 0.0   ;;  %v2842_v2 = vld [vmem:[%s3351_s4] sm:$0xff] (!%p257_p3)   ;;  %vm2901_vm0 = vmmov (!%p257_p3), 0   ;;  %p305_p4 = scmp.lt.s32.totalorder (!%p257_p3), %s2890_s21, 1  ;;  %vm362_vm1 = vcmask (!%p257_p3), 130048  }
   0x7   : > { %260 = sbr.rel (%p257_p3) target bundleno = 343 (0x157), region = 44  ;;  %2665 = vmatprep.subr.bf16.mxu0 (!%p257_p3), %v2900_v1  ;;  %2671 = vmatprep.subr.bf16.mxu1 (!%p257_p3), %v2900_v1  ;;  %v2845_v3 = vld [vmem:[%s3351_s4 + $0x10] sm:$0xff] (!%p257_p3)   ;;  %v2846_v4 = vld [vmem:[%s3351_s4 + $0x18] sm:$0xff] (!%p257_p3)   ;;  %vm466_vm2 = vsmask.f32 (!%p257_p3), 3328  ;;  %vm651_vm4 = vcmask (!%p257_p3), 1042432  }
   0x8   : > { %2666 = vmatpush3.bf16.msra.mxu0 (!%p257_p3), %v2841_v0  ;;  %2667 = vmatprep.mubr.msk.bf16.mxu0 (!%p257_p3), %vm2901_vm0, %v2900_v1  ;;  %vm467_vm3 = vsmask.f32 (!%p257_p3), 7440  ;;  %vm652_vm5 = vcmask (!%p257_p3), 1046532   ;;  %v2847_v49 = vld [vmem:[%s3351_s4 + $0x20] sm:$0xff] (!%p257_p3)   ;;  %v2848_v60 = vld [vmem:[%s3351_s4 + $0x28] sm:$0xff] (!%p257_p3)  }
   0x9   : > { %2672 = vmatpush3.bf16.msra.mxu1 (!%p257_p3), %v2842_v2  ;;  %2673 = vmatprep.mubr.msk.bf16.mxu1 (!%p257_p3), %vm2901_vm0, %v2900_v1  ;;  %vm3019_vm6 = vmor (!%p257_p3), %vm466_vm2, %vm467_vm3 }
   0xa   : > { %2677 = vmatprep.subr.bf16.mxu0 (!%p257_p3), %v2900_v1  ;;  %2683 = vmatprep.subr.bf16.mxu1 (!%p257_p3), %v2900_v1  ;;  %vm3040_vm7 = vmor (!%p257_p3), %vm651_vm4, %vm652_vm5 }
   0xe   : > { %s3363_s21 = smov (!%p305_p4, %s2890_s21), 1 }
   0xf   : > { %s2975_s7 = sshll.u32 %s3363_s21, 5  ;;  %s2609_s10 = sshll.u32 %s3363_s21, 3 }
  0x10   : > { %s2984_s12 = scalar_lea.vmem %s3347_s0, %s2975_s7  ;;  %s2990_s15 = scalar_lea.vmem %s3348_s1, %s2975_s7 }
  0x11   : > { %v2843_v5 = vld [vmem:[%s2990_s15] ss:$8 sps:$4 sm:$0xff]   ;;  %v2997_v8 = vld [vmem:[%s2984_s12 + $0x4] sm:$0x1]  ;;  %v3002_v10 = vld [vmem:[%s2984_s12 + $0xc] sm:$0x1]  ;;  %s3028_s18 = scalar_lea.vmem %s3349_s2, %s2975_s7  ;;  %s3049_s27 = scalar_lea.vmem %s3350_s3, %s2975_s7 }
  0x12   : > { %v2844_v6 = vld [vmem:[%s2984_s12] ss:$8 sps:$4 sm:$0xff]   ;;  %2668 = vmatmul.mubr.msk.bf16.vlgmr.msra.gmra.mrb[0].mxu0 %vm362_vm1, %v2843_v5  ;;  %v479_v13 = vshll.u32 %v2997_v8, 16  ;;  %v493_v16 = vshll.u32 %v3002_v10, 16  ;;  %v556_v18 = vld [vmem:[%s2990_s15 + $0x4] sm:$0x1]  ;;  %s333_s14 = scalar_lea.vmem %s3353_s6, %s2609_s10 }
  0x13   : > { %v462_v7 = vld [vmem:[%s2984_s12] sm:$0xf]  ;;  %v464_v9 = vld [vmem:[%s2984_s12 + $0x8] sm:$0xf]  ;;  %2674 = vmatmul.mubr.msk.bf16.vlgmr.msra.gmra.mrb[0].mxu1 %vm362_vm1, %v2844_v6  ;;  %2678 = vmatpush3.bf16.msra.mxu0 %v2845_v3  ;;  %v558_v26 = vld [vmem:[%s2990_s15 + $0xc] sm:$0x1] }
  0x14   : > { %v470_v11 = vshrl.u32 %v462_v7, 16  ;;  %v473_v12 = vshll.u32 %v462_v7, 16  ;;  %v484_v14 = vshrl.u32 %v464_v9, 16  ;;  %2684 = vmatpush3.bf16.msra.mxu1 %v2846_v4  ;;  %2679 = vmatprep.mubr.msk.bf16.mxu0 %vm2901_vm0, %v2900_v1  ;;  %v487_v15 = vshll.u32 %v464_v9, 16  ;;  %v555_v17 = vld [vmem:[%s2990_s15] sm:$0xf] }
  0x15   : > { %2689 = vmatprep.subr.bf16.mxu0 %v2900_v1  ;;  %v481_v21 = vrot.slane %v479_v13, 5  ;;  %2685 = vmatprep.mubr.msk.bf16.mxu1 %vm2901_vm0, %v2900_v1  ;;  %v557_v23 = vld [vmem:[%s2990_s15 + $0x8] sm:$0xf]  ;;  %v495_v25 = vrot.slane %v493_v16, 5  ;;  %v560_v27 = vshrl.u32 %v555_v17, 16  ;;  %v563_v28 = vshll.u32 %v555_v17, 16 }
  0x16   : > { %v472_v19 = vrot.slane %v470_v11, 4  ;;  %v475_v20 = vrot.slane %v473_v12, 5  ;;  %v486_v22 = vrot.slane %v484_v14, 4  ;;  %v489_v24 = vrot.slane %v487_v15, 5  ;;  %2695 = vmatprep.subr.bf16.mxu1 %v2900_v1  ;;  %v645_v33 = vld [vmem:[%s2984_s12] sm:$0xe] }
  0x17   : > { %v569_v30 = vshll.u32 %v556_v18, 16  ;;  %v574_v31 = vshrl.u32 %v557_v23, 16  ;;  %v577_v32 = vshll.u32 %v557_v23, 16  ;;  %v562_v36 = vrot.slane %v560_v27, 4  ;;  %v646_v39 = vld [vmem:[%s2984_s12 + $0x8] sm:$0xe] }
  0x18   : > { %v476_v29 = vor.u32 %v475_v20, %v472_v19  ;;  %v490_v35 = vor.u32 %v489_v24, %v486_v22  ;;  %v565_v37 = vrot.slane %v563_v28, 5  ;;  %v583_v38 = vshll.u32 %v558_v26, 16  ;;  %v848_v0 = vld [vmem:[%s3028_s18] sm:$0xf]  ;;  %v3065_v2 = vld [vmem:[%s3028_s18 + $0x4] sm:$0x1] }
  0x19   : > { %v571_v41 = vrot.slane %v569_v30, 5  ;;  %v576_v42 = vrot.slane %v574_v31, 4  ;;  %v579_v43 = vrot.slane %v577_v32, 5  ;;  %v2445_v47 = vrot.slane %v645_v33, 9  ;;  %v850_v3 = vld [vmem:[%s3028_s18 + $0x8] sm:$0xf] }
  0x1a   : > { %v477_v40 = vrot.slane %v476_v29, 4  ;;  %v491_v44 = vrot.slane %v490_v35, 4  ;;  %v566_v45 = vor.u32 %v565_v37, %v562_v36  ;;  %v585_v46 = vrot.slane %v583_v38, 5  ;;  %v3071_v5 = vld [vmem:[%s3028_s18 + $0xc] sm:$0x1]  ;;  %v2849_v15 = vld [vmem:[%s3351_s4 + $0x30] sm:$0xff]  }
  0x1b   : > { %v580_v50 = vor.u32 %v579_v43, %v576_v42  ;;  %v656_v51 = vrot.slane %v2997_v8, 5  ;;  %v2446_v52 = vrot.slane %v646_v39, 9  ;;  %v660_v56 = vrot.slane %v3002_v10, 5  ;;  %v938_v19 = vld [vmem:[%s3049_s27] sm:$0xf]  ;;  %v2851_v33 = vld [vmem:[%s3351_s4 + $0x38] sm:$0xff]  }
  0x1c   : > { %v482_v48 = vsel %vm3019_vm6, %v477_v40, %v481_v21  ;;  %v496_v53 = vsel %vm3019_vm6, %v491_v44, %v495_v25  ;;  %v567_v54 = vrot.slane %v566_v45, 4  ;;  %v853_v6 = vshrl.u32 %v848_v0, 16  ;;  %v2850_v20 = vld [vmem:[%s3028_s18] ss:$8 sps:$4 sm:$0xff]   ;;  %v939_v22 = vld [vmem:[%s3049_s27 + $0x4] sm:$0x1] }
  0x1d   : > { %v2437_v57 = vcombine.low %v482_v48, %v496_v53  ;;  %v581_v58 = vrot.slane %v580_v50, 4  ;;  %v657_v62 = vsel %vm3040_vm7, %v2445_v47, %v656_v51  ;;  %v661_v63 = vsel %vm3040_vm7, %v2446_v52, %v660_v56  ;;  %v940_v23 = vld [vmem:[%s3049_s27 + $0x8] sm:$0xf]  ;;  %v941_v24 = vld [vmem:[%s3049_s27 + $0xc] sm:$0x1]  ;;  %v2853_v44 = vld [vmem:[%s3351_s4 + $0x40] sm:$0xff]  }
  0x1e   : > { %v572_v59 = vsel %vm3019_vm6, %v567_v54, %v571_v41  ;;  %v856_v7 = vshll.u32 %v848_v0, 16  ;;  %v862_v8 = vshll.u32 %v3065_v2, 16  ;;  %v867_v9 = vshrl.u32 %v850_v3, 16  ;;  %v2852_v41 = vld [vmem:[%s3049_s27] ss:$8 sps:$4 sm:$0xff]  }
  0x1f   : > { %2680 = vmatmul.mubr.msk.bf16.vlgmr.msra.gmra.mrb[4].mxu0 %vm362_vm1, %v2437_v57  ;;  %v586_v61 = vsel %vm3019_vm6, %v581_v58, %v585_v46  ;;  %v870_v10 = vshll.u32 %v850_v3, 16  ;;  %v876_v11 = vshll.u32 %v3071_v5, 16  ;;  %v855_v12 = vrot.slane %v853_v6, 4  ;;  %v1028_v43 = vld [vmem:[%s3028_s18] sm:$0xe] }
  0x20   : > { %2690 = vmatpush3.bf16.msra.mxu0 %v2847_v49  ;;  %v2442_v4 = vcombine.low %v572_v59, %v586_v61  ;;  %2691 = vmatprep.mubr.msk.bf16.mxu0 %vm2901_vm0, %v2900_v1  ;;  %v858_v13 = vrot.slane %v856_v7, 5  ;;  %v2449_v14 = vcombine.low %v657_v62, %v661_v63  ;;  %v864_v16 = vrot.slane %v862_v8, 5  ;;  %v1029_v50 = vld [vmem:[%s3028_s18 + $0x8] sm:$0xe]  ;;  %v3133_v8 = vld [vmem:[%s2984_s12 + $0xc] sm:$0x1] }
  0x21   : > { %2701 = vmatprep.subr.bf16.mxu0 %v2900_v1  ;;  %v869_v17 = vrot.slane %v867_v9, 4  ;;  %v872_v18 = vrot.slane %v870_v10, 5  ;;  %v878_v26 = vrot.slane %v876_v11, 5  ;;  %v943_v27 = vshrl.u32 %v938_v19, 16  ;;  %v2493_v59 = vld [vmem:[%s2984_s12 + $0x8] sm:$0xf] }
  0x22   : > { %2686 = vmatmul.mubr.msk.bf16.vlgmr.msra.gmra.mrb[4].mxu1 %vm362_vm1, %v2442_v4  ;;  %v859_v21 = vor.u32 %v858_v13, %v855_v12  ;;  %v946_v28 = vshll.u32 %v938_v19, 16  ;;  %v952_v29 = vshll.u32 %v939_v22, 16  ;;  %v957_v30 = vshrl.u32 %v940_v23, 16  ;;  %v2854_v61 = vld [vmem:[%s3351_s4 + $0x48] sm:$0xff]   ;;  %v3139_v11 = vld [vmem:[%s2984_s12 + $0x14] sm:$0x1] }
  0x23   : > { %2696 = vmatpush3.bf16.msra.mxu1 %v2848_v60  ;;  %2697 = vmatprep.mubr.msk.bf16.mxu1 %vm2901_vm0, %v2900_v1  ;;  %v873_v25 = vor.u32 %v872_v18, %v869_v17  ;;  %v960_v31 = vshll.u32 %v940_v23, 16  ;;  %v966_v32 = vshll.u32 %v941_v24, 16  ;;  %v945_v37 = vrot.slane %v943_v27, 4  ;;  %v2495_v60 = vld [vmem:[%s2984_s12 + $0x10] sm:$0xf]  ;;  %v2856_v22 = vld [vmem:[%s3351_s4 + $0x58] sm:$0xff]  }
  0x24   : > { %2707 = vmatprep.subr.bf16.mxu1 %v2900_v1  ;;  %v860_v35 = vrot.slane %v859_v21, 4  ;;  %v948_v38 = vrot.slane %v946_v28, 5  ;;  %v959_v39 = vrot.slane %v957_v30, 4  ;;  %v954_v45 = vrot.slane %v952_v29, 5  ;;  %v2502_v9 = vld [vmem:[%s2990_s15 + $0x8] sm:$0xf] }
  0x25   : > { %v874_v36 = vrot.slane %v873_v25, 4  ;;  %v962_v40 = vrot.slane %v960_v31, 5  ;;  %v968_v47 = vrot.slane %v966_v32, 5  ;;  %v1036_v53 = vrot.slane %v3065_v2, 5  ;;  %v2503_v27 = vld [vmem:[%s2990_s15 + $0xc] sm:$0x1] }
  0x26   : > { %v949_v42 = vor.u32 %v948_v38, %v945_v37  ;;  %v865_v48 = vsel %vm3019_vm6, %v860_v35, %v864_v16  ;;  %v1040_v54 = vrot.slane %v3071_v5, 5  ;;  %v2472_v57 = vrot.slane %v1028_v43, 9  ;;  %v2855_v5 = vld [vmem:[%s3351_s4 + $0x50] sm:$0xff]   ;;  %v2858_v35 = vld [vmem:[%s3351_s4 + $0x60] sm:$0xff]  }
  0x27   : > { %2692 = vmatmul.mubr.msk.bf16.vlgmr.msra.gmra.mrb[8].mxu0 %vm362_vm1, %v2449_v14  ;;  %v963_v46 = vor.u32 %v962_v40, %v959_v39  ;;  %v879_v49 = vsel %vm3019_vm6, %v874_v36, %v878_v26  ;;  %v2473_v58 = vrot.slane %v1029_v50, 9  ;;  %v1235_v62 = vshrl.u32 %v2493_v59, 16  ;;  %v2504_v14 = vld [vmem:[%s2990_s15 + $0x10] sm:$0xf]  ;;  %v2505_v28 = vld [vmem:[%s2990_s15 + $0x14] sm:$0x1] }
  0x28   : > { %2702 = vmatpush3.bf16.msra.mxu0 %v2849_v15  ;;  %2703 = vmatprep.mubr.msk.bf16.mxu0 %vm2901_vm0, %v2900_v1  ;;  %v950_v51 = vrot.slane %v949_v42, 4  ;;  %v2464_v56 = vcombine.low %v865_v48, %v879_v49  ;;  %v1238_v63 = vshll.u32 %v2493_v59, 16  ;;  %v1249_v3 = vshrl.u32 %v2495_v60, 16  ;;  %v2534_v49 = vld [vmem:[%s3028_s18 + $0x8] sm:$0xf]  ;;  %v2861_v59 = vld [vmem:[%s3351_s4 + $0x70] sm:$0xff]  }
  0x29   : > { %2713 = vmatprep.subr.bf16.mxu0 %v2900_v1  ;;  %v964_v52 = vrot.slane %v963_v46, 4  ;;  %v1252_v4 = vshll.u32 %v2495_v60, 16  ;;  %v1037_v6 = vsel %vm3040_vm7, %v2472_v57, %v1036_v53  ;;  %v1041_v7 = vsel %vm3040_vm7, %v2473_v58, %v1040_v54  ;;  %v2860_v50 = vld [vmem:[%s3351_s4 + $0x68] sm:$0xff]  }
  0x2a   : > { %2698 = vmatmul.mubr.msk.bf16.vlgmr.msra.gmra.mrb[8].mxu1 %vm362_vm1, %v2850_v20  ;;  %v955_v0 = vsel %vm3019_vm6, %v950_v51, %v954_v45  ;;  %v1237_v12 = vrot.slane %v1235_v62, 4  ;;  %v1240_v13 = vrot.slane %v1238_v63, 5  ;;  %v1251_v15 = vrot.slane %v1249_v3, 4  ;;  %v2536_v51 = vld [vmem:[%s3028_s18 + $0x10] sm:$0xf] }
  0x2b   : > { %2708 = vmatpush3.bf16.msra.mxu1 %v2851_v33  ;;  %2709 = vmatprep.mubr.msk.bf16.mxu1 %vm2901_vm0, %v2900_v1  ;;  %v969_v2 = vsel %vm3019_vm6, %v964_v52, %v968_v47  ;;  %v1254_v16 = vrot.slane %v1252_v4, 5  ;;  %v1325_v17 = vshrl.u32 %v2502_v9, 16  ;;  %v1328_v18 = vshll.u32 %v2502_v9, 16  ;;  %v2857_v33 = vld [vmem:[%s2984_s12 + $0x8] ss:$8 sps:$4 sm:$0xff]  }
  0x2c   : > { %2719 = vmatprep.subr.bf16.mxu1 %v2900_v1  ;;  %v2469_v10 = vcombine.low %v955_v0, %v969_v2  ;;  %v2476_v19 = vcombine.low %v1037_v6, %v1041_v7  ;;  %v1339_v20 = vshrl.u32 %v2504_v14, 16  ;;  %v1342_v21 = vshll.u32 %v2504_v14, 16  ;;  %v2511_v54 = vld [vmem:[%s2984_s12 + $0x8] sm:$0xe]  ;;  %v2545_v7 = vld [vmem:[%s3049_s27 + $0x10] sm:$0xf] }
  0x2d   : > { %v1244_v23 = vshll.u32 %v3133_v8, 16  ;;  %v1258_v24 = vshll.u32 %v3139_v11, 16  ;;  %v1327_v25 = vrot.slane %v1325_v17, 4  ;;  %v1330_v26 = vrot.slane %v1328_v18, 5  ;;  %v2543_v4 = vld [vmem:[%s3049_s27 + $0x8] sm:$0xf] }
  0x2e   : > { %v1341_v29 = vrot.slane %v1339_v20, 4  ;;  %v1344_v30 = vrot.slane %v1342_v21, 5  ;;  %v1241_v31 = vor.u32 %v1240_v13, %v1237_v12  ;;  %v1255_v32 = vor.u32 %v1254_v16, %v1251_v15  ;;  %v3197_v12 = vld [vmem:[%s3028_s18 + $0x14] sm:$0x1] }
  0x2f   : > { %2704 = vmatmul.mubr.msk.bf16.vlgmr.msra.gmra.mrb[12].mxu0 %vm362_vm1, %v2852_v41  ;;  %v1331_v36 = vor.u32 %v1330_v26, %v1327_v25  ;;  %v1334_v37 = vshll.u32 %v2503_v27, 16  ;;  %v1348_v39 = vshll.u32 %v2505_v28, 16  ;;  %v1246_v40 = vrot.slane %v1244_v23, 5 }
  0x30   : > { %2714 = vmatpush3.bf16.msra.mxu0 %v2853_v44  ;;  %2715 = vmatprep.mubr.msk.bf16.mxu0 %vm2901_vm0, %v2900_v1  ;;  %v1345_v38 = vor.u32 %v1344_v30, %v1341_v29  ;;  %v1260_v41 = vrot.slane %v1258_v24, 5  ;;  %v1242_v42 = vrot.slane %v1241_v31, 4  ;;  %v1256_v43 = vrot.slane %v1255_v32, 4  ;;  %v2859_v44 = vld [vmem:[%s2990_s15 + $0x8] ss:$8 sps:$4 sm:$0xff]   ;;  %v2863_v32 = vld [vmem:[%s3351_s4 + $0x80] sm:$0xff]  }
  0x31   : > { %2725 = vmatprep.subr.bf16.mxu0 %v2900_v1  ;;  %v1332_v45 = vrot.slane %v1331_v36, 4  ;;  %v1336_v46 = vrot.slane %v1334_v37, 5  ;;  %v1350_v48 = vrot.slane %v1348_v39, 5  ;;  %v1615_v57 = vshrl.u32 %v2534_v49, 16  ;;  %v2544_v24 = vld [vmem:[%s3049_s27 + $0xc] sm:$0x1] }
  0x32   : > { %2710 = vmatmul.mubr.msk.bf16.vlgmr.msra.gmra.mrb[12].mxu1 %vm362_vm1, %v2464_v56  ;;  %v1346_v47 = vrot.slane %v1345_v38, 4  ;;  %v1247_v52 = vsel %vm3019_vm6, %v1242_v42, %v1246_v40  ;;  %v1261_v53 = vsel %vm3019_vm6, %v1256_v43, %v1260_v41  ;;  %v2512_v56 = vld [vmem:[%s2984_s12 + $0x10] sm:$0xe]  ;;  %v1618_v58 = vshll.u32 %v2534_v49, 16  ;;  %v2865_v40 = vld [vmem:[%s3351_s4 + $0x88] sm:$0xff]  }
  0x33   : > { %2720 = vmatpush3.bf16.msra.mxu1 %v2854_v61  ;;  %2721 = vmatprep.mubr.msk.bf16.mxu1 %vm2901_vm0, %v2900_v1  ;;  %v1337_v60 = vsel %vm3019_vm6, %v1332_v45, %v1336_v46  ;;  %v1629_v62 = vshrl.u32 %v2536_v51, 16  ;;  %v1632_v63 = vshll.u32 %v2536_v51, 16  ;;  %v2499_v0 = vcombine.low %v1247_v52, %v1261_v53  ;;  %v2866_v45 = vld [vmem:[%s3049_s27 + $0x8] ss:$8 sps:$4 sm:$0xff]  }
  0x34   : > { %2731 = vmatprep.subr.bf16.mxu1 %v2900_v1  ;;  %v1351_v61 = vsel %vm3019_vm6, %v1346_v47, %v1350_v48  ;;  %v1418_v2 = vrot.slane %v3133_v8, 5  ;;  %v1422_v3 = vrot.slane %v3139_v11, 5  ;;  %v2514_v6 = vrot.slane %v2512_v56, 9  ;;  %v2862_v8 = vld [vmem:[%s3351_s4 + $0x78] sm:$0xff]   ;;  %v2552_v48 = vld [vmem:[%s3028_s18 + $0x8] sm:$0xe] }
  0x35   : > { %v2508_v9 = vcombine.low %v1337_v60, %v1351_v61  ;;  %v1617_v13 = vrot.slane %v1615_v57, 4  ;;  %v1620_v14 = vrot.slane %v1618_v58, 5  ;;  %v1631_v15 = vrot.slane %v1629_v62, 4  ;;  %v2553_v53 = vld [vmem:[%s3028_s18 + $0x10] sm:$0xe] }
  0x36   : > { %v1634_v11 = vrot.slane %v1632_v63, 5  ;;  %v1705_v16 = vshrl.u32 %v2543_v4, 16  ;;  %v1708_v17 = vshll.u32 %v2543_v4, 16  ;;  %v1719_v18 = vshrl.u32 %v2545_v7, 16  ;;  %v2575_v56 = vld [vmem:[%s2984_s12 + $0x10] sm:$0xf] }
  0x37   : > { %2716 = vmatmul.mubr.msk.bf16.vlgmr.msra.gmra.mrb[16].mxu0 %vm362_vm1, %v2469_v10  ;;  %v3194_v10 = vld [vmem:[%s3028_s18 + $0xc] sm:$0x1]  ;;  %v1423_v21 = vsel %vm3040_vm7, %v2514_v6, %v1422_v3  ;;  %v1638_v23 = vshll.u32 %v3197_v12, 16  ;;  %v1621_v25 = vor.u32 %v1620_v14, %v1617_v13  ;;  %v1714_v39 = vshll.u32 %v2544_v24, 16  ;;  %v2577_v58 = vld [vmem:[%s2984_s12 + $0x18] sm:$0xf] }
  0x38   : > { %2726 = vmatpush3.bf16.msra.mxu0 %v2855_v5  ;;  %2727 = vmatprep.mubr.msk.bf16.mxu0 %vm2901_vm0, %v2900_v1  ;;  %v2513_v5 = vrot.slane %v2511_v54, 9  ;;  %v1707_v26 = vrot.slane %v1705_v16, 4  ;;  %v1710_v27 = vrot.slane %v1708_v17, 5  ;;  %v1635_v29 = vor.u32 %v1634_v11, %v1631_v15  ;;  %v2867_v54 = vld [vmem:[%s3351_s4 + $0x90] sm:$0xff]   ;;  %v2868_v63 = vld [vmem:[%s3351_s4 + $0x98] sm:$0xff]   ;;  %v2869_v16 = vld [vmem:[%s3351_s4 + $0xa0] sm:$0xff]  }
  0x39   : > { %2737 = vmatprep.subr.bf16.mxu0 %v2900_v1  ;;  %v1721_v30 = vrot.slane %v1719_v18, 4  ;;  %v1622_v36 = vrot.slane %v1621_v25, 4  ;;  %v1640_v38 = vrot.slane %v1638_v23, 5  ;;  %v1716_v47 = vrot.slane %v1714_v39, 5  ;;  %v2870_v24 = vld [vmem:[%s3351_s4 + $0xa8] sm:$0xff]  }
  0x3a   : > { %2722 = vmatmul.mubr.msk.bf16.vlgmr.msra.gmra.mrb[16].mxu1 %vm362_vm1, %v2476_v19  ;;  %v1722_v19 = vshll.u32 %v2545_v7, 16  ;;  %v1419_v20 = vsel %vm3040_vm7, %v2513_v5, %v1418_v2  ;;  %v1636_v41 = vrot.slane %v1635_v29, 4  ;;  %v1711_v42 = vor.u32 %v1710_v27, %v1707_v26  ;;  %v2584_v7 = vld [vmem:[%s2990_s15 + $0x10] sm:$0xf] }
  0x3b   : > { %2732 = vmatpush3.bf16.msra.mxu1 %v2856_v22  ;;  %2733 = vmatprep.mubr.msk.bf16.mxu1 %vm2901_vm0, %v2900_v1  ;;  %v1624_v22 = vshll.u32 %v3194_v10, 16  ;;  %v2517_v28 = vcombine.low %v1419_v20, %v1423_v21  ;;  %v1798_v57 = vrot.slane %v3194_v10, 5  ;;  %v2554_v60 = vrot.slane %v2552_v48, 9  ;;  %v3272_v21 = vld [vmem:[%s2984_s12 + $0x14] sm:$0x1] }
  0x3c   : > { %2743 = vmatprep.subr.bf16.mxu1 %v2900_v1  ;;  %v1724_v31 = vrot.slane %v1722_v19, 5  ;;  %v1641_v49 = vsel %vm3019_vm6, %v1636_v41, %v1640_v38  ;;  %v2555_v61 = vrot.slane %v2553_v53, 9  ;;  %v1802_v62 = vrot.slane %v3197_v12, 5  ;;  %v2872_v41 = vld [vmem:[%s3351_s4 + $0xb0] sm:$0xff]  }
  0x3d   : > { %v1626_v37 = vrot.slane %v1624_v22, 5  ;;  %v1997_v3 = vshrl.u32 %v2575_v56, 16  ;;  %v2000_v4 = vshll.u32 %v2575_v56, 16  ;;  %v2011_v5 = vshrl.u32 %v2577_v58, 16  ;;  %v3275_v22 = vld [vmem:[%s2984_s12 + $0x1c] sm:$0x1] }
  0x3e   : > { %v1725_v43 = vor.u32 %v1724_v31, %v1721_v30  ;;  %v2014_v6 = vshll.u32 %v2577_v58, 16  ;;  %v1799_v12 = vsel %vm3040_vm7, %v2554_v60, %v1798_v57  ;;  %v1803_v13 = vsel %vm3040_vm7, %v2555_v61, %v1802_v62  ;;  %v2594_v56 = vld [vmem:[%s2984_s12 + $0x18] sm:$0xe]  ;;  %v2875_v60 = vld [vmem:[%s3351_s4 + $0xc0] sm:$0xff]  }
  0x3f   : > { %2728 = vmatmul.mubr.msk.bf16.vlgmr.msra.gmra.mrb[20].mxu0 %vm362_vm1, %v2857_v33  ;;  %v2546_v33 = vld [vmem:[%s3049_s27 + $0x14] sm:$0x1]  ;;  %v1627_v46 = vsel %vm3019_vm6, %v1622_v36, %v1626_v37  ;;  %v2087_v14 = vshrl.u32 %v2584_v7, 16  ;;  %v1999_v17 = vrot.slane %v1997_v3, 4  ;;  %v2002_v18 = vrot.slane %v2000_v4, 5 }
  0x40   : > { %2738 = vmatpush3.bf16.msra.mxu0 %v2858_v35  ;;  %2739 = vmatprep.mubr.msk.bf16.mxu0 %vm2901_vm0, %v2900_v1  ;;  %v2864_v35 = vld [vmem:[%s3028_s18 + $0x8] ss:$8 sps:$4 sm:$0xff]   ;;  %v1726_v51 = vrot.slane %v1725_v43, 4  ;;  %v2013_v19 = vrot.slane %v2011_v5, 4  ;;  %v2016_v20 = vrot.slane %v2014_v6, 5  ;;  %v2558_v23 = vcombine.low %v1799_v12, %v1803_v13 }
  0x41   : > { %2749 = vmatprep.subr.bf16.mxu0 %v2900_v1  ;;  %v2089_v25 = vrot.slane %v2087_v14, 4  ;;  %v2003_v29 = vor.u32 %v2002_v18, %v1999_v17  ;;  %v2006_v30 = vshll.u32 %v3272_v21, 16  ;;  %v2871_v36 = vld [vmem:[%s2984_s12 + $0x10] ss:$8 sps:$4 sm:$0xff]   ;;  %v2180_v62 = vrot.slane %v3272_v21, 5 }
  0x42   : > { %2734 = vmatmul.mubr.msk.bf16.vlgmr.msra.gmra.mrb[20].mxu1 %vm362_vm1, %v2859_v44  ;;  %v1728_v44 = vshll.u32 %v2546_v33, 16  ;;  %v2017_v31 = vor.u32 %v2016_v20, %v2013_v19  ;;  %v2585_v33 = vld [vmem:[%s2990_s15 + $0x14] sm:$0x1] }
  0x43   : > { %2744 = vmatpush3.bf16.msra.mxu1 %v2860_v50  ;;  %2745 = vmatprep.mubr.msk.bf16.mxu1 %vm2901_vm0, %v2900_v1  ;;  %v1712_v50 = vrot.slane %v1711_v42, 4  ;;  %v2096_v38 = vshll.u32 %v2585_v33, 16  ;;  %v2004_v42 = vrot.slane %v2003_v29, 4  ;;  %v2008_v43 = vrot.slane %v2006_v30, 5 }
  0x44   : > { %2755 = vmatprep.subr.bf16.mxu1 %v2900_v1  ;;  %v1730_v52 = vrot.slane %v1728_v44, 5  ;;  %v2018_v44 = vrot.slane %v2017_v31, 4 }
  0x46   : > { %v1731_v2 = vsel %vm3019_vm6, %v1726_v51, %v1730_v52  ;;  %v2009_v52 = vsel %vm3019_vm6, %v2004_v42, %v2008_v43 }
  0x47   : > { %2740 = vmatmul.mubr.msk.bf16.vlgmr.msra.gmra.mrb[24].mxu0 %vm362_vm1, %v2499_v0  ;;  %v1717_v0 = vsel %vm3019_vm6, %v1712_v50, %v1716_v47  ;;  %v2874_v47 = vld [vmem:[%s3351_s4 + $0xb8] sm:$0xff]  }
  0x48   : > { %2750 = vmatpush3.bf16.msra.mxu0 %v2861_v59  ;;  %2751 = vmatprep.mubr.msk.bf16.mxu0 %vm2901_vm0, %v2900_v1  ;;  %v2540_v59 = vcombine.low %v1627_v46, %v1641_v49  ;;  %v2549_v10 = vcombine.low %v1717_v0, %v1731_v2  ;;  %v2873_v46 = vld [vmem:[%s2990_s15 + $0x10] ss:$8 sps:$4 sm:$0xff]   ;;  %v2098_v49 = vrot.slane %v2096_v38, 5  ;;  %v2184_v0 = vrot.slane %v3275_v22, 5 }
  0x49   : > { %2761 = vmatprep.subr.bf16.mxu0 %v2900_v1 }
  0x4a   : > { %2746 = vmatmul.mubr.msk.bf16.vlgmr.msra.gmra.mrb[24].mxu1 %vm362_vm1, %v2508_v9  ;;  %v2586_v9 = vld [vmem:[%s2990_s15 + $0x18] sm:$0xf] }
  0x4b   : > { %2756 = vmatpush3.bf16.msra.mxu1 %v2862_v8  ;;  %2757 = vmatprep.mubr.msk.bf16.mxu1 %vm2901_vm0, %v2900_v1  ;;  %v2090_v8 = vshll.u32 %v2584_v7, 16  ;;  %v2101_v15 = vshrl.u32 %v2586_v9, 16  ;;  %v2104_v11 = vshll.u32 %v2586_v9, 16 }
  0x4c   : > { %2767 = vmatprep.subr.bf16.mxu1 %v2900_v1 }
  0x4d   : > { %v2092_v26 = vrot.slane %v2090_v8, 5  ;;  %v2103_v27 = vrot.slane %v2101_v15, 4 }
  0x4f   : > { %2752 = vmatmul.mubr.msk.bf16.vlgmr.msra.gmra.mrb[28].mxu0 %vm362_vm1, %v2517_v28  ;;  %v2106_v28 = vrot.slane %v2104_v11, 5  ;;  %v2093_v37 = vor.u32 %v2092_v26, %v2089_v25 }
  0x50   : > { %2762 = vmatpush3.bf16.msra.mxu0 %v2863_v32  ;;  %2763 = vmatprep.mubr.msk.bf16.mxu0 %vm2901_vm0, %v2900_v1  ;;  %v2020_v32 = vshll.u32 %v3275_v22, 16 }
  0x51   : > { %2773 = vmatprep.subr.bf16.mxu0 %v2900_v1  ;;  %v2107_v39 = vor.u32 %v2106_v28, %v2103_v27  ;;  %v2094_v48 = vrot.slane %v2093_v37, 4 }
  0x52   : > { %2758 = vmatmul.mubr.msk.bf16.vlgmr.msra.gmra.mrb[28].mxu1 %vm362_vm1, %v2864_v35  ;;  %v2587_v35 = vld [vmem:[%s2990_s15 + $0x1c] sm:$0x1] }
  0x53   : > { %2768 = vmatpush3.bf16.msra.mxu1 %v2865_v40  ;;  %2769 = vmatprep.mubr.msk.bf16.mxu1 %vm2901_vm0, %v2900_v1  ;;  %v2110_v40 = vshll.u32 %v2587_v35, 16  ;;  %v2108_v50 = vrot.slane %v2107_v39, 4  ;;  %v2099_v58 = vsel %vm3019_vm6, %v2094_v48, %v2098_v49 }
  0x54   : > { %2779 = vmatprep.subr.bf16.mxu1 %v2900_v1 }
  0x55   : > { %v2112_v51 = vrot.slane %v2110_v40, 5 }
  0x57   : > { %2764 = vmatmul.mubr.msk.bf16.vlgmr.msra.gmra.mrb[32].mxu0 %vm362_vm1, %v2866_v45  ;;  %v2022_v45 = vrot.slane %v2020_v32, 5 }
  0x58   : > { %2774 = vmatpush3.bf16.msra.mxu0 %v2867_v54  ;;  %2775 = vmatprep.mubr.msk.bf16.mxu0 %vm2901_vm0, %v2900_v1  ;;  %v2593_v54 = vld [vmem:[%s2984_s12 + $0x10] sm:$0xe] }
  0x59   : > { %2785 = vmatprep.subr.bf16.mxu0 %v2900_v1  ;;  %v2023_v53 = vsel %vm3019_vm6, %v2018_v44, %v2022_v45  ;;  %v2595_v61 = vrot.slane %v2593_v54, 9 }
  0x5a   : > { %2770 = vmatmul.mubr.msk.bf16.vlgmr.msra.gmra.mrb[32].mxu1 %vm362_vm1, %v2540_v59  ;;  %v2581_v57 = vcombine.low %v2009_v52, %v2023_v53  ;;  %v2113_v59 = vsel %vm3019_vm6, %v2108_v50, %v2112_v51 }
  0x5b   : > { %2780 = vmatpush3.bf16.msra.mxu1 %v2868_v63  ;;  %2781 = vmatprep.mubr.msk.bf16.mxu1 %vm2901_vm0, %v2900_v1  ;;  %v2596_v63 = vrot.slane %v2594_v56, 9  ;;  %v2590_v2 = vcombine.low %v2099_v58, %v2113_v59  ;;  %v2181_v34 = vsel %vm3040_vm7, %v2595_v61, %v2180_v62 }
  0x5c   : > { %2791 = vmatprep.subr.bf16.mxu1 %v2900_v1 }
  0x5d   : > { %v2185_v3 = vsel %vm3040_vm7, %v2596_v63, %v2184_v0 }
  0x5e   : > { %v2599_v4 = vcombine.low %v2181_v34, %v2185_v3 }
  0x5f   : > { %2776 = vmatmul.mubr.msk.bf16.vlgmr.msra.gmra.mrb[36].mxu0 %vm362_vm1, %v2549_v10 }
  0x60   : > { %2786 = vmatpush3.bf16.msra.mxu0 %v2869_v16  ;;  %2787 = vmatprep.mubr.msk.bf16.mxu0 %vm2901_vm0, %v2900_v1 }
  0x61   : > { %2797 = vmatprep.subr.bf16.mxu0 %v2900_v1 }
  0x62   : > { %2782 = vmatmul.mubr.msk.bf16.vlgmr.msra.gmra.mrb[36].mxu1 %vm362_vm1, %v2558_v23 }
  0x63   : > { %2792 = vmatpush3.bf16.msra.mxu1 %v2870_v24  ;;  %2793 = vmatprep.mubr.msk.bf16.mxu1 %vm2901_vm0, %v2900_v1 }
  0x64   : > { %2803 = vmatprep.subr.bf16.mxu1 %v2900_v1 }
  0x67   : > { %2788 = vmatmul.mubr.msk.bf16.vlgmr.msra.gmra.mrb[40].mxu0 %vm362_vm1, %v2871_v36 }
  0x68   : > { %2798 = vmatpush3.bf16.msra.mxu0 %v2872_v41  ;;  %2799 = vmatprep.mubr.msk.bf16.mxu0 %vm2901_vm0, %v2900_v1 }
  0x69   : > { %2809 = vmatprep.subr.bf16.mxu0 %v2900_v1 }
  0x6a   : > { %2794 = vmatmul.mubr.msk.bf16.vlgmr.msra.gmra.mrb[40].mxu1 %vm362_vm1, %v2873_v46 }
  0x6b   : > { %2804 = vmatpush3.bf16.msra.mxu1 %v2874_v47  ;;  %2805 = vmatprep.mubr.msk.bf16.mxu1 %vm2901_vm0, %v2900_v1 }
  0x6f   : > { %2800 = vmatmul.mubr.msk.bf16.vlgmr.msra.gmra.mrb[44].mxu0 %vm362_vm1, %v2581_v57 }
  0x70   : > { %2810 = vmatpush3.bf16.msra.mxu0 %v2875_v60  ;;  %2811 = vmatprep.mubr.msk.bf16.mxu0 %vm2901_vm0, %v2900_v1 }
  0x72   : > { %2806 = vmatmul.mubr.msk.bf16.vlgmr.msra.gmra.mrb[44].mxu1 %vm362_vm1, %v2590_v2 }
  0x77   : > { %2812 = vmatmul.mubr.msk.bf16.vlgmr.msra.gmra.mrb[48].mxu0 %vm362_vm1, %v2599_v4 }
  0xe5   : > { %v400_v5 = vpop.f32.mrb[0].mxu0 }
  0xe6   : > { %v455_v6 = vpop.f32.mrb[0].mxu1  ;;  %v2669_v7 = vpop.f32.mrb[1].mxu0 }
  0xe7   : > { %v456_v9 = vadd.f32 %v455_v6, %v400_v5  ;;  %v2675_v10 = vpop.f32.mrb[1].mxu1  ;;  %v403_v12 = vpop.f32.mrb[2].mxu0 }
  0xe8   : > { %v458_v13 = vpop.f32.mrb[2].mxu1  ;;  %v2670_v14 = vpop.f32.mrb[3].mxu0 }
  0xe9   : > { %v459_v1 = vadd.f32 %v458_v13, %v403_v12  ;;  %v2676_v8 = vpop.f32.mrb[3].mxu1 }
  0xf2   : > { %v546_v15 = vpop.f32.mrb[4].mxu0 }
  0xf3   : > { %v553_v11 = vadd.f32 %v546_v15, %v456_v9  ;;  %v2681_v16 = vpop.f32.mrb[5].mxu0 }
  0xf4   : > { %v549_v55 = vpop.f32.mrb[6].mxu0 }
  0xf5   : > { %v554_v17 = vadd.f32 %v549_v55, %v459_v1  ;;  %v636_v18 = vpop.f32.mrb[4].mxu1  ;;  %v2682_v19 = vpop.f32.mrb[7].mxu0 }
  0xf6   : > { %v643_v20 = vadd.f32 %v636_v18, %v553_v11  ;;  %v2687_v21 = vpop.f32.mrb[5].mxu1 }
  0xf7   : > { %v639_v22 = vpop.f32.mrb[6].mxu1 }
  0xf8   : > { %v644_v23 = vadd.f32 %v639_v22, %v554_v17  ;;  %v2688_v24 = vpop.f32.mrb[7].mxu1 }
  0xfa   : > { %v711_v25 = vpop.f32.mrb[8].mxu0 }
  0xfb   : > { %v718_v26 = vadd.f32 %v711_v25, %v643_v20  ;;  %v2693_v27 = vpop.f32.mrb[9].mxu0 }
  0xfc   : > { %v714_v28 = vpop.f32.mrb[10].mxu0 }
  0xfd   : > { %v719_v29 = vadd.f32 %v714_v28, %v644_v23  ;;  %v775_v30 = vpop.f32.mrb[8].mxu1  ;;  %v2694_v31 = vpop.f32.mrb[11].mxu0 }
  0xfe   : > { %v782_v32 = vadd.f32 %v775_v30, %v718_v26  ;;  %v2699_v33 = vpop.f32.mrb[9].mxu1 }
  0xff   : > { %v778_v35 = vpop.f32.mrb[10].mxu1 }
 0x100   : > { %v783_v36 = vadd.f32 %v778_v35, %v719_v29  ;;  %v2700_v37 = vpop.f32.mrb[11].mxu1 }
 0x102   : > { %v839_v38 = vpop.f32.mrb[12].mxu0 }
 0x103   : > { %v846_v39 = vadd.f32 %v839_v38, %v782_v32  ;;  %v2705_v40 = vpop.f32.mrb[13].mxu0 }
 0x104   : > { %v842_v41 = vpop.f32.mrb[14].mxu0 }
 0x105   : > { %v847_v42 = vadd.f32 %v842_v41, %v783_v36  ;;  %v929_v43 = vpop.f32.mrb[12].mxu1  ;;  %v2706_v44 = vpop.f32.mrb[15].mxu0 }
 0x106   : > { %v936_v45 = vadd.f32 %v929_v43, %v846_v39  ;;  %v2711_v46 = vpop.f32.mrb[13].mxu1 }
 0x107   : > { %v932_v47 = vpop.f32.mrb[14].mxu1 }
 0x108   : > { %v937_v48 = vadd.f32 %v932_v47, %v847_v42  ;;  %v2712_v49 = vpop.f32.mrb[15].mxu1 }
 0x10a   : > { %v1019_v50 = vpop.f32.mrb[16].mxu0 }
 0x10b   : > { %v1026_v51 = vadd.f32 %v1019_v50, %v936_v45  ;;  %v2717_v52 = vpop.f32.mrb[17].mxu0 }
 0x10c   : > { %v1022_v53 = vpop.f32.mrb[18].mxu0 }
 0x10d   : > { %v1027_v54 = vadd.f32 %v1022_v53, %v937_v48  ;;  %v1091_v56 = vpop.f32.mrb[16].mxu1  ;;  %v2718_v57 = vpop.f32.mrb[19].mxu0 }
 0x10e   : > { %v1098_v58 = vadd.f32 %v1091_v56, %v1026_v51  ;;  %v2723_v59 = vpop.f32.mrb[17].mxu1 }
 0x10f   : > { %v1094_v60 = vpop.f32.mrb[18].mxu1 }
 0x110   : > { %v1099_v61 = vadd.f32 %v1094_v60, %v1027_v54  ;;  %v2724_v62 = vpop.f32.mrb[19].mxu1 }
 0x112   : > { %v1157_v63 = vpop.f32.mrb[20].mxu0 }
 0x113   : > { %v1164_v0 = vadd.f32 %v1157_v63, %v1098_v58  ;;  %v2729_v2 = vpop.f32.mrb[21].mxu0 }
 0x114   : > { %v1160_v34 = vpop.f32.mrb[22].mxu0 }
 0x115   : > { %v1165_v3 = vadd.f32 %v1160_v34, %v1099_v61  ;;  %v1221_v4 = vpop.f32.mrb[20].mxu1  ;;  %v2730_v5 = vpop.f32.mrb[23].mxu0 }
 0x116   : > { %v1228_v6 = vadd.f32 %v1221_v4, %v1164_v0  ;;  %v2735_v7 = vpop.f32.mrb[21].mxu1 }
 0x117   : > { %v1224_v9 = vpop.f32.mrb[22].mxu1 }
 0x118   : > { %v1229_v10 = vadd.f32 %v1224_v9, %v1165_v3  ;;  %v2736_v12 = vpop.f32.mrb[23].mxu1 }
 0x11a   : > { %v1311_v13 = vpop.f32.mrb[24].mxu0 }
 0x11b   : > { %v1318_v14 = vadd.f32 %v1311_v13, %v1228_v6  ;;  %v2741_v1 = vpop.f32.mrb[25].mxu0 }
 0x11c   : > { %v1314_v8 = vpop.f32.mrb[26].mxu0 }
 0x11d   : > { %v1319_v15 = vadd.f32 %v1314_v8, %v1229_v10  ;;  %v1401_v11 = vpop.f32.mrb[24].mxu1  ;;  %v2742_v16 = vpop.f32.mrb[27].mxu0 }
 0x11e   : > { %v1408_v55 = vadd.f32 %v1401_v11, %v1318_v14  ;;  %v2747_v17 = vpop.f32.mrb[25].mxu1 }
 0x11f   : > { %v1404_v18 = vpop.f32.mrb[26].mxu1 }
 0x120   : > { %v1409_v19 = vadd.f32 %v1404_v18, %v1319_v15  ;;  %v2748_v20 = vpop.f32.mrb[27].mxu1  ;;  %v2602_v18 = vld [vmem:[%s3352_s5] ss:$0 sm:$0xff] }
 0x122   : > { %v1473_v21 = vpop.f32.mrb[28].mxu0 }
 0x123   : > { %v1480_v22 = vadd.f32 %v1473_v21, %v1408_v55  ;;  %v2753_v23 = vpop.f32.mrb[29].mxu0 }
 0x124   : > { %v1476_v24 = vpop.f32.mrb[30].mxu0 }
 0x125   : > { %v1481_v25 = vadd.f32 %v1476_v24, %v1409_v19  ;;  %v1537_v26 = vpop.f32.mrb[28].mxu1  ;;  %v2754_v27 = vpop.f32.mrb[31].mxu0 }
 0x126   : > { %v1544_v28 = vadd.f32 %v1537_v26, %v1480_v22  ;;  %v2759_v29 = vpop.f32.mrb[29].mxu1 }
 0x127   : > { %v1540_v30 = vpop.f32.mrb[30].mxu1 }
 0x128   : > { %v1545_v31 = vadd.f32 %v1540_v30, %v1481_v25  ;;  %v2760_v32 = vpop.f32.mrb[31].mxu1 }
 0x12a   : > { %v1601_v33 = vpop.f32.mrb[32].mxu0 }
 0x12b   : > { %v1608_v35 = vadd.f32 %v1601_v33, %v1544_v28  ;;  %v2765_v36 = vpop.f32.mrb[33].mxu0 }
 0x12c   : > { %v1604_v37 = vpop.f32.mrb[34].mxu0 }
 0x12d   : > { %v1609_v38 = vadd.f32 %v1604_v37, %v1545_v31  ;;  %v1691_v39 = vpop.f32.mrb[32].mxu1  ;;  %v2766_v40 = vpop.f32.mrb[35].mxu0 }
 0x12e   : > { %v1698_v41 = vadd.f32 %v1691_v39, %v1608_v35  ;;  %v2771_v42 = vpop.f32.mrb[33].mxu1 }
 0x12f   : > { %v1694_v43 = vpop.f32.mrb[34].mxu1 }
 0x130   : > { %v1699_v44 = vadd.f32 %v1694_v43, %v1609_v38  ;;  %v2772_v45 = vpop.f32.mrb[35].mxu1 }
 0x132   : > { %v1781_v46 = vpop.f32.mrb[36].mxu0 }
 0x133   : > { %v1788_v47 = vadd.f32 %v1781_v46, %v1698_v41  ;;  %v2777_v48 = vpop.f32.mrb[37].mxu0 }
 0x134   : > { %v1784_v49 = vpop.f32.mrb[38].mxu0 }
 0x135   : > { %v1789_v50 = vadd.f32 %v1784_v49, %v1699_v44  ;;  %v1853_v51 = vpop.f32.mrb[36].mxu1  ;;  %v2778_v52 = vpop.f32.mrb[39].mxu0 }
 0x136   : > { %v1860_v53 = vadd.f32 %v1853_v51, %v1788_v47  ;;  %v2783_v54 = vpop.f32.mrb[37].mxu1 }
 0x137   : > { %v1856_v56 = vpop.f32.mrb[38].mxu1 }
 0x138   : > { %v1861_v57 = vadd.f32 %v1856_v56, %v1789_v50  ;;  %v2784_v58 = vpop.f32.mrb[39].mxu1 }
 0x13a   : > { %v1919_v59 = vpop.f32.mrb[40].mxu0 }
 0x13b   : > { %v1926_v60 = vadd.f32 %v1919_v59, %v1860_v53  ;;  %v2789_v61 = vpop.f32.mrb[41].mxu0 }
 0x13c   : > { %v1922_v62 = vpop.f32.mrb[42].mxu0 }
 0x13d   : > { %v1927_v63 = vadd.f32 %v1922_v62, %v1861_v57  ;;  %v1983_v0 = vpop.f32.mrb[40].mxu1  ;;  %v2790_v2 = vpop.f32.mrb[43].mxu0 }
 0x13e   : > { %v1990_v34 = vadd.f32 %v1983_v0, %v1926_v60  ;;  %v2795_v3 = vpop.f32.mrb[41].mxu1 }
 0x13f   : > { %v1986_v4 = vpop.f32.mrb[42].mxu1 }
 0x140   : > { %v1991_v5 = vadd.f32 %v1986_v4, %v1927_v63  ;;  %v2796_v6 = vpop.f32.mrb[43].mxu1 }
 0x142   : > { %v2073_v7 = vpop.f32.mrb[44].mxu0 }
 0x143   : > { %v2080_v9 = vadd.f32 %v2073_v7, %v1990_v34  ;;  %v2801_v10 = vpop.f32.mrb[45].mxu0 }
 0x144   : > { %v2076_v12 = vpop.f32.mrb[46].mxu0 }
 0x145   : > { %v2081_v13 = vadd.f32 %v2076_v12, %v1991_v5  ;;  %v2163_v14 = vpop.f32.mrb[44].mxu1  ;;  %v2802_v1 = vpop.f32.mrb[47].mxu0 }
 0x146   : > { %v2170_v8 = vadd.f32 %v2163_v14, %v2080_v9  ;;  %v2807_v15 = vpop.f32.mrb[45].mxu1 }
 0x147   : > { %v2166_v11 = vpop.f32.mrb[46].mxu1 }
 0x148   : > { %v2171_v16 = vadd.f32 %v2166_v11, %v2081_v13  ;;  %v2808_v55 = vpop.f32.mrb[47].mxu1 }
 0x14a   : > { %v2235_v17 = vpop.f32.mrb[48].mxu0 }
 0x14b   : > { %v2242_v19 = vadd.f32 %v2235_v17, %v2170_v8  ;;  %v2813_v20 = vpop.f32.mrb[49].mxu0 }
 0x14c   : > { %v2238_v21 = vpop.f32.mrb[50].mxu0 }
 0x14d   : > { %v2251_v22 = vadd.f32 %v2602_v18, %v2242_v19  ;;  %v2243_v23 = vadd.f32 %v2238_v21, %v2171_v16  ;;  %v2814_v24 = vpop.f32.mrb[51].mxu0 }
 0x14f   : > { %v2255_v25 = vmul.f32 0.2, %v2251_v22  ;;  %v2252_v26 = vadd.f32 %v2602_v18, %v2243_v23  ;;  %vm2253_vm8 = vcmp.ge.f32.partialorder %v2251_v22, 0.0 }
 0x151   : > { %vm2254_vm9 = vcmp.ge.f32.partialorder %v2252_v26, 0.0  ;;  %v2256_v27 = vmul.f32 0.2, %v2252_v26  ;;  %v2257_v28 = vsel %vm2253_vm8, %v2251_v22, %v2255_v25 }
 0x153   : > { %v2258_v29 = vsel %vm2254_vm9, %v2252_v26, %v2256_v27 }
 0x154   : > { %v2613_v30 = vpack.c.bf16 %v2258_v29, %v2257_v28 }
 0x156   : > { %2614 = vst [vmem:[%s333_s14] sm:$0xff] %v2613_v30  }
 0x157 PF: > { %s16_s23 = sadd.s32 1, %s2898_s23   ;;  %s3358_s21 = smov %s2894_s22 }
 0x158   : > { %p13_p5 = scmp.ge.s32.totalorder %s16_s23, 4   ;;  %s3359_s22 = smov %s3361_s24 }
 0x15a   :  { %15 = sbr.rel (!%p13_p5) target bundleno = 2 (0x2), region = 117 }

// kernel: _discriminator_forward_impl.9
= control target key start
LH: loop header
LB: loop body
LE: loop exit
PB: predicated region body
PF: predicated region fallthrough
CT: control target
= control target key end

     0   :  { %s969_s21 = smov 0   ;;  %s971_s22 = smov 0   ;;  %s1050_s0 = inlined_call_operand.vmem [shape: bf16[2,3,10,32], index: 0, kind: input, shape index: {}]   ;;  %s1051_s1 = inlined_call_operand.vmem [shape: bf16[2,3,10,32], index: 1, kind: input, shape index: {}]   ;;  %s1052_s2 = inlined_call_operand.vmem [shape: bf16[2,3,10,32], index: 2, kind: input, shape index: {}]   ;;  %s1053_s3 = inlined_call_operand.vmem [shape: bf16[2,3,10,32], index: 3, kind: input, shape index: {}]   ;;  %s1054_s4 = inlined_call_operand.vmem [shape: bf16[25,32,128], index: 4, kind: input, shape index: {}]   ;;  %s1055_s5 = inlined_call_operand.vmem [shape: f32[1,128], index: 5, kind: input, shape index: {}]   ;;  %s1056_s6 = inlined_call_operand.vmem [shape: bf16[2,1,8,128], index: 6, kind: output, shape index: {}]  }
   0x1   :  { %s973_s23 = smov 0  }
   0x2 LB: > { %s28_s24 = sadd.s32 1, %s926_s22  ;;  %p776_p0 = scmp.ge.s32.totalorder %s930_s23, 1  ;;  %s930_s23 = sphi %s973_s23, %s16_s23   ;;  %s926_s22 = sphi %s971_s22, %s1058_s22   ;;  %s922_s21 = sphi %s969_s21, %s1057_s21  }
   0x3   : > { %p30_p1 = scmp.ge.s32.totalorder %s28_s24, 2  ;;  %p256_p2 = scmp.lt.s32.totalorder %s930_s23, 3 }
   0x5   : > { %s1060_s24 = smov (%p30_p1, %s28_s24), 0  ;;  %p257_p3 = pnand %p776_p0, %p256_p2 }
   0x6   : > { %v896_v0 = vld [vmem:[%s1054_s4 + $0xd0] sm:$0xff] (!%p257_p3)   ;;  %v932_v1 = vmov (!%p257_p3), 0.0   ;;  %v897_v2 = vld [vmem:[%s1054_s4 + $0xc0] sm:$0xff] (!%p257_p3)   ;;  %v898_v3 = vld [vmem:[%s1054_s4 + $0xd8] sm:$0xff] (!%p257_p3)   ;;  %vm933_vm0 = vmmov (!%p257_p3), 0   ;;  %p303_p4 = scmp.lt.s32.totalorder (!%p257_p3), %s922_s21, 1 }
   0x7   : > { %260 = sbr.rel (%p257_p3) target bundleno = 257 (0x101), region = 44  ;;  %837 = vmatprep.subr.bf16.mxu0 (!%p257_p3), %v932_v1  ;;  %845 = vmatprep.subr.bf16.mxu1 (!%p257_p3), %v932_v1  ;;  %v899_v4 = vld [vmem:[%s1054_s4 + $0xc8] sm:$0xff] (!%p257_p3)   ;;  %vm375_vm1 = vcmask (!%p257_p3), 261120   ;;  %v902_v15 = vld [vmem:[%s1054_s4 + $0x110] sm:$0xff] (!%p257_p3)   ;;  %v903_v18 = vld [vmem:[%s1054_s4 + $0x120] sm:$0xff] (!%p257_p3)  }
   0x8   : > { %838 = vmatpush3.bf16.msra.mxu0 (!%p257_p3), %v896_v0  ;;  %841 = vmatprep.mubr.msk.bf16.mxu0 (!%p257_p3), %vm933_vm0, %v932_v1  ;;  %v904_v23 = vld [vmem:[%s1054_s4 + $0x118] sm:$0xff] (!%p257_p3)   ;;  %v905_v26 = vld [vmem:[%s1054_s4 + $0x128] sm:$0xff] (!%p257_p3)   ;;  %v822_v42 = vld [vmem:[%s1055_s5] ss:$0 sm:$0xff] (!%p257_p3) }
   0x9   : > { %846 = vmatpush3.bf16.msra.mxu1 (!%p257_p3), %v897_v2  ;;  %839 = vmatprep.subr.bf16.mxu0 (!%p257_p3), %v932_v1 }
   0xa   : > { %847 = vmatprep.subr.bf16.mxu1 (!%p257_p3), %v932_v1  ;;  %849 = vmatprep.mubr.msk.bf16.mxu1 (!%p257_p3), %vm933_vm0, %v932_v1 }
   0xc   : > { %840 = vmatpush3.bf16.msra.mxu0 (!%p257_p3), %v898_v3 }
   0xd   : > { %848 = vmatpush3.bf16.msra.mxu1 (!%p257_p3), %v899_v4  ;;  %853 = vmatprep.subr.bf16.mxu0 (!%p257_p3), %v932_v1 }
   0xe   : > { %s1062_s21 = smov (!%p303_p4, %s922_s21), 1  ;;  %861 = vmatprep.subr.bf16.mxu1 %v932_v1 }
   0xf   : > { %s869_s9 = smul.u32 24, %s1062_s21 }
  0x11   : > { %s312_s12 = scalar_lea.vmem %s1051_s1, %s869_s9  ;;  %s307_s15 = scalar_lea.vmem %s1050_s0, %s869_s9 }
  0x12   : > { %v900_v5 = vld [vmem:[%s312_s12 + $0x8] sm:$0x1f]   ;;  %s317_s18 = scalar_lea.vmem %s1052_s2, %s869_s9  ;;  %s322_s25 = scalar_lea.vmem %s1053_s3, %s869_s9 }
  0x13   : > { %v901_v6 = vld [vmem:[%s307_s15 + $0x8] sm:$0x1f]   ;;  %v357_v7 = vshrl.u32 %v900_v5, 16  ;;  %v359_v8 = vshll.u32 %v900_v5, 16  ;;  %s781_s12 = sshll.u32 %s1062_s21, 2 }
  0x14   : > { %v425_v9 = vshrl.u32 %v901_v6, 16  ;;  %v427_v10 = vshll.u32 %v901_v6, 16  ;;  %v906_v11 = vld [vmem:[%s317_s18 + $0x8] sm:$0x1f]   ;;  %s329_s15 = scalar_lea.vmem %s1056_s6, %s781_s12 }
  0x15   : > { %v361_v12 = vrot.slane %v359_v8, 1  ;;  %v907_v13 = vld [vmem:[%s322_s25 + $0x8] sm:$0x1f]   ;;  %v503_v16 = vshll.u32 %v906_v11, 16  ;;  %v501_v21 = vshrl.u32 %v906_v11, 16 }
  0x16   : > { %v429_v14 = vrot.slane %v427_v10, 1  ;;  %v580_v19 = vshll.u32 %v907_v13, 16  ;;  %v578_v24 = vshrl.u32 %v907_v13, 16 }
  0x17   : > { %v362_v17 = vor.u32 %v361_v12, %v357_v7  ;;  %v505_v22 = vrot.slane %v503_v16, 1 }
  0x18   : > { %v430_v20 = vor.u32 %v429_v14, %v425_v9  ;;  %v582_v25 = vrot.slane %v580_v19, 1 }
  0x19   : > { %842 = vmatmul.mubr.msk.bf16.vlgmr.msra.gmra.mrb[0].mxu0 %vm375_vm1, %v362_v17  ;;  %v506_v27 = vor.u32 %v505_v22, %v501_v21 }
  0x1a   : > { %850 = vmatmul.mubr.msk.bf16.vlgmr.msra.gmra.mrb[0].mxu1 %vm375_vm1, %v430_v20  ;;  %854 = vmatpush3.bf16.msra.mxu0 %v902_v15  ;;  %v583_v28 = vor.u32 %v582_v25, %v578_v24 }
  0x1b   : > { %862 = vmatpush3.bf16.msra.mxu1 %v903_v18  ;;  %855 = vmatprep.subr.bf16.mxu0 %v932_v1 }
  0x1c   : > { %863 = vmatprep.subr.bf16.mxu1 %v932_v1  ;;  %857 = vmatprep.mubr.msk.bf16.mxu0 %vm933_vm0, %v932_v1 }
  0x1d   : > { %865 = vmatprep.mubr.msk.bf16.mxu1 %vm933_vm0, %v932_v1 }
  0x1e   : > { %856 = vmatpush3.bf16.msra.mxu0 %v904_v23 }
  0x1f   : > { %864 = vmatpush3.bf16.msra.mxu1 %v905_v26 }
  0x21   : > { %858 = vmatmul.mubr.msk.bf16.vlgmr.msra.gmra.mrb[4].mxu0 %vm375_vm1, %v506_v27 }
  0x22   : > { %866 = vmatmul.mubr.msk.bf16.vlgmr.msra.gmra.mrb[4].mxu1 %vm375_vm1, %v583_v28 }
  0xec   : > { %v413_v29 = vpop.f32.mrb[0].mxu0 }
  0xed   : > { %v480_v30 = vpop.f32.mrb[0].mxu1  ;;  %v843_v31 = vpop.f32.mrb[1].mxu0 }
  0xee   : > { %v481_v32 = vadd.f32 %v480_v30, %v413_v29  ;;  %v851_v33 = vpop.f32.mrb[1].mxu1  ;;  %v416_v34 = vpop.f32.mrb[2].mxu0 }
  0xef   : > { %v483_v35 = vpop.f32.mrb[2].mxu1  ;;  %v844_v36 = vpop.f32.mrb[3].mxu0 }
  0xf0   : > { %v852_v37 = vpop.f32.mrb[3].mxu1 }
  0xf4   : > { %v556_v38 = vpop.f32.mrb[4].mxu0 }
  0xf5   : > { %v562_v39 = vadd.f32 %v556_v38, %v481_v32  ;;  %v633_v40 = vpop.f32.mrb[4].mxu1  ;;  %v859_v41 = vpop.f32.mrb[5].mxu0 }
  0xf6   : > { %v867_v43 = vpop.f32.mrb[5].mxu1  ;;  %v559_v44 = vpop.f32.mrb[6].mxu0 }
  0xf7   : > { %v639_v45 = vadd.f32 %v633_v40, %v562_v39  ;;  %v636_v46 = vpop.f32.mrb[6].mxu1  ;;  %v860_v47 = vpop.f32.mrb[7].mxu0 }
  0xf8   : > { %v868_v48 = vpop.f32.mrb[7].mxu1 }
  0xf9   : > { %v647_v49 = vadd.f32 %v822_v42, %v639_v45 }
  0xfb   : > { %vm648_vm2 = vcmp.ge.f32.partialorder %v647_v49, 0.0  ;;  %v649_v50 = vmul.f32 0.2, %v647_v49 }
  0xfd   : > { %v650_v51 = vsel %vm648_vm2, %v647_v49, %v649_v50 }
  0xfe   : > { %v651_v52 = vpack.c.bf16 %v650_v51, %v650_v51 }
 0x100   : > { %652 = vst [vmem:[%s329_s15] sm:$0xf] %v651_v52 }
 0x101 PF: > { %s16_s23 = sadd.s32 1, %s930_s23   ;;  %s1057_s21 = smov %s926_s22 }
 0x102   : > { %p13_p5 = scmp.ge.s32.totalorder %s16_s23, 4   ;;  %s1058_s22 = smov %s1060_s24 }
 0x104   :  { %15 = sbr.rel (!%p13_p5) target bundleno = 2 (0x2), region = 91 }

// kernel: _discriminator_forward_impl.11
= control target key start
LH: loop header
LB: loop body
LE: loop exit
PB: predicated region body
PF: predicated region fallthrough
CT: control target
= control target key end

     0   :  { %s653_s21 = smov 0   ;;  %s655_s22 = smov 0   ;;  %s695_s0 = inlined_call_operand.vmem [shape: bf16[2,3,10,32], index: 0, kind: input, shape index: {}]   ;;  %s696_s1 = inlined_call_operand.vmem [shape: bf16[2,3,10,32], index: 1, kind: input, shape index: {}]   ;;  %s697_s2 = inlined_call_operand.vmem [shape: bf16[2,3,10,32], index: 2, kind: input, shape index: {}]   ;;  %s698_s3 = inlined_call_operand.vmem [shape: bf16[2,3,10,32], index: 3, kind: input, shape index: {}]   ;;  %s699_s4 = inlined_call_operand.vmem [shape: bf16[25,32,128], index: 4, kind: input, shape index: {}]   ;;  %s700_s5 = inlined_call_operand.vmem [shape: f32[1,128], index: 5, kind: input, shape index: {}]   ;;  %s701_s6 = inlined_call_operand.vmem [shape: f32[2,1,8,128], index: 6, kind: output, shape index: {}]  }
   0x1   :  { %s657_s1 = smov 0  }
   0x2 LB: > { %s28_s2 = sadd.s32 1, %s610_s22  ;;  %p535_p0 = scmp.ge.s32.totalorder %s614_s1, 1  ;;  %s614_s1 = sphi %s657_s1, %s16_s1   ;;  %s610_s22 = sphi %s655_s22, %s703_s22   ;;  %s606_s21 = sphi %s653_s21, %s702_s21  }
   0x3   : > { %p30_p1 = scmp.ge.s32.totalorder %s28_s2, 2  ;;  %p256_p2 = scmp.lt.s32.totalorder %s614_s1, 3 }
   0x5   : > { %s705_s2 = smov (%p30_p1, %s28_s2), 0  ;;  %p257_p3 = pnand %p535_p0, %p256_p2 }
   0x6   : > { %v589_v0 = vld [vmem:[%s699_s4 + $0xc0] sm:$0xff] (!%p257_p3)   ;;  %v616_v1 = vmov (!%p257_p3), 0.0   ;;  %v590_v2 = vld [vmem:[%s699_s4 + $0xc8] sm:$0xff] (!%p257_p3)   ;;  %vm617_vm0 = vmmov (!%p257_p3), 0   ;;  %p303_p4 = scmp.lt.s32.totalorder (!%p257_p3), %s606_s21, 1  ;;  %vm373_vm1 = vcmask (!%p257_p3), 261120  }
   0x7   : > { %260 = sbr.rel (%p257_p3) target bundleno = 243 (0xf3), region = 44  ;;  %554 = vmatprep.subr.bf16.mxu0 (!%p257_p3), %v616_v1  ;;  %558 = vmatprep.mubr.msk.bf16.mxu0 (!%p257_p3), %vm617_vm0, %v616_v1  ;;  %v544_v8 = vld [vmem:[%s700_s5] ss:$0 sm:$0xff] (!%p257_p3) }
   0x8   : > { %555 = vmatpush3.bf16.msra.mxu0 (!%p257_p3), %v589_v0 }
   0x9   : > { %556 = vmatprep.subr.bf16.mxu0 (!%p257_p3), %v616_v1 }
   0xc   : > { %557 = vmatpush3.bf16.msra.mxu0 (!%p257_p3), %v590_v2 }
   0xe   : > { %s707_s21 = smov (!%p303_p4, %s606_s21), 1 }
   0xf   : > { %s562_s26 = smul.u32 24, %s707_s21  ;;  %s537_s8 = sshll.u32 %s707_s21, 3 }
  0x10   : > { %s329_s11 = scalar_lea.vmem %s701_s6, %s537_s8 }
  0x11   : > { %s307_s29 = scalar_lea.vmem %s695_s0, %s562_s26 }
  0x12   : > { %v591_v3 = vld [vmem:[%s307_s29 + $0x8] sm:$0x1f]  }
  0x13   : > { %v355_v4 = vshrl.u32 %v591_v3, 16  ;;  %v357_v5 = vshll.u32 %v591_v3, 16 }
  0x15   : > { %v359_v6 = vrot.slane %v357_v5, 1 }
  0x17   : > { %v360_v7 = vor.u32 %v359_v6, %v355_v4 }
  0x19   : > { %559 = vmatmul.mubr.msk.bf16.vlgmr.msra.gmra.mrb[0].mxu0 %vm373_vm1, %v360_v7 }
  0xec   : > { %v411_v9 = vpop.f32.mrb[0].mxu0 }
  0xed   : > { %v412_v10 = vadd.f32 %v544_v8, %v411_v9  ;;  %v560_v11 = vpop.f32.mrb[1].mxu0 }
  0xee   : > { %v414_v12 = vpop.f32.mrb[2].mxu0 }
  0xef   : > { %vm417_vm2 = vcmp.ge.f32.partialorder %v412_v10, 0.0  ;;  %v418_v13 = vmul.f32 0.2, %v412_v10  ;;  %v561_v14 = vpop.f32.mrb[3].mxu0 }
  0xf1   : > { %v419_v15 = vsel %vm417_vm2, %v412_v10, %v418_v13 }
  0xf2   : > { %420 = vst [vmem:[%s329_s11] sm:$0xff] %v419_v15 }
  0xf3 PF: > { %s16_s1 = sadd.s32 1, %s614_s1   ;;  %s702_s21 = smov %s610_s22 }
  0xf4   : > { %p13_p5 = scmp.ge.s32.totalorder %s16_s1, 4   ;;  %s703_s22 = smov %s705_s2 }
  0xf6   :  { %15 = sbr.rel (!%p13_p5) target bundleno = 2 (0x2), region = 85 }

// kernel: _discriminator_forward_impl.10
= control target key start
LH: loop header
LB: loop body
LE: loop exit
PB: predicated region body
PF: predicated region fallthrough
CT: control target
= control target key end

     0   :  { %s654_s21 = smov 0   ;;  %s656_s22 = smov 0   ;;  %s696_s0 = inlined_call_operand.vmem [shape: bf16[2,3,10,32], index: 0, kind: input, shape index: {}]   ;;  %s697_s1 = inlined_call_operand.vmem [shape: bf16[2,3,10,32], index: 1, kind: input, shape index: {}]   ;;  %s698_s2 = inlined_call_operand.vmem [shape: bf16[2,3,10,32], index: 2, kind: input, shape index: {}]   ;;  %s699_s3 = inlined_call_operand.vmem [shape: bf16[2,3,10,32], index: 3, kind: input, shape index: {}]   ;;  %s700_s4 = inlined_call_operand.vmem [shape: bf16[25,32,128], index: 4, kind: input, shape index: {}]   ;;  %s701_s5 = inlined_call_operand.vmem [shape: f32[1,128], index: 5, kind: input, shape index: {}]   ;;  %s702_s6 = inlined_call_operand.vmem [shape: bf16[2,1,8,128], index: 6, kind: output, shape index: {}]  }
   0x1   :  { %s658_s1 = smov 0  }
   0x2 LB: > { %s28_s2 = sadd.s32 1, %s611_s22  ;;  %p536_p0 = scmp.ge.s32.totalorder %s615_s1, 1  ;;  %s615_s1 = sphi %s658_s1, %s16_s1   ;;  %s611_s22 = sphi %s656_s22, %s704_s22   ;;  %s607_s21 = sphi %s654_s21, %s703_s21  }
   0x3   : > { %p30_p1 = scmp.ge.s32.totalorder %s28_s2, 2  ;;  %p256_p2 = scmp.lt.s32.totalorder %s615_s1, 3 }
   0x5   : > { %s706_s2 = smov (%p30_p1, %s28_s2), 0  ;;  %p257_p3 = pnand %p536_p0, %p256_p2 }
   0x6   : > { %v590_v0 = vld [vmem:[%s700_s4 + $0xc0] sm:$0xff] (!%p257_p3)   ;;  %v617_v1 = vmov (!%p257_p3), 0.0   ;;  %v591_v2 = vld [vmem:[%s700_s4 + $0xc8] sm:$0xff] (!%p257_p3)   ;;  %vm618_vm0 = vmmov (!%p257_p3), 0   ;;  %p303_p4 = scmp.lt.s32.totalorder (!%p257_p3), %s607_s21, 1  ;;  %vm373_vm1 = vcmask (!%p257_p3), 261120  }
   0x7   : > { %260 = sbr.rel (%p257_p3) target bundleno = 245 (0xf5), region = 44  ;;  %555 = vmatprep.subr.bf16.mxu0 (!%p257_p3), %v617_v1  ;;  %559 = vmatprep.mubr.msk.bf16.mxu0 (!%p257_p3), %vm618_vm0, %v617_v1  ;;  %v545_v8 = vld [vmem:[%s701_s5] ss:$0 sm:$0xff] (!%p257_p3) }
   0x8   : > { %556 = vmatpush3.bf16.msra.mxu0 (!%p257_p3), %v590_v0 }
   0x9   : > { %557 = vmatprep.subr.bf16.mxu0 (!%p257_p3), %v617_v1 }
   0xc   : > { %558 = vmatpush3.bf16.msra.mxu0 (!%p257_p3), %v591_v2 }
   0xe   : > { %s708_s21 = smov (!%p303_p4, %s607_s21), 1 }
   0xf   : > { %s563_s26 = smul.u32 24, %s708_s21  ;;  %s538_s8 = sshll.u32 %s708_s21, 2 }
  0x10   : > { %s329_s11 = scalar_lea.vmem %s702_s6, %s538_s8 }
  0x11   : > { %s307_s29 = scalar_lea.vmem %s696_s0, %s563_s26 }
  0x12   : > { %v592_v3 = vld [vmem:[%s307_s29 + $0x8] sm:$0x1f]  }
  0x13   : > { %v355_v4 = vshrl.u32 %v592_v3, 16  ;;  %v357_v5 = vshll.u32 %v592_v3, 16 }
  0x15   : > { %v359_v6 = vrot.slane %v357_v5, 1 }
  0x17   : > { %v360_v7 = vor.u32 %v359_v6, %v355_v4 }
  0x19   : > { %560 = vmatmul.mubr.msk.bf16.vlgmr.msra.gmra.mrb[0].mxu0 %vm373_vm1, %v360_v7 }
  0xec   : > { %v411_v9 = vpop.f32.mrb[0].mxu0 }
  0xed   : > { %v412_v10 = vadd.f32 %v545_v8, %v411_v9  ;;  %v561_v11 = vpop.f32.mrb[1].mxu0 }
  0xee   : > { %v414_v12 = vpop.f32.mrb[2].mxu0 }
  0xef   : > { %vm417_vm2 = vcmp.ge.f32.partialorder %v412_v10, 0.0  ;;  %v418_v13 = vmul.f32 0.2, %v412_v10  ;;  %v562_v14 = vpop.f32.mrb[3].mxu0 }
  0xf1   : > { %v419_v15 = vsel %vm417_vm2, %v412_v10, %v418_v13 }
  0xf2   : > { %v420_v16 = vpack.c.bf16 %v419_v15, %v419_v15 }
  0xf4   : > { %421 = vst [vmem:[%s329_s11] sm:$0xf] %v420_v16 }
  0xf5 PF: > { %s16_s1 = sadd.s32 1, %s615_s1   ;;  %s703_s21 = smov %s611_s22 }
  0xf6   : > { %p13_p5 = scmp.ge.s32.totalorder %s16_s1, 4   ;;  %s704_s22 = smov %s706_s2 }
  0xf8   :  { %15 = sbr.rel (!%p13_p5) target bundleno = 2 (0x2), region = 85 }

</bundles_post_ra>
